<compile_context>
chip_gen: v7x
topology: tpu7x:2x2x1
jax: 0.10.0
libtpu: 0.0.40
codegen_flags: <defaults>
</compile_context>

<pallas_src>
import functools

import jax
import jax.numpy as jnp
from jax.experimental import pallas as pl
from jax.experimental.pallas import tpu as pltpu

LRELU_SLOPE = 0.2
BN_EPS = 1e-5

_VMEM_SPEC = pl.BlockSpec(memory_space=pltpu.MemorySpace.VMEM)


def _round_up(x, m):
    return (x + m - 1) // m * m


# ------------------------------ Pallas kernels ------------------------------ #

def _mm_bias_lrelu_kernel(p_ref, w_ref, b_ref, o_ref):
    """o = lrelu(p @ w + b).  p:(tm,K) bf16, w:(K,N) bf16, b:(1,N) f32, o bf16."""
    acc = jnp.dot(p_ref[...], w_ref[...], preferred_element_type=jnp.float32)
    acc = acc + b_ref[...]
    acc = jnp.where(acc > 0, acc, LRELU_SLOPE * acc)
    o_ref[...] = acc.astype(o_ref.dtype)


def _mm_bn_lrelu_kernel(p_ref, w_ref, b_ref, g_ref, beta_ref, o_ref):
    """Fused conv-matmul + train-mode BatchNorm (biased var, eps=1e-5) + LeakyReLU.

    Whole M (= B*OH*OW) lives in one block so per-channel batch stats are exact
    and the activation never round-trips HBM between conv, stats and affine.
    """
    acc = jnp.dot(p_ref[...], w_ref[...], preferred_element_type=jnp.float32)
    acc = acc + b_ref[...]
    m = acc.shape[0]
    mean = jnp.sum(acc, axis=0, keepdims=True) * (1.0 / m)
    cent = acc - mean
    var = jnp.sum(cent * cent, axis=0, keepdims=True) * (1.0 / m)
    inv = jax.lax.rsqrt(var + BN_EPS)
    y = cent * (g_ref[...] * inv) + beta_ref[...]
    y = jnp.where(y > 0, y, LRELU_SLOPE * y)
    o_ref[...] = y.astype(o_ref.dtype)


def _head_kernel(x_ref, w_ref, b_ref, o_ref, *, n_out):
    """Final Conv(512->out,4,1,0)+Sigmoid as VPU multiply + lane reduce.

    Avoids building/DMA-ing a 99%-zero (K,128) MXU weight for out_dim=1.
    """
    x = x_ref[...].astype(jnp.float32)            # (M, K)
    w = w_ref[...].astype(jnp.float32)            # (n_out, K)
    cols = [jnp.sum(x * w[n:n + 1, :], axis=-1, keepdims=True) for n in range(n_out)]
    s = cols[0] if n_out == 1 else jnp.concatenate(cols, axis=-1)
    s = s + b_ref[...]
    # sigmoid(x) = 0.5*tanh(0.5*x) + 0.5  (numerically stable, uses EUP tanh)
    o_ref[...] = 0.5 * jnp.tanh(0.5 * s) + 0.5


# ----------------------------- kernel wrappers ------------------------------ #

def _mm_bias_lrelu(p, w, b):
    """M-tiled, parallel-grid matmul with fused bias + LeakyReLU."""
    M, K = p.shape
    N = w.shape[1]
    tm = 256 if M % 256 == 0 else M          # block = full array if M not tileable
    return pl.pallas_call(
        _mm_bias_lrelu_kernel,
        out_shape=jax.ShapeDtypeStruct((M, N), jnp.bfloat16),
        grid_spec=pltpu.PrefetchScalarGridSpec(
            num_scalar_prefetch=0,
            grid=(M // tm,),
            in_specs=[pl.BlockSpec((tm, K), lambda i: (i, 0)),
                      pl.BlockSpec((K, N), lambda i: (0, 0)),
                      pl.BlockSpec((1, N), lambda i: (0, 0))],
            out_specs=pl.BlockSpec((tm, N), lambda i: (i, 0)),
        ),
        compiler_params=pltpu.CompilerParams(dimension_semantics=("parallel",)),
    )(p, w, b)


def _mm_bn_lrelu(p, w, b, g, beta):
    M, K = p.shape
    N = w.shape[1]
    # TODO(synk): at larger batch/resolution, tile M with an accumulated
    # sum/sum-of-squares pass instead of whole-array VMEM residency (v7x: 64 MiB).
    return pl.pallas_call(
        _mm_bn_lrelu_kernel,
        out_shape=jax.ShapeDtypeStruct((M, N), jnp.bfloat16),
        in_specs=[_VMEM_SPEC] * 5,
        out_specs=_VMEM_SPEC,
    )(p, w, b, g, beta)


def _head(x, w, b):
    M, _ = x.shape
    n_out = w.shape[0]
    return pl.pallas_call(
        functools.partial(_head_kernel, n_out=n_out),
        out_shape=jax.ShapeDtypeStruct((M, n_out), jnp.float32),
        in_specs=[_VMEM_SPEC] * 3,
        out_specs=_VMEM_SPEC,
    )(x, w, b)


# ------------------------------- conv helpers ------------------------------- #

def _im2col_nhwc(x, kh, kw, stride, pad):
    """NHWC im2col: (N,H,W,C) -> (N*OH*OW, kh*kw*C), (kh,kw,C)-major."""
    N, H, W, C = x.shape
    if pad:
        x = jnp.pad(x, ((0, 0), (pad, pad), (pad, pad), (0, 0)))
    OH = (H + 2 * pad - kh) // stride + 1
    OW = (W + 2 * pad - kw) // stride + 1
    cols = []
    for i in range(kh):
        for j in range(kw):
            cols.append(x[:, i:i + stride * OH:stride, j:j + stride * OW:stride, :])
    patches = jnp.concatenate(cols, axis=-1)              # (N, OH, OW, kh*kw*C)
    # TODO(synk): fold im2col into the Pallas kernel (overlapping-window DMA via
    # index_map / make_async_copy) to avoid materializing the ~16x patch array.
    return patches.reshape(N * OH * OW, kh * kw * C), OH, OW


# ----------------------- one-time parameter packing -------------------------- #

def prepare_params(params, input_dim, label_dim):
    """Pack weights ONCE: im2col-matmul layout, bf16, block-diagonal fused
    input-stage weight (data||label branches), padded input channels."""
    cin_tot = input_dim + label_dim
    cin_pad = _round_up(cin_tot, 8)      # K = 16*cin_pad -> multiple of 128

    def to_mat(w):                       # (Cout,Cin,KH,KW) -> (KH*KW*Cin, Cout)
        cout, cin, kh, kw = w.shape
        return jnp.transpose(w, (2, 3, 1, 0)).reshape(kh * kw * cin, cout)

    # Block-diagonal weight: out ch 0..63 read data channels, 64..127 read labels.
    w_cat = jnp.zeros((128, cin_pad, 4, 4), jnp.float32)
    w_cat = w_cat.at[:64, :input_dim].set(params["w_data"])
    w_cat = w_cat.at[64:, input_dim:cin_tot].set(params["w_lab"])
    b_in = jnp.concatenate([params["b_data"], params["b_lab"]])

    def row(v):
        return v.reshape(1, -1).astype(jnp.float32)

    return {
        "w_in": to_mat(w_cat).astype(jnp.bfloat16), "b_in": row(b_in),
        "w1": to_mat(params["w1"]).astype(jnp.bfloat16), "b1": row(params["b1"]),
        "g1": row(params["g1"]), "beta1": row(params["beta1"]),
        "w2": to_mat(params["w2"]).astype(jnp.bfloat16), "b2": row(params["b2"]),
        "g2": row(params["g2"]), "beta2": row(params["beta2"]),
        "w_out": to_mat(params["w_out"]).T.astype(jnp.bfloat16),   # (out_dim, K)
        "b_out": row(params["b_out"]),
    }


# --------------------------- discriminator forward --------------------------- #

def discriminator_forward(prep, data, labels):
    """data: (B,input_dim,H,W), labels: (B,label_dim,H,W) -> (B,output_dim,1,1)."""
    B = data.shape[0]
    cin_pad = prep["w_in"].shape[0] // 16

    # NCHW -> NHWC once at the module boundary; pad channels once so K%128==0.
    x = jnp.concatenate([data, labels], axis=1)
    x = jnp.transpose(x, (0, 2, 3, 1)).astype(jnp.bfloat16)
    x = jnp.pad(x, ((0, 0), (0, 0), (0, 0), (0, cin_pad - x.shape[-1])))

    # Fused input stage: data-conv || label-conv as one block-diagonal matmul;
    # output is already the channel concat (lane-dense 128) + LeakyReLU.
    patches, oh, ow = _im2col_nhwc(x, 4, 4, 2, 1)
    h = _mm_bias_lrelu(patches, prep["w_in"], prep["b_in"])
    x = h.reshape(B, oh, ow, -1)

    # Two Conv(4,2,1)+BatchNorm(batch stats)+LeakyReLU blocks, fully fused.
    for i in (1, 2):
        patches, oh, ow = _im2col_nhwc(x, 4, 4, 2, 1)
        h = _mm_bn_lrelu(patches, prep[f"w{i}"], prep[f"b{i}"],
                         prep[f"g{i}"], prep[f"beta{i}"])
        x = h.reshape(B, oh, ow, -1)

    # Final Conv(4,1,0) + Sigmoid head (multiply + lane-reduce, f32 out).
    patches, oh, ow = _im2col_nhwc(x, 4, 4, 1, 0)
    out = _head(patches, prep["w_out"], prep["b_out"])
    return out.reshape(B, oh, ow, -1).transpose(0, 3, 1, 2)   # NCHW (B,out,1,1)


# ------------------------------ parameter init ------------------------------ #

def init_params(key, input_dim, label_dim, output_dim):
    """DCGAN-style init: conv weights ~ N(0, 0.02), biases 0, BN gamma=1, beta=0."""
    ks = jax.random.split(key, 5)

    def conv_w(k, cout, cin):
        return (0.02 * jax.random.normal(k, (cout, cin, 4, 4))).astype(jnp.float32)

    return {
        "w_data": conv_w(ks[0], 64, input_dim), "b_data": jnp.zeros((64,), jnp.float32),
        "w_lab":  conv_w(ks[1], 64, label_dim), "b_lab":  jnp.zeros((64,), jnp.float32),
        "w1": conv_w(ks[2], 256, 128), "b1": jnp.zeros((256,), jnp.float32),
        "g1": jnp.ones((256,), jnp.float32), "beta1": jnp.zeros((256,), jnp.float32),
        "w2": conv_w(ks[3], 512, 256), "b2": jnp.zeros((512,), jnp.float32),
        "g2": jnp.ones((512,), jnp.float32), "beta2": jnp.zeros((512,), jnp.float32),
        "w_out": conv_w(ks[4], output_dim, 512), "b_out": jnp.zeros((output_dim,), jnp.float32),
    }


# ----------------------------------- main ----------------------------------- #

if __name__ == "__main__":
    B, INPUT_DIM, LABEL_DIM, OUTPUT_DIM, IMG = 2, 1, 10, 1, 32  # MNIST branch

    key = jax.random.PRNGKey(0)
    k_params, k_data, k_lab = jax.random.split(key, 3)

    raw = init_params(k_params, INPUT_DIM, LABEL_DIM, OUTPUT_DIM)
    prep = prepare_params(raw, INPUT_DIM, LABEL_DIM)   # one-time weight packing

    data = jax.random.normal(k_data, (B, INPUT_DIM, IMG, IMG), dtype=jnp.float32)
    # Labels as one-hot maps broadcast over spatial dims (standard cGAN conditioning).
    lab_idx = jax.random.randint(k_lab, (B,), 0, LABEL_DIM)
    labels = jnp.broadcast_to(
        jax.nn.one_hot(lab_idx, LABEL_DIM, dtype=jnp.float32)[:, :, None, None],
        (B, LABEL_DIM, IMG, IMG),
    )

    fwd = jax.jit(discriminator_forward)
    out = jax.block_until_ready(fwd(prep, data, labels))

    assert out.shape == (B, OUTPUT_DIM, 1, 1), out.shape
    assert bool(jnp.all(jnp.isfinite(out)))
    assert bool(jnp.all((out >= 0.0) & (out <= 1.0)))  # sigmoid output
    print("KERNEL_OK")
</pallas_src>

<mosaic_0001>
module attributes {stable_mosaic.version = 11 : i64} {
  func.func @_mm_bias_lrelu_kernel(%arg0: i32, %arg1: memref<256x256xbf16, #tpu.memory_space<vmem>>, %arg2: memref<256x128xbf16, #tpu.memory_space<vmem>>, %arg3: memref<1x128xf32, #tpu.memory_space<vmem>>, %arg4: memref<256x128xbf16, #tpu.memory_space<vmem>>) attributes {dimension_semantics = [#tpu.dimension_semantics<parallel>], iteration_bounds = array<i64: 2>, scalar_prefetch = 0 : i64, scratch_operands = 0 : i64, tpu.core_type = #tpu.core_type<tc>, window_params = [{transform_indices = @transform_0, window_bounds = array<i64: 256, 256>}, {pipeline_mode = #tpu.pipeline_mode<synchronous>, transform_indices = @transform_1, window_bounds = array<i64: 256, 128>}, {pipeline_mode = #tpu.pipeline_mode<synchronous>, transform_indices = @transform_2, window_bounds = array<i64: 1, 128>}, {transform_indices = @transform_3, window_bounds = array<i64: 256, 128>}]} {
    %c0 = arith.constant 0 : index
    %c0_0 = arith.constant 0 : index
    %0 = vector.load %arg1[%c0, %c0_0] : memref<256x256xbf16, #tpu.memory_space<vmem>>, vector<256x256xbf16>
    %c0_1 = arith.constant 0 : index
    %c0_2 = arith.constant 0 : index
    %1 = vector.load %arg2[%c0_1, %c0_2] : memref<256x128xbf16, #tpu.memory_space<vmem>>, vector<256x128xbf16>
    %cst = arith.constant dense<0.000000e+00> : vector<256x128xf32>
    %2 = tpu.matmul %0, %1, %cst {dimension_numbers = #tpu.dot_dimension_numbers<[1], [0], [0], [1], [0, 0, 1, 1], [], []>} : vector<256x256xbf16>, vector<256x128xbf16>, vector<256x128xf32> -> vector<256x128xf32>
    %c0_3 = arith.constant 0 : index
    %c0_4 = arith.constant 0 : index
    %3 = vector.load %arg3[%c0_3, %c0_4] : memref<1x128xf32, #tpu.memory_space<vmem>>, vector<1x128xf32>
    %4 = vector.broadcast %3 : vector<1x128xf32> to vector<256x128xf32>
    %5 = arith.addf %2, %4 : vector<256x128xf32>
    %cst_5 = arith.constant 0.000000e+00 : f32
    %6 = vector.broadcast %cst_5 : f32 to vector<256x128xf32>
    %7 = arith.cmpf ogt, %5, %6 : vector<256x128xf32>
    %cst_6 = arith.constant 2.000000e-01 : f32
    %8 = vector.broadcast %cst_6 : f32 to vector<256x128xf32>
    %9 = arith.mulf %8, %5 : vector<256x128xf32>
    %10 = arith.select %7, %5, %9 : vector<256x128xi1>, vector<256x128xf32>
    %11 = arith.truncf %10 : vector<256x128xf32> to vector<256x128xbf16>
    %c0_7 = arith.constant 0 : index
    %c0_8 = arith.constant 0 : index
    %12 = vector.load %arg4[%c0_7, %c0_8] : memref<256x128xbf16, #tpu.memory_space<vmem>>, vector<256x128xbf16>
    tpu.vector_store %arg4[%c0_7, %c0_8], %11 {strides = array<i32>} : memref<256x128xbf16, #tpu.memory_space<vmem>>, vector<256x128xbf16>,
    return
  }
  func.func @transform_0(%arg0: i32) -> (i32, i32) {
    %c0_i32 = arith.constant 0 : i32
    %c0_i32_0 = arith.constant 0 : i32
    return %arg0, %c0_i32 : i32, i32
  }
  func.func @transform_1(%arg0: i32) -> (i32, i32) {
    %c0_i32 = arith.constant 0 : i32
    %c0_i32_0 = arith.constant 0 : i32
    %c0_i32_1 = arith.constant 0 : i32
    return %c0_i32, %c0_i32_0 : i32, i32
  }
  func.func @transform_2(%arg0: i32) -> (i32, i32) {
    %c0_i32 = arith.constant 0 : i32
    %c0_i32_0 = arith.constant 0 : i32
    %c0_i32_1 = arith.constant 0 : i32
    return %c0_i32, %c0_i32_0 : i32, i32
  }
  func.func @transform_3(%arg0: i32) -> (i32, i32) {
    %c0_i32 = arith.constant 0 : i32
    %c0_i32_0 = arith.constant 0 : i32
    return %arg0, %c0_i32 : i32, i32
  }
}

module attributes {stable_mosaic.version = 11 : i64} {
  func.func @_mm_bn_lrelu_kernel(%arg0: memref<128x2048xbf16, #tpu.memory_space<vmem>>, %arg1: memref<2048x256xbf16, #tpu.memory_space<vmem>>, %arg2: memref<1x256xf32, #tpu.memory_space<vmem>>, %arg3: memref<1x256xf32, #tpu.memory_space<vmem>>, %arg4: memref<1x256xf32, #tpu.memory_space<vmem>>, %arg5: memref<128x256xbf16, #tpu.memory_space<vmem>>) attributes {dimension_semantics = [], scalar_prefetch = 0 : i64, scratch_operands = 0 : i64, tpu.core_type = #tpu.core_type<tc>} {
    %c0 = arith.constant 0 : index
    %c0_0 = arith.constant 0 : index
    %0 = vector.load %arg0[%c0, %c0_0] : memref<128x2048xbf16, #tpu.memory_space<vmem>>, vector<128x2048xbf16>
    %c0_1 = arith.constant 0 : index
    %c0_2 = arith.constant 0 : index
    %1 = vector.load %arg1[%c0_1, %c0_2] : memref<2048x256xbf16, #tpu.memory_space<vmem>>, vector<2048x256xbf16>
    %cst = arith.constant dense<0.000000e+00> : vector<128x256xf32>
    %2 = tpu.matmul %0, %1, %cst {dimension_numbers = #tpu.dot_dimension_numbers<[1], [0], [0], [1], [0, 0, 1, 1], [], []>} : vector<128x2048xbf16>, vector<2048x256xbf16>, vector<128x256xf32> -> vector<128x256xf32>
    %c0_3 = arith.constant 0 : index
    %c0_4 = arith.constant 0 : index
    %3 = vector.load %arg2[%c0_3, %c0_4] : memref<1x256xf32, #tpu.memory_space<vmem>>, vector<1x256xf32>
    %4 = vector.broadcast %3 : vector<1x256xf32> to vector<128x256xf32>
    %5 = arith.addf %2, %4 : vector<128x256xf32>
    %cst_5 = arith.constant dense<0.000000e+00> : vector<256xf32>
    %6 = vector.multi_reduction <add>, %5, %cst_5 [0] : vector<128x256xf32> to vector<256xf32>
    %7 = vector.shape_cast %6 : vector<256xf32> to vector<1x256xf32>
    %cst_6 = arith.constant 7.812500e-03 : f32
    %8 = vector.broadcast %cst_6 : f32 to vector<1x256xf32>
    %9 = arith.mulf %7, %8 : vector<1x256xf32>
    %10 = vector.broadcast %9 : vector<1x256xf32> to vector<128x256xf32>
    %11 = arith.subf %5, %10 : vector<128x256xf32>
    %12 = arith.mulf %11, %11 : vector<128x256xf32>
    %cst_7 = arith.constant dense<0.000000e+00> : vector<256xf32>
    %13 = vector.multi_reduction <add>, %12, %cst_7 [0] : vector<128x256xf32> to vector<256xf32>
    %14 = vector.shape_cast %13 : vector<256xf32> to vector<1x256xf32>
    %cst_8 = arith.constant 7.812500e-03 : f32
    %15 = vector.broadcast %cst_8 : f32 to vector<1x256xf32>
    %16 = arith.mulf %14, %15 : vector<1x256xf32>
    %cst_9 = arith.constant 9.99999974E-6 : f32
    %17 = vector.broadcast %cst_9 : f32 to vector<1x256xf32>
    %18 = arith.addf %16, %17 : vector<1x256xf32>
    %19 = math.rsqrt %18 : vector<1x256xf32>
    %c0_10 = arith.constant 0 : index
    %c0_11 = arith.constant 0 : index
    %20 = vector.load %arg3[%c0_10, %c0_11] : memref<1x256xf32, #tpu.memory_space<vmem>>, vector<1x256xf32>
    %21 = arith.mulf %20, %19 : vector<1x256xf32>
    %22 = vector.broadcast %21 : vector<1x256xf32> to vector<128x256xf32>
    %23 = arith.mulf %11, %22 : vector<128x256xf32>
    %c0_12 = arith.constant 0 : index
    %c0_13 = arith.constant 0 : index
    %24 = vector.load %arg4[%c0_12, %c0_13] : memref<1x256xf32, #tpu.memory_space<vmem>>, vector<1x256xf32>
    %25 = vector.broadcast %24 : vector<1x256xf32> to vector<128x256xf32>
    %26 = arith.addf %23, %25 : vector<128x256xf32>
    %cst_14 = arith.constant 0.000000e+00 : f32
    %27 = vector.broadcast %cst_14 : f32 to vector<128x256xf32>
    %28 = arith.cmpf ogt, %26, %27 : vector<128x256xf32>
    %cst_15 = arith.constant 2.000000e-01 : f32
    %29 = vector.broadcast %cst_15 : f32 to vector<128x256xf32>
    %30 = arith.mulf %29, %26 : vector<128x256xf32>
    %31 = arith.select %28, %26, %30 : vector<128x256xi1>, vector<128x256xf32>
    %32 = arith.truncf %31 : vector<128x256xf32> to vector<128x256xbf16>
    %c0_16 = arith.constant 0 : index
    %c0_17 = arith.constant 0 : index
    %33 = vector.load %arg5[%c0_16, %c0_17] : memref<128x256xbf16, #tpu.memory_space<vmem>>, vector<128x256xbf16>
    tpu.vector_store %arg5[%c0_16, %c0_17], %32 {strides = array<i32>} : memref<128x256xbf16, #tpu.memory_space<vmem>>, vector<128x256xbf16>,
    return
  }
}

module attributes {stable_mosaic.version = 11 : i64} {
  func.func @_mm_bn_lrelu_kernel(%arg0: memref<32x4096xbf16, #tpu.memory_space<vmem>>, %arg1: memref<4096x512xbf16, #tpu.memory_space<vmem>>, %arg2: memref<1x512xf32, #tpu.memory_space<vmem>>, %arg3: memref<1x512xf32, #tpu.memory_space<vmem>>, %arg4: memref<1x512xf32, #tpu.memory_space<vmem>>, %arg5: memref<32x512xbf16, #tpu.memory_space<vmem>>) attributes {dimension_semantics = [], scalar_prefetch = 0 : i64, scratch_operands = 0 : i64, tpu.core_type = #tpu.core_type<tc>} {
    %c0 = arith.constant 0 : index
    %c0_0 = arith.constant 0 : index
    %0 = vector.load %arg0[%c0, %c0_0] : memref<32x4096xbf16, #tpu.memory_space<vmem>>, vector<32x4096xbf16>
    %c0_1 = arith.constant 0 : index
    %c0_2 = arith.constant 0 : index
    %1 = vector.load %arg1[%c0_1, %c0_2] : memref<4096x512xbf16, #tpu.memory_space<vmem>>, vector<4096x512xbf16>
    %cst = arith.constant dense<0.000000e+00> : vector<32x512xf32>
    %2 = tpu.matmul %0, %1, %cst {dimension_numbers = #tpu.dot_dimension_numbers<[1], [0], [0], [1], [0, 0, 1, 1], [], []>} : vector<32x4096xbf16>, vector<4096x512xbf16>, vector<32x512xf32> -> vector<32x512xf32>
    %c0_3 = arith.constant 0 : index
    %c0_4 = arith.constant 0 : index
    %3 = vector.load %arg2[%c0_3, %c0_4] : memref<1x512xf32, #tpu.memory_space<vmem>>, vector<1x512xf32>
    %4 = vector.broadcast %3 : vector<1x512xf32> to vector<32x512xf32>
    %5 = arith.addf %2, %4 : vector<32x512xf32>
    %cst_5 = arith.constant dense<0.000000e+00> : vector<512xf32>
    %6 = vector.multi_reduction <add>, %5, %cst_5 [0] : vector<32x512xf32> to vector<512xf32>
    %7 = vector.shape_cast %6 : vector<512xf32> to vector<1x512xf32>
    %cst_6 = arith.constant 3.125000e-02 : f32
    %8 = vector.broadcast %cst_6 : f32 to vector<1x512xf32>
    %9 = arith.mulf %7, %8 : vector<1x512xf32>
    %10 = vector.broadcast %9 : vector<1x512xf32> to vector<32x512xf32>
    %11 = arith.subf %5, %10 : vector<32x512xf32>
    %12 = arith.mulf %11, %11 : vector<32x512xf32>
    %cst_7 = arith.constant dense<0.000000e+00> : vector<512xf32>
    %13 = vector.multi_reduction <add>, %12, %cst_7 [0] : vector<32x512xf32> to vector<512xf32>
    %14 = vector.shape_cast %13 : vector<512xf32> to vector<1x512xf32>
    %cst_8 = arith.constant 3.125000e-02 : f32
    %15 = vector.broadcast %cst_8 : f32 to vector<1x512xf32>
    %16 = arith.mulf %14, %15 : vector<1x512xf32>
    %cst_9 = arith.constant 9.99999974E-6 : f32
    %17 = vector.broadcast %cst_9 : f32 to vector<1x512xf32>
    %18 = arith.addf %16, %17 : vector<1x512xf32>
    %19 = math.rsqrt %18 : vector<1x512xf32>
    %c0_10 = arith.constant 0 : index
    %c0_11 = arith.constant 0 : index
    %20 = vector.load %arg3[%c0_10, %c0_11] : memref<1x512xf32, #tpu.memory_space<vmem>>, vector<1x512xf32>
    %21 = arith.mulf %20, %19 : vector<1x512xf32>
    %22 = vector.broadcast %21 : vector<1x512xf32> to vector<32x512xf32>
    %23 = arith.mulf %11, %22 : vector<32x512xf32>
    %c0_12 = arith.constant 0 : index
    %c0_13 = arith.constant 0 : index
    %24 = vector.load %arg4[%c0_12, %c0_13] : memref<1x512xf32, #tpu.memory_space<vmem>>, vector<1x512xf32>
    %25 = vector.broadcast %24 : vector<1x512xf32> to vector<32x512xf32>
    %26 = arith.addf %23, %25 : vector<32x512xf32>
    %cst_14 = arith.constant 0.000000e+00 : f32
    %27 = vector.broadcast %cst_14 : f32 to vector<32x512xf32>
    %28 = arith.cmpf ogt, %26, %27 : vector<32x512xf32>
    %cst_15 = arith.constant 2.000000e-01 : f32
    %29 = vector.broadcast %cst_15 : f32 to vector<32x512xf32>
    %30 = arith.mulf %29, %26 : vector<32x512xf32>
    %31 = arith.select %28, %26, %30 : vector<32x512xi1>, vector<32x512xf32>
    %32 = arith.truncf %31 : vector<32x512xf32> to vector<32x512xbf16>
    %c0_16 = arith.constant 0 : index
    %c0_17 = arith.constant 0 : index
    %33 = vector.load %arg5[%c0_16, %c0_17] : memref<32x512xbf16, #tpu.memory_space<vmem>>, vector<32x512xbf16>
    tpu.vector_store %arg5[%c0_16, %c0_17], %32 {strides = array<i32>} : memref<32x512xbf16, #tpu.memory_space<vmem>>, vector<32x512xbf16>,
    return
  }
}

module attributes {stable_mosaic.version = 11 : i64} {
  func.func @_head_kernel(%arg0: memref<2x8192xbf16, #tpu.memory_space<vmem>>, %arg1: memref<1x8192xbf16, #tpu.memory_space<vmem>>, %arg2: memref<1x1xf32, #tpu.memory_space<vmem>>, %arg3: memref<2x1xf32, #tpu.memory_space<vmem>>) attributes {dimension_semantics = [], scalar_prefetch = 0 : i64, scratch_operands = 0 : i64, tpu.core_type = #tpu.core_type<tc>} {
    %c0 = arith.constant 0 : index
    %c0_0 = arith.constant 0 : index
    %0 = vector.load %arg0[%c0, %c0_0] : memref<2x8192xbf16, #tpu.memory_space<vmem>>, vector<2x8192xbf16>
    %1 = arith.extf %0 : vector<2x8192xbf16> to vector<2x8192xf32>
    %c0_1 = arith.constant 0 : index
    %c0_2 = arith.constant 0 : index
    %2 = vector.load %arg1[%c0_1, %c0_2] : memref<1x8192xbf16, #tpu.memory_space<vmem>>, vector<1x8192xbf16>
    %3 = arith.extf %2 : vector<1x8192xbf16> to vector<1x8192xf32>
    %4 = vector.broadcast %3 : vector<1x8192xf32> to vector<2x8192xf32>
    %5 = arith.mulf %1, %4 : vector<2x8192xf32>
    %cst = arith.constant dense<0.000000e+00> : vector<2xf32>
    %6 = vector.multi_reduction <add>, %5, %cst [1] : vector<2x8192xf32> to vector<2xf32>
    %7 = vector.shape_cast %6 : vector<2xf32> to vector<2x1xf32>
    %c0_3 = arith.constant 0 : index
    %c0_4 = arith.constant 0 : index
    %8 = vector.load %arg2[%c0_3, %c0_4] : memref<1x1xf32, #tpu.memory_space<vmem>>, vector<1x1xf32>
    %9 = vector.broadcast %8 : vector<1x1xf32> to vector<2x1xf32>
    %10 = arith.addf %7, %9 : vector<2x1xf32>
    %cst_5 = arith.constant 5.000000e-01 : f32
    %11 = vector.broadcast %cst_5 : f32 to vector<2x1xf32>
    %12 = arith.mulf %11, %10 : vector<2x1xf32>
    %13 = math.tanh %12 : vector<2x1xf32>
    %cst_6 = arith.constant 5.000000e-01 : f32
    %14 = vector.broadcast %cst_6 : f32 to vector<2x1xf32>
    %15 = arith.mulf %14, %13 : vector<2x1xf32>
    %cst_7 = arith.constant 5.000000e-01 : f32
    %16 = vector.broadcast %cst_7 : f32 to vector<2x1xf32>
    %17 = arith.addf %15, %16 : vector<2x1xf32>
    %c0_8 = arith.constant 0 : index
    %c0_9 = arith.constant 0 : index
    %18 = vector.load %arg3[%c0_8, %c0_9] : memref<2x1xf32, #tpu.memory_space<vmem>>, vector<2x1xf32>
    tpu.vector_store %arg3[%c0_8, %c0_9], %17 {strides = array<i32>} : memref<2x1xf32, #tpu.memory_space<vmem>>, vector<2x1xf32>,
    return
  }
}

</mosaic_0001>

<bundles_post_ra>
// kernel: discriminator_forward.4
= control target key start
LH: loop header
LB: loop body
LE: loop exit
PB: predicated region body
PF: predicated region fallthrough
CT: control target
= control target key end

     0   :  { %s1427_s12 = smov 0   ;;  %s1585_s0 = inlined_call_operand.vmem [shape: bf16[512,256], index: 0, kind: input, shape index: {}]   ;;  %s1586_s1 = inlined_call_operand.vmem [shape: bf16[256,128], index: 1, kind: input, shape index: {}]   ;;  %s1587_s2 = inlined_call_operand.vmem [shape: f32[1,128], index: 2, kind: input, shape index: {}]   ;;  %s1588_s3 = inlined_call_operand.vmem [shape: bf16[512,128], index: 3, kind: output, shape index: {}]  }
   0x1 LB: > { %s978_s13 = sadd.s32 4294967295, %s1405_s12   ;;  %p982_p0 = scmp.ge.s32.totalorder %s1405_s12, 1  ;;  %s1405_s12 = sphi %s1427_s12, %s13_s12  }
   0x2   : > { %p139_p1 = scmp.lt.s32.totalorder %s1405_s12, 3 }
   0x4   : > { %p140_p2 = pnand %p982_p0, %p139_p1 }
   0x5   : > { %v1335_v0 = vld [vmem:[%s1586_s1 + $0x40] sm:$0xff] (!%p140_p2)   ;;  %s983_s16 = sshll.u32 (!%p140_p2), %s978_s13, 5  ;;  %v1337_v2 = vld [vmem:[%s1586_s1 + $0x48] sm:$0xff] (!%p140_p2)   ;;  %v1339_v4 = vld [vmem:[%s1586_s1 + $0x50] sm:$0xff] (!%p140_p2)  }
   0x6   : > { %143 = sbr.rel (%p140_p2) target bundleno = 320 (0x140), region = 32  ;;  %v1336_v1 = vld [vmem:[%s1586_s1] sm:$0xff] (!%p140_p2)   ;;  %1199 = vmatprep.subr.bf16.mxu0 (!%p140_p2), %v1335_v0  ;;  %1311 = vmatprep.subr.bf16.mxu1 (!%p140_p2), %v1335_v0  ;;  %v1338_v3 = vld [vmem:[%s1586_s1 + $0x8] sm:$0xff] (!%p140_p2)   ;;  %p165_p3 = scmp.lt.s32.totalorder (!%p140_p2), %s983_s16, 63  ;;  %v1340_v5 = vld [vmem:[%s1586_s1 + $0x10] sm:$0xff] (!%p140_p2)  }
   0x7   : > { %1200 = vmatpush3.bf16.msra.mxu0 (!%p140_p2), %v1336_v1  ;;  %1319 = vmatpush3.bf16.msra.mxu1 (!%p140_p2), %v1336_v1  ;;  %v1341_v6 = vld [vmem:[%s1586_s1 + $0x58] sm:$0xff] (!%p140_p2)   ;;  %v1343_v8 = vld [vmem:[%s1586_s1 + $0x60] sm:$0xff] (!%p140_p2)   ;;  %v1345_v10 = vld [vmem:[%s1586_s1 + $0x68] sm:$0xff] (!%p140_p2)  }
   0x8   : > { %1201 = vmatprep.subr.bf16.mxu0 (!%p140_p2), %v1337_v2  ;;  %1312 = vmatprep.subr.bf16.mxu1 (!%p140_p2), %v1337_v2  ;;  %v1342_v7 = vld [vmem:[%s1586_s1 + $0x18] sm:$0xff] (!%p140_p2)   ;;  %v1344_v9 = vld [vmem:[%s1586_s1 + $0x20] sm:$0xff] (!%p140_p2)   ;;  %v1346_v13 = vld [vmem:[%s1586_s1 + $0x28] sm:$0xff] (!%p140_p2)  }
   0x9   : > { %v1347_v14 = vld [vmem:[%s1586_s1 + $0x70] sm:$0xff] (!%p140_p2)   ;;  %v1349_v16 = vld [vmem:[%s1586_s1 + $0x78] sm:$0xff] (!%p140_p2)   ;;  %v1526_v50 = vld [vmem:[%s1587_s2] ss:$0 sm:$0xff] (!%p140_p2) }
   0xa   : > { %v1348_v15 = vld [vmem:[%s1586_s1 + $0x30] sm:$0xff] (!%p140_p2)   ;;  %v1350_v17 = vld [vmem:[%s1586_s1 + $0x38] sm:$0xff] (!%p140_p2)  }
   0xb   : > { %1202 = vmatpush3.bf16.msra.mxu0 (!%p140_p2), %v1338_v3  ;;  %1320 = vmatpush3.bf16.msra.mxu1 (!%p140_p2), %v1338_v3 }
   0xc   : > { %1203 = vmatprep.subr.bf16.mxu0 (!%p140_p2), %v1339_v4  ;;  %1313 = vmatprep.subr.bf16.mxu1 (!%p140_p2), %v1339_v4 }
   0xd   : > { %s1590_s16 = smov (!%p165_p3, %s983_s16), 63 }
   0xe   : > { %s1071_s4 = sshll.u32 %s1590_s16, 3  ;;  %s987_s28 = sshll.u32 %s1590_s16, 2 }
   0xf   : > { %1204 = vmatpush3.bf16.msra.mxu0 %v1340_v5  ;;  %1321 = vmatpush3.bf16.msra.mxu1 %v1340_v5  ;;  %s1468_s9 = scalar_lea.vmem %s1585_s0, %s1071_s4  ;;  %s1536_s4 = scalar_lea.vmem %s1588_s3, %s987_s28 }
  0x10   : > { %1205 = vmatprep.subr.bf16.mxu0 %v1341_v6  ;;  %1314 = vmatprep.subr.bf16.mxu1 %v1341_v6  ;;  %v1353_v11 = vld [vmem:[%s1468_s9 + $0x4] ss:$8 sps:$4 sm:$0xff]   ;;  %v1351_v18 = vld [vmem:[%s1468_s9] ss:$8 sps:$4 sm:$0xff]   ;;  %v1357_v20 = vld [vmem:[%s1468_s9 + $0x14] ss:$8 sps:$4 sm:$0xff]  }
  0x11   : > { %v1356_v12 = vld [vmem:[%s1468_s9 + $0x84] ss:$8 sps:$4 sm:$0xff]   ;;  %537 = vmatprep.mubr.bf16.mxu0 %v1353_v11  ;;  %v1354_v19 = vld [vmem:[%s1468_s9 + $0x80] ss:$8 sps:$4 sm:$0xff]   ;;  %v1359_v21 = vld [vmem:[%s1468_s9 + $0x94] ss:$8 sps:$4 sm:$0xff]  }
  0x12   : > { %601 = vmatprep.mubr.bf16.mxu1 %v1356_v12  ;;  %v1361_v22 = vld [vmem:[%s1468_s9 + $0x10] ss:$8 sps:$4 sm:$0xff]   ;;  %v1363_v24 = vld [vmem:[%s1468_s9 + $0x24] ss:$8 sps:$4 sm:$0xff]   ;;  %v1367_v26 = vld [vmem:[%s1468_s9 + $0x20] ss:$8 sps:$4 sm:$0xff]  }
  0x13   : > { %1206 = vmatpush3.bf16.msra.mxu0 %v1342_v7  ;;  %1322 = vmatpush3.bf16.msra.mxu1 %v1342_v7  ;;  %v1362_v23 = vld [vmem:[%s1468_s9 + $0x90] ss:$8 sps:$4 sm:$0xff]   ;;  %v1365_v25 = vld [vmem:[%s1468_s9 + $0xa4] ss:$8 sps:$4 sm:$0xff]   ;;  %v1368_v27 = vld [vmem:[%s1468_s9 + $0xa0] ss:$8 sps:$4 sm:$0xff]  }
  0x14   : > { %1207 = vmatprep.subr.bf16.mxu0 %v1343_v8  ;;  %1315 = vmatprep.subr.bf16.mxu1 %v1343_v8  ;;  %v1369_v28 = vld [vmem:[%s1468_s9 + $0x34] ss:$8 sps:$4 sm:$0xff]   ;;  %v1373_v30 = vld [vmem:[%s1468_s9 + $0x30] ss:$8 sps:$4 sm:$0xff]   ;;  %v1375_v32 = vld [vmem:[%s1468_s9 + $0x44] ss:$8 sps:$4 sm:$0xff]  }
  0x15   : > { %v1371_v29 = vld [vmem:[%s1468_s9 + $0xb4] ss:$8 sps:$4 sm:$0xff]   ;;  %v1374_v31 = vld [vmem:[%s1468_s9 + $0xb0] ss:$8 sps:$4 sm:$0xff]   ;;  %v1377_v33 = vld [vmem:[%s1468_s9 + $0xc4] ss:$8 sps:$4 sm:$0xff]  }
  0x16   : > { %v1379_v34 = vld [vmem:[%s1468_s9 + $0x40] ss:$8 sps:$4 sm:$0xff]   ;;  %v1381_v36 = vld [vmem:[%s1468_s9 + $0x54] ss:$8 sps:$4 sm:$0xff]   ;;  %v1385_v38 = vld [vmem:[%s1468_s9 + $0x50] ss:$8 sps:$4 sm:$0xff]  }
  0x17   : > { %1208 = vmatpush3.bf16.msra.mxu0 %v1344_v9  ;;  %1323 = vmatpush3.bf16.msra.mxu1 %v1344_v9  ;;  %v1380_v35 = vld [vmem:[%s1468_s9 + $0xc0] ss:$8 sps:$4 sm:$0xff]   ;;  %v1383_v37 = vld [vmem:[%s1468_s9 + $0xd4] ss:$8 sps:$4 sm:$0xff]   ;;  %v1386_v39 = vld [vmem:[%s1468_s9 + $0xd0] ss:$8 sps:$4 sm:$0xff]  }
  0x18   : > { %1209 = vmatprep.subr.bf16.mxu0 %v1345_v10  ;;  %1316 = vmatprep.subr.bf16.mxu1 %v1345_v10  ;;  %v1387_v40 = vld [vmem:[%s1468_s9 + $0x64] ss:$8 sps:$4 sm:$0xff]   ;;  %v1391_v42 = vld [vmem:[%s1468_s9 + $0x60] ss:$8 sps:$4 sm:$0xff]   ;;  %v1393_v44 = vld [vmem:[%s1468_s9 + $0x74] ss:$8 sps:$4 sm:$0xff]  }
  0x19   : > { %v1389_v41 = vld [vmem:[%s1468_s9 + $0xe4] ss:$8 sps:$4 sm:$0xff]   ;;  %v1392_v43 = vld [vmem:[%s1468_s9 + $0xe0] ss:$8 sps:$4 sm:$0xff]   ;;  %v1395_v45 = vld [vmem:[%s1468_s9 + $0xf4] ss:$8 sps:$4 sm:$0xff]  }
  0x1a   : > { %v1397_v46 = vld [vmem:[%s1468_s9 + $0x70] ss:$8 sps:$4 sm:$0xff]  }
  0x1b   : > { %1210 = vmatpush3.bf16.msra.mxu0 %v1346_v13  ;;  %1324 = vmatpush3.bf16.msra.mxu1 %v1346_v13  ;;  %v1398_v47 = vld [vmem:[%s1468_s9 + $0xf0] ss:$8 sps:$4 sm:$0xff]  }
  0x1c   : > { %1211 = vmatprep.subr.bf16.mxu0 %v1347_v14  ;;  %1317 = vmatprep.subr.bf16.mxu1 %v1347_v14 }
  0x1f   : > { %1212 = vmatpush3.bf16.msra.mxu0 %v1348_v15  ;;  %1325 = vmatpush3.bf16.msra.mxu1 %v1348_v15 }
  0x20   : > { %1213 = vmatprep.subr.bf16.mxu0 %v1349_v16  ;;  %1318 = vmatprep.subr.bf16.mxu1 %v1349_v16 }
  0x23   : > { %1214 = vmatpush3.bf16.msra.mxu0 %v1350_v17  ;;  %1326 = vmatpush3.bf16.msra.mxu1 %v1350_v17 }
  0x26   : > { %538 = vmatmul.mubr.bf16.vlgmr.msra.gmra.mrb[0].mxu0 %v1351_v18  ;;  %602 = vmatmul.mubr.bf16.vlgmr.msra.gmra.mrb[0].mxu1 %v1354_v19 }
  0x27   : > { %545 = vmatprep.mubr.bf16.mxu0 %v1357_v20  ;;  %609 = vmatprep.mubr.bf16.mxu1 %v1359_v21 }
  0x2e   : > { %546 = vmatmul.mubr.bf16.gmra.mrb[4].mxu0 %v1361_v22  ;;  %610 = vmatmul.mubr.bf16.gmra.mrb[4].mxu1 %v1362_v23 }
  0x2f   : > { %553 = vmatprep.mubr.bf16.mxu0 %v1363_v24  ;;  %617 = vmatprep.mubr.bf16.mxu1 %v1365_v25 }
  0x36   : > { %554 = vmatmul.mubr.bf16.gmra.mrb[8].mxu0 %v1367_v26  ;;  %618 = vmatmul.mubr.bf16.gmra.mrb[8].mxu1 %v1368_v27 }
  0x37   : > { %561 = vmatprep.mubr.bf16.mxu0 %v1369_v28  ;;  %625 = vmatprep.mubr.bf16.mxu1 %v1371_v29 }
  0x3e   : > { %562 = vmatmul.mubr.bf16.gmra.mrb[12].mxu0 %v1373_v30  ;;  %626 = vmatmul.mubr.bf16.gmra.mrb[12].mxu1 %v1374_v31 }
  0x3f   : > { %569 = vmatprep.mubr.bf16.mxu0 %v1375_v32  ;;  %633 = vmatprep.mubr.bf16.mxu1 %v1377_v33 }
  0x46   : > { %570 = vmatmul.mubr.bf16.gmra.mrb[16].mxu0 %v1379_v34  ;;  %634 = vmatmul.mubr.bf16.gmra.mrb[16].mxu1 %v1380_v35 }
  0x47   : > { %577 = vmatprep.mubr.bf16.mxu0 %v1381_v36  ;;  %641 = vmatprep.mubr.bf16.mxu1 %v1383_v37 }
  0x4e   : > { %578 = vmatmul.mubr.bf16.gmra.mrb[20].mxu0 %v1385_v38  ;;  %642 = vmatmul.mubr.bf16.gmra.mrb[20].mxu1 %v1386_v39 }
  0x4f   : > { %585 = vmatprep.mubr.bf16.mxu0 %v1387_v40  ;;  %649 = vmatprep.mubr.bf16.mxu1 %v1389_v41 }
  0x56   : > { %586 = vmatmul.mubr.bf16.gmra.mrb[24].mxu0 %v1391_v42  ;;  %650 = vmatmul.mubr.bf16.gmra.mrb[24].mxu1 %v1392_v43 }
  0x57   : > { %593 = vmatprep.mubr.bf16.mxu0 %v1393_v44  ;;  %657 = vmatprep.mubr.bf16.mxu1 %v1395_v45 }
  0x5e   : > { %594 = vmatmul.mubr.bf16.gmra.mrb[28].mxu0 %v1397_v46  ;;  %658 = vmatmul.mubr.bf16.gmra.mrb[28].mxu1 %v1398_v47 }
  0xf9   : > { %v1215_v48 = vpop.f32.mrb[0].mxu0  ;;  %v1263_v49 = vpop.f32.mrb[0].mxu1 }
  0xfa   : > { %v1216_v51 = vpop.f32.mrb[1].mxu0  ;;  %v1264_v52 = vpop.f32.mrb[1].mxu1 }
  0xfb   : > { %v1217_v53 = vadd.f32 %v1216_v51, %v1215_v48  ;;  %v1265_v54 = vadd.f32 %v1264_v52, %v1263_v49  ;;  %v1218_v55 = vpop.f32.mrb[2].mxu0  ;;  %v1266_v56 = vpop.f32.mrb[2].mxu1 }
  0xfc   : > { %v1219_v57 = vpop.f32.mrb[3].mxu0  ;;  %v1267_v58 = vpop.f32.mrb[3].mxu1 }
  0xfd   : > { %v540_v59 = vadd.f32 %v1217_v53, %v1526_v50  ;;  %v604_v60 = vadd.f32 %v1265_v54, %v1526_v50  ;;  %v1220_v61 = vadd.f32 %v1219_v57, %v1218_v55  ;;  %v1268_v62 = vadd.f32 %v1267_v58, %v1266_v56 }
  0xff   : > { %v698_v63 = vmul.f32 0.2, %v540_v59  ;;  %v714_v0 = vmul.f32 0.2, %v604_v60  ;;  %vm666_vm0 = vcmp.gt.f32.partialorder %v540_v59, 0.0  ;;  %vm682_vm1 = vcmp.gt.f32.partialorder %v604_v60, 0.0 }
 0x100   : > { %v543_v1 = vadd.f32 %v1220_v61, %v1526_v50  ;;  %v607_v2 = vadd.f32 %v1268_v62, %v1526_v50 }
 0x101   : > { %v1221_v3 = vpop.f32.mrb[4].mxu0  ;;  %v1269_v4 = vpop.f32.mrb[4].mxu1  ;;  %v730_v7 = vsel %vm666_vm0, %v540_v59, %v698_v63  ;;  %v746_v8 = vsel %vm682_vm1, %v604_v60, %v714_v0 }
 0x102   : > { %vm667_vm2 = vcmp.gt.f32.partialorder %v543_v1, 0.0  ;;  %v699_v5 = vmul.f32 0.2, %v543_v1  ;;  %vm683_vm3 = vcmp.gt.f32.partialorder %v607_v2, 0.0  ;;  %v715_v6 = vmul.f32 0.2, %v607_v2 }
 0x103   : > { %v1222_v9 = vpop.f32.mrb[5].mxu0  ;;  %v1270_v10 = vpop.f32.mrb[5].mxu1 }
 0x104   : > { %v731_v11 = vsel %vm667_vm2, %v543_v1, %v699_v5  ;;  %v747_v12 = vsel %vm683_vm3, %v607_v2, %v715_v6  ;;  %v1223_v13 = vadd.f32 %v1222_v9, %v1221_v3  ;;  %v1271_v14 = vadd.f32 %v1270_v10, %v1269_v4  ;;  %v1224_v15 = vpop.f32.mrb[6].mxu0  ;;  %v1272_v16 = vpop.f32.mrb[6].mxu1 }
 0x105   : > { %v1107_v17 = vpack.c.bf16 %v731_v11, %v730_v7  ;;  %v1147_v18 = vpack.c.bf16 %v747_v12, %v746_v8  ;;  %v1225_v19 = vpop.f32.mrb[7].mxu0  ;;  %v1273_v20 = vpop.f32.mrb[7].mxu1 }
 0x106   : > { %v548_v21 = vadd.f32 %v1223_v13, %v1526_v50  ;;  %v612_v22 = vadd.f32 %v1271_v14, %v1526_v50  ;;  %v1226_v23 = vadd.f32 %v1225_v19, %v1224_v15  ;;  %v1274_v24 = vadd.f32 %v1273_v20, %v1272_v16 }
 0x107   : > { %1108 = vst [vmem:[%s1536_s4] sm:$0xff] %v1107_v17   ;;  %1191 = vst [vmem:[%s1536_s4 + $0x40] sm:$0xff] %v1147_v18  }
 0x108   : > { %v700_v25 = vmul.f32 0.2, %v548_v21  ;;  %v716_v26 = vmul.f32 0.2, %v612_v22  ;;  %v551_v27 = vadd.f32 %v1226_v23, %v1526_v50  ;;  %v615_v28 = vadd.f32 %v1274_v24, %v1526_v50 }
 0x109   : > { %v1227_v29 = vpop.f32.mrb[8].mxu0  ;;  %v1275_v30 = vpop.f32.mrb[8].mxu1  ;;  %vm668_vm4 = vcmp.gt.f32.partialorder %v548_v21, 0.0  ;;  %vm684_vm5 = vcmp.gt.f32.partialorder %v612_v22, 0.0 }
 0x10a   : > { %v1228_v31 = vpop.f32.mrb[9].mxu0  ;;  %v1276_v32 = vpop.f32.mrb[9].mxu1  ;;  %vm669_vm6 = vcmp.gt.f32.partialorder %v551_v27, 0.0  ;;  %v701_v33 = vmul.f32 0.2, %v551_v27  ;;  %vm685_vm7 = vcmp.gt.f32.partialorder %v615_v28, 0.0  ;;  %v732_v39 = vsel %vm668_vm4, %v548_v21, %v700_v25 }
 0x10b   : > { %v717_v34 = vmul.f32 0.2, %v615_v28  ;;  %v1229_v35 = vadd.f32 %v1228_v31, %v1227_v29  ;;  %v1277_v36 = vadd.f32 %v1276_v32, %v1275_v30  ;;  %v1230_v37 = vpop.f32.mrb[10].mxu0  ;;  %v1278_v38 = vpop.f32.mrb[10].mxu1  ;;  %v748_v40 = vsel %vm684_vm5, %v612_v22, %v716_v26 }
 0x10c   : > { %v733_v41 = vsel %vm669_vm6, %v551_v27, %v701_v33  ;;  %v1231_v43 = vpop.f32.mrb[11].mxu0  ;;  %v1279_v44 = vpop.f32.mrb[11].mxu1 }
 0x10d   : > { %v749_v42 = vsel %vm685_vm7, %v615_v28, %v717_v34  ;;  %v1112_v45 = vpack.c.bf16 %v733_v41, %v732_v39  ;;  %v556_v47 = vadd.f32 %v1229_v35, %v1526_v50  ;;  %v620_v48 = vadd.f32 %v1277_v36, %v1526_v50 }
 0x10e   : > { %v1152_v46 = vpack.c.bf16 %v749_v42, %v748_v40  ;;  %v1232_v49 = vadd.f32 %v1231_v43, %v1230_v37  ;;  %v1280_v51 = vadd.f32 %v1279_v44, %v1278_v38 }
 0x10f   : > { %1184 = vst [vmem:[%s1536_s4 + $0x8] sm:$0xff] %v1112_v45   ;;  %v702_v52 = vmul.f32 0.2, %v556_v47  ;;  %v718_v53 = vmul.f32 0.2, %v620_v48  ;;  %vm670_vm8 = vcmp.gt.f32.partialorder %v556_v47, 0.0 }
 0x110   : > { %1192 = vst [vmem:[%s1536_s4 + $0x48] sm:$0xff] %v1152_v46   ;;  %v559_v54 = vadd.f32 %v1232_v49, %v1526_v50  ;;  %v623_v55 = vadd.f32 %v1280_v51, %v1526_v50  ;;  %vm686_vm9 = vcmp.gt.f32.partialorder %v620_v48, 0.0 }
 0x111   : > { %v1233_v56 = vpop.f32.mrb[12].mxu0  ;;  %v1281_v57 = vpop.f32.mrb[12].mxu1  ;;  %v734_v2 = vsel %vm670_vm8, %v556_v47, %v702_v52  ;;  %v750_v3 = vsel %vm686_vm9, %v620_v48, %v718_v53 }
 0x112   : > { %v1234_v58 = vpop.f32.mrb[13].mxu0  ;;  %v1282_v59 = vpop.f32.mrb[13].mxu1  ;;  %vm671_vm10 = vcmp.gt.f32.partialorder %v559_v54, 0.0  ;;  %v703_v60 = vmul.f32 0.2, %v559_v54  ;;  %vm687_vm11 = vcmp.gt.f32.partialorder %v623_v55, 0.0 }
 0x113   : > { %v719_v61 = vmul.f32 0.2, %v623_v55  ;;  %v1235_v62 = vadd.f32 %v1234_v58, %v1233_v56  ;;  %v1283_v63 = vadd.f32 %v1282_v59, %v1281_v57  ;;  %v1236_v0 = vpop.f32.mrb[14].mxu0  ;;  %v1284_v1 = vpop.f32.mrb[14].mxu1 }
 0x114   : > { %v735_v4 = vsel %vm671_vm10, %v559_v54, %v703_v60  ;;  %v1237_v6 = vpop.f32.mrb[15].mxu0  ;;  %v1285_v7 = vpop.f32.mrb[15].mxu1 }
 0x115   : > { %v751_v5 = vsel %vm687_vm11, %v623_v55, %v719_v61  ;;  %v1117_v8 = vpack.c.bf16 %v735_v4, %v734_v2  ;;  %v564_v10 = vadd.f32 %v1235_v62, %v1526_v50  ;;  %v628_v11 = vadd.f32 %v1283_v63, %v1526_v50 }
 0x116   : > { %v1157_v9 = vpack.c.bf16 %v751_v5, %v750_v3  ;;  %v1238_v12 = vadd.f32 %v1237_v6, %v1236_v0  ;;  %v1286_v13 = vadd.f32 %v1285_v7, %v1284_v1 }
 0x117   : > { %1185 = vst [vmem:[%s1536_s4 + $0x10] sm:$0xff] %v1117_v8   ;;  %v704_v14 = vmul.f32 0.2, %v564_v10  ;;  %v720_v15 = vmul.f32 0.2, %v628_v11  ;;  %vm672_vm12 = vcmp.gt.f32.partialorder %v564_v10, 0.0 }
 0x118   : > { %1193 = vst [vmem:[%s1536_s4 + $0x50] sm:$0xff] %v1157_v9   ;;  %v567_v16 = vadd.f32 %v1238_v12, %v1526_v50  ;;  %v631_v17 = vadd.f32 %v1286_v13, %v1526_v50  ;;  %vm688_vm13 = vcmp.gt.f32.partialorder %v628_v11, 0.0 }
 0x119   : > { %v1239_v18 = vpop.f32.mrb[16].mxu0  ;;  %v1287_v19 = vpop.f32.mrb[16].mxu1  ;;  %v736_v28 = vsel %vm672_vm12, %v564_v10, %v704_v14  ;;  %v752_v29 = vsel %vm688_vm13, %v628_v11, %v720_v15 }
 0x11a   : > { %v1240_v20 = vpop.f32.mrb[17].mxu0  ;;  %v1288_v21 = vpop.f32.mrb[17].mxu1  ;;  %vm673_vm14 = vcmp.gt.f32.partialorder %v567_v16, 0.0  ;;  %v705_v22 = vmul.f32 0.2, %v567_v16  ;;  %vm689_vm15 = vcmp.gt.f32.partialorder %v631_v17, 0.0 }
 0x11b   : > { %v721_v23 = vmul.f32 0.2, %v631_v17  ;;  %v1241_v24 = vadd.f32 %v1240_v20, %v1239_v18  ;;  %v1289_v25 = vadd.f32 %v1288_v21, %v1287_v19  ;;  %v1242_v26 = vpop.f32.mrb[18].mxu0  ;;  %v1290_v27 = vpop.f32.mrb[18].mxu1 }
 0x11c   : > { %v737_v30 = vsel %vm673_vm14, %v567_v16, %v705_v22  ;;  %v1243_v32 = vpop.f32.mrb[19].mxu0  ;;  %v1291_v33 = vpop.f32.mrb[19].mxu1 }
 0x11d   : > { %v753_v31 = vsel %vm689_vm15, %v631_v17, %v721_v23  ;;  %v1122_v34 = vpack.c.bf16 %v737_v30, %v736_v28  ;;  %v572_v36 = vadd.f32 %v1241_v24, %v1526_v50  ;;  %v636_v37 = vadd.f32 %v1289_v25, %v1526_v50 }
 0x11e   : > { %v1162_v35 = vpack.c.bf16 %v753_v31, %v752_v29  ;;  %v1244_v38 = vadd.f32 %v1243_v32, %v1242_v26  ;;  %v1292_v39 = vadd.f32 %v1291_v33, %v1290_v27 }
 0x11f   : > { %1186 = vst [vmem:[%s1536_s4 + $0x18] sm:$0xff] %v1122_v34   ;;  %v706_v40 = vmul.f32 0.2, %v572_v36  ;;  %v722_v41 = vmul.f32 0.2, %v636_v37  ;;  %vm674_vm0 = vcmp.gt.f32.partialorder %v572_v36, 0.0 }
 0x120   : > { %1194 = vst [vmem:[%s1536_s4 + $0x58] sm:$0xff] %v1162_v35   ;;  %v575_v42 = vadd.f32 %v1244_v38, %v1526_v50  ;;  %v639_v43 = vadd.f32 %v1292_v39, %v1526_v50  ;;  %vm690_vm1 = vcmp.gt.f32.partialorder %v636_v37, 0.0 }
 0x121   : > { %v1245_v44 = vpop.f32.mrb[20].mxu0  ;;  %v1293_v45 = vpop.f32.mrb[20].mxu1  ;;  %v738_v55 = vsel %vm674_vm0, %v572_v36, %v706_v40  ;;  %v754_v56 = vsel %vm690_vm1, %v636_v37, %v722_v41 }
 0x122   : > { %v1246_v46 = vpop.f32.mrb[21].mxu0  ;;  %v1294_v47 = vpop.f32.mrb[21].mxu1  ;;  %vm675_vm2 = vcmp.gt.f32.partialorder %v575_v42, 0.0  ;;  %v707_v48 = vmul.f32 0.2, %v575_v42  ;;  %vm691_vm3 = vcmp.gt.f32.partialorder %v639_v43, 0.0 }
 0x123   : > { %v723_v49 = vmul.f32 0.2, %v639_v43  ;;  %v1247_v51 = vadd.f32 %v1246_v46, %v1245_v44  ;;  %v1295_v52 = vadd.f32 %v1294_v47, %v1293_v45  ;;  %v1248_v53 = vpop.f32.mrb[22].mxu0  ;;  %v1296_v54 = vpop.f32.mrb[22].mxu1 }
 0x124   : > { %v739_v57 = vsel %vm675_vm2, %v575_v42, %v707_v48  ;;  %v1249_v59 = vpop.f32.mrb[23].mxu0  ;;  %v1297_v60 = vpop.f32.mrb[23].mxu1 }
 0x125   : > { %v755_v58 = vsel %vm691_vm3, %v639_v43, %v723_v49  ;;  %v1127_v61 = vpack.c.bf16 %v739_v57, %v738_v55  ;;  %v580_v63 = vadd.f32 %v1247_v51, %v1526_v50  ;;  %v644_v0 = vadd.f32 %v1295_v52, %v1526_v50 }
 0x126   : > { %v1167_v62 = vpack.c.bf16 %v755_v58, %v754_v56  ;;  %v1250_v1 = vadd.f32 %v1249_v59, %v1248_v53  ;;  %v1298_v2 = vadd.f32 %v1297_v60, %v1296_v54 }
 0x127   : > { %1187 = vst [vmem:[%s1536_s4 + $0x20] sm:$0xff] %v1127_v61   ;;  %v708_v3 = vmul.f32 0.2, %v580_v63  ;;  %v724_v4 = vmul.f32 0.2, %v644_v0  ;;  %vm676_vm4 = vcmp.gt.f32.partialorder %v580_v63, 0.0 }
 0x128   : > { %1195 = vst [vmem:[%s1536_s4 + $0x60] sm:$0xff] %v1167_v62   ;;  %v583_v5 = vadd.f32 %v1250_v1, %v1526_v50  ;;  %v647_v6 = vadd.f32 %v1298_v2, %v1526_v50  ;;  %vm692_vm5 = vcmp.gt.f32.partialorder %v644_v0, 0.0 }
 0x129   : > { %v1251_v7 = vpop.f32.mrb[24].mxu0  ;;  %v1299_v8 = vpop.f32.mrb[24].mxu1  ;;  %v740_v17 = vsel %vm676_vm4, %v580_v63, %v708_v3  ;;  %v756_v18 = vsel %vm692_vm5, %v644_v0, %v724_v4 }
 0x12a   : > { %v1252_v9 = vpop.f32.mrb[25].mxu0  ;;  %v1300_v10 = vpop.f32.mrb[25].mxu1  ;;  %vm677_vm6 = vcmp.gt.f32.partialorder %v583_v5, 0.0  ;;  %v709_v11 = vmul.f32 0.2, %v583_v5  ;;  %vm693_vm7 = vcmp.gt.f32.partialorder %v647_v6, 0.0 }
 0x12b   : > { %v725_v12 = vmul.f32 0.2, %v647_v6  ;;  %v1253_v13 = vadd.f32 %v1252_v9, %v1251_v7  ;;  %v1301_v14 = vadd.f32 %v1300_v10, %v1299_v8  ;;  %v1254_v15 = vpop.f32.mrb[26].mxu0  ;;  %v1302_v16 = vpop.f32.mrb[26].mxu1 }
 0x12c   : > { %v741_v19 = vsel %vm677_vm6, %v583_v5, %v709_v11  ;;  %v1255_v21 = vpop.f32.mrb[27].mxu0  ;;  %v1303_v22 = vpop.f32.mrb[27].mxu1 }
 0x12d   : > { %v757_v20 = vsel %vm693_vm7, %v647_v6, %v725_v12  ;;  %v1132_v23 = vpack.c.bf16 %v741_v19, %v740_v17  ;;  %v588_v25 = vadd.f32 %v1253_v13, %v1526_v50  ;;  %v652_v26 = vadd.f32 %v1301_v14, %v1526_v50 }
 0x12e   : > { %v1172_v24 = vpack.c.bf16 %v757_v20, %v756_v18  ;;  %v1256_v27 = vadd.f32 %v1255_v21, %v1254_v15  ;;  %v1304_v28 = vadd.f32 %v1303_v22, %v1302_v16 }
 0x12f   : > { %1188 = vst [vmem:[%s1536_s4 + $0x28] sm:$0xff] %v1132_v23   ;;  %v710_v29 = vmul.f32 0.2, %v588_v25  ;;  %v726_v30 = vmul.f32 0.2, %v652_v26  ;;  %vm678_vm8 = vcmp.gt.f32.partialorder %v588_v25, 0.0 }
 0x130   : > { %1196 = vst [vmem:[%s1536_s4 + $0x68] sm:$0xff] %v1172_v24   ;;  %v591_v31 = vadd.f32 %v1256_v27, %v1526_v50  ;;  %v655_v32 = vadd.f32 %v1304_v28, %v1526_v50  ;;  %vm694_vm9 = vcmp.gt.f32.partialorder %v652_v26, 0.0 }
 0x131   : > { %v1257_v33 = vpop.f32.mrb[28].mxu0  ;;  %v1305_v34 = vpop.f32.mrb[28].mxu1  ;;  %v742_v43 = vsel %vm678_vm8, %v588_v25, %v710_v29  ;;  %v758_v44 = vsel %vm694_vm9, %v652_v26, %v726_v30 }
 0x132   : > { %v1258_v35 = vpop.f32.mrb[29].mxu0  ;;  %v1306_v36 = vpop.f32.mrb[29].mxu1  ;;  %vm679_vm10 = vcmp.gt.f32.partialorder %v591_v31, 0.0  ;;  %v711_v37 = vmul.f32 0.2, %v591_v31  ;;  %vm695_vm11 = vcmp.gt.f32.partialorder %v655_v32, 0.0 }
 0x133   : > { %v727_v38 = vmul.f32 0.2, %v655_v32  ;;  %v1259_v39 = vadd.f32 %v1258_v35, %v1257_v33  ;;  %v1307_v40 = vadd.f32 %v1306_v36, %v1305_v34  ;;  %v1260_v41 = vpop.f32.mrb[30].mxu0  ;;  %v1308_v42 = vpop.f32.mrb[30].mxu1 }
 0x134   : > { %v743_v45 = vsel %vm679_vm10, %v591_v31, %v711_v37  ;;  %v1261_v47 = vpop.f32.mrb[31].mxu0  ;;  %v1309_v48 = vpop.f32.mrb[31].mxu1 }
 0x135   : > { %v759_v46 = vsel %vm695_vm11, %v655_v32, %v727_v38  ;;  %v1137_v49 = vpack.c.bf16 %v743_v45, %v742_v43  ;;  %v596_v52 = vadd.f32 %v1259_v39, %v1526_v50  ;;  %v660_v53 = vadd.f32 %v1307_v40, %v1526_v50 }
 0x136   : > { %v1177_v51 = vpack.c.bf16 %v759_v46, %v758_v44  ;;  %v1262_v54 = vadd.f32 %v1261_v47, %v1260_v41  ;;  %v1310_v55 = vadd.f32 %v1309_v48, %v1308_v42 }
 0x137   : > { %1189 = vst [vmem:[%s1536_s4 + $0x30] sm:$0xff] %v1137_v49   ;;  %v712_v56 = vmul.f32 0.2, %v596_v52  ;;  %v728_v57 = vmul.f32 0.2, %v660_v53  ;;  %vm680_vm12 = vcmp.gt.f32.partialorder %v596_v52, 0.0 }
 0x138   : > { %1197 = vst [vmem:[%s1536_s4 + $0x70] sm:$0xff] %v1177_v51   ;;  %v599_v58 = vadd.f32 %v1262_v54, %v1526_v50  ;;  %v663_v59 = vadd.f32 %v1310_v55, %v1526_v50  ;;  %vm696_vm13 = vcmp.gt.f32.partialorder %v660_v53, 0.0 }
 0x139   : > { %v744_v62 = vsel %vm680_vm12, %v596_v52, %v712_v56  ;;  %v760_v63 = vsel %vm696_vm13, %v660_v53, %v728_v57 }
 0x13a   : > { %vm681_vm14 = vcmp.gt.f32.partialorder %v599_v58, 0.0  ;;  %v713_v60 = vmul.f32 0.2, %v599_v58  ;;  %vm697_vm15 = vcmp.gt.f32.partialorder %v663_v59, 0.0  ;;  %v729_v61 = vmul.f32 0.2, %v663_v59 }
 0x13c   : > { %v745_v0 = vsel %vm681_vm14, %v599_v58, %v713_v60  ;;  %v761_v1 = vsel %vm697_vm15, %v663_v59, %v729_v61 }
 0x13d   : > { %v1142_v2 = vpack.c.bf16 %v745_v0, %v744_v62  ;;  %v1182_v3 = vpack.c.bf16 %v761_v1, %v760_v63 }
 0x13f   : > { %1190 = vst [vmem:[%s1536_s4 + $0x38] sm:$0xff] %v1142_v2   ;;  %1198 = vst [vmem:[%s1536_s4 + $0x78] sm:$0xff] %v1182_v3  }
 0x140 PF: > { %s13_s12 = sadd.s32 1, %s1405_s12  }
 0x141   : > { %p10_p4 = scmp.ge.s32.totalorder %s13_s12, 4  }
 0x143   :  { %12 = sbr.rel (!%p10_p4) target bundleno = 1 (0x1), region = 62 }

// kernel: discriminator_forward.5
= control target key start
LH: loop header
LB: loop body
LE: loop exit
PB: predicated region body
PF: predicated region fallthrough
CT: control target
= control target key end

     0   :  { %s6561_s1 = inlined_call_operand.vmem [shape: bf16[2048,256], index: 1, kind: input, shape index: {}]   ;;  %s6562_s0 = inlined_call_operand.vmem [shape: bf16[128,2048], index: 0, kind: input, shape index: {}]   ;;  %s6563_s2 = inlined_call_operand.vmem [shape: f32[1,256], index: 2, kind: input, shape index: {}]   ;;  %s6564_s3 = inlined_call_operand.vmem [shape: f32[1,256], index: 3, kind: input, shape index: {}]   ;;  %s6565_s4 = inlined_call_operand.vmem [shape: f32[1,256], index: 4, kind: input, shape index: {}]   ;;  %s6566_s5 = inlined_call_operand.vmem [shape: bf16[128,256], index: 5, kind: output, shape index: {}]  }
   0x1   :  { %v4388_v0 = vld [vmem:[%s6561_s1 + $0x4] ss:$8 sps:$4 sm:$0xff]   ;;  %v4392_v2 = vld [vmem:[%s6561_s1] ss:$8 sps:$4 sm:$0xff]   ;;  %v4394_v4 = vld [vmem:[%s6561_s1 + $0x14] ss:$8 sps:$4 sm:$0xff]  }
   0x2   :  { %v4390_v1 = vld [vmem:[%s6561_s1 + $0x404] ss:$8 sps:$4 sm:$0xff]   ;;  %2336 = vmatprep.subr.bf16.mxu1 %v4388_v0  ;;  %v4393_v3 = vld [vmem:[%s6561_s1 + $0x400] ss:$8 sps:$4 sm:$0xff]   ;;  %v4396_v5 = vld [vmem:[%s6561_s1 + $0x414] ss:$8 sps:$4 sm:$0xff]  }
   0x3   :  { %2788 = vmatprep.subr.bf16.mxu0 %v4390_v1  ;;  %2337 = vmatpush1.bf16.msra.mxu1 %v4392_v2  ;;  %v4398_v6 = vld [vmem:[%s6561_s1 + $0x10] ss:$8 sps:$4 sm:$0xff]   ;;  %v4400_v8 = vld [vmem:[%s6561_s1 + $0x24] ss:$8 sps:$4 sm:$0xff]   ;;  %v4404_v10 = vld [vmem:[%s6561_s1 + $0x20] ss:$8 sps:$4 sm:$0xff]  }
   0x4   :  { %2789 = vmatpush1.bf16.msra.mxu0 %v4393_v3  ;;  %2338 = vmatprep.subr.bf16.mxu1 %v4394_v4  ;;  %v4399_v7 = vld [vmem:[%s6561_s1 + $0x410] ss:$8 sps:$4 sm:$0xff]   ;;  %v4402_v9 = vld [vmem:[%s6561_s1 + $0x424] ss:$8 sps:$4 sm:$0xff]   ;;  %v4405_v11 = vld [vmem:[%s6561_s1 + $0x420] ss:$8 sps:$4 sm:$0xff]  }
   0x5   :  { %2790 = vmatprep.subr.bf16.mxu0 %v4396_v5  ;;  %v4406_v12 = vld [vmem:[%s6561_s1 + $0x34] ss:$8 sps:$4 sm:$0xff]   ;;  %v4410_v14 = vld [vmem:[%s6561_s1 + $0x30] ss:$8 sps:$4 sm:$0xff]   ;;  %v4412_v16 = vld [vmem:[%s6561_s1 + $0x44] ss:$8 sps:$4 sm:$0xff]  }
   0x6   :  { %v4408_v13 = vld [vmem:[%s6561_s1 + $0x434] ss:$8 sps:$4 sm:$0xff]   ;;  %v4411_v15 = vld [vmem:[%s6561_s1 + $0x430] ss:$8 sps:$4 sm:$0xff]   ;;  %v4414_v17 = vld [vmem:[%s6561_s1 + $0x444] ss:$8 sps:$4 sm:$0xff]  }
   0x7   :  { %2339 = vmatpush1.bf16.msra.mxu1 %v4398_v6  ;;  %v4416_v18 = vld [vmem:[%s6561_s1 + $0x40] ss:$8 sps:$4 sm:$0xff]   ;;  %v4418_v20 = vld [vmem:[%s6561_s1 + $0x54] ss:$8 sps:$4 sm:$0xff]   ;;  %v4422_v22 = vld [vmem:[%s6561_s1 + $0x50] ss:$8 sps:$4 sm:$0xff]  }
   0x8   :  { %2791 = vmatpush1.bf16.msra.mxu0 %v4399_v7  ;;  %2340 = vmatprep.subr.bf16.mxu1 %v4400_v8  ;;  %v4417_v19 = vld [vmem:[%s6561_s1 + $0x440] ss:$8 sps:$4 sm:$0xff]   ;;  %v4420_v21 = vld [vmem:[%s6561_s1 + $0x454] ss:$8 sps:$4 sm:$0xff]   ;;  %v4423_v23 = vld [vmem:[%s6561_s1 + $0x450] ss:$8 sps:$4 sm:$0xff]  }
   0x9   :  { %2792 = vmatprep.subr.bf16.mxu0 %v4402_v9  ;;  %v4424_v24 = vld [vmem:[%s6561_s1 + $0x64] ss:$8 sps:$4 sm:$0xff]   ;;  %v4428_v26 = vld [vmem:[%s6561_s1 + $0x60] ss:$8 sps:$4 sm:$0xff]   ;;  %v4430_v28 = vld [vmem:[%s6561_s1 + $0x74] ss:$8 sps:$4 sm:$0xff]  }
   0xa   :  { %v4426_v25 = vld [vmem:[%s6561_s1 + $0x464] ss:$8 sps:$4 sm:$0xff]   ;;  %v4429_v27 = vld [vmem:[%s6561_s1 + $0x460] ss:$8 sps:$4 sm:$0xff]   ;;  %v4432_v29 = vld [vmem:[%s6561_s1 + $0x474] ss:$8 sps:$4 sm:$0xff]  }
   0xb   :  { %2341 = vmatpush1.bf16.msra.mxu1 %v4404_v10  ;;  %v4434_v30 = vld [vmem:[%s6561_s1 + $0x70] ss:$8 sps:$4 sm:$0xff]   ;;  %v4436_v32 = vld [vmem:[%s6561_s1 + $0x84] ss:$8 sps:$4 sm:$0xff]   ;;  %v4440_v34 = vld [vmem:[%s6561_s1 + $0x80] ss:$8 sps:$4 sm:$0xff]  }
   0xc   :  { %2793 = vmatpush1.bf16.msra.mxu0 %v4405_v11  ;;  %2342 = vmatprep.subr.bf16.mxu1 %v4406_v12  ;;  %v4435_v31 = vld [vmem:[%s6561_s1 + $0x470] ss:$8 sps:$4 sm:$0xff]   ;;  %v4438_v33 = vld [vmem:[%s6561_s1 + $0x484] ss:$8 sps:$4 sm:$0xff]   ;;  %v4441_v35 = vld [vmem:[%s6561_s1 + $0x480] ss:$8 sps:$4 sm:$0xff]  }
   0xd   :  { %2794 = vmatprep.subr.bf16.mxu0 %v4408_v13  ;;  %v4442_v36 = vld [vmem:[%s6561_s1 + $0x94] ss:$8 sps:$4 sm:$0xff]   ;;  %v4446_v38 = vld [vmem:[%s6561_s1 + $0x90] ss:$8 sps:$4 sm:$0xff]   ;;  %v4448_v40 = vld [vmem:[%s6561_s1 + $0xa4] ss:$8 sps:$4 sm:$0xff]  }
   0xe   :  { %v4444_v37 = vld [vmem:[%s6561_s1 + $0x494] ss:$8 sps:$4 sm:$0xff]   ;;  %v4447_v39 = vld [vmem:[%s6561_s1 + $0x490] ss:$8 sps:$4 sm:$0xff]   ;;  %v4450_v41 = vld [vmem:[%s6561_s1 + $0x4a4] ss:$8 sps:$4 sm:$0xff]  }
   0xf   :  { %2343 = vmatpush1.bf16.msra.mxu1 %v4410_v14  ;;  %v4452_v42 = vld [vmem:[%s6561_s1 + $0xa0] ss:$8 sps:$4 sm:$0xff]   ;;  %v4454_v44 = vld [vmem:[%s6561_s1 + $0xb4] ss:$8 sps:$4 sm:$0xff]   ;;  %v4458_v46 = vld [vmem:[%s6561_s1 + $0xb0] ss:$8 sps:$4 sm:$0xff]  }
  0x10   :  { %2795 = vmatpush1.bf16.msra.mxu0 %v4411_v15  ;;  %2344 = vmatprep.subr.bf16.mxu1 %v4412_v16  ;;  %v4453_v43 = vld [vmem:[%s6561_s1 + $0x4a0] ss:$8 sps:$4 sm:$0xff]   ;;  %v4456_v45 = vld [vmem:[%s6561_s1 + $0x4b4] ss:$8 sps:$4 sm:$0xff]   ;;  %v4459_v47 = vld [vmem:[%s6561_s1 + $0x4b0] ss:$8 sps:$4 sm:$0xff]  }
  0x11   :  { %2796 = vmatprep.subr.bf16.mxu0 %v4414_v17  ;;  %v20_v48 = vld [vmem:[%s6562_s0] sm:$0xff]  ;;  %v4466_v58 = vld [vmem:[%s6561_s1 + $0xd4] ss:$8 sps:$4 sm:$0xff]   ;;  %v4470_v60 = vld [vmem:[%s6561_s1 + $0xd0] ss:$8 sps:$4 sm:$0xff]  }
  0x12   :  { %v28_v49 = vld [vmem:[%s6562_s0 + $0x40] sm:$0xff]  ;;  %v4468_v59 = vld [vmem:[%s6561_s1 + $0x4d4] ss:$8 sps:$4 sm:$0xff]   ;;  %v4471_v61 = vld [vmem:[%s6561_s1 + $0x4d0] ss:$8 sps:$4 sm:$0xff]  }
  0x13   :  { %2345 = vmatpush1.bf16.msra.mxu1 %v4416_v18  ;;  %v24_v50 = vld [vmem:[%s6562_s0 + $0x20] sm:$0xff]  ;;  %v3716_v53 = vcombine.high %v20_v48, %v28_v49  ;;  %v4478_v2 = vld [vmem:[%s6561_s1 + $0xf4] ss:$8 sps:$4 sm:$0xff]   ;;  %v4482_v4 = vld [vmem:[%s6561_s1 + $0xf0] ss:$8 sps:$4 sm:$0xff]   ;;  %v3715_v11 = vcombine.low %v20_v48, %v28_v49 }
  0x14   :  { %2797 = vmatpush1.bf16.msra.mxu0 %v4417_v19  ;;  %2346 = vmatprep.subr.bf16.mxu1 %v4418_v20  ;;  %v32_v51 = vld [vmem:[%s6562_s0 + $0x60] sm:$0xff]  ;;  %v4480_v3 = vld [vmem:[%s6561_s1 + $0x4f4] ss:$8 sps:$4 sm:$0xff]   ;;  %v4483_v5 = vld [vmem:[%s6561_s1 + $0x4f0] ss:$8 sps:$4 sm:$0xff]  }
  0x15   :  { %2798 = vmatprep.subr.bf16.mxu0 %v4420_v21  ;;  %v4460_v52 = vld [vmem:[%s6561_s1 + $0xc4] ss:$8 sps:$4 sm:$0xff]   ;;  %v3724_v55 = vcombine.high %v24_v50, %v32_v51  ;;  %2368 = vmatprep.mubr.bf16.mxu1 %v3716_v53  ;;  %v4464_v56 = vld [vmem:[%s6561_s1 + $0xc0] ss:$8 sps:$4 sm:$0xff]   ;;  %v3723_v12 = vcombine.low %v24_v50, %v32_v51  ;;  %v4492_v16 = vld [vmem:[%s6561_s1 + $0x114] ss:$8 sps:$4 sm:$0xff]  }
  0x16   :  { %v4462_v54 = vld [vmem:[%s6561_s1 + $0x4c4] ss:$8 sps:$4 sm:$0xff]   ;;  %v4465_v57 = vld [vmem:[%s6561_s1 + $0x4c0] ss:$8 sps:$4 sm:$0xff]   ;;  %v4495_v17 = vld [vmem:[%s6561_s1 + $0x514] ss:$8 sps:$4 sm:$0xff]  }
  0x17   :  { %2347 = vmatpush1.bf16.msra.mxu1 %v4422_v22  ;;  %2820 = vmatprep.mubr.bf16.mxu0 %v3724_v55  ;;  %v4472_v62 = vld [vmem:[%s6561_s1 + $0xe4] ss:$8 sps:$4 sm:$0xff]   ;;  %v4476_v0 = vld [vmem:[%s6561_s1 + $0xe0] ss:$8 sps:$4 sm:$0xff]   ;;  %v4490_v20 = vld [vmem:[%s6561_s1 + $0x110] ss:$8 sps:$4 sm:$0xff]  }
  0x18   :  { %2799 = vmatpush1.bf16.msra.mxu0 %v4423_v23  ;;  %2348 = vmatprep.subr.bf16.mxu1 %v4424_v24  ;;  %v4474_v63 = vld [vmem:[%s6561_s1 + $0x4e4] ss:$8 sps:$4 sm:$0xff]   ;;  %v4477_v1 = vld [vmem:[%s6561_s1 + $0x4e0] ss:$8 sps:$4 sm:$0xff]   ;;  %v4493_v21 = vld [vmem:[%s6561_s1 + $0x510] ss:$8 sps:$4 sm:$0xff]  }
  0x19   :  { %2800 = vmatprep.subr.bf16.mxu0 %v4426_v25  ;;  %v4486_v6 = vld [vmem:[%s6561_s1 + $0x104] ss:$8 sps:$4 sm:$0xff]   ;;  %v4484_v8 = vld [vmem:[%s6561_s1 + $0x100] ss:$8 sps:$4 sm:$0xff]   ;;  %v4516_v48 = vld [vmem:[%s6561_s1 + $0x154] ss:$8 sps:$4 sm:$0xff]  }
  0x1a   :  { %v4489_v7 = vld [vmem:[%s6561_s1 + $0x504] ss:$8 sps:$4 sm:$0xff]   ;;  %v4487_v9 = vld [vmem:[%s6561_s1 + $0x500] ss:$8 sps:$4 sm:$0xff]   ;;  %v4519_v49 = vld [vmem:[%s6561_s1 + $0x554] ss:$8 sps:$4 sm:$0xff]  }
  0x1b   :  { %2349 = vmatpush1.bf16.msra.mxu1 %v4428_v26  ;;  %v36_v10 = vld [vmem:[%s6562_s0 + $0x80] sm:$0xff]  ;;  %v4517_v53 = vld [vmem:[%s6561_s1 + $0x550] ss:$8 sps:$4 sm:$0xff]  }
  0x1c   :  { %2801 = vmatpush1.bf16.msra.mxu0 %v4429_v27  ;;  %2350 = vmatprep.subr.bf16.mxu1 %v4430_v28  ;;  %v44_v13 = vld [vmem:[%s6562_s0 + $0xc0] sm:$0xff] }
  0x1d   :  { %2802 = vmatprep.subr.bf16.mxu0 %v4432_v29  ;;  %v40_v14 = vld [vmem:[%s6562_s0 + $0xa0] sm:$0xff]  ;;  %v3732_v18 = vcombine.high %v36_v10, %v44_v13  ;;  %v3731_v28 = vcombine.low %v36_v10, %v44_v13 }
  0x1e   :  { %v48_v15 = vld [vmem:[%s6562_s0 + $0xe0] sm:$0xff] }
  0x1f   :  { %2351 = vmatpush1.bf16.msra.mxu1 %v4434_v30  ;;  %v3740_v19 = vcombine.high %v40_v14, %v48_v15  ;;  %v4498_v22 = vld [vmem:[%s6561_s1 + $0x124] ss:$8 sps:$4 sm:$0xff]   ;;  %v4496_v24 = vld [vmem:[%s6561_s1 + $0x120] ss:$8 sps:$4 sm:$0xff]   ;;  %v3739_v29 = vcombine.low %v40_v14, %v48_v15 }
  0x20   :  { %2803 = vmatpush1.bf16.msra.mxu0 %v4435_v31  ;;  %2352 = vmatprep.subr.bf16.mxu1 %v4436_v32  ;;  %v4501_v23 = vld [vmem:[%s6561_s1 + $0x524] ss:$8 sps:$4 sm:$0xff]   ;;  %v4499_v25 = vld [vmem:[%s6561_s1 + $0x520] ss:$8 sps:$4 sm:$0xff]   ;;  %v4504_v32 = vld [vmem:[%s6561_s1 + $0x134] ss:$8 sps:$4 sm:$0xff]  }
  0x21   :  { %2804 = vmatprep.subr.bf16.mxu0 %v4438_v33  ;;  %v52_v26 = vld [vmem:[%s6562_s0 + $0x100] sm:$0xff]  ;;  %v4507_v33 = vld [vmem:[%s6561_s1 + $0x534] ss:$8 sps:$4 sm:$0xff]  }
  0x22   :  { %v60_v27 = vld [vmem:[%s6562_s0 + $0x140] sm:$0xff] }
  0x23   :  { %2353 = vmatpush1.bf16.msra.mxu1 %v4440_v34  ;;  %v56_v30 = vld [vmem:[%s6562_s0 + $0x120] sm:$0xff]  ;;  %v3748_v34 = vcombine.high %v52_v26, %v60_v27 }
  0x24   :  { %2805 = vmatpush1.bf16.msra.mxu0 %v4441_v35  ;;  %2354 = vmatprep.subr.bf16.mxu1 %v4442_v36  ;;  %v64_v31 = vld [vmem:[%s6562_s0 + $0x160] sm:$0xff]  ;;  %v4502_v36 = vld [vmem:[%s6561_s1 + $0x130] ss:$8 sps:$4 sm:$0xff]  }
  0x25   :  { %2806 = vmatprep.subr.bf16.mxu0 %v4444_v37  ;;  %v3756_v35 = vcombine.high %v56_v30, %v64_v31  ;;  %v4505_v37 = vld [vmem:[%s6561_s1 + $0x530] ss:$8 sps:$4 sm:$0xff]   ;;  %v4525_v55 = vld [vmem:[%s6561_s1 + $0x564] ss:$8 sps:$4 sm:$0xff]   ;;  %v4532_v14 = vld [vmem:[%s6561_s1 + $0x180] ss:$8 sps:$4 sm:$0xff]  }
  0x26   :  { %v112_v13 = vld [vmem:[%s6562_s0 + $0x2e0] sm:$0xff] }
  0x27   :  { %2355 = vmatpush1.bf16.msra.mxu1 %v4446_v38  ;;  %v4510_v38 = vld [vmem:[%s6561_s1 + $0x144] ss:$8 sps:$4 sm:$0xff]   ;;  %v4535_v15 = vld [vmem:[%s6561_s1 + $0x580] ss:$8 sps:$4 sm:$0xff]  }
  0x28   :  { %2807 = vmatpush1.bf16.msra.mxu0 %v4447_v39  ;;  %2356 = vmatprep.subr.bf16.mxu1 %v4448_v40  ;;  %v4513_v39 = vld [vmem:[%s6561_s1 + $0x544] ss:$8 sps:$4 sm:$0xff]   ;;  %v4508_v40 = vld [vmem:[%s6561_s1 + $0x140] ss:$8 sps:$4 sm:$0xff]  }
  0x29   :  { %2808 = vmatprep.subr.bf16.mxu0 %v4450_v41  ;;  %v4511_v41 = vld [vmem:[%s6561_s1 + $0x540] ss:$8 sps:$4 sm:$0xff]  }
  0x2b   :  { %2357 = vmatpush1.bf16.msra.mxu1 %v4452_v42  ;;  %v68_v42 = vld [vmem:[%s6562_s0 + $0x180] sm:$0xff] }
  0x2c   :  { %2809 = vmatpush1.bf16.msra.mxu0 %v4453_v43  ;;  %2358 = vmatprep.subr.bf16.mxu1 %v4454_v44  ;;  %v76_v43 = vld [vmem:[%s6562_s0 + $0x1c0] sm:$0xff]  ;;  %v3747_v44 = vcombine.low %v52_v26, %v60_v27 }
  0x2d   :  { %2810 = vmatprep.subr.bf16.mxu0 %v4456_v45  ;;  %v3755_v45 = vcombine.low %v56_v30, %v64_v31  ;;  %v3764_v50 = vcombine.high %v68_v42, %v76_v43  ;;  %v116_v26 = vld [vmem:[%s6562_s0 + $0x300] sm:$0xff] }
  0x2e   :  { %v120_v30 = vld [vmem:[%s6562_s0 + $0x320] sm:$0xff] }
  0x2f   :  { %2359 = vmatpush1.bf16.msra.mxu1 %v4458_v46  ;;  %v72_v46 = vld [vmem:[%s6562_s0 + $0x1a0] sm:$0xff] }
  0x30   :  { %2811 = vmatpush1.bf16.msra.mxu0 %v4459_v47  ;;  %2360 = vmatprep.subr.bf16.mxu1 %v4460_v52  ;;  %v80_v47 = vld [vmem:[%s6562_s0 + $0x1e0] sm:$0xff]  ;;  %v4514_v52 = vld [vmem:[%s6561_s1 + $0x150] ss:$8 sps:$4 sm:$0xff]  }
  0x31   :  { %2812 = vmatprep.subr.bf16.mxu0 %v4462_v54  ;;  %v3772_v51 = vcombine.high %v72_v46, %v80_v47  ;;  %v4522_v54 = vld [vmem:[%s6561_s1 + $0x164] ss:$8 sps:$4 sm:$0xff]  }
  0x32   :  { %v128_v31 = vld [vmem:[%s6562_s0 + $0x360] sm:$0xff] }
  0x33   :  { %2361 = vmatpush1.bf16.msra.mxu1 %v4464_v56  ;;  %v4520_v56 = vld [vmem:[%s6561_s1 + $0x160] ss:$8 sps:$4 sm:$0xff]  }
  0x34   :  { %2813 = vmatpush1.bf16.msra.mxu0 %v4465_v57  ;;  %2362 = vmatprep.subr.bf16.mxu1 %v4466_v58  ;;  %v84_v57 = vld [vmem:[%s6562_s0 + $0x200] sm:$0xff] }
  0x35   :  { %2814 = vmatprep.subr.bf16.mxu0 %v4468_v59  ;;  %v92_v58 = vld [vmem:[%s6562_s0 + $0x240] sm:$0xff]  ;;  %v3763_v59 = vcombine.low %v68_v42, %v76_v43 }
  0x36   :  { %v3779_v10 = vcombine.low %v84_v57, %v92_v58  ;;  %v132_v42 = vld [vmem:[%s6562_s0 + $0x380] sm:$0xff] }
  0x37   :  { %2363 = vmatpush1.bf16.msra.mxu1 %v4470_v60  ;;  %v3771_v60 = vcombine.low %v72_v46, %v80_v47  ;;  %v140_v43 = vld [vmem:[%s6562_s0 + $0x3c0] sm:$0xff] }
  0x38   :  { %2815 = vmatpush1.bf16.msra.mxu0 %v4471_v61  ;;  %2364 = vmatprep.subr.bf16.mxu1 %v4472_v62  ;;  %v88_v61 = vld [vmem:[%s6562_s0 + $0x220] sm:$0xff] }
  0x39   :  { %2816 = vmatprep.subr.bf16.mxu0 %v4474_v63  ;;  %v96_v62 = vld [vmem:[%s6562_s0 + $0x260] sm:$0xff] }
  0x3a   :  { %v4523_v63 = vld [vmem:[%s6561_s1 + $0x560] ss:$8 sps:$4 sm:$0xff]  }
  0x3b   :  { %2365 = vmatpush1.bf16.msra.mxu1 %v4476_v0  ;;  %v4528_v0 = vld [vmem:[%s6561_s1 + $0x174] ss:$8 sps:$4 sm:$0xff]   ;;  %v136_v46 = vld [vmem:[%s6562_s0 + $0x3a0] sm:$0xff] }
  0x3c   :  { %2817 = vmatpush1.bf16.msra.mxu0 %v4477_v1  ;;  %2366 = vmatprep.subr.bf16.mxu1 %v4478_v2  ;;  %v4531_v1 = vld [vmem:[%s6561_s1 + $0x574] ss:$8 sps:$4 sm:$0xff]   ;;  %v3780_v2 = vcombine.high %v84_v57, %v92_v58  ;;  %v144_v47 = vld [vmem:[%s6562_s0 + $0x3e0] sm:$0xff]  ;;  %v21_v58 = vld [vmem:[%s6562_s0 + $0x8] sm:$0xff] }
  0x3d   :  { %2818 = vmatprep.subr.bf16.mxu0 %v4480_v3  ;;  %v3788_v3 = vcombine.high %v88_v61, %v96_v62  ;;  %v4571_v57 = vld [vmem:[%s6561_s1 + $0x5e0] ss:$8 sps:$4 sm:$0xff]  }
  0x3f   :  { %2367 = vmatpush1.bf16.msra.mxu1 %v4482_v4  ;;  %v4526_v4 = vld [vmem:[%s6561_s1 + $0x170] ss:$8 sps:$4 sm:$0xff]  }
  0x40   :  { %2819 = vmatpush1.bf16.msra.mxu0 %v4483_v5  ;;  %2449 = vmatprep.subr.bf16.mxu1 %v4486_v6  ;;  %v4529_v5 = vld [vmem:[%s6561_s1 + $0x570] ss:$8 sps:$4 sm:$0xff]   ;;  %v4534_v6 = vld [vmem:[%s6561_s1 + $0x184] ss:$8 sps:$4 sm:$0xff]  }
  0x41   :  { %2901 = vmatprep.subr.bf16.mxu0 %v4489_v7  ;;  %v4537_v7 = vld [vmem:[%s6561_s1 + $0x584] ss:$8 sps:$4 sm:$0xff]  }
  0x42   :  { %2369 = vmatmul.mubr.bf16.vlgmr.msra.gmra.mrb[0].mxu1 %v3715_v11  ;;  %v3787_v11 = vcombine.low %v88_v61, %v96_v62  ;;  %v3835_v61 = vcombine.low %v136_v46, %v144_v47  ;;  %v25_v62 = vld [vmem:[%s6562_s0 + $0x28] sm:$0xff] }
  0x43   :  { %2821 = vmatmul.mubr.bf16.vlgmr.msra.gmra.mrb[0].mxu0 %v3723_v12  ;;  %2450 = vmatpush1.bf16.msra.mxu1 %v4484_v8  ;;  %v100_v8 = vld [vmem:[%s6562_s0 + $0x280] sm:$0xff] }
  0x44   :  { %2902 = vmatpush1.bf16.msra.mxu0 %v4487_v9  ;;  %2451 = vmatprep.subr.bf16.mxu1 %v4492_v16  ;;  %v108_v9 = vld [vmem:[%s6562_s0 + $0x2c0] sm:$0xff]  ;;  %v4540_v16 = vld [vmem:[%s6561_s1 + $0x194] ss:$8 sps:$4 sm:$0xff]  }
  0x45   :  { %2903 = vmatprep.subr.bf16.mxu0 %v4495_v17  ;;  %2378 = vmatprep.mubr.bf16.mxu1 %v3732_v18  ;;  %v104_v12 = vld [vmem:[%s6562_s0 + $0x2a0] sm:$0xff]  ;;  %v4543_v17 = vld [vmem:[%s6561_s1 + $0x594] ss:$8 sps:$4 sm:$0xff]   ;;  %v3796_v18 = vcombine.high %v100_v8, %v108_v9  ;;  %v3795_v27 = vcombine.low %v100_v8, %v108_v9  ;;  %v37_v9 = vld [vmem:[%s6562_s0 + $0x88] sm:$0xff] }
  0x46   :  { %2830 = vmatprep.mubr.bf16.mxu0 %v3740_v19  ;;  %v3804_v19 = vcombine.high %v104_v12, %v112_v13  ;;  %v4580_v8 = vld [vmem:[%s6561_s1 + $0x200] ss:$8 sps:$4 sm:$0xff]  }
  0x47   :  { %2452 = vmatpush1.bf16.msra.mxu1 %v4490_v20  ;;  %v4538_v20 = vld [vmem:[%s6561_s1 + $0x190] ss:$8 sps:$4 sm:$0xff]  }
  0x48   :  { %2904 = vmatpush1.bf16.msra.mxu0 %v4493_v21  ;;  %2453 = vmatprep.subr.bf16.mxu1 %v4498_v22  ;;  %v4541_v21 = vld [vmem:[%s6561_s1 + $0x590] ss:$8 sps:$4 sm:$0xff]   ;;  %v4546_v22 = vld [vmem:[%s6561_s1 + $0x1a4] ss:$8 sps:$4 sm:$0xff]  }
  0x49   :  { %2905 = vmatprep.subr.bf16.mxu0 %v4501_v23  ;;  %v4549_v23 = vld [vmem:[%s6561_s1 + $0x5a4] ss:$8 sps:$4 sm:$0xff]  }
  0x4a   :  { %2379 = vmatmul.mubr.bf16.gmra.mrb[4].mxu1 %v3731_v28  ;;  %v3803_v28 = vcombine.low %v104_v12, %v112_v13  ;;  %v41_v13 = vld [vmem:[%s6562_s0 + $0xa8] sm:$0xff] }
  0x4b   :  { %2831 = vmatmul.mubr.bf16.gmra.mrb[4].mxu0 %v3739_v29  ;;  %2454 = vmatpush1.bf16.msra.mxu1 %v4496_v24  ;;  %v4544_v24 = vld [vmem:[%s6561_s1 + $0x1a0] ss:$8 sps:$4 sm:$0xff]  }
  0x4c   :  { %2906 = vmatpush1.bf16.msra.mxu0 %v4499_v25  ;;  %2455 = vmatprep.subr.bf16.mxu1 %v4504_v32  ;;  %v4547_v25 = vld [vmem:[%s6561_s1 + $0x5a0] ss:$8 sps:$4 sm:$0xff]   ;;  %v4552_v32 = vld [vmem:[%s6561_s1 + $0x1b4] ss:$8 sps:$4 sm:$0xff]  }
  0x4d   :  { %2907 = vmatprep.subr.bf16.mxu0 %v4507_v33  ;;  %2388 = vmatprep.mubr.bf16.mxu1 %v3748_v34  ;;  %v124_v29 = vld [vmem:[%s6562_s0 + $0x340] sm:$0xff]  ;;  %v4555_v33 = vld [vmem:[%s6561_s1 + $0x5b4] ss:$8 sps:$4 sm:$0xff]  }
  0x4e   :  { %2840 = vmatprep.mubr.bf16.mxu0 %v3756_v35  ;;  %v3812_v34 = vcombine.high %v116_v26, %v124_v29  ;;  %v3820_v35 = vcombine.high %v120_v30, %v128_v31 }
  0x4f   :  { %2456 = vmatpush1.bf16.msra.mxu1 %v4502_v36  ;;  %v4550_v36 = vld [vmem:[%s6561_s1 + $0x1b0] ss:$8 sps:$4 sm:$0xff]  }
  0x50   :  { %2908 = vmatpush1.bf16.msra.mxu0 %v4505_v37  ;;  %2457 = vmatprep.subr.bf16.mxu1 %v4510_v38  ;;  %v4553_v37 = vld [vmem:[%s6561_s1 + $0x5b0] ss:$8 sps:$4 sm:$0xff]   ;;  %v4558_v38 = vld [vmem:[%s6561_s1 + $0x1c4] ss:$8 sps:$4 sm:$0xff]  }
  0x51   :  { %2909 = vmatprep.subr.bf16.mxu0 %v4513_v39  ;;  %v4561_v39 = vld [vmem:[%s6561_s1 + $0x5c4] ss:$8 sps:$4 sm:$0xff]  }
  0x52   :  { %2389 = vmatmul.mubr.bf16.gmra.mrb[8].mxu1 %v3747_v44  ;;  %v3811_v44 = vcombine.low %v116_v26, %v124_v29  ;;  %v65_v29 = vld [vmem:[%s6562_s0 + $0x168] sm:$0xff] }
  0x53   :  { %2841 = vmatmul.mubr.bf16.gmra.mrb[8].mxu0 %v3755_v45  ;;  %2458 = vmatpush1.bf16.msra.mxu1 %v4508_v40  ;;  %v4556_v40 = vld [vmem:[%s6561_s1 + $0x1c0] ss:$8 sps:$4 sm:$0xff]   ;;  %v3819_v45 = vcombine.low %v120_v30, %v128_v31 }
  0x54   :  { %2910 = vmatpush1.bf16.msra.mxu0 %v4511_v41  ;;  %2459 = vmatprep.subr.bf16.mxu1 %v4516_v48  ;;  %v4559_v41 = vld [vmem:[%s6561_s1 + $0x5c0] ss:$8 sps:$4 sm:$0xff]   ;;  %v4564_v48 = vld [vmem:[%s6561_s1 + $0x1d4] ss:$8 sps:$4 sm:$0xff]  }
  0x55   :  { %2911 = vmatprep.subr.bf16.mxu0 %v4519_v49  ;;  %2398 = vmatprep.mubr.bf16.mxu1 %v3764_v50  ;;  %v4567_v49 = vld [vmem:[%s6561_s1 + $0x5d4] ss:$8 sps:$4 sm:$0xff]   ;;  %v3828_v50 = vcombine.high %v132_v42, %v140_v43  ;;  %v4592_v30 = vld [vmem:[%s6561_s1 + $0x220] ss:$8 sps:$4 sm:$0xff]  }
  0x56   :  { %2850 = vmatprep.mubr.bf16.mxu0 %v3772_v51  ;;  %v3836_v51 = vcombine.high %v136_v46, %v144_v47  ;;  %v4595_v31 = vld [vmem:[%s6561_s1 + $0x620] ss:$8 sps:$4 sm:$0xff]  }
  0x57   :  { %2460 = vmatpush1.bf16.msra.mxu1 %v4514_v52  ;;  %v4562_v52 = vld [vmem:[%s6561_s1 + $0x1d0] ss:$8 sps:$4 sm:$0xff]   ;;  %v73_v46 = vld [vmem:[%s6562_s0 + $0x1a8] sm:$0xff] }
  0x58   :  { %2912 = vmatpush1.bf16.msra.mxu0 %v4517_v53  ;;  %2461 = vmatprep.subr.bf16.mxu1 %v4522_v54  ;;  %v4565_v53 = vld [vmem:[%s6561_s1 + $0x5d0] ss:$8 sps:$4 sm:$0xff]   ;;  %v4570_v54 = vld [vmem:[%s6561_s1 + $0x1e4] ss:$8 sps:$4 sm:$0xff]  }
  0x59   :  { %2913 = vmatprep.subr.bf16.mxu0 %v4525_v55  ;;  %v4573_v55 = vld [vmem:[%s6561_s1 + $0x5e4] ss:$8 sps:$4 sm:$0xff]  }
  0x5a   :  { %2399 = vmatmul.mubr.bf16.gmra.mrb[12].mxu1 %v3763_v59  ;;  %v29_v59 = vld [vmem:[%s6562_s0 + $0x48] sm:$0xff] }
  0x5b   :  { %2851 = vmatmul.mubr.bf16.gmra.mrb[12].mxu0 %v3771_v60  ;;  %2462 = vmatpush1.bf16.msra.mxu1 %v4520_v56  ;;  %v4568_v56 = vld [vmem:[%s6561_s1 + $0x1e0] ss:$8 sps:$4 sm:$0xff]   ;;  %v3827_v60 = vcombine.low %v132_v42, %v140_v43 }
  0x5c   :  { %2914 = vmatpush1.bf16.msra.mxu0 %v4523_v63  ;;  %2463 = vmatprep.subr.bf16.mxu1 %v4528_v0  ;;  %v33_v63 = vld [vmem:[%s6562_s0 + $0x68] sm:$0xff]  ;;  %v4576_v0 = vld [vmem:[%s6561_s1 + $0x1f4] ss:$8 sps:$4 sm:$0xff]  }
  0x5d   :  { %2915 = vmatprep.subr.bf16.mxu0 %v4531_v1  ;;  %2408 = vmatprep.mubr.bf16.mxu1 %v3780_v2  ;;  %v4579_v1 = vld [vmem:[%s6561_s1 + $0x5f4] ss:$8 sps:$4 sm:$0xff]   ;;  %v3718_v2 = vcombine.high %v21_v58, %v29_v59  ;;  %v3725_v12 = vcombine.low %v25_v62, %v33_v63  ;;  %v69_v42 = vld [vmem:[%s6562_s0 + $0x188] sm:$0xff] }
  0x5e   :  { %2860 = vmatprep.mubr.bf16.mxu0 %v3788_v3  ;;  %v3726_v3 = vcombine.high %v25_v62, %v33_v63  ;;  %v81_v47 = vld [vmem:[%s6562_s0 + $0x1e8] sm:$0xff] }
  0x5f   :  { %2464 = vmatpush1.bf16.msra.mxu1 %v4526_v4  ;;  %v4574_v4 = vld [vmem:[%s6561_s1 + $0x1f0] ss:$8 sps:$4 sm:$0xff]   ;;  %v89_v62 = vld [vmem:[%s6562_s0 + $0x228] sm:$0xff] }
  0x60   :  { %2916 = vmatpush1.bf16.msra.mxu0 %v4529_v5  ;;  %2465 = vmatprep.subr.bf16.mxu1 %v4534_v6  ;;  %v4577_v5 = vld [vmem:[%s6561_s1 + $0x5f0] ss:$8 sps:$4 sm:$0xff]   ;;  %v4582_v6 = vld [vmem:[%s6561_s1 + $0x204] ss:$8 sps:$4 sm:$0xff]  }
  0x61   :  { %2917 = vmatprep.subr.bf16.mxu0 %v4537_v7  ;;  %v4585_v7 = vld [vmem:[%s6561_s1 + $0x604] ss:$8 sps:$4 sm:$0xff]  }
  0x62   :  { %2409 = vmatmul.mubr.bf16.gmra.mrb[16].mxu1 %v3779_v10  ;;  %v45_v10 = vld [vmem:[%s6562_s0 + $0xc8] sm:$0xff] }
  0x63   :  { %2861 = vmatmul.mubr.bf16.gmra.mrb[16].mxu0 %v3787_v11  ;;  %2466 = vmatpush1.bf16.msra.mxu1 %v4532_v14  ;;  %v3717_v11 = vcombine.low %v21_v58, %v29_v59  ;;  %v49_v14 = vld [vmem:[%s6562_s0 + $0xe8] sm:$0xff]  ;;  %v3733_v26 = vcombine.low %v37_v9, %v45_v10 }
  0x64   :  { %2918 = vmatpush1.bf16.msra.mxu0 %v4535_v15  ;;  %2467 = vmatprep.subr.bf16.mxu1 %v4540_v16  ;;  %v4583_v15 = vld [vmem:[%s6561_s1 + $0x600] ss:$8 sps:$4 sm:$0xff]   ;;  %v4588_v16 = vld [vmem:[%s6561_s1 + $0x214] ss:$8 sps:$4 sm:$0xff]  }
  0x65   :  { %2919 = vmatprep.subr.bf16.mxu0 %v4543_v17  ;;  %2418 = vmatprep.mubr.bf16.mxu1 %v3796_v18  ;;  %v4591_v17 = vld [vmem:[%s6561_s1 + $0x614] ss:$8 sps:$4 sm:$0xff]   ;;  %v3734_v18 = vcombine.high %v37_v9, %v45_v10  ;;  %v85_v58 = vld [vmem:[%s6562_s0 + $0x208] sm:$0xff] }
  0x66   :  { %2870 = vmatprep.mubr.bf16.mxu0 %v3804_v19  ;;  %v3742_v19 = vcombine.high %v41_v13, %v49_v14  ;;  %v93_v59 = vld [vmem:[%s6562_s0 + $0x248] sm:$0xff] }
  0x67   :  { %2468 = vmatpush1.bf16.msra.mxu1 %v4538_v20  ;;  %v4586_v20 = vld [vmem:[%s6561_s1 + $0x210] ss:$8 sps:$4 sm:$0xff]   ;;  %v97_v63 = vld [vmem:[%s6562_s0 + $0x268] sm:$0xff] }
  0x68   :  { %2920 = vmatpush1.bf16.msra.mxu0 %v4541_v21  ;;  %2469 = vmatprep.subr.bf16.mxu1 %v4546_v22  ;;  %v4589_v21 = vld [vmem:[%s6561_s1 + $0x610] ss:$8 sps:$4 sm:$0xff]   ;;  %v4594_v22 = vld [vmem:[%s6561_s1 + $0x224] ss:$8 sps:$4 sm:$0xff]   ;;  %v4631_v9 = vld [vmem:[%s6561_s1 + $0x680] ss:$8 sps:$4 sm:$0xff]  }
  0x69   :  { %2921 = vmatprep.subr.bf16.mxu0 %v4549_v23  ;;  %v4597_v23 = vld [vmem:[%s6561_s1 + $0x624] ss:$8 sps:$4 sm:$0xff]  }
  0x6a   :  { %2419 = vmatmul.mubr.bf16.gmra.mrb[20].mxu1 %v3795_v27  ;;  %v3741_v27 = vcombine.low %v41_v13, %v49_v14  ;;  %v101_v10 = vld [vmem:[%s6562_s0 + $0x288] sm:$0xff]  ;;  %v3789_v13 = vcombine.low %v89_v62, %v97_v63 }
  0x6b   :  { %2871 = vmatmul.mubr.bf16.gmra.mrb[20].mxu0 %v3803_v28  ;;  %2470 = vmatpush1.bf16.msra.mxu1 %v4544_v24  ;;  %v53_v24 = vld [vmem:[%s6562_s0 + $0x108] sm:$0xff] }
  0x6c   :  { %2922 = vmatpush1.bf16.msra.mxu0 %v4547_v25  ;;  %2471 = vmatprep.subr.bf16.mxu1 %v4552_v32  ;;  %v61_v25 = vld [vmem:[%s6562_s0 + $0x148] sm:$0xff]  ;;  %v4600_v32 = vld [vmem:[%s6561_s1 + $0x234] ss:$8 sps:$4 sm:$0xff]  }
  0x6d   :  { %2923 = vmatprep.subr.bf16.mxu0 %v4555_v33  ;;  %2428 = vmatprep.mubr.bf16.mxu1 %v3812_v34  ;;  %v57_v28 = vld [vmem:[%s6562_s0 + $0x128] sm:$0xff]  ;;  %v4603_v33 = vld [vmem:[%s6561_s1 + $0x634] ss:$8 sps:$4 sm:$0xff]   ;;  %v3750_v34 = vcombine.high %v53_v24, %v61_v25  ;;  %v3749_v43 = vcombine.low %v53_v24, %v61_v25 }
  0x6e   :  { %2880 = vmatprep.mubr.bf16.mxu0 %v3820_v35  ;;  %v3758_v35 = vcombine.high %v57_v28, %v65_v29  ;;  %v105_v14 = vld [vmem:[%s6562_s0 + $0x2a8] sm:$0xff] }
  0x6f   :  { %2472 = vmatpush1.bf16.msra.mxu1 %v4550_v36  ;;  %v4598_v36 = vld [vmem:[%s6561_s1 + $0x230] ss:$8 sps:$4 sm:$0xff]   ;;  %v4640_v24 = vld [vmem:[%s6561_s1 + $0x2a0] ss:$8 sps:$4 sm:$0xff]  }
  0x70   :  { %2924 = vmatpush1.bf16.msra.mxu0 %v4553_v37  ;;  %2473 = vmatprep.subr.bf16.mxu1 %v4558_v38  ;;  %v4601_v37 = vld [vmem:[%s6561_s1 + $0x630] ss:$8 sps:$4 sm:$0xff]   ;;  %v4606_v38 = vld [vmem:[%s6561_s1 + $0x244] ss:$8 sps:$4 sm:$0xff]  }
  0x71   :  { %2925 = vmatprep.subr.bf16.mxu0 %v4561_v39  ;;  %v4609_v39 = vld [vmem:[%s6561_s1 + $0x644] ss:$8 sps:$4 sm:$0xff]  }
  0x72   :  { %2429 = vmatmul.mubr.bf16.gmra.mrb[24].mxu1 %v3811_v44  ;;  %v3757_v44 = vcombine.low %v57_v28, %v65_v29  ;;  %v117_v25 = vld [vmem:[%s6562_s0 + $0x308] sm:$0xff] }
  0x73   :  { %2881 = vmatmul.mubr.bf16.gmra.mrb[24].mxu0 %v3819_v45  ;;  %2474 = vmatpush1.bf16.msra.mxu1 %v4556_v40  ;;  %v4604_v40 = vld [vmem:[%s6561_s1 + $0x240] ss:$8 sps:$4 sm:$0xff]  }
  0x74   :  { %2926 = vmatpush1.bf16.msra.mxu0 %v4559_v41  ;;  %2475 = vmatprep.subr.bf16.mxu1 %v4564_v48  ;;  %v4607_v41 = vld [vmem:[%s6561_s1 + $0x640] ss:$8 sps:$4 sm:$0xff]   ;;  %v4612_v48 = vld [vmem:[%s6561_s1 + $0x254] ss:$8 sps:$4 sm:$0xff]  }
  0x75   :  { %2927 = vmatprep.subr.bf16.mxu0 %v4567_v49  ;;  %2438 = vmatprep.mubr.bf16.mxu1 %v3828_v50  ;;  %v77_v45 = vld [vmem:[%s6562_s0 + $0x1c8] sm:$0xff]  ;;  %v4615_v49 = vld [vmem:[%s6561_s1 + $0x654] ss:$8 sps:$4 sm:$0xff]  }
  0x76   :  { %2890 = vmatprep.mubr.bf16.mxu0 %v3836_v51  ;;  %v3766_v50 = vcombine.high %v69_v42, %v77_v45  ;;  %v3774_v51 = vcombine.high %v73_v46, %v81_v47  ;;  %v121_v29 = vld [vmem:[%s6562_s0 + $0x328] sm:$0xff] }
  0x77   :  { %2476 = vmatpush1.bf16.msra.mxu1 %v4562_v52  ;;  %v4610_v52 = vld [vmem:[%s6561_s1 + $0x250] ss:$8 sps:$4 sm:$0xff]  }
  0x78   :  { %2928 = vmatpush1.bf16.msra.mxu0 %v4565_v53  ;;  %2477 = vmatprep.subr.bf16.mxu1 %v4570_v54  ;;  %v4613_v53 = vld [vmem:[%s6561_s1 + $0x650] ss:$8 sps:$4 sm:$0xff]   ;;  %v4618_v54 = vld [vmem:[%s6561_s1 + $0x264] ss:$8 sps:$4 sm:$0xff]  }
  0x79   :  { %2929 = vmatprep.subr.bf16.mxu0 %v4573_v55  ;;  %v4621_v55 = vld [vmem:[%s6561_s1 + $0x664] ss:$8 sps:$4 sm:$0xff]  }
  0x7a   :  { %2439 = vmatmul.mubr.bf16.gmra.mrb[28].mxu1 %v3827_v60  ;;  %v3765_v60 = vcombine.low %v69_v42, %v77_v45  ;;  %v145_v45 = vld [vmem:[%s6562_s0 + $0x3e8] sm:$0xff] }
  0x7b   :  { %2891 = vmatmul.mubr.bf16.gmra.mrb[28].mxu0 %v3835_v61  ;;  %2478 = vmatpush1.bf16.msra.mxu1 %v4568_v56  ;;  %v4616_v56 = vld [vmem:[%s6561_s1 + $0x260] ss:$8 sps:$4 sm:$0xff]   ;;  %v3773_v61 = vcombine.low %v73_v46, %v81_v47 }
  0x7c   :  { %2930 = vmatpush1.bf16.msra.mxu0 %v4571_v57  ;;  %2479 = vmatprep.subr.bf16.mxu1 %v4576_v0  ;;  %v4619_v57 = vld [vmem:[%s6561_s1 + $0x660] ss:$8 sps:$4 sm:$0xff]   ;;  %v4624_v0 = vld [vmem:[%s6561_s1 + $0x274] ss:$8 sps:$4 sm:$0xff]  }
  0x7d   :  { %2931 = vmatprep.subr.bf16.mxu0 %v4579_v1  ;;  %2481 = vmatprep.mubr.bf16.mxu1 %v3718_v2  ;;  %v4627_v1 = vld [vmem:[%s6561_s1 + $0x674] ss:$8 sps:$4 sm:$0xff]   ;;  %v3782_v2 = vcombine.high %v85_v58, %v93_v59  ;;  %v4652_v46 = vld [vmem:[%s6561_s1 + $0x2c0] ss:$8 sps:$4 sm:$0xff]  }
  0x7e   :  { %2933 = vmatprep.mubr.bf16.mxu0 %v3726_v3  ;;  %v3790_v3 = vcombine.high %v89_v62, %v97_v63  ;;  %v4655_v47 = vld [vmem:[%s6561_s1 + $0x6c0] ss:$8 sps:$4 sm:$0xff]   ;;  %v26_v62 = vld [vmem:[%s6562_s0 + $0x30] sm:$0xff] }
  0x7f   :  { %2480 = vmatpush1.bf16.msra.mxu1 %v4574_v4  ;;  %v4622_v4 = vld [vmem:[%s6561_s1 + $0x270] ss:$8 sps:$4 sm:$0xff]  }
  0x80   :  { %2932 = vmatpush1.bf16.msra.mxu0 %v4577_v5  ;;  %2562 = vmatprep.subr.bf16.mxu1 %v4582_v6  ;;  %v4625_v5 = vld [vmem:[%s6561_s1 + $0x670] ss:$8 sps:$4 sm:$0xff]   ;;  %v4630_v6 = vld [vmem:[%s6561_s1 + $0x284] ss:$8 sps:$4 sm:$0xff]  }
  0x81   :  { %3014 = vmatprep.subr.bf16.mxu0 %v4585_v7  ;;  %v4633_v7 = vld [vmem:[%s6561_s1 + $0x684] ss:$8 sps:$4 sm:$0xff]   ;;  %v34_v63 = vld [vmem:[%s6562_s0 + $0x70] sm:$0xff] }
  0x82   :  { %2482 = vmatmul.mubr.bf16.vlgmr.msra.gmra.mrb[0].mxu1 %v3717_v11  ;;  %v109_v11 = vld [vmem:[%s6562_s0 + $0x2c8] sm:$0xff] }
  0x83   :  { %2934 = vmatmul.mubr.bf16.vlgmr.msra.gmra.mrb[0].mxu0 %v3725_v12  ;;  %2563 = vmatpush1.bf16.msra.mxu1 %v4580_v8  ;;  %v4628_v8 = vld [vmem:[%s6561_s1 + $0x280] ss:$8 sps:$4 sm:$0xff]   ;;  %v3781_v12 = vcombine.low %v85_v58, %v93_v59  ;;  %v22_v58 = vld [vmem:[%s6562_s0 + $0x10] sm:$0xff] }
  0x84   :  { %3015 = vmatpush1.bf16.msra.mxu0 %v4583_v15  ;;  %2564 = vmatprep.subr.bf16.mxu1 %v4588_v16  ;;  %v113_v15 = vld [vmem:[%s6562_s0 + $0x2e8] sm:$0xff]  ;;  %v4636_v16 = vld [vmem:[%s6561_s1 + $0x294] ss:$8 sps:$4 sm:$0xff]  }
  0x85   :  { %3016 = vmatprep.subr.bf16.mxu0 %v4591_v17  ;;  %2491 = vmatprep.mubr.bf16.mxu1 %v3734_v18  ;;  %v4639_v17 = vld [vmem:[%s6561_s1 + $0x694] ss:$8 sps:$4 sm:$0xff]   ;;  %v3798_v18 = vcombine.high %v101_v10, %v109_v11  ;;  %v3805_v28 = vcombine.low %v105_v14, %v113_v15 }
  0x86   :  { %2943 = vmatprep.mubr.bf16.mxu0 %v3742_v19  ;;  %v3806_v19 = vcombine.high %v105_v14, %v113_v15  ;;  %v42_v14 = vld [vmem:[%s6562_s0 + $0xb0] sm:$0xff] }
  0x87   :  { %2565 = vmatpush1.bf16.msra.mxu1 %v4586_v20  ;;  %v4634_v20 = vld [vmem:[%s6561_s1 + $0x290] ss:$8 sps:$4 sm:$0xff]  }
  0x88   :  { %3017 = vmatpush1.bf16.msra.mxu0 %v4589_v21  ;;  %2566 = vmatprep.subr.bf16.mxu1 %v4594_v22  ;;  %v4637_v21 = vld [vmem:[%s6561_s1 + $0x690] ss:$8 sps:$4 sm:$0xff]   ;;  %v4642_v22 = vld [vmem:[%s6561_s1 + $0x2a4] ss:$8 sps:$4 sm:$0xff]  }
  0x89   :  { %3018 = vmatprep.subr.bf16.mxu0 %v4597_v23  ;;  %v4645_v23 = vld [vmem:[%s6561_s1 + $0x6a4] ss:$8 sps:$4 sm:$0xff]   ;;  %v50_v15 = vld [vmem:[%s6562_s0 + $0xf0] sm:$0xff] }
  0x8a   :  { %2492 = vmatmul.mubr.bf16.gmra.mrb[4].mxu1 %v3733_v26  ;;  %v125_v26 = vld [vmem:[%s6562_s0 + $0x348] sm:$0xff] }
  0x8b   :  { %2944 = vmatmul.mubr.bf16.gmra.mrb[4].mxu0 %v3741_v27  ;;  %2567 = vmatpush1.bf16.msra.mxu1 %v4592_v30  ;;  %v3797_v27 = vcombine.low %v101_v10, %v109_v11  ;;  %v129_v30 = vld [vmem:[%s6562_s0 + $0x368] sm:$0xff]  ;;  %v3813_v42 = vcombine.low %v117_v25, %v125_v26  ;;  %v38_v10 = vld [vmem:[%s6562_s0 + $0x90] sm:$0xff] }
  0x8c   :  { %3019 = vmatpush1.bf16.msra.mxu0 %v4595_v31  ;;  %2568 = vmatprep.subr.bf16.mxu1 %v4600_v32  ;;  %v4643_v31 = vld [vmem:[%s6561_s1 + $0x6a0] ss:$8 sps:$4 sm:$0xff]   ;;  %v4648_v32 = vld [vmem:[%s6561_s1 + $0x2b4] ss:$8 sps:$4 sm:$0xff]  }
  0x8d   :  { %3020 = vmatprep.subr.bf16.mxu0 %v4603_v33  ;;  %2501 = vmatprep.mubr.bf16.mxu1 %v3750_v34  ;;  %v4651_v33 = vld [vmem:[%s6561_s1 + $0x6b4] ss:$8 sps:$4 sm:$0xff]   ;;  %v3814_v34 = vcombine.high %v117_v25, %v125_v26  ;;  %v4691_v25 = vld [vmem:[%s6561_s1 + $0x720] ss:$8 sps:$4 sm:$0xff]  }
  0x8e   :  { %2953 = vmatprep.mubr.bf16.mxu0 %v3758_v35  ;;  %v3822_v35 = vcombine.high %v121_v29, %v129_v30  ;;  %v46_v11 = vld [vmem:[%s6562_s0 + $0xd0] sm:$0xff] }
  0x8f   :  { %2569 = vmatpush1.bf16.msra.mxu1 %v4598_v36  ;;  %v4646_v36 = vld [vmem:[%s6561_s1 + $0x2b0] ss:$8 sps:$4 sm:$0xff]  }
  0x90   :  { %3021 = vmatpush1.bf16.msra.mxu0 %v4601_v37  ;;  %2570 = vmatprep.subr.bf16.mxu1 %v4606_v38  ;;  %v4649_v37 = vld [vmem:[%s6561_s1 + $0x6b0] ss:$8 sps:$4 sm:$0xff]   ;;  %v4654_v38 = vld [vmem:[%s6561_s1 + $0x2c4] ss:$8 sps:$4 sm:$0xff]  }
  0x91   :  { %3022 = vmatprep.subr.bf16.mxu0 %v4609_v39  ;;  %v4657_v39 = vld [vmem:[%s6561_s1 + $0x6c4] ss:$8 sps:$4 sm:$0xff]   ;;  %v54_v26 = vld [vmem:[%s6562_s0 + $0x110] sm:$0xff] }
  0x92   :  { %2502 = vmatmul.mubr.bf16.gmra.mrb[8].mxu1 %v3749_v43  ;;  %v3821_v43 = vcombine.low %v121_v29, %v129_v30  ;;  %v3743_v29 = vcombine.low %v42_v14, %v50_v15  ;;  %v58_v30 = vld [vmem:[%s6562_s0 + $0x130] sm:$0xff] }
  0x93   :  { %2954 = vmatmul.mubr.bf16.gmra.mrb[8].mxu0 %v3757_v44  ;;  %2571 = vmatpush1.bf16.msra.mxu1 %v4604_v40  ;;  %v133_v40 = vld [vmem:[%s6562_s0 + $0x388] sm:$0xff] }
  0x94   :  { %3023 = vmatpush1.bf16.msra.mxu0 %v4607_v41  ;;  %2572 = vmatprep.subr.bf16.mxu1 %v4612_v48  ;;  %v141_v41 = vld [vmem:[%s6562_s0 + $0x3c8] sm:$0xff]  ;;  %v4660_v48 = vld [vmem:[%s6561_s1 + $0x2d4] ss:$8 sps:$4 sm:$0xff]  }
  0x95   :  { %3024 = vmatprep.subr.bf16.mxu0 %v4615_v49  ;;  %2511 = vmatprep.mubr.bf16.mxu1 %v3766_v50  ;;  %v137_v44 = vld [vmem:[%s6562_s0 + $0x3a8] sm:$0xff]  ;;  %v4663_v49 = vld [vmem:[%s6561_s1 + $0x6d4] ss:$8 sps:$4 sm:$0xff]   ;;  %v3830_v50 = vcombine.high %v133_v40, %v141_v41  ;;  %v3829_v59 = vcombine.low %v133_v40, %v141_v41 }
  0x96   :  { %2963 = vmatprep.mubr.bf16.mxu0 %v3774_v51  ;;  %v3838_v51 = vcombine.high %v137_v44, %v145_v45  ;;  %v70_v40 = vld [vmem:[%s6562_s0 + $0x190] sm:$0xff] }
  0x97   :  { %2573 = vmatpush1.bf16.msra.mxu1 %v4610_v52  ;;  %v4658_v52 = vld [vmem:[%s6561_s1 + $0x2d0] ss:$8 sps:$4 sm:$0xff]  }
  0x98   :  { %3025 = vmatpush1.bf16.msra.mxu0 %v4613_v53  ;;  %2574 = vmatprep.subr.bf16.mxu1 %v4618_v54  ;;  %v4661_v53 = vld [vmem:[%s6561_s1 + $0x6d0] ss:$8 sps:$4 sm:$0xff]   ;;  %v4666_v54 = vld [vmem:[%s6561_s1 + $0x2e4] ss:$8 sps:$4 sm:$0xff]  }
  0x99   :  { %3026 = vmatprep.subr.bf16.mxu0 %v4621_v55  ;;  %v4669_v55 = vld [vmem:[%s6561_s1 + $0x6e4] ss:$8 sps:$4 sm:$0xff]  }
  0x9a   :  { %2512 = vmatmul.mubr.bf16.gmra.mrb[12].mxu1 %v3765_v60  ;;  %v3837_v60 = vcombine.low %v137_v44, %v145_v45  ;;  %v74_v44 = vld [vmem:[%s6562_s0 + $0x1b0] sm:$0xff] }
  0x9b   :  { %2964 = vmatmul.mubr.bf16.gmra.mrb[12].mxu0 %v3773_v61  ;;  %2575 = vmatpush1.bf16.msra.mxu1 %v4616_v56  ;;  %v4664_v56 = vld [vmem:[%s6561_s1 + $0x2e0] ss:$8 sps:$4 sm:$0xff]   ;;  %v30_v61 = vld [vmem:[%s6562_s0 + $0x50] sm:$0xff] }
  0x9c   :  { %3027 = vmatpush1.bf16.msra.mxu0 %v4619_v57  ;;  %2576 = vmatprep.subr.bf16.mxu1 %v4624_v0  ;;  %v4667_v57 = vld [vmem:[%s6561_s1 + $0x6e0] ss:$8 sps:$4 sm:$0xff]   ;;  %v4672_v0 = vld [vmem:[%s6561_s1 + $0x2f4] ss:$8 sps:$4 sm:$0xff]  }
  0x9d   :  { %3028 = vmatprep.subr.bf16.mxu0 %v4627_v1  ;;  %2521 = vmatprep.mubr.bf16.mxu1 %v3782_v2  ;;  %v4675_v1 = vld [vmem:[%s6561_s1 + $0x6f4] ss:$8 sps:$4 sm:$0xff]   ;;  %v3720_v2 = vcombine.high %v22_v58, %v30_v61 }
  0x9e   :  { %2973 = vmatprep.mubr.bf16.mxu0 %v3790_v3  ;;  %v3728_v3 = vcombine.high %v26_v62, %v34_v63  ;;  %v82_v45 = vld [vmem:[%s6562_s0 + $0x1f0] sm:$0xff] }
  0x9f   :  { %2577 = vmatpush1.bf16.msra.mxu1 %v4622_v4  ;;  %v4670_v4 = vld [vmem:[%s6561_s1 + $0x2f0] ss:$8 sps:$4 sm:$0xff]  }
  0xa0   :  { %3029 = vmatpush1.bf16.msra.mxu0 %v4625_v5  ;;  %2578 = vmatprep.subr.bf16.mxu1 %v4630_v6  ;;  %v4673_v5 = vld [vmem:[%s6561_s1 + $0x6f0] ss:$8 sps:$4 sm:$0xff]   ;;  %v4678_v6 = vld [vmem:[%s6561_s1 + $0x304] ss:$8 sps:$4 sm:$0xff]  }
  0xa1   :  { %3030 = vmatprep.subr.bf16.mxu0 %v4633_v7  ;;  %v4681_v7 = vld [vmem:[%s6561_s1 + $0x704] ss:$8 sps:$4 sm:$0xff]  }
  0xa2   :  { %2522 = vmatmul.mubr.bf16.gmra.mrb[16].mxu1 %v3781_v12  ;;  %v3719_v12 = vcombine.low %v22_v58, %v30_v61  ;;  %v3775_v58 = vcombine.low %v74_v44, %v82_v45  ;;  %v98_v61 = vld [vmem:[%s6562_s0 + $0x270] sm:$0xff] }
  0xa3   :  { %2974 = vmatmul.mubr.bf16.gmra.mrb[16].mxu0 %v3789_v13  ;;  %2579 = vmatpush1.bf16.msra.mxu1 %v4628_v8  ;;  %v4676_v8 = vld [vmem:[%s6561_s1 + $0x300] ss:$8 sps:$4 sm:$0xff]   ;;  %v3727_v13 = vcombine.low %v26_v62, %v34_v63 }
  0xa4   :  { %3031 = vmatpush1.bf16.msra.mxu0 %v4631_v9  ;;  %2580 = vmatprep.subr.bf16.mxu1 %v4636_v16  ;;  %v4679_v9 = vld [vmem:[%s6561_s1 + $0x700] ss:$8 sps:$4 sm:$0xff]   ;;  %v4684_v16 = vld [vmem:[%s6561_s1 + $0x314] ss:$8 sps:$4 sm:$0xff]  }
  0xa5   :  { %3032 = vmatprep.subr.bf16.mxu0 %v4639_v17  ;;  %2531 = vmatprep.mubr.bf16.mxu1 %v3798_v18  ;;  %v4687_v17 = vld [vmem:[%s6561_s1 + $0x714] ss:$8 sps:$4 sm:$0xff]   ;;  %v3736_v18 = vcombine.high %v38_v10, %v46_v11  ;;  %v4712_v62 = vld [vmem:[%s6561_s1 + $0x360] ss:$8 sps:$4 sm:$0xff]  }
  0xa6   :  { %2983 = vmatprep.mubr.bf16.mxu0 %v3806_v19  ;;  %v3744_v19 = vcombine.high %v42_v14, %v50_v15  ;;  %v4715_v63 = vld [vmem:[%s6561_s1 + $0x760] ss:$8 sps:$4 sm:$0xff]  }
  0xa7   :  { %2581 = vmatpush1.bf16.msra.mxu1 %v4634_v20  ;;  %v4682_v20 = vld [vmem:[%s6561_s1 + $0x310] ss:$8 sps:$4 sm:$0xff]   ;;  %v4724_v14 = vld [vmem:[%s6561_s1 + $0x380] ss:$8 sps:$4 sm:$0xff]  }
  0xa8   :  { %3033 = vmatpush1.bf16.msra.mxu0 %v4637_v21  ;;  %2582 = vmatprep.subr.bf16.mxu1 %v4642_v22  ;;  %v4685_v21 = vld [vmem:[%s6561_s1 + $0x710] ss:$8 sps:$4 sm:$0xff]   ;;  %v4690_v22 = vld [vmem:[%s6561_s1 + $0x324] ss:$8 sps:$4 sm:$0xff]   ;;  %v4727_v15 = vld [vmem:[%s6561_s1 + $0x780] ss:$8 sps:$4 sm:$0xff]  }
  0xa9   :  { %3034 = vmatprep.subr.bf16.mxu0 %v4645_v23  ;;  %v4693_v23 = vld [vmem:[%s6561_s1 + $0x724] ss:$8 sps:$4 sm:$0xff]  }
  0xaa   :  { %2532 = vmatmul.mubr.bf16.gmra.mrb[20].mxu1 %v3797_v27  ;;  %v62_v27 = vld [vmem:[%s6562_s0 + $0x150] sm:$0xff] }
  0xab   :  { %2984 = vmatmul.mubr.bf16.gmra.mrb[20].mxu0 %v3805_v28  ;;  %2583 = vmatpush1.bf16.msra.mxu1 %v4640_v24  ;;  %v4688_v24 = vld [vmem:[%s6561_s1 + $0x320] ss:$8 sps:$4 sm:$0xff]   ;;  %v3735_v28 = vcombine.low %v38_v10, %v46_v11  ;;  %v3751_v41 = vcombine.low %v54_v26, %v62_v27  ;;  %v110_v11 = vld [vmem:[%s6562_s0 + $0x2d0] sm:$0xff] }
  0xac   :  { %3035 = vmatpush1.bf16.msra.mxu0 %v4643_v31  ;;  %2584 = vmatprep.subr.bf16.mxu1 %v4648_v32  ;;  %v66_v31 = vld [vmem:[%s6562_s0 + $0x170] sm:$0xff] }
  0xad   :  { %3036 = vmatprep.subr.bf16.mxu0 %v4651_v33  ;;  %2541 = vmatprep.mubr.bf16.mxu1 %v3814_v34  ;;  %v4696_v32 = vld [vmem:[%s6561_s1 + $0x334] ss:$8 sps:$4 sm:$0xff]   ;;  %v3752_v34 = vcombine.high %v54_v26, %v62_v27 }
  0xae   :  { %2993 = vmatprep.mubr.bf16.mxu0 %v3822_v35  ;;  %v4699_v33 = vld [vmem:[%s6561_s1 + $0x734] ss:$8 sps:$4 sm:$0xff]   ;;  %v3760_v35 = vcombine.high %v58_v30, %v66_v31 }
  0xaf   :  { %2585 = vmatpush1.bf16.msra.mxu1 %v4646_v36  ;;  %v4694_v36 = vld [vmem:[%s6561_s1 + $0x330] ss:$8 sps:$4 sm:$0xff]  }
  0xb0   :  { %3037 = vmatpush1.bf16.msra.mxu0 %v4649_v37  ;;  %2586 = vmatprep.subr.bf16.mxu1 %v4654_v38  ;;  %v4697_v37 = vld [vmem:[%s6561_s1 + $0x730] ss:$8 sps:$4 sm:$0xff]   ;;  %v4702_v38 = vld [vmem:[%s6561_s1 + $0x344] ss:$8 sps:$4 sm:$0xff]  }
  0xb1   :  { %3038 = vmatprep.subr.bf16.mxu0 %v4657_v39  ;;  %v4705_v39 = vld [vmem:[%s6561_s1 + $0x744] ss:$8 sps:$4 sm:$0xff]   ;;  %v126_v27 = vld [vmem:[%s6562_s0 + $0x350] sm:$0xff] }
  0xb2   :  { %2542 = vmatmul.mubr.bf16.gmra.mrb[24].mxu1 %v3813_v42  ;;  %v3759_v42 = vcombine.low %v58_v30, %v66_v31  ;;  %v4736_v30 = vld [vmem:[%s6561_s1 + $0x3a0] ss:$8 sps:$4 sm:$0xff]  }
  0xb3   :  { %2994 = vmatmul.mubr.bf16.gmra.mrb[24].mxu0 %v3821_v43  ;;  %2587 = vmatpush1.bf16.msra.mxu1 %v4652_v46  ;;  %v78_v43 = vld [vmem:[%s6562_s0 + $0x1d0] sm:$0xff]  ;;  %v4700_v46 = vld [vmem:[%s6561_s1 + $0x340] ss:$8 sps:$4 sm:$0xff]  }
  0xb4   :  { %3039 = vmatpush1.bf16.msra.mxu0 %v4655_v47  ;;  %2588 = vmatprep.subr.bf16.mxu1 %v4660_v48  ;;  %v4703_v47 = vld [vmem:[%s6561_s1 + $0x740] ss:$8 sps:$4 sm:$0xff]   ;;  %v4708_v48 = vld [vmem:[%s6561_s1 + $0x354] ss:$8 sps:$4 sm:$0xff]  }
  0xb5   :  { %3040 = vmatprep.subr.bf16.mxu0 %v4663_v49  ;;  %2551 = vmatprep.mubr.bf16.mxu1 %v3830_v50  ;;  %v4711_v49 = vld [vmem:[%s6561_s1 + $0x754] ss:$8 sps:$4 sm:$0xff]   ;;  %v3768_v50 = vcombine.high %v70_v40, %v78_v43  ;;  %v4739_v31 = vld [vmem:[%s6561_s1 + $0x7a0] ss:$8 sps:$4 sm:$0xff]  }
  0xb6   :  { %3003 = vmatprep.mubr.bf16.mxu0 %v3838_v51  ;;  %v3776_v51 = vcombine.high %v74_v44, %v82_v45  ;;  %v138_v44 = vld [vmem:[%s6562_s0 + $0x3b0] sm:$0xff] }
  0xb7   :  { %2589 = vmatpush1.bf16.msra.mxu1 %v4658_v52  ;;  %v4706_v52 = vld [vmem:[%s6561_s1 + $0x350] ss:$8 sps:$4 sm:$0xff]  }
  0xb8   :  { %3041 = vmatpush1.bf16.msra.mxu0 %v4661_v53  ;;  %2590 = vmatprep.subr.bf16.mxu1 %v4666_v54  ;;  %v4709_v53 = vld [vmem:[%s6561_s1 + $0x750] ss:$8 sps:$4 sm:$0xff]   ;;  %v4714_v54 = vld [vmem:[%s6561_s1 + $0x364] ss:$8 sps:$4 sm:$0xff]  }
  0xb9   :  { %3042 = vmatprep.subr.bf16.mxu0 %v4669_v55  ;;  %v4717_v55 = vld [vmem:[%s6561_s1 + $0x764] ss:$8 sps:$4 sm:$0xff]   ;;  %v146_v45 = vld [vmem:[%s6562_s0 + $0x3f0] sm:$0xff] }
  0xba   :  { %2552 = vmatmul.mubr.bf16.gmra.mrb[28].mxu1 %v3829_v59  ;;  %v94_v59 = vld [vmem:[%s6562_s0 + $0x250] sm:$0xff] }
  0xbb   :  { %3004 = vmatmul.mubr.bf16.gmra.mrb[28].mxu0 %v3837_v60  ;;  %2591 = vmatpush1.bf16.msra.mxu1 %v4664_v56  ;;  %v86_v56 = vld [vmem:[%s6562_s0 + $0x210] sm:$0xff] }
  0xbc   :  { %3043 = vmatpush1.bf16.msra.mxu0 %v4667_v57  ;;  %2592 = vmatprep.subr.bf16.mxu1 %v4672_v0  ;;  %v3767_v57 = vcombine.low %v70_v40, %v78_v43  ;;  %v90_v60 = vld [vmem:[%s6562_s0 + $0x230] sm:$0xff] }
  0xbd   :  { %3044 = vmatprep.subr.bf16.mxu0 %v4675_v1  ;;  %2594 = vmatprep.mubr.bf16.mxu1 %v3720_v2  ;;  %v4720_v0 = vld [vmem:[%s6561_s1 + $0x374] ss:$8 sps:$4 sm:$0xff]   ;;  %v3784_v2 = vcombine.high %v86_v56, %v94_v59  ;;  %v3791_v10 = vcombine.low %v90_v60, %v98_v61 }
  0xbe   :  { %3046 = vmatprep.mubr.bf16.mxu0 %v3728_v3  ;;  %v4723_v1 = vld [vmem:[%s6561_s1 + $0x774] ss:$8 sps:$4 sm:$0xff]   ;;  %v3792_v3 = vcombine.high %v90_v60, %v98_v61 }
  0xbf   :  { %2593 = vmatpush1.bf16.msra.mxu1 %v4670_v4  ;;  %v4718_v4 = vld [vmem:[%s6561_s1 + $0x370] ss:$8 sps:$4 sm:$0xff]  }
  0xc0   :  { %3045 = vmatpush1.bf16.msra.mxu0 %v4673_v5  ;;  %2675 = vmatprep.subr.bf16.mxu1 %v4678_v6  ;;  %v4721_v5 = vld [vmem:[%s6561_s1 + $0x770] ss:$8 sps:$4 sm:$0xff]   ;;  %v4726_v6 = vld [vmem:[%s6561_s1 + $0x384] ss:$8 sps:$4 sm:$0xff]  }
  0xc1   :  { %3127 = vmatprep.subr.bf16.mxu0 %v4681_v7  ;;  %v4729_v7 = vld [vmem:[%s6561_s1 + $0x784] ss:$8 sps:$4 sm:$0xff]   ;;  %v134_v40 = vld [vmem:[%s6562_s0 + $0x390] sm:$0xff]  ;;  %v27_v60 = vld [vmem:[%s6562_s0 + $0x38] sm:$0xff] }
  0xc2   :  { %2595 = vmatmul.mubr.bf16.vlgmr.msra.gmra.mrb[0].mxu1 %v3719_v12  ;;  %v106_v12 = vld [vmem:[%s6562_s0 + $0x2b0] sm:$0xff]  ;;  %v35_v61 = vld [vmem:[%s6562_s0 + $0x78] sm:$0xff] }
  0xc3   :  { %3047 = vmatmul.mubr.bf16.vlgmr.msra.gmra.mrb[0].mxu0 %v3727_v13  ;;  %2676 = vmatpush1.bf16.msra.mxu1 %v4676_v8  ;;  %v102_v8 = vld [vmem:[%s6562_s0 + $0x290] sm:$0xff] }
  0xc4   :  { %3128 = vmatpush1.bf16.msra.mxu0 %v4679_v9  ;;  %2677 = vmatprep.subr.bf16.mxu1 %v4684_v16  ;;  %v3783_v9 = vcombine.low %v86_v56, %v94_v59  ;;  %v114_v13 = vld [vmem:[%s6562_s0 + $0x2f0] sm:$0xff]  ;;  %v23_v56 = vld [vmem:[%s6562_s0 + $0x18] sm:$0xff] }
  0xc5   :  { %3129 = vmatprep.subr.bf16.mxu0 %v4687_v17  ;;  %2604 = vmatprep.mubr.bf16.mxu1 %v3736_v18  ;;  %v4732_v16 = vld [vmem:[%s6561_s1 + $0x394] ss:$8 sps:$4 sm:$0xff]   ;;  %v3800_v18 = vcombine.high %v102_v8, %v110_v11  ;;  %v3807_v26 = vcombine.low %v106_v12, %v114_v13 }
  0xc6   :  { %3056 = vmatprep.mubr.bf16.mxu0 %v3744_v19  ;;  %v4735_v17 = vld [vmem:[%s6561_s1 + $0x794] ss:$8 sps:$4 sm:$0xff]   ;;  %v3808_v19 = vcombine.high %v106_v12, %v114_v13 }
  0xc7   :  { %2678 = vmatpush1.bf16.msra.mxu1 %v4682_v20  ;;  %v4730_v20 = vld [vmem:[%s6561_s1 + $0x390] ss:$8 sps:$4 sm:$0xff]  }
  0xc8   :  { %3130 = vmatpush1.bf16.msra.mxu0 %v4685_v21  ;;  %2679 = vmatprep.subr.bf16.mxu1 %v4690_v22  ;;  %v4733_v21 = vld [vmem:[%s6561_s1 + $0x790] ss:$8 sps:$4 sm:$0xff]   ;;  %v4738_v22 = vld [vmem:[%s6561_s1 + $0x3a4] ss:$8 sps:$4 sm:$0xff]  }
  0xc9   :  { %3131 = vmatprep.subr.bf16.mxu0 %v4693_v23  ;;  %v4741_v23 = vld [vmem:[%s6561_s1 + $0x7a4] ss:$8 sps:$4 sm:$0xff]   ;;  %v142_v43 = vld [vmem:[%s6562_s0 + $0x3d0] sm:$0xff]  ;;  %v31_v59 = vld [vmem:[%s6562_s0 + $0x58] sm:$0xff] }
  0xca   :  { %2605 = vmatmul.mubr.bf16.gmra.mrb[4].mxu1 %v3735_v28  ;;  %v122_v28 = vld [vmem:[%s6562_s0 + $0x330] sm:$0xff] }
  0xcb   :  { %3057 = vmatmul.mubr.bf16.gmra.mrb[4].mxu0 %v3743_v29  ;;  %2680 = vmatpush1.bf16.msra.mxu1 %v4688_v24  ;;  %v118_v24 = vld [vmem:[%s6562_s0 + $0x310] sm:$0xff] }
  0xcc   :  { %3132 = vmatpush1.bf16.msra.mxu0 %v4691_v25  ;;  %2681 = vmatprep.subr.bf16.mxu1 %v4696_v32  ;;  %v3799_v25 = vcombine.low %v102_v8, %v110_v11  ;;  %v130_v29 = vld [vmem:[%s6562_s0 + $0x370] sm:$0xff]  ;;  %v43_v8 = vld [vmem:[%s6562_s0 + $0xb8] sm:$0xff]  ;;  %v3729_v11 = vcombine.low %v27_v60, %v35_v61 }
  0xcd   :  { %3133 = vmatprep.subr.bf16.mxu0 %v4699_v33  ;;  %2614 = vmatprep.mubr.bf16.mxu1 %v3752_v34  ;;  %v4744_v32 = vld [vmem:[%s6561_s1 + $0x3b4] ss:$8 sps:$4 sm:$0xff]   ;;  %v3816_v34 = vcombine.high %v118_v24, %v126_v27 }
  0xce   :  { %3066 = vmatprep.mubr.bf16.mxu0 %v3760_v35  ;;  %v4747_v33 = vld [vmem:[%s6561_s1 + $0x7b4] ss:$8 sps:$4 sm:$0xff]   ;;  %v3824_v35 = vcombine.high %v122_v28, %v130_v29 }
  0xcf   :  { %2682 = vmatpush1.bf16.msra.mxu1 %v4694_v36  ;;  %v4742_v36 = vld [vmem:[%s6561_s1 + $0x3b0] ss:$8 sps:$4 sm:$0xff]  }
  0xd0   :  { %3134 = vmatpush1.bf16.msra.mxu0 %v4697_v37  ;;  %2683 = vmatprep.subr.bf16.mxu1 %v4702_v38  ;;  %v4745_v37 = vld [vmem:[%s6561_s1 + $0x7b0] ss:$8 sps:$4 sm:$0xff]   ;;  %v4750_v38 = vld [vmem:[%s6561_s1 + $0x3c4] ss:$8 sps:$4 sm:$0xff]  }
  0xd1   :  { %3135 = vmatprep.subr.bf16.mxu0 %v4705_v39  ;;  %v4753_v39 = vld [vmem:[%s6561_s1 + $0x7c4] ss:$8 sps:$4 sm:$0xff]  }
  0xd2   :  { %2615 = vmatmul.mubr.bf16.gmra.mrb[8].mxu1 %v3751_v41  ;;  %v3815_v41 = vcombine.low %v118_v24, %v126_v27  ;;  %v75_v24 = vld [vmem:[%s6562_s0 + $0x1b8] sm:$0xff] }
  0xd3   :  { %3067 = vmatmul.mubr.bf16.gmra.mrb[8].mxu0 %v3759_v42  ;;  %2684 = vmatpush1.bf16.msra.mxu1 %v4700_v46  ;;  %v3823_v42 = vcombine.low %v122_v28, %v130_v29  ;;  %v4748_v46 = vld [vmem:[%s6561_s1 + $0x3c0] ss:$8 sps:$4 sm:$0xff]  }
  0xd4   :  { %3136 = vmatpush1.bf16.msra.mxu0 %v4703_v47  ;;  %2685 = vmatprep.subr.bf16.mxu1 %v4708_v48  ;;  %v4751_v47 = vld [vmem:[%s6561_s1 + $0x7c0] ss:$8 sps:$4 sm:$0xff]   ;;  %v4756_v48 = vld [vmem:[%s6561_s1 + $0x3d4] ss:$8 sps:$4 sm:$0xff]  }
  0xd5   :  { %3137 = vmatprep.subr.bf16.mxu0 %v4711_v49  ;;  %2624 = vmatprep.mubr.bf16.mxu1 %v3768_v50  ;;  %v4759_v49 = vld [vmem:[%s6561_s1 + $0x7d4] ss:$8 sps:$4 sm:$0xff]   ;;  %v3832_v50 = vcombine.high %v134_v40, %v142_v43 }
  0xd6   :  { %3076 = vmatprep.mubr.bf16.mxu0 %v3776_v51  ;;  %v3840_v51 = vcombine.high %v138_v44, %v146_v45 }
  0xd7   :  { %2686 = vmatpush1.bf16.msra.mxu1 %v4706_v52  ;;  %v4754_v52 = vld [vmem:[%s6561_s1 + $0x3d0] ss:$8 sps:$4 sm:$0xff]  }
  0xd8   :  { %3138 = vmatpush1.bf16.msra.mxu0 %v4709_v53  ;;  %2687 = vmatprep.subr.bf16.mxu1 %v4714_v54  ;;  %v4757_v53 = vld [vmem:[%s6561_s1 + $0x7d0] ss:$8 sps:$4 sm:$0xff]   ;;  %v4762_v54 = vld [vmem:[%s6561_s1 + $0x3e4] ss:$8 sps:$4 sm:$0xff]  }
  0xd9   :  { %3139 = vmatprep.subr.bf16.mxu0 %v4717_v55  ;;  %v4765_v55 = vld [vmem:[%s6561_s1 + $0x7e4] ss:$8 sps:$4 sm:$0xff]  }
  0xda   :  { %2625 = vmatmul.mubr.bf16.gmra.mrb[12].mxu1 %v3767_v57  ;;  %v3831_v57 = vcombine.low %v134_v40, %v142_v43  ;;  %v107_v40 = vld [vmem:[%s6562_s0 + $0x2b8] sm:$0xff] }
  0xdb   :  { %3077 = vmatmul.mubr.bf16.gmra.mrb[12].mxu0 %v3775_v58  ;;  %2688 = vmatpush1.bf16.msra.mxu1 %v4712_v62  ;;  %v3839_v58 = vcombine.low %v138_v44, %v146_v45  ;;  %v4760_v62 = vld [vmem:[%s6561_s1 + $0x3e0] ss:$8 sps:$4 sm:$0xff]  }
  0xdc   :  { %3140 = vmatpush1.bf16.msra.mxu0 %v4715_v63  ;;  %2689 = vmatprep.subr.bf16.mxu1 %v4720_v0  ;;  %v4763_v63 = vld [vmem:[%s6561_s1 + $0x7e0] ss:$8 sps:$4 sm:$0xff]   ;;  %v4768_v0 = vld [vmem:[%s6561_s1 + $0x3f4] ss:$8 sps:$4 sm:$0xff]  }
  0xdd   :  { %3141 = vmatprep.subr.bf16.mxu0 %v4723_v1  ;;  %2634 = vmatprep.mubr.bf16.mxu1 %v3784_v2  ;;  %v4771_v1 = vld [vmem:[%s6561_s1 + $0x7f4] ss:$8 sps:$4 sm:$0xff]   ;;  %v3722_v2 = vcombine.high %v23_v56, %v31_v59 }
  0xde   :  { %3086 = vmatprep.mubr.bf16.mxu0 %v3792_v3  ;;  %v3730_v3 = vcombine.high %v27_v60, %v35_v61 }
  0xdf   :  { %2690 = vmatpush1.bf16.msra.mxu1 %v4718_v4  ;;  %v4766_v4 = vld [vmem:[%s6561_s1 + $0x3f0] ss:$8 sps:$4 sm:$0xff]  }
  0xe0   :  { %3142 = vmatpush1.bf16.msra.mxu0 %v4721_v5  ;;  %2691 = vmatprep.subr.bf16.mxu1 %v4726_v6  ;;  %v4769_v5 = vld [vmem:[%s6561_s1 + $0x7f0] ss:$8 sps:$4 sm:$0xff]  }
  0xe1   :  { %3143 = vmatprep.subr.bf16.mxu0 %v4729_v7  ;;  %v39_v6 = vld [vmem:[%s6562_s0 + $0x98] sm:$0xff] }
  0xe2   :  { %2635 = vmatmul.mubr.bf16.gmra.mrb[16].mxu1 %v3783_v9  ;;  %v47_v7 = vld [vmem:[%s6562_s0 + $0xd8] sm:$0xff] }
  0xe3   :  { %3087 = vmatmul.mubr.bf16.gmra.mrb[16].mxu0 %v3791_v10  ;;  %2692 = vmatpush1.bf16.msra.mxu1 %v4724_v14  ;;  %v51_v9 = vld [vmem:[%s6562_s0 + $0xf8] sm:$0xff]  ;;  %v3721_v10 = vcombine.low %v23_v56, %v31_v59  ;;  %v3738_v12 = vcombine.high %v39_v6, %v47_v7 }
  0xe4   :  { %3144 = vmatpush1.bf16.msra.mxu0 %v4727_v15  ;;  %2693 = vmatprep.subr.bf16.mxu1 %v4732_v16  ;;  %v3746_v13 = vcombine.high %v43_v8, %v51_v9  ;;  %v55_v14 = vld [vmem:[%s6562_s0 + $0x118] sm:$0xff] }
  0xe5   :  { %3145 = vmatprep.subr.bf16.mxu0 %v4735_v17  ;;  %2644 = vmatprep.mubr.bf16.mxu1 %v3800_v18  ;;  %v63_v15 = vld [vmem:[%s6562_s0 + $0x158] sm:$0xff]  ;;  %v3737_v18 = vcombine.low %v39_v6, %v47_v7 }
  0xe6   :  { %3096 = vmatprep.mubr.bf16.mxu0 %v3808_v19  ;;  %v59_v16 = vld [vmem:[%s6562_s0 + $0x138] sm:$0xff]  ;;  %v3745_v19 = vcombine.low %v43_v8, %v51_v9 }
  0xe7   :  { %2694 = vmatpush1.bf16.msra.mxu1 %v4730_v20  ;;  %v67_v17 = vld [vmem:[%s6562_s0 + $0x178] sm:$0xff]  ;;  %v3754_v20 = vcombine.high %v55_v14, %v63_v15 }
  0xe8   :  { %3146 = vmatpush1.bf16.msra.mxu0 %v4733_v21  ;;  %2695 = vmatprep.subr.bf16.mxu1 %v4738_v22  ;;  %v3762_v21 = vcombine.high %v59_v16, %v67_v17  ;;  %v71_v22 = vld [vmem:[%s6562_s0 + $0x198] sm:$0xff]  ;;  %v3761_v27 = vcombine.low %v59_v16, %v67_v17 }
  0xe9   :  { %3147 = vmatprep.subr.bf16.mxu0 %v4741_v23  ;;  %v79_v23 = vld [vmem:[%s6562_s0 + $0x1d8] sm:$0xff] }
  0xea   :  { %2645 = vmatmul.mubr.bf16.gmra.mrb[20].mxu1 %v3799_v25  ;;  %v83_v25 = vld [vmem:[%s6562_s0 + $0x1f8] sm:$0xff]  ;;  %v3770_v28 = vcombine.high %v71_v22, %v79_v23 }
  0xeb   :  { %3097 = vmatmul.mubr.bf16.gmra.mrb[20].mxu0 %v3807_v26  ;;  %2696 = vmatpush1.bf16.msra.mxu1 %v4736_v30  ;;  %v3753_v26 = vcombine.low %v55_v14, %v63_v15  ;;  %v3778_v29 = vcombine.high %v75_v24, %v83_v25  ;;  %v87_v30 = vld [vmem:[%s6562_s0 + $0x218] sm:$0xff] }
  0xec   :  { %3148 = vmatpush1.bf16.msra.mxu0 %v4739_v31  ;;  %2697 = vmatprep.subr.bf16.mxu1 %v4744_v32  ;;  %v95_v31 = vld [vmem:[%s6562_s0 + $0x258] sm:$0xff] }
  0xed   :  { %3149 = vmatprep.subr.bf16.mxu0 %v4747_v33  ;;  %2654 = vmatprep.mubr.bf16.mxu1 %v3816_v34  ;;  %v91_v32 = vld [vmem:[%s6562_s0 + $0x238] sm:$0xff]  ;;  %v3769_v34 = vcombine.low %v71_v22, %v79_v23 }
  0xee   :  { %3106 = vmatprep.mubr.bf16.mxu0 %v3824_v35  ;;  %v99_v33 = vld [vmem:[%s6562_s0 + $0x278] sm:$0xff]  ;;  %v3777_v35 = vcombine.low %v75_v24, %v83_v25 }
  0xef   :  { %2698 = vmatpush1.bf16.msra.mxu1 %v4742_v36  ;;  %v3786_v36 = vcombine.high %v87_v30, %v95_v31  ;;  %v3793_v43 = vcombine.low %v91_v32, %v99_v33  ;;  %v139_v56 = vld [vmem:[%s6562_s0 + $0x3b8] sm:$0xff] }
  0xf0   :  { %3150 = vmatpush1.bf16.msra.mxu0 %v4745_v37  ;;  %2699 = vmatprep.subr.bf16.mxu1 %v4750_v38  ;;  %v3794_v37 = vcombine.high %v91_v32, %v99_v33  ;;  %v103_v38 = vld [vmem:[%s6562_s0 + $0x298] sm:$0xff] }
  0xf1   :  { %3151 = vmatprep.subr.bf16.mxu0 %v4753_v39  ;;  %v111_v39 = vld [vmem:[%s6562_s0 + $0x2d8] sm:$0xff] }
  0xf2   :  { %2655 = vmatmul.mubr.bf16.gmra.mrb[24].mxu1 %v3815_v41  ;;  %v115_v41 = vld [vmem:[%s6562_s0 + $0x2f8] sm:$0xff]  ;;  %v3802_v44 = vcombine.high %v103_v38, %v111_v39 }
  0xf3   :  { %3107 = vmatmul.mubr.bf16.gmra.mrb[24].mxu0 %v3823_v42  ;;  %2700 = vmatpush1.bf16.msra.mxu1 %v4748_v46  ;;  %v3785_v42 = vcombine.low %v87_v30, %v95_v31  ;;  %v3810_v45 = vcombine.high %v107_v40, %v115_v41  ;;  %v119_v46 = vld [vmem:[%s6562_s0 + $0x318] sm:$0xff] }
  0xf4   :  { %3152 = vmatpush1.bf16.msra.mxu0 %v4751_v47  ;;  %2701 = vmatprep.subr.bf16.mxu1 %v4756_v48  ;;  %v127_v47 = vld [vmem:[%s6562_s0 + $0x358] sm:$0xff] }
  0xf5   :  { %3153 = vmatprep.subr.bf16.mxu0 %v4759_v49  ;;  %2664 = vmatprep.mubr.bf16.mxu1 %v3832_v50  ;;  %v123_v48 = vld [vmem:[%s6562_s0 + $0x338] sm:$0xff]  ;;  %v3801_v50 = vcombine.low %v103_v38, %v111_v39 }
  0xf6   :  { %3116 = vmatprep.mubr.bf16.mxu0 %v3840_v51  ;;  %v131_v49 = vld [vmem:[%s6562_s0 + $0x378] sm:$0xff]  ;;  %v3809_v51 = vcombine.low %v107_v40, %v115_v41 }
  0xf7   :  { %2702 = vmatpush1.bf16.msra.mxu1 %v4754_v52  ;;  %v3818_v52 = vcombine.high %v119_v46, %v127_v47  ;;  %v3825_v59 = vcombine.low %v123_v48, %v131_v49 }
  0xf8   :  { %3154 = vmatpush1.bf16.msra.mxu0 %v4757_v53  ;;  %2703 = vmatprep.subr.bf16.mxu1 %v4762_v54  ;;  %v3826_v53 = vcombine.high %v123_v48, %v131_v49  ;;  %v135_v54 = vld [vmem:[%s6562_s0 + $0x398] sm:$0xff] }
  0xf9   :  { %3155 = vmatprep.subr.bf16.mxu0 %v4765_v55  ;;  %v143_v55 = vld [vmem:[%s6562_s0 + $0x3d8] sm:$0xff] }
  0xfa   :  { %2665 = vmatmul.mubr.bf16.gmra.mrb[28].mxu1 %v3831_v57  ;;  %v147_v57 = vld [vmem:[%s6562_s0 + $0x3f8] sm:$0xff]  ;;  %v3834_v60 = vcombine.high %v135_v54, %v143_v55 }
  0xfb   :  { %3117 = vmatmul.mubr.bf16.gmra.mrb[28].mxu0 %v3839_v58  ;;  %2704 = vmatpush1.bf16.msra.mxu1 %v4760_v62  ;;  %v3817_v58 = vcombine.low %v119_v46, %v127_v47  ;;  %v3842_v61 = vcombine.high %v139_v56, %v147_v57  ;;  %v3833_v62 = vcombine.low %v135_v54, %v143_v55 }
  0xfc   :  { %3156 = vmatpush1.bf16.msra.mxu0 %v4763_v63  ;;  %2705 = vmatprep.subr.bf16.mxu1 %v4768_v0  ;;  %v3841_v63 = vcombine.low %v139_v56, %v147_v57  ;;  %v406_v0 = vlaneseq }
  0xfd   :  { %3157 = vmatprep.subr.bf16.mxu0 %v4771_v1  ;;  %2707 = vmatprep.mubr.bf16.mxu1 %v3722_v2 }
  0xfe   :  { %3159 = vmatprep.mubr.bf16.mxu0 %v3730_v3  ;;  %v5959_v1 = vshrl.u32 %v406_v0, 7  ;;  %v404_v3 = vld [vmem:[%s6563_s2] sm:$0x3] }
  0xff   :  { %2706 = vmatpush1.bf16.msra.mxu1 %v4766_v4 }
 0x100   :  { %3158 = vmatpush1.bf16.msra.mxu0 %v4769_v5  ;;  %v5962_v2 = vsub.s32 0, %v5959_v1  ;;  %v5968_v4 = vsub.s32 1, %v5959_v1 }
 0x102   :  { %2708 = vmatmul.mubr.bf16.vlgmr.msra.gmra.mrb[0].mxu1 %v3721_v10  ;;  %v5971_v5 = vrot.slane %v404_v3, %v5962_v2  ;;  %v5974_v6 = vrot.slane %v404_v3, %v5968_v4 }
 0x103   :  { %3160 = vmatmul.mubr.bf16.vlgmr.msra.gmra.mrb[0].mxu0 %v3729_v11  ;;  %2717 = vmatprep.mubr.bf16.mxu1 %v3738_v12 }
 0x104   :  { %3169 = vmatprep.mubr.bf16.mxu0 %v3746_v13 }
 0x10a   :  { %2718 = vmatmul.mubr.bf16.gmra.mrb[4].mxu1 %v3737_v18 }
 0x10b   :  { %3170 = vmatmul.mubr.bf16.gmra.mrb[4].mxu0 %v3745_v19  ;;  %2727 = vmatprep.mubr.bf16.mxu1 %v3754_v20 }
 0x10c   :  { %3179 = vmatprep.mubr.bf16.mxu0 %v3762_v21 }
 0x112   :  { %2728 = vmatmul.mubr.bf16.gmra.mrb[8].mxu1 %v3753_v26 }
 0x113   :  { %3180 = vmatmul.mubr.bf16.gmra.mrb[8].mxu0 %v3761_v27  ;;  %2737 = vmatprep.mubr.bf16.mxu1 %v3770_v28 }
 0x114   :  { %3189 = vmatprep.mubr.bf16.mxu0 %v3778_v29 }
 0x11a   :  { %2738 = vmatmul.mubr.bf16.gmra.mrb[12].mxu1 %v3769_v34 }
 0x11b   :  { %3190 = vmatmul.mubr.bf16.gmra.mrb[12].mxu0 %v3777_v35  ;;  %2747 = vmatprep.mubr.bf16.mxu1 %v3786_v36 }
 0x11c   :  { %3199 = vmatprep.mubr.bf16.mxu0 %v3794_v37 }
 0x122   :  { %2748 = vmatmul.mubr.bf16.gmra.mrb[16].mxu1 %v3785_v42 }
 0x123   :  { %3200 = vmatmul.mubr.bf16.gmra.mrb[16].mxu0 %v3793_v43  ;;  %2757 = vmatprep.mubr.bf16.mxu1 %v3802_v44 }
 0x124   :  { %3209 = vmatprep.mubr.bf16.mxu0 %v3810_v45 }
 0x12a   :  { %2758 = vmatmul.mubr.bf16.gmra.mrb[20].mxu1 %v3801_v50 }
 0x12b   :  { %3210 = vmatmul.mubr.bf16.gmra.mrb[20].mxu0 %v3809_v51  ;;  %2767 = vmatprep.mubr.bf16.mxu1 %v3818_v52 }
 0x12c   :  { %3219 = vmatprep.mubr.bf16.mxu0 %v3826_v53 }
 0x132   :  { %2768 = vmatmul.mubr.bf16.gmra.mrb[24].mxu1 %v3817_v58 }
 0x133   :  { %3220 = vmatmul.mubr.bf16.gmra.mrb[24].mxu0 %v3825_v59  ;;  %2777 = vmatprep.mubr.bf16.mxu1 %v3834_v60 }
 0x134   :  { %3229 = vmatprep.mubr.bf16.mxu0 %v3842_v61 }
 0x13a   :  { %2778 = vmatmul.mubr.bf16.gmra.mrb[28].mxu1 %v3833_v62 }
 0x13b   :  { %3230 = vmatmul.mubr.bf16.gmra.mrb[28].mxu0 %v3841_v63 }
 0x1d5   :  { %v2709_v7 = vpop.f32.mrb[0].mxu1 }
 0x1d6   :  { %v3161_v8 = vpop.f32.mrb[0].mxu0  ;;  %v4131_v9 = vadd.f32 %v2709_v7, %v5971_v5  ;;  %v2711_v10 = vpop.f32.mrb[1].mxu1 }
 0x1d7   :  { %v3163_v11 = vpop.f32.mrb[1].mxu0  ;;  %v4133_v12 = vadd.f32 %v2711_v10, %v5974_v6  ;;  %v2713_v13 = vpop.f32.mrb[2].mxu1 }
 0x1d8   :  { %v3165_v14 = vpop.f32.mrb[2].mxu0  ;;  %v5978_v15 = vadd.f32 %v4131_v9, %v3161_v8  ;;  %v4135_v16 = vadd.f32 %v2713_v13, %v5971_v5  ;;  %v2715_v17 = vpop.f32.mrb[3].mxu1 }
 0x1d9   :  { %v3167_v18 = vpop.f32.mrb[3].mxu0  ;;  %v5981_v19 = vadd.f32 %v4133_v12, %v3163_v11  ;;  %v4137_v20 = vadd.f32 %v2715_v17, %v5974_v6 }
 0x1da   :  { %v5984_v21 = vadd.f32 %v4135_v16, %v3165_v14 }
 0x1db   :  { %v5986_v22 = vadd.f32 %v4137_v20, %v3167_v18 }
 0x1dc   :  { %v3240_v23 = vadd.f32 %v5984_v21, %v5978_v15 }
 0x1dd   :  { %v3261_v24 = vadd.f32 %v5986_v22, %v5981_v19  ;;  %v2719_v25 = vpop.f32.mrb[4].mxu1 }
 0x1de   :  { %v3171_v26 = vpop.f32.mrb[4].mxu0  ;;  %v4139_v27 = vadd.f32 %v2719_v25, %v5971_v5  ;;  %v2721_v28 = vpop.f32.mrb[5].mxu1 }
 0x1df   :  { %v3173_v29 = vpop.f32.mrb[5].mxu0  ;;  %v4141_v30 = vadd.f32 %v2721_v28, %v5974_v6  ;;  %v2723_v31 = vpop.f32.mrb[6].mxu1 }
 0x1e0   :  { %v3175_v32 = vpop.f32.mrb[6].mxu0  ;;  %v5994_v33 = vadd.f32 %v4139_v27, %v3171_v26  ;;  %v4143_v34 = vadd.f32 %v2723_v31, %v5971_v5  ;;  %v2725_v35 = vpop.f32.mrb[7].mxu1 }
 0x1e1   :  { %v3177_v36 = vpop.f32.mrb[7].mxu0  ;;  %v5997_v37 = vadd.f32 %v4141_v30, %v3173_v29  ;;  %v4145_v38 = vadd.f32 %v2725_v35, %v5974_v6 }
 0x1e2   :  { %v3241_v39 = vadd.f32 %v5994_v33, %v3240_v23  ;;  %v6001_v40 = vadd.f32 %v4143_v34, %v3175_v32 }
 0x1e3   :  { %v3262_v41 = vadd.f32 %v5997_v37, %v3261_v24  ;;  %v6004_v42 = vadd.f32 %v4145_v38, %v3177_v36 }
 0x1e4   :  { %v3242_v43 = vadd.f32 %v6001_v40, %v3241_v39 }
 0x1e5   :  { %v3263_v44 = vadd.f32 %v6004_v42, %v3262_v41  ;;  %v2729_v45 = vpop.f32.mrb[8].mxu1 }
 0x1e6   :  { %v3181_v46 = vpop.f32.mrb[8].mxu0  ;;  %v4147_v47 = vadd.f32 %v2729_v45, %v5971_v5  ;;  %v2731_v48 = vpop.f32.mrb[9].mxu1 }
 0x1e7   :  { %v3183_v49 = vpop.f32.mrb[9].mxu0  ;;  %v4149_v50 = vadd.f32 %v2731_v48, %v5974_v6  ;;  %v2733_v51 = vpop.f32.mrb[10].mxu1 }
 0x1e8   :  { %v3185_v52 = vpop.f32.mrb[10].mxu0  ;;  %v6010_v53 = vadd.f32 %v4147_v47, %v3181_v46  ;;  %v4151_v54 = vadd.f32 %v2733_v51, %v5971_v5  ;;  %v2735_v55 = vpop.f32.mrb[11].mxu1 }
 0x1e9   :  { %v3187_v56 = vpop.f32.mrb[11].mxu0  ;;  %v6013_v57 = vadd.f32 %v4149_v50, %v3183_v49  ;;  %v4153_v58 = vadd.f32 %v2735_v55, %v5974_v6 }
 0x1ea   :  { %v3243_v59 = vadd.f32 %v6010_v53, %v3242_v43  ;;  %v6017_v60 = vadd.f32 %v4151_v54, %v3185_v52 }
 0x1eb   :  { %v3264_v61 = vadd.f32 %v6013_v57, %v3263_v44  ;;  %v6020_v62 = vadd.f32 %v4153_v58, %v3187_v56 }
 0x1ec   :  { %v3244_v63 = vadd.f32 %v6017_v60, %v3243_v59 }
 0x1ed   :  { %v3265_v0 = vadd.f32 %v6020_v62, %v3264_v61  ;;  %v2739_v3 = vpop.f32.mrb[12].mxu1 }
 0x1ee   :  { %v3191_v7 = vpop.f32.mrb[12].mxu0  ;;  %v4155_v8 = vadd.f32 %v2739_v3, %v5971_v5  ;;  %v2741_v9 = vpop.f32.mrb[13].mxu1 }
 0x1ef   :  { %v3193_v10 = vpop.f32.mrb[13].mxu0  ;;  %v4157_v11 = vadd.f32 %v2741_v9, %v5974_v6  ;;  %v2743_v12 = vpop.f32.mrb[14].mxu1 }
 0x1f0   :  { %v3195_v13 = vpop.f32.mrb[14].mxu0  ;;  %v6026_v14 = vadd.f32 %v4155_v8, %v3191_v7  ;;  %v4159_v16 = vadd.f32 %v2743_v12, %v5971_v5  ;;  %v2745_v17 = vpop.f32.mrb[15].mxu1 }
 0x1f1   :  { %v3197_v18 = vpop.f32.mrb[15].mxu0  ;;  %v6029_v20 = vadd.f32 %v4157_v11, %v3193_v10  ;;  %v4161_v23 = vadd.f32 %v2745_v17, %v5974_v6 }
 0x1f2   :  { %v3245_v24 = vadd.f32 %v6026_v14, %v3244_v63  ;;  %v6033_v25 = vadd.f32 %v4159_v16, %v3195_v13 }
 0x1f3   :  { %v3266_v26 = vadd.f32 %v6029_v20, %v3265_v0  ;;  %v6036_v27 = vadd.f32 %v4161_v23, %v3197_v18 }
 0x1f4   :  { %v3246_v28 = vadd.f32 %v6033_v25, %v3245_v24 }
 0x1f5   :  { %v3267_v29 = vadd.f32 %v6036_v27, %v3266_v26  ;;  %v2749_v30 = vpop.f32.mrb[16].mxu1 }
 0x1f6   :  { %v3201_v31 = vpop.f32.mrb[16].mxu0  ;;  %v4163_v32 = vadd.f32 %v2749_v30, %v5971_v5  ;;  %v2751_v34 = vpop.f32.mrb[17].mxu1 }
 0x1f7   :  { %v3203_v35 = vpop.f32.mrb[17].mxu0  ;;  %v4165_v36 = vadd.f32 %v2751_v34, %v5974_v6  ;;  %v2753_v38 = vpop.f32.mrb[18].mxu1 }
 0x1f8   :  { %v3205_v39 = vpop.f32.mrb[18].mxu0  ;;  %v6042_v41 = vadd.f32 %v4163_v32, %v3201_v31  ;;  %v4167_v43 = vadd.f32 %v2753_v38, %v5971_v5  ;;  %v2755_v44 = vpop.f32.mrb[19].mxu1 }
 0x1f9   :  { %v3207_v45 = vpop.f32.mrb[19].mxu0  ;;  %v6045_v46 = vadd.f32 %v4165_v36, %v3203_v35  ;;  %v4169_v47 = vadd.f32 %v2755_v44, %v5974_v6 }
 0x1fa   :  { %v3247_v48 = vadd.f32 %v6042_v41, %v3246_v28  ;;  %v6049_v49 = vadd.f32 %v4167_v43, %v3205_v39 }
 0x1fb   :  { %v3268_v50 = vadd.f32 %v6045_v46, %v3267_v29  ;;  %v6052_v51 = vadd.f32 %v4169_v47, %v3207_v45 }
 0x1fc   :  { %v3248_v52 = vadd.f32 %v6049_v49, %v3247_v48 }
 0x1fd   :  { %v3269_v54 = vadd.f32 %v6052_v51, %v3268_v50  ;;  %v2759_v55 = vpop.f32.mrb[20].mxu1 }
 0x1fe   :  { %v3211_v56 = vpop.f32.mrb[20].mxu0  ;;  %v4171_v58 = vadd.f32 %v2759_v55, %v5971_v5  ;;  %v2761_v59 = vpop.f32.mrb[21].mxu1 }
 0x1ff   :  { %v3213_v61 = vpop.f32.mrb[21].mxu0  ;;  %v4173_v63 = vadd.f32 %v2761_v59, %v5974_v6  ;;  %v2763_v0 = vpop.f32.mrb[22].mxu1 }
 0x200   :  { %v3215_v3 = vpop.f32.mrb[22].mxu0  ;;  %v6058_v7 = vadd.f32 %v4171_v58, %v3211_v56  ;;  %v4175_v8 = vadd.f32 %v2763_v0, %v5971_v5  ;;  %v2765_v9 = vpop.f32.mrb[23].mxu1 }
 0x201   :  { %v3217_v10 = vpop.f32.mrb[23].mxu0  ;;  %v6061_v11 = vadd.f32 %v4173_v63, %v3213_v61  ;;  %v4177_v12 = vadd.f32 %v2765_v9, %v5974_v6 }
 0x202   :  { %v3249_v13 = vadd.f32 %v6058_v7, %v3248_v52  ;;  %v6065_v16 = vadd.f32 %v4175_v8, %v3215_v3 }
 0x203   :  { %v3270_v17 = vadd.f32 %v6061_v11, %v3269_v54  ;;  %v6068_v18 = vadd.f32 %v4177_v12, %v3217_v10 }
 0x204   :  { %v3250_v23 = vadd.f32 %v6065_v16, %v3249_v13 }
 0x205   :  { %v3271_v24 = vadd.f32 %v6068_v18, %v3270_v17  ;;  %v2769_v26 = vpop.f32.mrb[24].mxu1 }
 0x206   :  { %v3221_v28 = vpop.f32.mrb[24].mxu0  ;;  %v4179_v29 = vadd.f32 %v2769_v26, %v5971_v5  ;;  %v2771_v30 = vpop.f32.mrb[25].mxu1 }
 0x207   :  { %v3223_v31 = vpop.f32.mrb[25].mxu0  ;;  %v4181_v32 = vadd.f32 %v2771_v30, %v5974_v6  ;;  %v2773_v34 = vpop.f32.mrb[26].mxu1 }
 0x208   :  { %v3225_v35 = vpop.f32.mrb[26].mxu0  ;;  %v4180_v36 = vadd.f32 %v4179_v29, %v3221_v28  ;;  %v4183_v38 = vadd.f32 %v2773_v34, %v5971_v5  ;;  %v2775_v39 = vpop.f32.mrb[27].mxu1 }
 0x209   :  { %v3227_v43 = vpop.f32.mrb[27].mxu0  ;;  %v6075_v44 = vadd.f32 %v4181_v32, %v3223_v31  ;;  %v4185_v45 = vadd.f32 %v2775_v39, %v5974_v6 }
 0x20a   :  { %v3251_v47 = vadd.f32 %v4180_v36, %v3250_v23  ;;  %v4184_v48 = vadd.f32 %v4183_v38, %v3225_v35 }
 0x20b   :  { %v3272_v50 = vadd.f32 %v6075_v44, %v3271_v24  ;;  %v6079_v52 = vadd.f32 %v4185_v45, %v3227_v43 }
 0x20c   :  { %v3252_v54 = vadd.f32 %v4184_v48, %v3251_v47 }
 0x20d   :  { %v3273_v55 = vadd.f32 %v6079_v52, %v3272_v50  ;;  %v2779_v56 = vpop.f32.mrb[28].mxu1 }
 0x20e   :  { %v3231_v58 = vpop.f32.mrb[28].mxu0  ;;  %v4187_v59 = vadd.f32 %v2779_v56, %v5971_v5  ;;  %v2781_v61 = vpop.f32.mrb[29].mxu1 }
 0x20f   :  { %v3233_v63 = vpop.f32.mrb[29].mxu0  ;;  %v4189_v0 = vadd.f32 %v2781_v61, %v5974_v6  ;;  %v2783_v3 = vpop.f32.mrb[30].mxu1 }
 0x210   :  { %v3235_v8 = vpop.f32.mrb[30].mxu0  ;;  %v4188_v9 = vadd.f32 %v4187_v59, %v3231_v58  ;;  %v4191_v10 = vadd.f32 %v2783_v3, %v5971_v5  ;;  %v2785_v12 = vpop.f32.mrb[31].mxu1 }
 0x211   :  { %v3237_v13 = vpop.f32.mrb[31].mxu0  ;;  %v4190_v17 = vadd.f32 %v4189_v0, %v3233_v63  ;;  %v4193_v23 = vadd.f32 %v2785_v12, %v5974_v6 }
 0x212   :  { %v3253_v24 = vadd.f32 %v4188_v9, %v3252_v54  ;;  %v4192_v26 = vadd.f32 %v4191_v10, %v3235_v8 }
 0x213   :  { %v3274_v28 = vadd.f32 %v4190_v17, %v3273_v55  ;;  %v4194_v29 = vadd.f32 %v4193_v23, %v3237_v13 }
 0x214   :  { %v3254_v30 = vadd.f32 %v4192_v26, %v3253_v24 }
 0x215   :  { %v3275_v31 = vadd.f32 %v4194_v29, %v3274_v28 }
 0x216   :  { %v3255_v32 = vrot.slane %v3254_v30, 4 }
 0x217   :  { %v3276_v34 = vrot.slane %v3275_v31, 4 }
 0x218   :  { %v3256_v35 = vadd.f32 %v3255_v32, %v3254_v30 }
 0x219   :  { %v3277_v38 = vadd.f32 %v3276_v34, %v3275_v31 }
 0x21a   :  { %v3257_v39 = vrot.slane %v3256_v35, 2 }
 0x21b   :  { %v3278_v43 = vrot.slane %v3277_v38, 2 }
 0x21c   :  { %v3258_v45 = vadd.f32 %v3257_v39, %v3256_v35 }
 0x21d   :  { %v3279_v47 = vadd.f32 %v3278_v43, %v3277_v38 }
 0x21e   :  { %v3259_v5 = vrot.slane %v3258_v45, 1 }
 0x21f   :  { %v3280_v50 = vrot.slane %v3279_v47, 1 }
 0x220   :  { %v3260_v56 = vadd.f32 %v3259_v5, %v3258_v45 }
 0x221   :  { %v3281_v59 = vadd.f32 %v3280_v50, %v3279_v47 }
 0x222   :  { %v3282_v58 = vmul.f32 0.0078125, %v3260_v56 }
 0x223   :  { %v3283_v10 = vmul.f32 0.0078125, %v3281_v59 }
 0x224   :  { %v6087_v6 = vsub.f32 %v5978_v15, %v3282_v58  ;;  %v6090_v54 = vsub.f32 %v5984_v21, %v3282_v58  ;;  %v6093_v55 = vsub.f32 %v5994_v33, %v3282_v58  ;;  %v6096_v61 = vsub.f32 %v6001_v40, %v3282_v58 }
 0x225   :  { %v6099_v63 = vsub.f32 %v6010_v53, %v3282_v58  ;;  %v6102_v0 = vsub.f32 %v6017_v60, %v3282_v58  ;;  %v6105_v3 = vsub.f32 %v6026_v14, %v3282_v58  ;;  %v6108_v15 = vsub.f32 %v6033_v25, %v3282_v58 }
 0x226   :  { %v6111_v21 = vsub.f32 %v6042_v41, %v3282_v58  ;;  %v6114_v33 = vsub.f32 %v6049_v49, %v3282_v58  ;;  %v6117_v40 = vsub.f32 %v6058_v7, %v3282_v58  ;;  %v6120_v53 = vsub.f32 %v6065_v16, %v3282_v58 }
 0x227   :  { %v6122_v60 = vsub.f32 %v4180_v36, %v3282_v58  ;;  %v6124_v8 = vsub.f32 %v4184_v48, %v3282_v58  ;;  %v6126_v14 = vsub.f32 %v4188_v9, %v3282_v58  ;;  %v6128_v25 = vsub.f32 %v4192_v26, %v3282_v58 }
 0x228   :  { %v3316_v41 = vmul.f32 %v6087_v6, %v6087_v6  ;;  %v3318_v49 = vmul.f32 %v6090_v54, %v6090_v54  ;;  %v3320_v7 = vmul.f32 %v6093_v55, %v6093_v55  ;;  %v3322_v16 = vmul.f32 %v6096_v61, %v6096_v61 }
 0x229   :  { %v6139_v48 = vsub.f32 %v5981_v19, %v3283_v10  ;;  %v6142_v9 = vsub.f32 %v5986_v22, %v3283_v10  ;;  %v6145_v12 = vsub.f32 %v5997_v37, %v3283_v10  ;;  %v6148_v13 = vsub.f32 %v6004_v42, %v3283_v10 }
 0x22a   :  { %v3348_v36 = vadd.f32 %v3318_v49, %v3316_v41  ;;  %v6151_v23 = vsub.f32 %v6013_v57, %v3283_v10  ;;  %v6154_v24 = vsub.f32 %v6020_v62, %v3283_v10  ;;  %v6157_v26 = vsub.f32 %v6029_v20, %v3283_v10 }
 0x22b   :  { %v6160_v28 = vsub.f32 %v6036_v27, %v3283_v10  ;;  %v6163_v22 = vsub.f32 %v6045_v46, %v3283_v10  ;;  %v6166_v37 = vsub.f32 %v6052_v51, %v3283_v10  ;;  %v6169_v42 = vsub.f32 %v6061_v11, %v3283_v10 }
 0x22c   :  { %v3349_v19 = vadd.f32 %v3348_v36, %v3320_v7  ;;  %v6172_v57 = vsub.f32 %v6068_v18, %v3283_v10  ;;  %v6175_v62 = vsub.f32 %v6075_v44, %v3283_v10  ;;  %v6178_v20 = vsub.f32 %v6079_v52, %v3283_v10 }
 0x22d   :  { %v3324_v27 = vmul.f32 %v6099_v63, %v6099_v63  ;;  %v6182_v30 = vsub.f32 %v4190_v17, %v3283_v10  ;;  %v6184_v51 = vsub.f32 %v4194_v29, %v3283_v10  ;;  %v3317_v11 = vmul.f32 %v6139_v48, %v6139_v48 }
 0x22e   :  { %v3350_v46 = vadd.f32 %v3349_v19, %v3322_v16  ;;  %v3319_v18 = vmul.f32 %v6142_v9, %v6142_v9  ;;  %v3326_v44 = vmul.f32 %v6102_v0, %v6102_v0  ;;  %v3328_v52 = vmul.f32 %v6105_v3, %v6105_v3 }
 0x22f   :  { %v3321_v17 = vmul.f32 %v6145_v12, %v6145_v12  ;;  %v3330_v29 = vmul.f32 %v6108_v15, %v6108_v15  ;;  %v3323_v38 = vmul.f32 %v6148_v13, %v6148_v13  ;;  %v3332_v43 = vmul.f32 %v6111_v21, %v6111_v21 }
 0x230   :  { %v3351_v31 = vadd.f32 %v3350_v46, %v3324_v27  ;;  %v3369_v34 = vadd.f32 %v3319_v18, %v3317_v11  ;;  %v3325_v47 = vmul.f32 %v6151_v23, %v6151_v23  ;;  %v3334_v50 = vmul.f32 %v6114_v33, %v6114_v33 }
 0x231   :  { %v3327_v58 = vmul.f32 %v6154_v24, %v6154_v24  ;;  %v3336_v41 = vmul.f32 %v6117_v40, %v6117_v40  ;;  %v3329_v10 = vmul.f32 %v6157_v26, %v6157_v26  ;;  %v3338_v16 = vmul.f32 %v6120_v53, %v6120_v53 }
 0x232   :  { %v3352_v32 = vadd.f32 %v3351_v31, %v3326_v44  ;;  %v3370_v39 = vadd.f32 %v3369_v34, %v3321_v17  ;;  %v3331_v19 = vmul.f32 %v6160_v28, %v6160_v28  ;;  %v3340_v46 = vmul.f32 %v6122_v60, %v6122_v60 }
 0x233   :  { %v3333_v18 = vmul.f32 %v6163_v22, %v6163_v22  ;;  %v3342_v31 = vmul.f32 %v6124_v8, %v6124_v8  ;;  %v3344_v34 = vmul.f32 %v6126_v14, %v6126_v14 }
 0x234   :  { %v3353_v35 = vadd.f32 %v3352_v32, %v3328_v52  ;;  %v3371_v5 = vadd.f32 %v3370_v39, %v3323_v38  ;;  %v3335_v32 = vmul.f32 %v6166_v37, %v6166_v37  ;;  %v3346_v39 = vmul.f32 %v6128_v25, %v6128_v25 }
 0x236   :  { %v3354_v45 = vadd.f32 %v3353_v35, %v3330_v29  ;;  %v3372_v59 = vadd.f32 %v3371_v5, %v3325_v47  ;;  %v3337_v35 = vmul.f32 %v6169_v42, %v6169_v42 }
 0x238   :  { %v3355_v56 = vadd.f32 %v3354_v45, %v3332_v43  ;;  %v3373_v7 = vadd.f32 %v3372_v59, %v3327_v58  ;;  %v3339_v45 = vmul.f32 %v6172_v57, %v6172_v57  ;;  %v3343_v59 = vmul.f32 %v6178_v20, %v6178_v20 }
 0x23a   :  { %v3356_v49 = vadd.f32 %v3355_v56, %v3334_v50  ;;  %v3374_v27 = vadd.f32 %v3373_v7, %v3329_v10  ;;  %v3341_v50 = vmul.f32 %v6175_v62, %v6175_v62  ;;  %v3345_v10 = vmul.f32 %v6182_v30, %v6182_v30 }
 0x23c   :  { %v3357_v36 = vadd.f32 %v3356_v49, %v3336_v41  ;;  %v3375_v44 = vadd.f32 %v3374_v27, %v3331_v19 }
 0x23e   :  { %v3358_v11 = vadd.f32 %v3357_v36, %v3338_v16  ;;  %v3376_v17 = vadd.f32 %v3375_v44, %v3333_v18  ;;  %v3347_v36 = vmul.f32 %v6184_v51, %v6184_v51 }
 0x240   :  { %v3359_v52 = vadd.f32 %v3358_v11, %v3340_v46  ;;  %v3377_v38 = vadd.f32 %v3376_v17, %v3335_v32 }
 0x242   :  { %v3360_v29 = vadd.f32 %v3359_v52, %v3342_v31  ;;  %v3378_v47 = vadd.f32 %v3377_v38, %v3337_v35 }
 0x244   :  { %v3361_v43 = vadd.f32 %v3360_v29, %v3344_v34  ;;  %v3379_v56 = vadd.f32 %v3378_v47, %v3339_v45 }
 0x246   :  { %v3362_v5 = vadd.f32 %v3361_v43, %v3346_v39  ;;  %v3380_v41 = vadd.f32 %v3379_v56, %v3341_v50  ;;  %v4776_v43 = vmov 1966171168  }
 0x247   :  { %v3401_v45 = vunpack.c.l.s4 %v4776_v43 }
 0x248   :  { %v3363_v58 = vrot.slane %v3362_v5, 4  ;;  %v3381_v7 = vadd.f32 %v3380_v41, %v3343_v59  ;;  %v3396_v41 = vld [vmem:[%s6564_s3] sm:$0x3] }
 0x249   :  { %v3402_v47 = vunpack.c.0.s8 %v3401_v45 }
 0x24a   :  { %v3364_v49 = vadd.f32 %v3363_v58, %v3362_v5  ;;  %v3382_v19 = vadd.f32 %v3381_v7, %v3345_v10 }
 0x24b   :  { %v3405_v50 = vsub.s32 %v3402_v47, %v5959_v1 }
 0x24c   :  { %v3365_v16 = vrot.slane %v3364_v49, 2  ;;  %v3383_v46 = vadd.f32 %v3382_v19, %v3347_v36 }
 0x24e   :  { %v3366_v27 = vadd.f32 %v3365_v16, %v3364_v49  ;;  %v3384_v18 = vrot.slane %v3383_v46, 4 }
 0x250   :  { %v3367_v11 = vrot.slane %v3366_v27, 1  ;;  %v3385_v31 = vadd.f32 %v3384_v18, %v3383_v46 }
 0x252   :  { %v3368_v44 = vadd.f32 %v3367_v11, %v3366_v27  ;;  %v3386_v52 = vrot.slane %v3385_v31, 2 }
 0x254   :  { %v3390_v32 = vmul.f32 0.0078125, %v3368_v44  ;;  %v3387_v17 = vadd.f32 %v3386_v52, %v3385_v31 }
 0x256   :  { %v3388_v34 = vrot.slane %v3387_v17, 1  ;;  %v3392_v29 = vadd.f32 1e-05, %v3390_v32 }
 0x258   :  { %v3389_v35 = vadd.f32 %v3388_v34, %v3387_v17  ;;  %4772 = vrsqrt.f32 %v3392_v29 }
 0x25a   :  { %v3391_v38 = vmul.f32 0.0078125, %v3389_v35 }
 0x25c   :  { %v3393_v39 = vadd.f32 1e-05, %v3391_v38 }
 0x25e   :  { %4774 = vrsqrt.f32 %v3393_v39 }
 0x262   :  { %v4773_v5 = vpop.eup %4772 }
 0x268   :  { %v4775_v56 = vpop.eup %4774 }
 0x269   :  { %v3399_v58 = vcombine.low %v4773_v5, %v4775_v56 }
 0x26b   :  { %v3406_v59 = vrot.slane %v3399_v58, %v3405_v50 }
 0x26d   :  { %v3413_v49 = vrot.slane %v3406_v59, %v3405_v50 }
 0x26f   :  { %v3415_v10 = vmul.f32 %v3413_v49, %v3396_v41 }
 0x271   :  { %v3420_v7 = vrot.slane %v3415_v10, %v5962_v2  ;;  %v3424_v16 = vrot.slane %v3415_v10, %v5968_v4 }
 0x273   :  { %v3435_v36 = vmul.f32 %v3420_v7, %v6099_v63  ;;  %v3436_v19 = vmul.f32 %v3424_v16, %v6151_v23  ;;  %v3437_v27 = vmul.f32 %v3420_v7, %v6102_v0  ;;  %v3438_v1 = vmul.f32 %v3424_v16, %v6154_v24 }
 0x274   :  { %v3439_v46 = vmul.f32 %v3420_v7, %v6105_v3  ;;  %v3440_v11 = vmul.f32 %v3424_v16, %v6157_v26  ;;  %v3441_v18 = vmul.f32 %v3420_v7, %v6108_v15  ;;  %v3442_v44 = vmul.f32 %v3424_v16, %v6160_v28 }
 0x275   :  { %v3443_v31 = vmul.f32 %v3420_v7, %v6111_v21  ;;  %v3444_v52 = vmul.f32 %v3424_v16, %v6163_v22  ;;  %v3445_v63 = vmul.f32 %v3420_v7, %v6114_v33  ;;  %v3446_v23 = vmul.f32 %v3424_v16, %v6166_v37  ;;  %v3459_v33 = vld [vmem:[%s6565_s4] sm:$0x3] }
 0x276   :  { %v3447_v0 = vmul.f32 %v3420_v7, %v6117_v40  ;;  %v3448_v24 = vmul.f32 %v3424_v16, %v6169_v42  ;;  %v3449_v3 = vmul.f32 %v3420_v7, %v6120_v53  ;;  %v3450_v26 = vmul.f32 %v3424_v16, %v6172_v57 }
 0x277   :  { %v3451_v15 = vmul.f32 %v3420_v7, %v6122_v60  ;;  %v3452_v28 = vmul.f32 %v3424_v16, %v6175_v62  ;;  %v3453_v21 = vmul.f32 %v3420_v7, %v6124_v8  ;;  %v3454_v22 = vmul.f32 %v3424_v16, %v6178_v20 }
 0x278   :  { %v3455_v40 = vmul.f32 %v3420_v7, %v6126_v14  ;;  %v3456_v37 = vmul.f32 %v3424_v16, %v6182_v30  ;;  %v3457_v53 = vmul.f32 %v3420_v7, %v6128_v25  ;;  %v3458_v42 = vmul.f32 %v3424_v16, %v6184_v51 }
 0x279   :  { %v3464_v60 = vrot.slane %v3459_v33, %v5962_v2  ;;  %v3468_v57 = vrot.slane %v3459_v33, %v5968_v4  ;;  %v3427_v8 = vmul.f32 %v3420_v7, %v6087_v6  ;;  %v3428_v62 = vmul.f32 %v3424_v16, %v6139_v48 }
 0x27a   :  { %v3429_v20 = vmul.f32 %v3420_v7, %v6090_v54  ;;  %v3430_v32 = vmul.f32 %v3424_v16, %v6142_v9  ;;  %v3431_v14 = vmul.f32 %v3420_v7, %v6093_v55  ;;  %v3432_v30 = vmul.f32 %v3424_v16, %v6145_v12 }
 0x27b   :  { %v3433_v25 = vmul.f32 %v3420_v7, %v6096_v61  ;;  %v3434_v51 = vmul.f32 %v3424_v16, %v6148_v13  ;;  %v6283_v17 = vadd.f32 %v3464_v60, %v3427_v8  ;;  %v6285_v2 = vadd.f32 %v3468_v57, %v3428_v62 }
 0x27c   :  { %v6287_v4 = vadd.f32 %v3464_v60, %v3429_v20  ;;  %v6289_v6 = vadd.f32 %v3468_v57, %v3430_v32  ;;  %v6291_v48 = vadd.f32 %v3464_v60, %v3431_v14  ;;  %v6293_v54 = vadd.f32 %v3468_v57, %v3432_v30 }
 0x27d   :  { %v6295_v9 = vadd.f32 %v3464_v60, %v3433_v25  ;;  %v6297_v55 = vadd.f32 %v3468_v57, %v3434_v51  ;;  %v6299_v12 = vadd.f32 %v3464_v60, %v3435_v36  ;;  %v6301_v61 = vadd.f32 %v3468_v57, %v3436_v19 }
 0x27e   :  { %v6303_v13 = vadd.f32 %v3464_v60, %v3437_v27  ;;  %v6305_v34 = vadd.f32 %v3468_v57, %v3438_v1  ;;  %v6307_v29 = vadd.f32 %v3464_v60, %v3439_v46  ;;  %v6309_v35 = vadd.f32 %v3468_v57, %v3440_v11 }
 0x27f   :  { %v6311_v38 = vadd.f32 %v3464_v60, %v3441_v18  ;;  %v6313_v39 = vadd.f32 %v3468_v57, %v3442_v44  ;;  %v6315_v43 = vadd.f32 %v3464_v60, %v3443_v31  ;;  %v6317_v45 = vadd.f32 %v3468_v57, %v3444_v52 }
 0x280   :  { %v6319_v47 = vadd.f32 %v3464_v60, %v3445_v63  ;;  %v6321_v5 = vadd.f32 %v3468_v57, %v3446_v23  ;;  %v6323_v50 = vadd.f32 %v3464_v60, %v3447_v0  ;;  %v6325_v56 = vadd.f32 %v3468_v57, %v3448_v24 }
 0x281   :  { %v6327_v58 = vadd.f32 %v3464_v60, %v3449_v3  ;;  %v6329_v59 = vadd.f32 %v3468_v57, %v3450_v26  ;;  %v6331_v41 = vadd.f32 %v3464_v60, %v3451_v15  ;;  %v6333_v49 = vadd.f32 %v3468_v57, %v3452_v28 }
 0x282   :  { %v6335_v10 = vadd.f32 %v3464_v60, %v3453_v21  ;;  %v6337_v7 = vadd.f32 %v3468_v57, %v3454_v22  ;;  %v6339_v16 = vadd.f32 %v3464_v60, %v3455_v40  ;;  %v6341_v36 = vadd.f32 %v3468_v57, %v3456_v37 }
 0x283   :  { %vm3503_vm0 = vcmp.gt.f32.partialorder %v6283_v17, 0.0  ;;  %vm3504_vm1 = vcmp.gt.f32.partialorder %v6285_v2, 0.0  ;;  %vm3505_vm2 = vcmp.gt.f32.partialorder %v6287_v4, 0.0  ;;  %vm3506_vm3 = vcmp.gt.f32.partialorder %v6289_v6, 0.0 }
 0x284   :  { %vm3507_vm4 = vcmp.gt.f32.partialorder %v6291_v48, 0.0  ;;  %vm3508_vm5 = vcmp.gt.f32.partialorder %v6293_v54, 0.0  ;;  %vm3509_vm6 = vcmp.gt.f32.partialorder %v6295_v9, 0.0  ;;  %vm3510_vm7 = vcmp.gt.f32.partialorder %v6297_v55, 0.0 }
 0x285   :  { %vm3511_vm8 = vcmp.gt.f32.partialorder %v6299_v12, 0.0  ;;  %v6353_v19 = vadd.f32 %v3464_v60, %v3457_v53  ;;  %v3535_v27 = vmul.f32 0.2, %v6283_v17  ;;  %v3536_v1 = vmul.f32 0.2, %v6285_v2 }
 0x286   :  { %v3537_v46 = vmul.f32 0.2, %v6287_v4  ;;  %v6362_v11 = vadd.f32 %v3468_v57, %v3458_v42  ;;  %vm3518_vm15 = vcmp.gt.f32.partialorder %v6313_v39, 0.0  ;;  %vm3519_vm10 = vcmp.gt.f32.partialorder %v6315_v43, 0.0 }
 0x287   :  { %v3538_v18 = vmul.f32 0.2, %v6289_v6  ;;  %v3539_v44 = vmul.f32 0.2, %v6291_v48  ;;  %v3540_v31 = vmul.f32 0.2, %v6293_v54  ;;  %v6381_v0 = vsel %vm3503_vm0, %v6283_v17, %v3535_v27 }
 0x288   :  { %vm3524_vm14 = vcmp.gt.f32.partialorder %v6325_v56, 0.0  ;;  %v3541_v52 = vmul.f32 0.2, %v6295_v9  ;;  %v3542_v63 = vmul.f32 0.2, %v6297_v55  ;;  %vm3528_vm9 = vcmp.gt.f32.partialorder %v6333_v49, 0.0 }
 0x289   :  { %v3543_v23 = vmul.f32 0.2, %v6299_v12  ;;  %v3544_v24 = vmul.f32 0.2, %v6301_v61  ;;  %v3545_v3 = vmul.f32 0.2, %v6303_v13  ;;  %v6393_v15 = vsel %vm3504_vm1, %v6285_v2, %v3536_v1 }
 0x28a   :  { %v3546_v26 = vmul.f32 0.2, %v6305_v34  ;;  %vm3530_vm11 = vcmp.gt.f32.partialorder %v6337_v7, 0.0  ;;  %vm3531_vm13 = vcmp.gt.f32.partialorder %v6339_v16, 0.0  ;;  %vm3532_vm12 = vcmp.gt.f32.partialorder %v6341_v36, 0.0 }
 0x28b   :  { %v3547_v28 = vmul.f32 0.2, %v6307_v29  ;;  %v3548_v21 = vmul.f32 0.2, %v6309_v35  ;;  %v3549_v22 = vmul.f32 0.2, %v6311_v38  ;;  %v3569_v33 = vsel %vm3505_vm2, %v6287_v4, %v3537_v46 }
 0x28c   :  { %vm3533_vm1 = vcmp.gt.f32.partialorder %v6353_v19, 0.0  ;;  %vm3534_vm0 = vcmp.gt.f32.partialorder %v6362_v11, 0.0  ;;  %v3550_v40 = vmul.f32 0.2, %v6313_v39  ;;  %v3551_v37 = vmul.f32 0.2, %v6315_v43 }
 0x28d   :  { %v3552_v53 = vmul.f32 0.2, %v6317_v45  ;;  %v3570_v42 = vsel %vm3506_vm3, %v6289_v6, %v3538_v18  ;;  %v3553_v60 = vmul.f32 0.2, %v6319_v47  ;;  %v3554_v57 = vmul.f32 0.2, %v6321_v5 }
 0x28e   :  { %v3555_v8 = vmul.f32 0.2, %v6323_v50  ;;  %v3571_v62 = vsel %vm3507_vm4, %v6291_v48, %v3539_v44  ;;  %v3556_v20 = vmul.f32 0.2, %v6325_v56  ;;  %v3557_v32 = vmul.f32 0.2, %v6327_v58 }
 0x28f   :  { %v3558_v14 = vmul.f32 0.2, %v6329_v59  ;;  %v3572_v30 = vsel %vm3508_vm5, %v6293_v54, %v3540_v31  ;;  %v3559_v25 = vmul.f32 0.2, %v6331_v41  ;;  %v3560_v51 = vmul.f32 0.2, %v6333_v49 }
 0x290   :  { %v3561_v17 = vmul.f32 0.2, %v6335_v10  ;;  %v3573_v2 = vsel %vm3509_vm6, %v6295_v9, %v3541_v52  ;;  %v3562_v4 = vmul.f32 0.2, %v6337_v7  ;;  %v3563_v6 = vmul.f32 0.2, %v6339_v16 }
 0x291   :  { %v3564_v48 = vmul.f32 0.2, %v6341_v36  ;;  %v3574_v54 = vsel %vm3510_vm7, %v6297_v55, %v3542_v63  ;;  %v3565_v27 = vmul.f32 0.2, %v6353_v19  ;;  %v3566_v1 = vmul.f32 0.2, %v6362_v11 }
 0x292   :  { %v3575_v46 = vsel %vm3511_vm8, %v6299_v12, %v3543_v23  ;;  %vm6567_vm2 = vcmp.gt.f32.partialorder %v6301_v61, 0.0  ;;  %vm6568_vm3 = vcmp.gt.f32.partialorder %v6303_v13, 0.0  ;;  %vm6569_vm4 = vcmp.gt.f32.partialorder %v6305_v34, 0.0 }
 0x293   :  { %v3576_v9 = vsel %vm6567_vm2, %v6301_v61, %v3544_v24  ;;  %v3577_v18 = vsel %vm6568_vm3, %v6303_v13, %v3545_v3  ;;  %v3578_v55 = vsel %vm6569_vm4, %v6305_v34, %v3546_v26  ;;  %vm6570_vm5 = vcmp.gt.f32.partialorder %v6307_v29, 0.0 }
 0x294   :  { %v3579_v44 = vsel %vm6570_vm5, %v6307_v29, %v3547_v28  ;;  %vm6571_vm6 = vcmp.gt.f32.partialorder %v6309_v35, 0.0  ;;  %vm6572_vm7 = vcmp.gt.f32.partialorder %v6311_v38, 0.0  ;;  %v3582_v13 = vsel %vm3518_vm15, %v6313_v39, %v3550_v40 }
 0x295   :  { %v3580_v12 = vsel %vm6571_vm6, %v6309_v35, %v3548_v21  ;;  %v3581_v61 = vsel %vm6572_vm7, %v6311_v38, %v3549_v22  ;;  %v3583_v34 = vsel %vm3519_vm10, %v6315_v43, %v3551_v37  ;;  %vm6573_vm8 = vcmp.gt.f32.partialorder %v6317_v45, 0.0 }
 0x296   :  { %v3584_v29 = vsel %vm6573_vm8, %v6317_v45, %v3552_v53  ;;  %vm6574_vm2 = vcmp.gt.f32.partialorder %v6319_v47, 0.0  ;;  %vm6575_vm3 = vcmp.gt.f32.partialorder %v6321_v5, 0.0  ;;  %vm6576_vm4 = vcmp.gt.f32.partialorder %v6323_v50, 0.0 }
 0x297   :  { %v3585_v35 = vsel %vm6574_vm2, %v6319_v47, %v3553_v60  ;;  %v3586_v38 = vsel %vm6575_vm3, %v6321_v5, %v3554_v57  ;;  %v3587_v39 = vsel %vm6576_vm4, %v6323_v50, %v3555_v8  ;;  %v3588_v43 = vsel %vm3524_vm14, %v6325_v56, %v3556_v20 }
 0x298   :  { %vm6577_vm10 = vcmp.gt.f32.partialorder %v6327_v58, 0.0  ;;  %vm6578_vm15 = vcmp.gt.f32.partialorder %v6329_v59, 0.0  ;;  %vm6579_vm5 = vcmp.gt.f32.partialorder %v6331_v41, 0.0  ;;  %v3592_v50 = vsel %vm3528_vm9, %v6333_v49, %v3560_v51 }
 0x299   :  { %v3589_v45 = vsel %vm6577_vm10, %v6327_v58, %v3557_v32  ;;  %v3590_v47 = vsel %vm6578_vm15, %v6329_v59, %v3558_v14  ;;  %v3591_v5 = vsel %vm6579_vm5, %v6331_v41, %v3559_v25  ;;  %vm6580_vm6 = vcmp.gt.f32.partialorder %v6335_v10, 0.0 }
 0x29a   :  { %v3593_v56 = vsel %vm6580_vm6, %v6335_v10, %v3561_v17  ;;  %v3594_v58 = vsel %vm3530_vm11, %v6337_v7, %v3562_v4  ;;  %v3595_v59 = vsel %vm3531_vm13, %v6339_v16, %v3563_v6  ;;  %v3596_v41 = vsel %vm3532_vm12, %v6341_v36, %v3564_v48 }
 0x29b   :  { %v3597_v49 = vsel %vm3533_vm1, %v6353_v19, %v3565_v27  ;;  %v3598_v10 = vsel %vm3534_vm0, %v6362_v11, %v3566_v1  ;;  %v4115_v31 = vpack.c.bf16 %v6393_v15, %v6381_v0  ;;  %v4116_v7 = vpack.c.bf16 %v3570_v42, %v3569_v33 }
 0x29c   :  { %v4117_v52 = vpack.c.bf16 %v3572_v30, %v3571_v62  ;;  %v4118_v63 = vpack.c.bf16 %v3574_v54, %v3573_v2  ;;  %v4119_v23 = vpack.c.bf16 %v3576_v9, %v3575_v46  ;;  %v4120_v16 = vpack.c.bf16 %v3578_v55, %v3577_v18 }
 0x29d   :  { %v4121_v24 = vpack.c.bf16 %v3580_v12, %v3579_v44  ;;  %v4122_v3 = vpack.c.bf16 %v3582_v13, %v3581_v61  ;;  %v4123_v26 = vpack.c.bf16 %v3584_v29, %v3583_v34  ;;  %v4124_v36 = vpack.c.bf16 %v3586_v38, %v3585_v35  ;;  %3695 = vst [vmem:[%s6566_s5] sm:$0xff] %v4115_v31 }
 0x29e   :  { %3696 = vst [vmem:[%s6566_s5 + $0x8] sm:$0xff] %v4116_v7  ;;  %v4125_v19 = vpack.c.bf16 %v3588_v43, %v3587_v39  ;;  %v4126_v11 = vpack.c.bf16 %v3590_v47, %v3589_v45  ;;  %v4127_v0 = vpack.c.bf16 %v3592_v50, %v3591_v5  ;;  %v4128_v15 = vpack.c.bf16 %v3594_v58, %v3593_v56 }
 0x29f   :  { %3697 = vst [vmem:[%s6566_s5 + $0x10] sm:$0xff] %v4117_v52  ;;  %3698 = vst [vmem:[%s6566_s5 + $0x18] sm:$0xff] %v4118_v63  ;;  %v4129_v28 = vpack.c.bf16 %v3596_v41, %v3595_v59  ;;  %v4130_v21 = vpack.c.bf16 %v3598_v10, %v3597_v49 }
 0x2a0   :  { %3699 = vst [vmem:[%s6566_s5 + $0x20] sm:$0xff] %v4119_v23  ;;  %3700 = vst [vmem:[%s6566_s5 + $0x28] sm:$0xff] %v4120_v16 }
 0x2a1   :  { %3701 = vst [vmem:[%s6566_s5 + $0x30] sm:$0xff] %v4121_v24  ;;  %3702 = vst [vmem:[%s6566_s5 + $0x38] sm:$0xff] %v4122_v3 }
 0x2a2   :  { %3703 = vst [vmem:[%s6566_s5 + $0x40] sm:$0xff] %v4123_v26  ;;  %3704 = vst [vmem:[%s6566_s5 + $0x48] sm:$0xff] %v4124_v36 }
 0x2a3   :  { %3705 = vst [vmem:[%s6566_s5 + $0x50] sm:$0xff] %v4125_v19  ;;  %3706 = vst [vmem:[%s6566_s5 + $0x58] sm:$0xff] %v4126_v11 }
 0x2a4   :  { %3707 = vst [vmem:[%s6566_s5 + $0x60] sm:$0xff] %v4127_v0  ;;  %3708 = vst [vmem:[%s6566_s5 + $0x68] sm:$0xff] %v4128_v15 }
 0x2a5   :  { %3709 = vst [vmem:[%s6566_s5 + $0x70] sm:$0xff] %v4129_v28  ;;  %3710 = vst [vmem:[%s6566_s5 + $0x78] sm:$0xff] %v4130_v21 }

// kernel: discriminator_forward.7
= control target key start
LH: loop header
LB: loop body
LE: loop exit
PB: predicated region body
PF: predicated region fallthrough
CT: control target
= control target key end

     0   :  { %v80_v1 = vlaneseq  ;;  %v1528_v11 = vmov 1983009808   ;;  %vm1376_vm0 = vcmask 1041408   ;;  %vm1518_vm1 = vcmask 1024   ;;  %s2517_s2 = inlined_call_operand.<no memory space> [shape: f32[1,1], index: 2, kind: input, shape index: {}]   ;;  %s2518_s1 = inlined_call_operand.vmem [shape: bf16[1,8192], index: 1, kind: input, shape index: {}]   ;;  %s2519_s0 = inlined_call_operand.vmem [shape: bf16[2,8192], index: 0, kind: input, shape index: {}]   ;;  %s2520_s3 = inlined_call_operand.vmem [shape: f32[2,1], index: 3, kind: output, shape index: {}]  }
   0x1   :  { %v8_v0 = vstv %s2517_s2  ;;  %v44_v2 = vld [vmem:[%s2518_s1 + $0x20] sm:$0xff]  ;;  %v45_v3 = vld [vmem:[%s2518_s1 + $0x28] sm:$0xff]  ;;  %v46_v5 = vld [vmem:[%s2518_s1 + $0x30] sm:$0xff]  ;;  %v1574_v12 = vunpack.c.l.s4 %v1528_v11 }
   0x2   :  { %9 = vst [vmem:[#allocation2] sm:$0x1] %v8_v0  ;;  %v1558_v4 = vshrl.u32 %v80_v1, 7  ;;  %v47_v6 = vld [vmem:[%s2518_s1 + $0x38] sm:$0xff]  ;;  %v1566_v7 = vunpack.c.l.bf16 %v44_v2  ;;  %v1568_v8 = vunpack.c.h.bf16 %v44_v2  ;;  %v1570_v9 = vunpack.c.l.bf16 %v45_v3  ;;  %v1655_v49 = vld [vmem:[%s2519_s0] sm:$0xff]  ;;  %v1660_v50 = vld [vmem:[%s2519_s0 + $0x8] sm:$0xff] }
   0x3   :  { %v1572_v10 = vunpack.c.h.bf16 %v45_v3  ;;  %v1588_v17 = vunpack.c.l.bf16 %v46_v5  ;;  %v1590_v18 = vunpack.c.h.bf16 %v46_v5  ;;  %v1592_v19 = vunpack.c.l.bf16 %v47_v6  ;;  %2541 = vst [vmem:[#allocation5_spill] sm:$0xff] %v1655_v49  ;;  %2542 = vst [vmem:[#allocation6_spill] sm:$0xff] %v1660_v50  ;;  %v1673_v55 = vld [vmem:[%s2519_s0 + $0x20] sm:$0xff]  ;;  %v1681_v57 = vld [vmem:[%s2519_s0 + $0x28] sm:$0xff] }
   0x4   :  { %v1577_v13 = vsub.s32 0, %v1558_v4  ;;  %v1580_v14 = vsub.s32 2, %v1558_v4  ;;  %v1583_v15 = vsub.s32 4, %v1558_v4  ;;  %v1586_v16 = vsub.s32 6, %v1558_v4  ;;  %v40_v56 = vld [vmem:[%s2518_s1] sm:$0xff]  ;;  %v1686_v58 = vld [vmem:[%s2519_s0 + $0x30] sm:$0xff] }
   0x5   :  { %v1594_v20 = vunpack.c.h.bf16 %v47_v6  ;;  %2543 = vst [vmem:[#allocation7_spill] sm:$0xff] %v1686_v58  ;;  %v1691_v59 = vld [vmem:[%s2519_s0 + $0x38] sm:$0xff]  ;;  %v41_v1 = vld [vmem:[%s2518_s1 + $0x8] sm:$0xff]  ;;  %v42_v2 = vld [vmem:[%s2518_s1 + $0x10] sm:$0xff]  ;;  %v1704_v3 = vunpack.c.l.bf16 %v40_v56  ;;  %v724_v5 = vunpack.c.0.s8 %v1574_v12  ;;  %v1719_v12 = vunpack.c.h.bf16 %v40_v56 }
   0x6   :  { %2539 = vst [vmem:[#allocation3_spill] sm:$0xff] %v1580_v14  ;;  %2540 = vst [vmem:[#allocation4_spill] sm:$0xff] %v1583_v15  ;;  %v211_v21 = vrot.slane %v1566_v7, %v1577_v13  ;;  %v215_v22 = vrot.slane %v1566_v7, %v1580_v14  ;;  %v219_v23 = vrot.slane %v1566_v7, %v1583_v15  ;;  %v1714_v61 = vld [vmem:[%s2518_s1 + $0x18] sm:$0xff]  ;;  %v1721_v6 = vunpack.c.l.bf16 %v41_v1 }
   0x7   :  { %v223_v24 = vrot.slane %v1566_v7, %v1586_v16  ;;  %v227_v25 = vrot.slane %v1568_v8, %v1577_v13  ;;  %v231_v26 = vrot.slane %v1568_v8, %v1580_v14  ;;  %v235_v27 = vrot.slane %v1568_v8, %v1583_v15  ;;  %2544 = vst [vmem:[#allocation8_spill] sm:$0xff] %v1691_v59 }
   0x8   :  { %v239_v28 = vrot.slane %v1568_v8, %v1586_v16  ;;  %v243_v29 = vrot.slane %v1570_v9, %v1577_v13  ;;  %v247_v30 = vrot.slane %v1570_v9, %v1580_v14  ;;  %v251_v31 = vrot.slane %v1570_v9, %v1583_v15  ;;  %2545 = vst [vmem:[#allocation9_spill] sm:$0xff] %v1714_v61 }
   0x9   :  { %v255_v32 = vrot.slane %v1570_v9, %v1586_v16  ;;  %v259_v33 = vrot.slane %v1572_v10, %v1577_v13  ;;  %v263_v34 = vrot.slane %v1572_v10, %v1580_v14  ;;  %v267_v35 = vrot.slane %v1572_v10, %v1583_v15 }
   0xa   :  { %v271_v36 = vrot.slane %v1572_v10, %v1586_v16  ;;  %v275_v37 = vrot.slane %v1588_v17, %v1577_v13  ;;  %v279_v38 = vrot.slane %v1588_v17, %v1580_v14  ;;  %v283_v39 = vrot.slane %v1588_v17, %v1583_v15 }
   0xb   :  { %v287_v40 = vrot.slane %v1588_v17, %v1586_v16  ;;  %v291_v41 = vrot.slane %v1590_v18, %v1577_v13  ;;  %v295_v42 = vrot.slane %v1590_v18, %v1580_v14  ;;  %v299_v43 = vrot.slane %v1590_v18, %v1583_v15 }
   0xc   :  { %v303_v44 = vrot.slane %v1590_v18, %v1586_v16  ;;  %v307_v45 = vrot.slane %v1592_v19, %v1577_v13  ;;  %v311_v46 = vrot.slane %v1592_v19, %v1580_v14  ;;  %v315_v47 = vrot.slane %v1592_v19, %v1583_v15 }
   0xd   :  { %v319_v48 = vrot.slane %v1592_v19, %v1586_v16  ;;  %v323_v51 = vrot.slane %v1594_v20, %v1577_v13  ;;  %v327_v52 = vrot.slane %v1594_v20, %v1580_v14  ;;  %v1723_v11 = vunpack.c.h.bf16 %v41_v1 }
   0xe   :  { %v1725_v63 = vunpack.c.l.bf16 %v42_v2  ;;  %v1727_v62 = vunpack.c.h.bf16 %v42_v2  ;;  %v1730_v53 = vunpack.c.l.bf16 %v1714_v61  ;;  %v83_v60 = vrot.slane %v1704_v3, %v1577_v13 }
   0xf   :  { %v87_v0 = vrot.slane %v1704_v3, %v1580_v14  ;;  %v1737_v56 = vsub.s32 %v724_v5, %v1558_v4  ;;  %v1743_v1 = vrot.slane %v211_v21, %v1577_v13  ;;  %v1749_v2 = vrot.slane %v215_v22, %v1577_v13 }
  0x10   :  { %2546 = vst [vmem:[#allocation10_spill] sm:$0xff] %v1727_v62  ;;  %2547 = vst [vmem:[#allocation11_spill] sm:$0xff] %v1730_v53  ;;  %v1755_v54 = vrot.slane %v219_v23, %v1577_v13  ;;  %v1761_v4 = vrot.slane %v223_v24, %v1577_v13  ;;  %v1767_v21 = vrot.slane %v227_v25, %v1577_v13 }
  0x11   :  { %2548 = vst [vmem:[#allocation12_spill] sm:$0xff] %v1737_v56  ;;  %v1773_v22 = vrot.slane %v231_v26, %v1577_v13  ;;  %v1779_v23 = vrot.slane %v235_v27, %v1577_v13  ;;  %v1785_v7 = vrot.slane %v239_v28, %v1577_v13  ;;  %v1791_v24 = vrot.slane %v243_v29, %v1577_v13 }
  0x12   :  { %v1797_v25 = vrot.slane %v247_v30, %v1577_v13  ;;  %v1803_v26 = vrot.slane %v251_v31, %v1577_v13  ;;  %v1809_v8 = vrot.slane %v255_v32, %v1577_v13  ;;  %v1815_v27 = vrot.slane %v259_v33, %v1577_v13 }
  0x13   :  { %v1821_v28 = vrot.slane %v263_v34, %v1577_v13  ;;  %v1827_v29 = vrot.slane %v267_v35, %v1577_v13  ;;  %v1833_v9 = vrot.slane %v271_v36, %v1577_v13  ;;  %v1839_v30 = vrot.slane %v275_v37, %v1577_v13 }
  0x14   :  { %v1845_v31 = vrot.slane %v279_v38, %v1577_v13  ;;  %v1851_v32 = vrot.slane %v283_v39, %v1577_v13  ;;  %v1857_v10 = vrot.slane %v287_v40, %v1577_v13  ;;  %v1863_v33 = vrot.slane %v291_v41, %v1577_v13 }
  0x15   :  { %v1869_v34 = vrot.slane %v295_v42, %v1577_v13  ;;  %v1875_v35 = vrot.slane %v299_v43, %v1577_v13  ;;  %v1881_v17 = vrot.slane %v303_v44, %v1577_v13  ;;  %v1887_v36 = vrot.slane %v307_v45, %v1577_v13 }
  0x16   :  { %v1893_v37 = vrot.slane %v311_v46, %v1577_v13  ;;  %v1899_v38 = vrot.slane %v315_v47, %v1577_v13  ;;  %v1905_v18 = vrot.slane %v319_v48, %v1577_v13  ;;  %v1911_v39 = vrot.slane %v323_v51, %v1577_v13 }
  0x17   :  { %v1917_v40 = vrot.slane %v327_v52, %v1577_v13  ;;  %v2549_v41 = vrot.slane %v1594_v20, %v1583_v15  ;;  %v2550_v19 = vrot.slane %v1594_v20, %v1586_v16  ;;  %v91_v44 = vrot.slane %v1704_v3, %v1583_v15 }
  0x18   :  { %v95_v45 = vrot.slane %v1704_v3, %v1586_v16  ;;  %v99_v46 = vrot.slane %v1719_v12, %v1577_v13  ;;  %v103_v47 = vrot.slane %v1719_v12, %v1580_v14  ;;  %v107_v48 = vrot.slane %v1719_v12, %v1583_v15 }
  0x19   :  { %v1923_v42 = vrot.slane %v2549_v41, %v1577_v13  ;;  %v1929_v43 = vrot.slane %v2550_v19, %v1577_v13  ;;  %v111_v20 = vrot.slane %v1719_v12, %v1586_v16  ;;  %v115_v51 = vrot.slane %v1721_v6, %v1577_v13 }
  0x1a   :  { %v119_v52 = vrot.slane %v1721_v6, %v1580_v14  ;;  %v123_v3 = vrot.slane %v1721_v6, %v1583_v15  ;;  %v127_v5 = vrot.slane %v1721_v6, %v1586_v16  ;;  %v131_v41 = vrot.slane %v1723_v11, %v1577_v13 }
  0x1b   :  { %v135_v19 = vrot.slane %v1723_v11, %v1580_v14  ;;  %v139_v12 = vrot.slane %v1723_v11, %v1583_v15  ;;  %v143_v50 = vrot.slane %v1723_v11, %v1586_v16  ;;  %v147_v49 = vrot.slane %v1725_v63, %v1577_v13 }
  0x1c   :  { %v151_v61 = vrot.slane %v1725_v63, %v1580_v14  ;;  %v155_v6 = vrot.slane %v1725_v63, %v1583_v15  ;;  %v159_v53 = vrot.slane %v1725_v63, %v1586_v16  ;;  %v1968_v62 = vrot.slane %v83_v60, %v1577_v13 }
  0x1d   :  { %v1971_v59 = vrot.slane %v87_v0, %v1577_v13  ;;  %v1974_v11 = vrot.slane %v91_v44, %v1577_v13  ;;  %v1977_v58 = vrot.slane %v95_v45, %v1577_v13  ;;  %v1980_v14 = vrot.slane %v99_v46, %v1577_v13 }
  0x1e   :  { %v1983_v15 = vrot.slane %v103_v47, %v1577_v13  ;;  %v1986_v63 = vrot.slane %v107_v48, %v1577_v13  ;;  %v1989_v60 = vrot.slane %v111_v20, %v1577_v13  ;;  %v1992_v0 = vrot.slane %v115_v51, %v1577_v13 }
  0x1f   :  { %v1995_v44 = vrot.slane %v119_v52, %v1577_v13  ;;  %v1998_v45 = vrot.slane %v123_v3, %v1577_v13  ;;  %v2001_v46 = vrot.slane %v127_v5, %v1577_v13  ;;  %v2004_v47 = vrot.slane %v131_v41, %v1577_v13 }
  0x20   :  { %v2007_v48 = vrot.slane %v135_v19, %v1577_v13  ;;  %v2010_v20 = vrot.slane %v139_v12, %v1577_v13  ;;  %v2013_v51 = vrot.slane %v143_v50, %v1577_v13  ;;  %v2016_v52 = vrot.slane %v147_v49, %v1577_v13 }
  0x21   :  { %v856_v3 = vcombine.low %v1743_v1, %v1749_v2  ;;  %v2021_v5 = vrot.slane %v151_v61, %v1577_v13  ;;  %v2024_v41 = vrot.slane %v155_v6, %v1577_v13  ;;  %v2027_v19 = vrot.slane %v159_v53, %v1577_v13 }
  0x22   :  { %v857_v12 = vcombine.low %v1755_v54, %v1761_v4  ;;  %v720_v50 = vcombine.low %v1968_v62, %v1971_v59  ;;  %v873_v1 = vcombine.low %v1767_v21, %v1773_v22  ;;  %v874_v61 = vcombine.low %v1779_v23, %v1785_v7 }
  0x23   :  { %v864_v49 = vrot.slane %v856_v3, %v1737_v56  ;;  %v721_v2 = vcombine.low %v1974_v11, %v1977_v58  ;;  %v890_v6 = vcombine.low %v1791_v24, %v1797_v25  ;;  %v891_v54 = vcombine.low %v1803_v26, %v1809_v8 }
  0x24   :  { %v871_v53 = vrot.slane %v857_v12, %v1737_v56  ;;  %v881_v59 = vrot.slane %v873_v1, %v1737_v56  ;;  %v888_v62 = vrot.slane %v874_v61, %v1737_v56  ;;  %v907_v4 = vcombine.low %v1815_v27, %v1821_v28 }
  0x25   :  { %v908_v21 = vcombine.low %v1827_v29, %v1833_v9  ;;  %v898_v58 = vrot.slane %v890_v6, %v1737_v56  ;;  %v905_v23 = vrot.slane %v891_v54, %v1737_v56  ;;  %v924_v7 = vcombine.low %v1839_v30, %v1845_v31  ;;  %v2558_v6 = vld [vmem:[#allocation8_spill] sm:$0xff] }
  0x26   :  { %v872_v22 = vcombine.low %v864_v49, %v871_v53  ;;  %v889_v24 = vcombine.low %v881_v59, %v888_v62  ;;  %v915_v25 = vrot.slane %v907_v4, %v1737_v56  ;;  %v925_v8 = vcombine.low %v1851_v32, %v1857_v10 }
  0x27   :  { %v922_v26 = vrot.slane %v908_v21, %v1737_v56  ;;  %v906_v27 = vcombine.low %v898_v58, %v905_v23  ;;  %v932_v28 = vrot.slane %v924_v7, %v1737_v56  ;;  %v941_v29 = vcombine.low %v1863_v33, %v1869_v34  ;;  %v2562_v21 = vld [vmem:[#allocation3_spill] sm:$0xff]  ;;  %v2563_v7 = vld [vmem:[#allocation4_spill] sm:$0xff] }
  0x28   :  { %v942_v9 = vcombine.low %v1875_v35, %v1881_v17  ;;  %v939_v30 = vrot.slane %v925_v8, %v1737_v56  ;;  %v958_v31 = vcombine.low %v1887_v36, %v1893_v37  ;;  %v959_v3 = vcombine.low %v1899_v38, %v1905_v18 }
  0x29   :  { %v923_v11 = vcombine.low %v915_v25, %v922_v26  ;;  %v949_v32 = vrot.slane %v941_v29, %v1737_v56  ;;  %v975_v12 = vcombine.low %v1911_v39, %v1917_v40  ;;  %v976_v33 = vcombine.low %v1923_v42, %v1929_v43 }
  0x2a   :  { %v956_v10 = vrot.slane %v942_v9, %v1737_v56  ;;  %v737_v34 = vcombine.low %v1980_v14, %v1983_v15  ;;  %v940_v35 = vcombine.low %v932_v28, %v939_v30  ;;  %v966_v17 = vrot.slane %v958_v31, %v1737_v56  ;;  %v2142_v30 = vld [vmem:[%s2519_s0 + $0x10] sm:$0xff] }
  0x2b   :  { %v973_v36 = vrot.slane %v959_v3, %v1737_v56  ;;  %v738_v37 = vcombine.low %v1986_v63, %v1989_v60  ;;  %v983_v18 = vrot.slane %v975_v12, %v1737_v56  ;;  %v990_v49 = vrot.slane %v976_v33, %v1737_v56 }
  0x2c   :  { %v957_v38 = vcombine.low %v949_v32, %v956_v10  ;;  %v754_v39 = vcombine.low %v1992_v0, %v1995_v44  ;;  %v755_v40 = vcombine.low %v1998_v45, %v2001_v46  ;;  %v771_v14 = vcombine.low %v2004_v47, %v2007_v48 }
  0x2d   :  { %v974_v15 = vcombine.low %v966_v17, %v973_v36  ;;  %v728_v42 = vrot.slane %v720_v50, %v1737_v56  ;;  %v735_v43 = vrot.slane %v721_v2, %v1737_v56  ;;  %v772_v63 = vcombine.low %v2010_v20, %v2013_v51  ;;  %v2555_v50 = vld [vmem:[#allocation7_spill] sm:$0xff]  ;;  %v2565_v36 = vld [vmem:[#allocation9_spill] sm:$0xff] }
  0x2e   :  { %v991_v60 = vcombine.low %v983_v18, %v990_v49  ;;  %v2551_v1 = vunpack.c.l.bf16 %v1673_v55  ;;  %v2552_v0 = vunpack.c.h.bf16 %v1673_v55  ;;  %v2553_v45 = vunpack.c.l.bf16 %v1681_v57 }
  0x2f   :  { %v2554_v47 = vunpack.c.h.bf16 %v1681_v57  ;;  %v2556_v53 = vunpack.c.l.bf16 %v2555_v50  ;;  %v2557_v20 = vunpack.c.h.bf16 %v2555_v50  ;;  %v2559_v54 = vunpack.c.l.bf16 %v2558_v6  ;;  %v2561_v57 = vld [vmem:[#allocation10_spill] sm:$0xff] }
  0x30   :  { %v1016_v61 = vmul.f32 %v872_v22, %v2551_v1  ;;  %v1017_v44 = vmul.f32 %v889_v24, %v2552_v0  ;;  %v1018_v46 = vmul.f32 %v906_v27, %v2553_v45  ;;  %v2560_v55 = vunpack.c.h.bf16 %v2558_v6  ;;  %v2564_v27 = vld [vmem:[#allocation11_spill] sm:$0xff] }
  0x31   :  { %v2101_v48 = vmul.f32 %v923_v11, %v2554_v47  ;;  %v2105_v2 = vmul.f32 %v940_v35, %v2556_v53  ;;  %v2109_v51 = vmul.f32 %v957_v38, %v2557_v20  ;;  %v2113_v59 = vmul.f32 %v974_v15, %v2559_v54  ;;  %v2570_v20 = vld [vmem:[#allocation6_spill] sm:$0xff] }
  0x32   :  { %v2117_v62 = vmul.f32 %v991_v60, %v2560_v55  ;;  %v163_v4 = vrot.slane %v2561_v57, %v1577_v13  ;;  %v167_v22 = vrot.slane %v2561_v57, %v2562_v21  ;;  %v745_v58 = vrot.slane %v737_v34, %v1737_v56 }
  0x33   :  { %v752_v23 = vrot.slane %v738_v37, %v1737_v56  ;;  %v171_v24 = vrot.slane %v2561_v57, %v2563_v7  ;;  %v175_v25 = vrot.slane %v2561_v57, %v1586_v16  ;;  %v788_v26 = vcombine.low %v2016_v52, %v2021_v5 }
  0x34   :  { %v789_v8 = vcombine.low %v2024_v41, %v2027_v19  ;;  %v179_v28 = vrot.slane %v2564_v27, %v1577_v13  ;;  %v183_v29 = vrot.slane %v2564_v27, %v2562_v21  ;;  %v762_v9 = vrot.slane %v754_v39, %v1737_v56 }
  0x35   :  { %v769_v11 = vrot.slane %v755_v40, %v1737_v56  ;;  %v187_v52 = vrot.slane %v2564_v27, %v2563_v7  ;;  %v736_v5 = vcombine.low %v728_v42, %v735_v43  ;;  %v779_v41 = vrot.slane %v771_v14, %v1737_v56  ;;  %v2566_v14 = vld [vmem:[#allocation5_spill] sm:$0xff] }
  0x36   :  { %v786_v19 = vrot.slane %v772_v63, %v1737_v56  ;;  %v191_v31 = vrot.slane %v2564_v27, %v1586_v16  ;;  %v483_v3 = vrot.slane %v163_v4, %v1577_v13  ;;  %v487_v32 = vrot.slane %v167_v22, %v1577_v13 }
  0x37   :  { %v753_v10 = vcombine.low %v745_v58, %v752_v23  ;;  %v491_v12 = vrot.slane %v171_v24, %v1577_v13  ;;  %v495_v33 = vrot.slane %v175_v25, %v1577_v13  ;;  %v796_v34 = vrot.slane %v788_v26, %v1737_v56 }
  0x38   :  { %v803_v35 = vrot.slane %v789_v8, %v1737_v56  ;;  %v28_v17 = vunpack.c.l.bf16 %v2142_v30  ;;  %v2158_v37 = vunpack.c.h.bf16 %v2565_v36  ;;  %v2161_v38 = vrot.slane %v179_v28, %v1577_v13 }
  0x39   :  { %v770_v18 = vcombine.low %v762_v9, %v769_v11  ;;  %v2164_v49 = vrot.slane %v183_v29, %v1577_v13  ;;  %v2167_v39 = vrot.slane %v187_v52, %v1577_v13  ;;  %v787_v40 = vcombine.low %v779_v41, %v786_v19 }
  0x3a   :  { %v2567_v15 = vunpack.c.l.bf16 %v2566_v14  ;;  %v2172_v43 = vrot.slane %v191_v31, %v1577_v13  ;;  %v805_v63 = vcombine.low %v483_v3, %v487_v32  ;;  %v2568_v60 = vunpack.c.h.bf16 %v2566_v14 }
  0x3b   :  { %v1176_v0 = vcombine.high %v1016_v61, %v1016_v61  ;;  %v804_v45 = vcombine.low %v796_v34, %v803_v35  ;;  %v806_v47 = vcombine.low %v491_v12, %v495_v33  ;;  %v2177_v53 = vrot.slane %v1016_v61, %v1737_v56 }
  0x3c   :  { %v1008_v42 = vmul.f32 %v736_v5, %v2567_v15  ;;  %v1009_v1 = vmul.f32 %v753_v10, %v2568_v60  ;;  %v2571_v6 = vunpack.c.l.bf16 %v2570_v20  ;;  %v1193_v57 = vcombine.high %v1017_v44, %v1017_v44 }
  0x3d   :  { %2569 = vst [vmem:[#allocation7_spill] sm:$0xff] %v2177_v53  ;;  %v2182_v55 = vrot.slane %v1176_v0, %v1737_v56  ;;  %v2185_v4 = vrot.slane %v1017_v44, %v1737_v56  ;;  %v2572_v22 = vunpack.c.h.bf16 %v2570_v20  ;;  %v1210_v24 = vcombine.high %v1018_v46, %v1018_v46 }
  0x3e   :  { %v1040_v50 = vcombine.high %v1008_v42, %v1008_v42  ;;  %v1010_v54 = vmul.f32 %v770_v18, %v2571_v6  ;;  %v1047_v23 = vrot.slane %v1008_v42, %v1737_v56  ;;  %v2191_v25 = vrot.slane %v1018_v46, %v1737_v56 }
  0x3f   :  { %v1011_v58 = vmul.f32 %v787_v40, %v2572_v22  ;;  %v1057_v61 = vcombine.high %v1009_v1, %v1009_v1  ;;  %v1064_v26 = vrot.slane %v1009_v1, %v1737_v56  ;;  %v2195_v8 = vrot.slane %v1193_v57, %v1737_v56 }
  0x40   :  { %v1227_v27 = vcombine.high %v2101_v48, %v2101_v48  ;;  %v1054_v44 = vrot.slane %v1040_v50, %v1737_v56  ;;  %v2201_v28 = vrot.slane %v1210_v24, %v1737_v56  ;;  %v2205_v29 = vrot.slane %v2101_v48, %v1737_v56 }
  0x41   :  { %v1244_v46 = vcombine.high %v2105_v2, %v2105_v2  ;;  %v1074_v9 = vcombine.high %v1010_v54, %v1010_v54  ;;  %v2214_v52 = vrot.slane %v2105_v2, %v1737_v56  ;;  %v1261_v5 = vcombine.high %v2109_v51, %v2109_v51 }
  0x42   :  { %v2210_v11 = vrot.slane %v1227_v27, %v1737_v56  ;;  %v1055_v41 = vcombine.high %v1047_v23, %v1047_v23  ;;  %v1081_v19 = vrot.slane %v1010_v54, %v1737_v56  ;;  %v2224_v31 = vrot.slane %v2109_v51, %v1737_v56 }
  0x43   :  { %v2220_v48 = vrot.slane %v1244_v46, %v1737_v56  ;;  %v1091_v3 = vcombine.high %v1011_v58, %v1011_v58  ;;  %v2227_v32 = vrot.slane %v1011_v58, %v1737_v56  ;;  %v2230_v2 = vrot.slane %v1261_v5, %v1737_v56 }
  0x44   :  { %v1278_v10 = vcombine.high %v2113_v59, %v2113_v59  ;;  %v1056_v12 = vcombine.high %v1054_v44, %v1054_v44  ;;  %v1071_v33 = vrot.slane %v1057_v61, %v1737_v56  ;;  %v2237_v34 = vrot.slane %v2113_v59, %v1737_v56 }
  0x45   :  { %v1295_v51 = vcombine.high %v2117_v62, %v2117_v62  ;;  %v1088_v35 = vrot.slane %v1074_v9, %v1737_v56  ;;  %v2247_v18 = vrot.slane %v2117_v62, %v1737_v56  ;;  %v1377_v40 = vsel %vm1376_vm0, %v1047_v23, 0.0 }
  0x46   :  { %v2243_v36 = vrot.slane %v1278_v10, %v1737_v56  ;;  %v2251_v14 = vrot.slane %v805_v63, %v1737_v56  ;;  %v1378_v15 = vsel %vm1376_vm0, %v1055_v41, 0.0  ;;  %v1380_v42 = vsel %vm1376_vm0, %v1054_v44, 0.0 }
  0x47   :  { %v2254_v59 = vrot.slane %v1295_v51, %v1737_v56  ;;  %v2259_v60 = vrot.slane %v806_v47, %v1737_v56  ;;  %v2261_v1 = vmul.f32 %v804_v45, %v28_v17  ;;  %v1072_v0 = vcombine.high %v1064_v26, %v1064_v26 }
  0x48   :  { %v1379_v62 = vadd.f32 %v1378_v15, %v1377_v40  ;;  %v1089_v50 = vcombine.high %v1081_v19, %v1081_v19  ;;  %v2264_v20 = vrot.slane %v1091_v3, %v1737_v56  ;;  %v1382_v6 = vsel %vm1376_vm0, %v1056_v12, 0.0 }
  0x49   :  { %v1073_v54 = vcombine.high %v1071_v33, %v1071_v33  ;;  %v1090_v57 = vcombine.high %v1088_v35, %v1088_v35  ;;  %v1191_v22 = vcombine.high %v2177_v53, %v2177_v53  ;;  %v1192_v17 = vcombine.high %v2182_v55, %v2182_v55 }
  0x4a   :  { %v1381_v47 = vadd.f32 %v1380_v42, %v1379_v62  ;;  %v1208_v45 = vcombine.high %v2185_v4, %v2185_v4  ;;  %v1225_v58 = vcombine.high %v2191_v25, %v2191_v25  ;;  %v1384_v23 = vsel %vm1376_vm0, %v1064_v26, 0.0 }
  0x4b   :  { %v1209_v24 = vcombine.high %v2195_v8, %v2195_v8  ;;  %v1226_v61 = vcombine.high %v2201_v28, %v2201_v28  ;;  %v1242_v27 = vcombine.high %v2205_v29, %v2205_v29  ;;  %v1243_v46 = vcombine.high %v2210_v11, %v2210_v11 }
  0x4c   :  { %v1383_v44 = vadd.f32 %v1382_v6, %v1381_v47  ;;  %v1259_v9 = vcombine.high %v2214_v52, %v2214_v52  ;;  %v1260_v5 = vcombine.high %v2220_v48, %v2220_v48  ;;  %v1386_v26 = vsel %vm1376_vm0, %v1072_v0, 0.0 }
  0x4d   :  { %v1276_v41 = vcombine.high %v2224_v31, %v2224_v31  ;;  %v1277_v3 = vcombine.high %v2230_v2, %v2230_v2  ;;  %v1293_v10 = vcombine.high %v2237_v34, %v2237_v34  ;;  %v1294_v51 = vcombine.high %v2243_v36, %v2243_v36 }
  0x4e   :  { %v1385_v12 = vadd.f32 %v1384_v23, %v1383_v44  ;;  %v1310_v40 = vcombine.high %v2247_v18, %v2247_v18  ;;  %v1311_v15 = vcombine.high %v2254_v59, %v2254_v59  ;;  %v1388_v42 = vsel %vm1376_vm0, %v1071_v33, 0.0 }
  0x4f   :  { %v1390_v62 = vsel %vm1376_vm0, %v1073_v54, 0.0  ;;  %v1392_v6 = vsel %vm1376_vm0, %v1081_v19, 0.0  ;;  %v1394_v47 = vsel %vm1376_vm0, %v1089_v50, 0.0  ;;  %v1396_v23 = vsel %vm1376_vm0, %v1088_v35, 0.0 }
  0x50   :  { %v1387_v0 = vadd.f32 %v1386_v26, %v1385_v12  ;;  %v1398_v44 = vsel %vm1376_vm0, %v1090_v57, 0.0  ;;  %v2310_v63 = vsel %vm1376_vm0, %v1191_v22, 0.0  ;;  %v2314_v53 = vsel %vm1376_vm0, %v2182_v55, 0.0 }
  0x51   :  { %v2317_v33 = vsel %vm1376_vm0, %v1192_v17, 0.0  ;;  %v2321_v19 = vsel %vm1376_vm0, %v2185_v4, 0.0  ;;  %v2324_v50 = vsel %vm1376_vm0, %v1208_v45, 0.0  ;;  %v2328_v35 = vsel %vm1376_vm0, %v2195_v8, 0.0 }
  0x52   :  { %v1389_v56 = vadd.f32 %v1388_v42, %v1387_v0  ;;  %v2331_v54 = vsel %vm1376_vm0, %v1209_v24, 0.0  ;;  %v2335_v55 = vsel %vm1376_vm0, %v2191_v25, 0.0  ;;  %v2338_v57 = vsel %vm1376_vm0, %v1225_v58, 0.0 }
  0x53   :  { %v2342_v4 = vsel %vm1376_vm0, %v2201_v28, 0.0  ;;  %v2345_v17 = vsel %vm1376_vm0, %v1226_v61, 0.0  ;;  %v2349_v8 = vsel %vm1376_vm0, %v2205_v29, 0.0  ;;  %v2352_v45 = vsel %vm1376_vm0, %v1242_v27, 0.0 }
  0x54   :  { %v1391_v22 = vadd.f32 %v1390_v62, %v1389_v56  ;;  %v2356_v25 = vsel %vm1376_vm0, %v2210_v11, 0.0  ;;  %v2359_v56 = vsel %vm1376_vm0, %v1243_v46, 0.0  ;;  %v2363_v28 = vsel %vm1376_vm0, %v2214_v52, 0.0 }
  0x55   :  { %v2366_v24 = vsel %vm1376_vm0, %v1259_v9, 0.0  ;;  %v2370_v29 = vsel %vm1376_vm0, %v2220_v48, 0.0  ;;  %v2373_v61 = vsel %vm1376_vm0, %v1260_v5, 0.0  ;;  %v2377_v11 = vsel %vm1376_vm0, %v2224_v31, 0.0 }
  0x56   :  { %v1393_v58 = vadd.f32 %v1392_v6, %v1391_v22  ;;  %v2380_v27 = vsel %vm1376_vm0, %v1276_v41, 0.0  ;;  %v2384_v52 = vsel %vm1376_vm0, %v2230_v2, 0.0  ;;  %v2387_v46 = vsel %vm1376_vm0, %v1277_v3, 0.0  ;;  %v19_v6 = vld [vmem:[%s2519_s0 + $0x18] sm:$0xff] }
  0x57   :  { %v2391_v48 = vsel %vm1376_vm0, %v2237_v34, 0.0  ;;  %v2394_v5 = vsel %vm1376_vm0, %v1293_v10, 0.0  ;;  %v2398_v31 = vsel %vm1376_vm0, %v2243_v36, 0.0  ;;  %v2401_v26 = vsel %vm1376_vm0, %v1294_v51, 0.0 }
  0x58   :  { %v1395_v9 = vadd.f32 %v1394_v47, %v1393_v58  ;;  %v2405_v2 = vsel %vm1376_vm0, %v2247_v18, 0.0  ;;  %v2408_v41 = vsel %vm1376_vm0, %v1310_v40, 0.0  ;;  %v2412_v34 = vsel %vm1376_vm0, %v2254_v59, 0.0 }
  0x59   :  { %v29_v3 = vunpack.c.h.bf16 %v2142_v30  ;;  %v195_v36 = vrot.slane %v2158_v37, %v1577_v13  ;;  %v2418_v12 = vsel %vm1376_vm0, %v1311_v15, 0.0  ;;  %v199_v18 = vrot.slane %v2158_v37, %v2562_v21 }
  0x5a   :  { %v1397_v10 = vadd.f32 %v1396_v23, %v1395_v9  ;;  %v203_v51 = vrot.slane %v2158_v37, %v2563_v7  ;;  %v207_v40 = vrot.slane %v2158_v37, %v1586_v16  ;;  %v1400_v59 = vsel %vm1376_vm0, %v2227_v32, 0.0  ;;  %v2573_v16 = vld [vmem:[#allocation12_spill] sm:$0xff] }
  0x5b   :  { %v821_v30 = vcombine.low %v2251_v14, %v2259_v60  ;;  %v822_v42 = vcombine.low %v2161_v38, %v2164_v49  ;;  %v823_v15 = vcombine.low %v2167_v39, %v2172_v43  ;;  %v1107_v21 = vcombine.high %v2264_v20, %v2264_v20 }
  0x5c   :  { %v1399_v0 = vadd.f32 %v1398_v44, %v1397_v10  ;;  %v1108_v7 = vcombine.high %v2261_v1, %v2261_v1  ;;  %v1115_v37 = vrot.slane %v2261_v1, %v2573_v16  ;;  %v2574_v62 = vcombine.high %v2227_v32, %v2227_v32 }
  0x5d   :  { %v515_v38 = vrot.slane %v195_v36, %v1577_v13  ;;  %v519_v49 = vrot.slane %v199_v18, %v1577_v13  ;;  %v523_v39 = vrot.slane %v203_v51, %v1577_v13  ;;  %v1404_v43 = vsel %vm1376_vm0, %v2264_v20, 0.0 }
  0x5e   :  { %v1402_v14 = vsel %vm1376_vm0, %v2574_v62, 0.0  ;;  %v1401_v60 = vadd.f32 %v1400_v59, %v1399_v0  ;;  %v527_v1 = vrot.slane %v207_v40, %v1577_v13  ;;  %v830_v32 = vrot.slane %v822_v42, %v2573_v16 }
  0x5f   :  { %v837_v47 = vrot.slane %v823_v15, %v2573_v16  ;;  %v1013_v44 = vmul.f32 %v821_v30, %v29_v3  ;;  %v1122_v22 = vrot.slane %v1108_v7, %v2573_v16  ;;  %v1123_v58 = vcombine.high %v1115_v37, %v1115_v37 }
  0x60   :  { %v1403_v23 = vadd.f32 %v1402_v14, %v1401_v60  ;;  %v1406_v9 = vsel %vm1376_vm0, %v1107_v21, 0.0  ;;  %v30_v10 = vunpack.c.l.bf16 %v19_v6  ;;  %v1408_v20 = vsel %vm1376_vm0, %v1115_v37, 0.0 }
  0x61   :  { %v838_v18 = vcombine.low %v830_v32, %v837_v47  ;;  %v839_v51 = vcombine.low %v515_v38, %v519_v49  ;;  %v840_v59 = vcombine.low %v523_v39, %v527_v1  ;;  %v1124_v13 = vcombine.high %v1122_v22, %v1122_v22 }
  0x62   :  { %v1405_v36 = vadd.f32 %v1404_v43, %v1403_v23  ;;  %v1125_v40 = vcombine.high %v1013_v44, %v1013_v44  ;;  %v1132_v42 = vrot.slane %v1013_v44, %v2573_v16  ;;  %v1410_v15 = vsel %vm1376_vm0, %v1123_v58, 0.0 }
  0x63   :  { %v1412_v30 = vsel %vm1376_vm0, %v1122_v22, 0.0  ;;  %v847_v7 = vrot.slane %v839_v51, %v2573_v16  ;;  %v854_v21 = vrot.slane %v840_v59, %v2573_v16  ;;  %v1014_v14 = vmul.f32 %v838_v18, %v30_v10 }
  0x64   :  { %v1407_v0 = vadd.f32 %v1406_v9, %v1405_v36  ;;  %v1139_v37 = vrot.slane %v1125_v40, %v2573_v16  ;;  %v1140_v60 = vcombine.high %v1132_v42, %v1132_v42  ;;  %v1414_v38 = vsel %vm1376_vm0, %v1124_v13, 0.0 }
  0x65   :  { %v1416_v39 = vsel %vm1376_vm0, %v1132_v42, 0.0  ;;  %v31_v43 = vunpack.c.h.bf16 %v19_v6  ;;  %v855_v1 = vcombine.low %v847_v7, %v854_v21  ;;  %v1142_v23 = vcombine.high %v1014_v14, %v1014_v14 }
  0x66   :  { %v1409_v3 = vadd.f32 %v1408_v20, %v1407_v0  ;;  %v1141_v47 = vcombine.high %v1139_v37, %v1139_v37  ;;  %v1149_v44 = vrot.slane %v1014_v14, %v2573_v16  ;;  %v1418_v22 = vsel %vm1376_vm0, %v1140_v60, 0.0 }
  0x67   :  { %v1420_v9 = vsel %vm1376_vm0, %v1139_v37, 0.0  ;;  %v1015_v10 = vmul.f32 %v855_v1, %v31_v43  ;;  %v1156_v20 = vrot.slane %v1142_v23, %v2573_v16 }
  0x68   :  { %v1411_v62 = vadd.f32 %v1410_v15, %v1409_v3  ;;  %v1157_v18 = vcombine.high %v1149_v44, %v1149_v44  ;;  %v1422_v51 = vsel %vm1376_vm0, %v1141_v47, 0.0  ;;  %v1424_v6 = vsel %vm1376_vm0, %v1149_v44, 0.0  ;;  %v2575_v44 = vld [vmem:[#allocation7_spill] sm:$0xff] }
  0x69   :  { %v1158_v13 = vcombine.high %v1156_v20, %v1156_v20  ;;  %v1159_v40 = vcombine.high %v1015_v10, %v1015_v10  ;;  %v1166_v42 = vrot.slane %v1015_v10, %v2573_v16 }
  0x6a   :  { %v1413_v49 = vadd.f32 %v1412_v30, %v1411_v62  ;;  %v1426_v15 = vsel %vm1376_vm0, %v1157_v18, 0.0  ;;  %v1428_v30 = vsel %vm1376_vm0, %v1156_v20, 0.0 }
  0x6b   :  { %v1173_v21 = vrot.slane %v1159_v40, %v2573_v16  ;;  %v1174_v62 = vcombine.high %v1166_v42, %v1166_v42  ;;  %v1430_v14 = vsel %vm1376_vm0, %v1158_v13, 0.0  ;;  %v1432_v60 = vsel %vm1376_vm0, %v1166_v42, 0.0 }
  0x6c   :  { %v1415_v32 = vadd.f32 %v1414_v38, %v1413_v49  ;;  %v1440_v16 = vsel %vm1376_vm0, %v2575_v44, 0.0 }
  0x6d   :  { %v1175_v49 = vcombine.high %v1173_v21, %v1173_v21  ;;  %v1436_v1 = vsel %vm1376_vm0, %v1173_v21, 0.0 }
  0x6e   :  { %v1417_v58 = vadd.f32 %v1416_v39, %v1415_v32  ;;  %v1434_v39 = vsel %vm1376_vm0, %v1174_v62, 0.0 }
  0x6f   :  { %v1438_v47 = vsel %vm1376_vm0, %v1175_v49, 0.0 }
  0x70   :  { %v1419_v36 = vadd.f32 %v1418_v22, %v1417_v58 }
  0x72   :  { %v1421_v59 = vadd.f32 %v1420_v9, %v1419_v36 }
  0x74   :  { %v1423_v0 = vadd.f32 %v1422_v51, %v1421_v59 }
  0x76   :  { %v1425_v3 = vadd.f32 %v1424_v6, %v1423_v0 }
  0x78   :  { %v1427_v7 = vadd.f32 %v1426_v15, %v1425_v3 }
  0x7a   :  { %v1429_v37 = vadd.f32 %v1428_v30, %v1427_v7 }
  0x7c   :  { %v1431_v38 = vadd.f32 %v1430_v14, %v1429_v37 }
  0x7e   :  { %v1433_v43 = vadd.f32 %v1432_v60, %v1431_v38 }
  0x80   :  { %v1435_v32 = vadd.f32 %v1434_v39, %v1433_v43 }
  0x82   :  { %v1437_v23 = vadd.f32 %v1436_v1, %v1435_v32 }
  0x84   :  { %v1439_v22 = vadd.f32 %v1438_v47, %v1437_v23 }
  0x86   :  { %v1441_v58 = vadd.f32 %v1440_v16, %v1439_v22 }
  0x88   :  { %v1443_v9 = vadd.f32 %v2310_v63, %v1441_v58 }
  0x8a   :  { %v1445_v36 = vadd.f32 %v2314_v53, %v1443_v9 }
  0x8c   :  { %v1447_v10 = vadd.f32 %v2317_v33, %v1445_v36 }
  0x8e   :  { %v1449_v20 = vadd.f32 %v2321_v19, %v1447_v10 }
  0x90   :  { %v1451_v18 = vadd.f32 %v2324_v50, %v1449_v20 }
  0x92   :  { %v1453_v51 = vadd.f32 %v2328_v35, %v1451_v18 }
  0x94   :  { %v1455_v59 = vadd.f32 %v2331_v54, %v1453_v51 }
  0x96   :  { %v1457_v6 = vadd.f32 %v2335_v55, %v1455_v59 }
  0x98   :  { %v1459_v0 = vadd.f32 %v2338_v57, %v1457_v6 }
  0x9a   :  { %v1461_v13 = vadd.f32 %v2342_v4, %v1459_v0 }
  0x9c   :  { %v1463_v63 = vadd.f32 %v2345_v17, %v1461_v13 }
  0x9e   :  { %v1465_v53 = vadd.f32 %v2349_v8, %v1463_v63 }
  0xa0   :  { %v1467_v33 = vadd.f32 %v2352_v45, %v1465_v53 }
  0xa2   :  { %v1469_v19 = vadd.f32 %v2356_v25, %v1467_v33 }
  0xa4   :  { %v1471_v50 = vadd.f32 %v2359_v56, %v1469_v19 }
  0xa6   :  { %v1473_v35 = vadd.f32 %v2363_v28, %v1471_v50 }
  0xa8   :  { %v1475_v54 = vadd.f32 %v2366_v24, %v1473_v35 }
  0xaa   :  { %v1477_v55 = vadd.f32 %v2370_v29, %v1475_v54 }
  0xac   :  { %v1479_v57 = vadd.f32 %v2373_v61, %v1477_v55 }
  0xae   :  { %v1481_v4 = vadd.f32 %v2377_v11, %v1479_v57 }
  0xb0   :  { %v1483_v17 = vadd.f32 %v2380_v27, %v1481_v4 }
  0xb2   :  { %v1485_v8 = vadd.f32 %v2384_v52, %v1483_v17  ;;  %v1524_v52 = vld [vmem:[#allocation2] ss:$0 sm:$0xff] }
  0xb4   :  { %v1487_v45 = vadd.f32 %v2387_v46, %v1485_v8 }
  0xb6   :  { %v1489_v25 = vadd.f32 %v2391_v48, %v1487_v45 }
  0xb8   :  { %v1491_v56 = vadd.f32 %v2394_v5, %v1489_v25 }
  0xba   :  { %v1493_v28 = vadd.f32 %v2398_v31, %v1491_v56 }
  0xbc   :  { %v1495_v24 = vadd.f32 %v2401_v26, %v1493_v28 }
  0xbe   :  { %v1497_v29 = vadd.f32 %v2405_v2, %v1495_v24 }
  0xc0   :  { %v1499_v61 = vadd.f32 %v2408_v41, %v1497_v29 }
  0xc2   :  { %v1501_v11 = vadd.f32 %v2412_v34, %v1499_v61 }
  0xc4   :  { %v1503_v27 = vadd.f32 %v2418_v12, %v1501_v11 }
  0xc6   :  { %1504 = vadd.xlane.f32.xlu0 %v1503_v27 }
 0x153   :  { %v1505_v40 = vpop.xlane.xlu0 %1504 }
 0x154   :  { %v1513_v46 = vadd.f32 %v1524_v52, %v1505_v40 }
 0x156   :  { %v1514_v42 = vmul.f32 0.5, %v1513_v46 }
 0x158   :  { %1526 = vtanh.f32 %v1514_v42 }
 0x162   :  { %v1527_v48 = vpop.eup %1526 }
 0x163   :  { %v1516_v5 = vmul.f32 0.5, %v1527_v48 }
 0x165   :  { %v1517_v31 = vadd.f32 0.5, %v1516_v5 }
 0x167   :  { %1519 = vst.msk [vmem:[%s2520_s3] sm:$0x3] %vm1518_vm1, %v1517_v31 }

// kernel: discriminator_forward.6
= control target key start
LH: loop header
LB: loop body
LE: loop exit
PB: predicated region body
PF: predicated region fallthrough
CT: control target
= control target key end

     0   :  { %s15120_s1 = inlined_call_operand.vmem [shape: bf16[4096,512], index: 1, kind: input, shape index: {}]   ;;  %s15121_s0 = inlined_call_operand.vmem [shape: bf16[32,4096], index: 0, kind: input, shape index: {}]   ;;  %s15122_s2 = inlined_call_operand.vmem [shape: f32[1,512], index: 2, kind: input, shape index: {}]   ;;  %s15123_s3 = inlined_call_operand.vmem [shape: f32[1,512], index: 3, kind: input, shape index: {}]   ;;  %s15124_s4 = inlined_call_operand.vmem [shape: f32[1,512], index: 4, kind: input, shape index: {}]   ;;  %s15125_s5 = inlined_call_operand.vmem [shape: bf16[32,512], index: 5, kind: output, shape index: {}]  }
   0x1   :  { %v9961_v0 = vld [vmem:[%s15120_s1 + $0x4] ss:$16 sps:$4 sm:$0xff]   ;;  %v9963_v1 = vld [vmem:[%s15120_s1 + $0xc] ss:$16 sps:$4 sm:$0xff]   ;;  %v9965_v2 = vld [vmem:[%s15120_s1] ss:$16 sps:$4 sm:$0xff]  }
   0x2   :  { %6570 = vmatprep.subr.bf16.mxu0 %v9961_v0  ;;  %v9966_v3 = vld [vmem:[%s15120_s1 + $0x8] ss:$16 sps:$4 sm:$0xff]   ;;  %7418 = vmatprep.subr.bf16.mxu1 %v9963_v1  ;;  %v9967_v4 = vld [vmem:[%s15120_s1 + $0x24] ss:$16 sps:$4 sm:$0xff]   ;;  %v9969_v5 = vld [vmem:[%s15120_s1 + $0x2c] ss:$16 sps:$4 sm:$0xff]  }
   0x3   :  { %6571 = vmatpush1.bf16.msra.mxu0 %v9965_v2  ;;  %7419 = vmatpush1.bf16.msra.mxu1 %v9966_v3  ;;  %v9971_v6 = vld [vmem:[%s15120_s1 + $0x20] ss:$16 sps:$4 sm:$0xff]   ;;  %v9972_v7 = vld [vmem:[%s15120_s1 + $0x28] ss:$16 sps:$4 sm:$0xff]   ;;  %v9973_v8 = vld [vmem:[%s15120_s1 + $0x44] ss:$16 sps:$4 sm:$0xff]  }
   0x4   :  { %6572 = vmatprep.subr.bf16.mxu0 %v9967_v4  ;;  %7420 = vmatprep.subr.bf16.mxu1 %v9969_v5  ;;  %v9975_v9 = vld [vmem:[%s15120_s1 + $0x4c] ss:$16 sps:$4 sm:$0xff]   ;;  %v9977_v10 = vld [vmem:[%s15120_s1 + $0x40] ss:$16 sps:$4 sm:$0xff]   ;;  %v9978_v11 = vld [vmem:[%s15120_s1 + $0x48] ss:$16 sps:$4 sm:$0xff]  }
   0x5   :  { %v9979_v12 = vld [vmem:[%s15120_s1 + $0x64] ss:$16 sps:$4 sm:$0xff]   ;;  %v9981_v13 = vld [vmem:[%s15120_s1 + $0x6c] ss:$16 sps:$4 sm:$0xff]   ;;  %v9983_v14 = vld [vmem:[%s15120_s1 + $0x60] ss:$16 sps:$4 sm:$0xff]  }
   0x6   :  { %v9984_v15 = vld [vmem:[%s15120_s1 + $0x68] ss:$16 sps:$4 sm:$0xff]   ;;  %v9985_v16 = vld [vmem:[%s15120_s1 + $0x84] ss:$16 sps:$4 sm:$0xff]   ;;  %v9987_v17 = vld [vmem:[%s15120_s1 + $0x8c] ss:$16 sps:$4 sm:$0xff]  }
   0x7   :  { %6573 = vmatpush1.bf16.msra.mxu0 %v9971_v6  ;;  %7421 = vmatpush1.bf16.msra.mxu1 %v9972_v7  ;;  %v9989_v18 = vld [vmem:[%s15120_s1 + $0x80] ss:$16 sps:$4 sm:$0xff]   ;;  %v9990_v19 = vld [vmem:[%s15120_s1 + $0x88] ss:$16 sps:$4 sm:$0xff]   ;;  %v9991_v20 = vld [vmem:[%s15120_s1 + $0xa4] ss:$16 sps:$4 sm:$0xff]  }
   0x8   :  { %6574 = vmatprep.subr.bf16.mxu0 %v9973_v8  ;;  %7422 = vmatprep.subr.bf16.mxu1 %v9975_v9  ;;  %v9993_v21 = vld [vmem:[%s15120_s1 + $0xac] ss:$16 sps:$4 sm:$0xff]   ;;  %v9995_v22 = vld [vmem:[%s15120_s1 + $0xa0] ss:$16 sps:$4 sm:$0xff]   ;;  %v9996_v23 = vld [vmem:[%s15120_s1 + $0xa8] ss:$16 sps:$4 sm:$0xff]  }
   0x9   :  { %v9997_v24 = vld [vmem:[%s15120_s1 + $0xc4] ss:$16 sps:$4 sm:$0xff]   ;;  %v9999_v25 = vld [vmem:[%s15120_s1 + $0xcc] ss:$16 sps:$4 sm:$0xff]   ;;  %v10001_v26 = vld [vmem:[%s15120_s1 + $0xc0] ss:$16 sps:$4 sm:$0xff]  }
   0xa   :  { %v10002_v27 = vld [vmem:[%s15120_s1 + $0xc8] ss:$16 sps:$4 sm:$0xff]   ;;  %v10003_v28 = vld [vmem:[%s15120_s1 + $0xe4] ss:$16 sps:$4 sm:$0xff]   ;;  %v10005_v29 = vld [vmem:[%s15120_s1 + $0xec] ss:$16 sps:$4 sm:$0xff]  }
   0xb   :  { %6575 = vmatpush1.bf16.msra.mxu0 %v9977_v10  ;;  %7423 = vmatpush1.bf16.msra.mxu1 %v9978_v11  ;;  %v10007_v30 = vld [vmem:[%s15120_s1 + $0xe0] ss:$16 sps:$4 sm:$0xff]   ;;  %v10008_v31 = vld [vmem:[%s15120_s1 + $0xe8] ss:$16 sps:$4 sm:$0xff]   ;;  %v10009_v32 = vld [vmem:[%s15120_s1 + $0x104] ss:$16 sps:$4 sm:$0xff]  }
   0xc   :  { %6576 = vmatprep.subr.bf16.mxu0 %v9979_v12  ;;  %7424 = vmatprep.subr.bf16.mxu1 %v9981_v13  ;;  %v10011_v33 = vld [vmem:[%s15120_s1 + $0x10c] ss:$16 sps:$4 sm:$0xff]   ;;  %v10013_v34 = vld [vmem:[%s15120_s1 + $0x100] ss:$16 sps:$4 sm:$0xff]   ;;  %v10014_v35 = vld [vmem:[%s15120_s1 + $0x108] ss:$16 sps:$4 sm:$0xff]  }
   0xd   :  { %v10015_v36 = vld [vmem:[%s15120_s1 + $0x124] ss:$16 sps:$4 sm:$0xff]   ;;  %v10017_v37 = vld [vmem:[%s15120_s1 + $0x12c] ss:$16 sps:$4 sm:$0xff]   ;;  %v10019_v38 = vld [vmem:[%s15120_s1 + $0x120] ss:$16 sps:$4 sm:$0xff]  }
   0xe   :  { %v10020_v39 = vld [vmem:[%s15120_s1 + $0x128] ss:$16 sps:$4 sm:$0xff]   ;;  %v10021_v40 = vld [vmem:[%s15120_s1 + $0x144] ss:$16 sps:$4 sm:$0xff]   ;;  %v10023_v41 = vld [vmem:[%s15120_s1 + $0x14c] ss:$16 sps:$4 sm:$0xff]  }
   0xf   :  { %6577 = vmatpush1.bf16.msra.mxu0 %v9983_v14  ;;  %7425 = vmatpush1.bf16.msra.mxu1 %v9984_v15  ;;  %v10025_v42 = vld [vmem:[%s15120_s1 + $0x140] ss:$16 sps:$4 sm:$0xff]   ;;  %v10026_v43 = vld [vmem:[%s15120_s1 + $0x148] ss:$16 sps:$4 sm:$0xff]   ;;  %v10027_v44 = vld [vmem:[%s15120_s1 + $0x164] ss:$16 sps:$4 sm:$0xff]  }
  0x10   :  { %6578 = vmatprep.subr.bf16.mxu0 %v9985_v16  ;;  %7426 = vmatprep.subr.bf16.mxu1 %v9987_v17  ;;  %v10029_v45 = vld [vmem:[%s15120_s1 + $0x16c] ss:$16 sps:$4 sm:$0xff]   ;;  %v20_v46 = vld [vmem:[%s15121_s0] sm:$0xff]  ;;  %v10032_v49 = vld [vmem:[%s15120_s1 + $0x168] ss:$16 sps:$4 sm:$0xff]  }
  0x11   :  { %v36_v47 = vld [vmem:[%s15121_s0 + $0x80] sm:$0xff]  ;;  %v10035_v52 = vld [vmem:[%s15120_s1 + $0x18c] ss:$16 sps:$4 sm:$0xff]   ;;  %v10038_v54 = vld [vmem:[%s15120_s1 + $0x188] ss:$16 sps:$4 sm:$0xff]  }
  0x12   :  { %v10031_v48 = vld [vmem:[%s15120_s1 + $0x160] ss:$16 sps:$4 sm:$0xff]   ;;  %v8601_v50 = vcombine.high %v20_v46, %v36_v47  ;;  %v10033_v51 = vld [vmem:[%s15120_s1 + $0x184] ss:$16 sps:$4 sm:$0xff]   ;;  %v10041_v56 = vld [vmem:[%s15120_s1 + $0x1ac] ss:$16 sps:$4 sm:$0xff]   ;;  %v8600_v5 = vcombine.low %v20_v46, %v36_v47 }
  0x13   :  { %6579 = vmatpush1.bf16.msra.mxu0 %v9989_v18  ;;  %7427 = vmatpush1.bf16.msra.mxu1 %v9990_v19  ;;  %v10037_v53 = vld [vmem:[%s15120_s1 + $0x180] ss:$16 sps:$4 sm:$0xff]   ;;  %v10039_v55 = vld [vmem:[%s15120_s1 + $0x1a4] ss:$16 sps:$4 sm:$0xff]   ;;  %v10044_v58 = vld [vmem:[%s15120_s1 + $0x1a8] ss:$16 sps:$4 sm:$0xff]  }
  0x14   :  { %6580 = vmatprep.subr.bf16.mxu0 %v9991_v20  ;;  %7428 = vmatprep.subr.bf16.mxu1 %v9993_v21  ;;  %v10043_v57 = vld [vmem:[%s15120_s1 + $0x1a0] ss:$16 sps:$4 sm:$0xff]   ;;  %v10045_v59 = vld [vmem:[%s15120_s1 + $0x1c4] ss:$16 sps:$4 sm:$0xff]   ;;  %v10047_v60 = vld [vmem:[%s15120_s1 + $0x1cc] ss:$16 sps:$4 sm:$0xff]  }
  0x15   :  { %6602 = vmatprep.mubr.bf16.mxu0 %v8601_v50  ;;  %7450 = vmatprep.mubr.bf16.mxu1 %v8601_v50  ;;  %v10049_v61 = vld [vmem:[%s15120_s1 + $0x1c0] ss:$16 sps:$4 sm:$0xff]   ;;  %v10050_v62 = vld [vmem:[%s15120_s1 + $0x1c8] ss:$16 sps:$4 sm:$0xff]   ;;  %v10051_v63 = vld [vmem:[%s15120_s1 + $0x1e4] ss:$16 sps:$4 sm:$0xff]  }
  0x16   :  { %v10053_v0 = vld [vmem:[%s15120_s1 + $0x1ec] ss:$16 sps:$4 sm:$0xff]   ;;  %v10055_v1 = vld [vmem:[%s15120_s1 + $0x1e0] ss:$16 sps:$4 sm:$0xff]   ;;  %v10056_v2 = vld [vmem:[%s15120_s1 + $0x1e8] ss:$16 sps:$4 sm:$0xff]  }
  0x17   :  { %6581 = vmatpush1.bf16.msra.mxu0 %v9995_v22  ;;  %7429 = vmatpush1.bf16.msra.mxu1 %v9996_v23  ;;  %v10059_v3 = vld [vmem:[%s15120_s1 + $0x204] ss:$16 sps:$4 sm:$0xff]   ;;  %v10062_v4 = vld [vmem:[%s15120_s1 + $0x20c] ss:$16 sps:$4 sm:$0xff]   ;;  %v10057_v6 = vld [vmem:[%s15120_s1 + $0x200] ss:$16 sps:$4 sm:$0xff]  }
  0x18   :  { %6582 = vmatprep.subr.bf16.mxu0 %v9997_v24  ;;  %7430 = vmatprep.subr.bf16.mxu1 %v9999_v25  ;;  %v10060_v7 = vld [vmem:[%s15120_s1 + $0x208] ss:$16 sps:$4 sm:$0xff]   ;;  %v10065_v8 = vld [vmem:[%s15120_s1 + $0x224] ss:$16 sps:$4 sm:$0xff]   ;;  %v10068_v9 = vld [vmem:[%s15120_s1 + $0x22c] ss:$16 sps:$4 sm:$0xff]  }
  0x19   :  { %v10063_v10 = vld [vmem:[%s15120_s1 + $0x220] ss:$16 sps:$4 sm:$0xff]   ;;  %v10066_v11 = vld [vmem:[%s15120_s1 + $0x228] ss:$16 sps:$4 sm:$0xff]   ;;  %v10071_v12 = vld [vmem:[%s15120_s1 + $0x244] ss:$16 sps:$4 sm:$0xff]  }
  0x1a   :  { %v10074_v13 = vld [vmem:[%s15120_s1 + $0x24c] ss:$16 sps:$4 sm:$0xff]   ;;  %v10069_v14 = vld [vmem:[%s15120_s1 + $0x240] ss:$16 sps:$4 sm:$0xff]   ;;  %v10072_v15 = vld [vmem:[%s15120_s1 + $0x248] ss:$16 sps:$4 sm:$0xff]  }
  0x1b   :  { %6583 = vmatpush1.bf16.msra.mxu0 %v10001_v26  ;;  %7431 = vmatpush1.bf16.msra.mxu1 %v10002_v27  ;;  %v10077_v16 = vld [vmem:[%s15120_s1 + $0x264] ss:$16 sps:$4 sm:$0xff]   ;;  %v10080_v17 = vld [vmem:[%s15120_s1 + $0x26c] ss:$16 sps:$4 sm:$0xff]   ;;  %v10075_v18 = vld [vmem:[%s15120_s1 + $0x260] ss:$16 sps:$4 sm:$0xff]  }
  0x1c   :  { %6584 = vmatprep.subr.bf16.mxu0 %v10003_v28  ;;  %7432 = vmatprep.subr.bf16.mxu1 %v10005_v29  ;;  %v10078_v19 = vld [vmem:[%s15120_s1 + $0x268] ss:$16 sps:$4 sm:$0xff]   ;;  %v10083_v20 = vld [vmem:[%s15120_s1 + $0x284] ss:$16 sps:$4 sm:$0xff]   ;;  %v10086_v21 = vld [vmem:[%s15120_s1 + $0x28c] ss:$16 sps:$4 sm:$0xff]  }
  0x1d   :  { %v10081_v22 = vld [vmem:[%s15120_s1 + $0x280] ss:$16 sps:$4 sm:$0xff]   ;;  %v10084_v23 = vld [vmem:[%s15120_s1 + $0x288] ss:$16 sps:$4 sm:$0xff]   ;;  %v10089_v24 = vld [vmem:[%s15120_s1 + $0x2a4] ss:$16 sps:$4 sm:$0xff]  }
  0x1e   :  { %v10092_v25 = vld [vmem:[%s15120_s1 + $0x2ac] ss:$16 sps:$4 sm:$0xff]   ;;  %v52_v26 = vld [vmem:[%s15121_s0 + $0x100] sm:$0xff]  ;;  %v10108_v46 = vld [vmem:[%s15120_s1 + $0x308] ss:$16 sps:$4 sm:$0xff]  }
  0x1f   :  { %6585 = vmatpush1.bf16.msra.mxu0 %v10007_v30  ;;  %7433 = vmatpush1.bf16.msra.mxu1 %v10008_v31  ;;  %v68_v27 = vld [vmem:[%s15121_s0 + $0x180] sm:$0xff]  ;;  %v10090_v30 = vld [vmem:[%s15120_s1 + $0x2a8] ss:$16 sps:$4 sm:$0xff]  }
  0x20   :  { %6586 = vmatprep.subr.bf16.mxu0 %v10009_v32  ;;  %7434 = vmatprep.subr.bf16.mxu1 %v10011_v33  ;;  %v8633_v28 = vcombine.high %v52_v26, %v68_v27  ;;  %v10087_v29 = vld [vmem:[%s15120_s1 + $0x2a0] ss:$16 sps:$4 sm:$0xff]   ;;  %v8632_v31 = vcombine.low %v52_v26, %v68_v27  ;;  %v10095_v32 = vld [vmem:[%s15120_s1 + $0x2c4] ss:$16 sps:$4 sm:$0xff]   ;;  %v10098_v33 = vld [vmem:[%s15120_s1 + $0x2cc] ss:$16 sps:$4 sm:$0xff]  }
  0x21   :  { %v10113_v47 = vld [vmem:[%s15120_s1 + $0x324] ss:$16 sps:$4 sm:$0xff]   ;;  %v10114_v50 = vld [vmem:[%s15120_s1 + $0x328] ss:$16 sps:$4 sm:$0xff]  }
  0x22   :  { %v11990_v27 = vld [vmem:[%s15121_s0 + $0x90] sm:$0xff] }
  0x23   :  { %6587 = vmatpush1.bf16.msra.mxu0 %v10013_v34  ;;  %7435 = vmatpush1.bf16.msra.mxu1 %v10014_v35  ;;  %v11821_v34 = vld [vmem:[%s15121_s0 + $0x8] sm:$0xff] }
  0x24   :  { %6588 = vmatprep.subr.bf16.mxu0 %v10015_v36  ;;  %7436 = vmatprep.subr.bf16.mxu1 %v10017_v37  ;;  %v11826_v35 = vld [vmem:[%s15121_s0 + $0x88] sm:$0xff]  ;;  %v10093_v36 = vld [vmem:[%s15120_s1 + $0x2c0] ss:$16 sps:$4 sm:$0xff]  }
  0x25   :  { %v10096_v37 = vld [vmem:[%s15120_s1 + $0x2c8] ss:$16 sps:$4 sm:$0xff]  }
  0x27   :  { %6589 = vmatpush1.bf16.msra.mxu0 %v10019_v38  ;;  %7437 = vmatpush1.bf16.msra.mxu1 %v10020_v39  ;;  %v8603_v38 = vcombine.high %v11821_v34, %v11826_v35  ;;  %v10101_v39 = vld [vmem:[%s15120_s1 + $0x2e4] ss:$16 sps:$4 sm:$0xff]  }
  0x28   :  { %6590 = vmatprep.subr.bf16.mxu0 %v10021_v40  ;;  %7438 = vmatprep.subr.bf16.mxu1 %v10023_v41  ;;  %v10104_v40 = vld [vmem:[%s15120_s1 + $0x2ec] ss:$16 sps:$4 sm:$0xff]   ;;  %v10099_v41 = vld [vmem:[%s15120_s1 + $0x2e0] ss:$16 sps:$4 sm:$0xff]  }
  0x2b   :  { %6591 = vmatpush1.bf16.msra.mxu0 %v10025_v42  ;;  %7439 = vmatpush1.bf16.msra.mxu1 %v10026_v43  ;;  %v10102_v42 = vld [vmem:[%s15120_s1 + $0x2e8] ss:$16 sps:$4 sm:$0xff]   ;;  %v10107_v43 = vld [vmem:[%s15120_s1 + $0x304] ss:$16 sps:$4 sm:$0xff]  }
  0x2c   :  { %6592 = vmatprep.subr.bf16.mxu0 %v10027_v44  ;;  %7440 = vmatprep.subr.bf16.mxu1 %v10029_v45  ;;  %v10110_v44 = vld [vmem:[%s15120_s1 + $0x30c] ss:$16 sps:$4 sm:$0xff]   ;;  %v10105_v45 = vld [vmem:[%s15120_s1 + $0x300] ss:$16 sps:$4 sm:$0xff]  }
  0x2f   :  { %6593 = vmatpush1.bf16.msra.mxu0 %v10031_v48  ;;  %7441 = vmatpush1.bf16.msra.mxu1 %v10032_v49  ;;  %v10116_v48 = vld [vmem:[%s15120_s1 + $0x32c] ss:$16 sps:$4 sm:$0xff]   ;;  %v10111_v49 = vld [vmem:[%s15120_s1 + $0x320] ss:$16 sps:$4 sm:$0xff]  }
  0x30   :  { %6594 = vmatprep.subr.bf16.mxu0 %v10033_v51  ;;  %7442 = vmatprep.subr.bf16.mxu1 %v10035_v52  ;;  %v10119_v51 = vld [vmem:[%s15120_s1 + $0x344] ss:$16 sps:$4 sm:$0xff]   ;;  %v10122_v52 = vld [vmem:[%s15120_s1 + $0x34c] ss:$16 sps:$4 sm:$0xff]  }
  0x33   :  { %6595 = vmatpush1.bf16.msra.mxu0 %v10037_v53  ;;  %7443 = vmatpush1.bf16.msra.mxu1 %v10038_v54  ;;  %v10117_v53 = vld [vmem:[%s15120_s1 + $0x340] ss:$16 sps:$4 sm:$0xff]   ;;  %v10120_v54 = vld [vmem:[%s15120_s1 + $0x348] ss:$16 sps:$4 sm:$0xff]  }
  0x34   :  { %6596 = vmatprep.subr.bf16.mxu0 %v10039_v55  ;;  %7444 = vmatprep.subr.bf16.mxu1 %v10041_v56  ;;  %v10125_v55 = vld [vmem:[%s15120_s1 + $0x364] ss:$16 sps:$4 sm:$0xff]   ;;  %v10128_v56 = vld [vmem:[%s15120_s1 + $0x36c] ss:$16 sps:$4 sm:$0xff]  }
  0x37   :  { %6597 = vmatpush1.bf16.msra.mxu0 %v10043_v57  ;;  %7445 = vmatpush1.bf16.msra.mxu1 %v10044_v58  ;;  %v10123_v57 = vld [vmem:[%s15120_s1 + $0x360] ss:$16 sps:$4 sm:$0xff]   ;;  %v10126_v58 = vld [vmem:[%s15120_s1 + $0x368] ss:$16 sps:$4 sm:$0xff]  }
  0x38   :  { %6598 = vmatprep.subr.bf16.mxu0 %v10045_v59  ;;  %7446 = vmatprep.subr.bf16.mxu1 %v10047_v60  ;;  %v10131_v59 = vld [vmem:[%s15120_s1 + $0x384] ss:$16 sps:$4 sm:$0xff]   ;;  %v10134_v60 = vld [vmem:[%s15120_s1 + $0x38c] ss:$16 sps:$4 sm:$0xff]  }
  0x3b   :  { %6599 = vmatpush1.bf16.msra.mxu0 %v10049_v61  ;;  %7447 = vmatpush1.bf16.msra.mxu1 %v10050_v62  ;;  %v10129_v61 = vld [vmem:[%s15120_s1 + $0x380] ss:$16 sps:$4 sm:$0xff]   ;;  %v10132_v62 = vld [vmem:[%s15120_s1 + $0x388] ss:$16 sps:$4 sm:$0xff]  }
  0x3c   :  { %6600 = vmatprep.subr.bf16.mxu0 %v10051_v63  ;;  %7448 = vmatprep.subr.bf16.mxu1 %v10053_v0  ;;  %v10137_v63 = vld [vmem:[%s15120_s1 + $0x3a4] ss:$16 sps:$4 sm:$0xff]   ;;  %v10140_v0 = vld [vmem:[%s15120_s1 + $0x3ac] ss:$16 sps:$4 sm:$0xff]  }
  0x3f   :  { %6601 = vmatpush1.bf16.msra.mxu0 %v10055_v1  ;;  %7449 = vmatpush1.bf16.msra.mxu1 %v10056_v2  ;;  %v10135_v1 = vld [vmem:[%s15120_s1 + $0x3a0] ss:$16 sps:$4 sm:$0xff]   ;;  %v10138_v2 = vld [vmem:[%s15120_s1 + $0x3a8] ss:$16 sps:$4 sm:$0xff]  }
  0x40   :  { %6623 = vmatprep.subr.bf16.mxu0 %v10059_v3  ;;  %7471 = vmatprep.subr.bf16.mxu1 %v10062_v4  ;;  %v10143_v3 = vld [vmem:[%s15120_s1 + $0x3c4] ss:$16 sps:$4 sm:$0xff]   ;;  %v10146_v4 = vld [vmem:[%s15120_s1 + $0x3cc] ss:$16 sps:$4 sm:$0xff]  }
  0x42   :  { %6603 = vmatmul.mubr.bf16.vlgmr.msra.gmra.mrb[0].mxu0 %v8600_v5  ;;  %7451 = vmatmul.mubr.bf16.vlgmr.msra.gmra.mrb[0].mxu1 %v8600_v5  ;;  %v10141_v5 = vld [vmem:[%s15120_s1 + $0x3c0] ss:$16 sps:$4 sm:$0xff]  }
  0x43   :  { %6624 = vmatpush1.bf16.msra.mxu0 %v10057_v6  ;;  %7472 = vmatpush1.bf16.msra.mxu1 %v10060_v7  ;;  %v10144_v6 = vld [vmem:[%s15120_s1 + $0x3c8] ss:$16 sps:$4 sm:$0xff]   ;;  %v10149_v7 = vld [vmem:[%s15120_s1 + $0x3e4] ss:$16 sps:$4 sm:$0xff]  }
  0x44   :  { %6625 = vmatprep.subr.bf16.mxu0 %v10065_v8  ;;  %7473 = vmatprep.subr.bf16.mxu1 %v10068_v9  ;;  %v10152_v8 = vld [vmem:[%s15120_s1 + $0x3ec] ss:$16 sps:$4 sm:$0xff]   ;;  %v10147_v9 = vld [vmem:[%s15120_s1 + $0x3e0] ss:$16 sps:$4 sm:$0xff]  }
  0x45   :  { %6612 = vmatprep.mubr.bf16.mxu0 %v8633_v28  ;;  %7460 = vmatprep.mubr.bf16.mxu1 %v8633_v28  ;;  %v10165_v28 = vld [vmem:[%s15120_s1 + $0x440] ss:$16 sps:$4 sm:$0xff]  }
  0x47   :  { %6626 = vmatpush1.bf16.msra.mxu0 %v10063_v10  ;;  %7474 = vmatpush1.bf16.msra.mxu1 %v10066_v11  ;;  %v10150_v10 = vld [vmem:[%s15120_s1 + $0x3e8] ss:$16 sps:$4 sm:$0xff]   ;;  %v10155_v11 = vld [vmem:[%s15120_s1 + $0x404] ss:$16 sps:$4 sm:$0xff]  }
  0x48   :  { %6627 = vmatprep.subr.bf16.mxu0 %v10071_v12  ;;  %7475 = vmatprep.subr.bf16.mxu1 %v10074_v13  ;;  %v10158_v12 = vld [vmem:[%s15120_s1 + $0x40c] ss:$16 sps:$4 sm:$0xff]   ;;  %v10153_v13 = vld [vmem:[%s15120_s1 + $0x400] ss:$16 sps:$4 sm:$0xff]  }
  0x4a   :  { %6613 = vmatmul.mubr.bf16.gmra.mrb[4].mxu0 %v8632_v31  ;;  %7461 = vmatmul.mubr.bf16.gmra.mrb[4].mxu1 %v8632_v31  ;;  %v10176_v31 = vld [vmem:[%s15120_s1 + $0x46c] ss:$16 sps:$4 sm:$0xff]  }
  0x4b   :  { %6628 = vmatpush1.bf16.msra.mxu0 %v10069_v14  ;;  %7476 = vmatpush1.bf16.msra.mxu1 %v10072_v15  ;;  %v10156_v14 = vld [vmem:[%s15120_s1 + $0x408] ss:$16 sps:$4 sm:$0xff]   ;;  %v8602_v15 = vcombine.low %v11821_v34, %v11826_v35  ;;  %v10179_v35 = vld [vmem:[%s15120_s1 + $0x484] ss:$16 sps:$4 sm:$0xff]  }
  0x4c   :  { %6629 = vmatprep.subr.bf16.mxu0 %v10077_v16  ;;  %7477 = vmatprep.subr.bf16.mxu1 %v10080_v17  ;;  %v53_v16 = vld [vmem:[%s15121_s0 + $0x108] sm:$0xff] }
  0x4d   :  { %6655 = vmatprep.mubr.bf16.mxu0 %v8603_v38  ;;  %7503 = vmatprep.mubr.bf16.mxu1 %v8603_v38  ;;  %v69_v17 = vld [vmem:[%s15121_s0 + $0x188] sm:$0xff] }
  0x4e   :  { %v8634_v26 = vcombine.low %v53_v16, %v69_v17  ;;  %v10174_v34 = vld [vmem:[%s15120_s1 + $0x468] ss:$16 sps:$4 sm:$0xff]  }
  0x4f   :  { %6630 = vmatpush1.bf16.msra.mxu0 %v10075_v18  ;;  %7478 = vmatpush1.bf16.msra.mxu1 %v10078_v19  ;;  %v10161_v18 = vld [vmem:[%s15120_s1 + $0x424] ss:$16 sps:$4 sm:$0xff]   ;;  %v10164_v19 = vld [vmem:[%s15120_s1 + $0x42c] ss:$16 sps:$4 sm:$0xff]   ;;  %v10180_v38 = vld [vmem:[%s15120_s1 + $0x488] ss:$16 sps:$4 sm:$0xff]  }
  0x50   :  { %6631 = vmatprep.subr.bf16.mxu0 %v10083_v20  ;;  %7479 = vmatprep.subr.bf16.mxu1 %v10086_v21  ;;  %v8635_v20 = vcombine.high %v53_v16, %v69_v17  ;;  %v10159_v21 = vld [vmem:[%s15120_s1 + $0x420] ss:$16 sps:$4 sm:$0xff]   ;;  %v10248_v16 = vld [vmem:[%s15120_s1 + $0x5ec] ss:$16 sps:$4 sm:$0xff]  }
  0x51   :  { %v10243_v17 = vld [vmem:[%s15120_s1 + $0x5e0] ss:$16 sps:$4 sm:$0xff]  }
  0x53   :  { %6632 = vmatpush1.bf16.msra.mxu0 %v10081_v22  ;;  %7480 = vmatpush1.bf16.msra.mxu1 %v10084_v23  ;;  %v10162_v22 = vld [vmem:[%s15120_s1 + $0x428] ss:$16 sps:$4 sm:$0xff]   ;;  %v10167_v23 = vld [vmem:[%s15120_s1 + $0x444] ss:$16 sps:$4 sm:$0xff]  }
  0x54   :  { %6633 = vmatprep.subr.bf16.mxu0 %v10089_v24  ;;  %7481 = vmatprep.subr.bf16.mxu1 %v10092_v25  ;;  %v10170_v24 = vld [vmem:[%s15120_s1 + $0x44c] ss:$16 sps:$4 sm:$0xff]   ;;  %v11985_v25 = vld [vmem:[%s15121_s0 + $0x10] sm:$0xff] }
  0x57   :  { %6634 = vmatpush1.bf16.msra.mxu0 %v10087_v29  ;;  %7482 = vmatpush1.bf16.msra.mxu1 %v10090_v30  ;;  %v10168_v29 = vld [vmem:[%s15120_s1 + $0x448] ss:$16 sps:$4 sm:$0xff]   ;;  %v10173_v30 = vld [vmem:[%s15120_s1 + $0x464] ss:$16 sps:$4 sm:$0xff]  }
  0x58   :  { %6635 = vmatprep.subr.bf16.mxu0 %v10095_v32  ;;  %7483 = vmatprep.subr.bf16.mxu1 %v10098_v33  ;;  %v8605_v32 = vcombine.high %v11985_v25, %v11990_v27  ;;  %v10171_v33 = vld [vmem:[%s15120_s1 + $0x460] ss:$16 sps:$4 sm:$0xff]  }
  0x5b   :  { %6636 = vmatpush1.bf16.msra.mxu0 %v10093_v36  ;;  %7484 = vmatpush1.bf16.msra.mxu1 %v10096_v37  ;;  %v10182_v36 = vld [vmem:[%s15120_s1 + $0x48c] ss:$16 sps:$4 sm:$0xff]   ;;  %v10177_v37 = vld [vmem:[%s15120_s1 + $0x480] ss:$16 sps:$4 sm:$0xff]  }
  0x5c   :  { %6637 = vmatprep.subr.bf16.mxu0 %v10101_v39  ;;  %7485 = vmatprep.subr.bf16.mxu1 %v10104_v40  ;;  %v10185_v39 = vld [vmem:[%s15120_s1 + $0x4a4] ss:$16 sps:$4 sm:$0xff]   ;;  %v10188_v40 = vld [vmem:[%s15120_s1 + $0x4ac] ss:$16 sps:$4 sm:$0xff]  }
  0x5f   :  { %6638 = vmatpush1.bf16.msra.mxu0 %v10099_v41  ;;  %7486 = vmatpush1.bf16.msra.mxu1 %v10102_v42  ;;  %v10183_v41 = vld [vmem:[%s15120_s1 + $0x4a0] ss:$16 sps:$4 sm:$0xff]   ;;  %v10186_v42 = vld [vmem:[%s15120_s1 + $0x4a8] ss:$16 sps:$4 sm:$0xff]  }
  0x60   :  { %6639 = vmatprep.subr.bf16.mxu0 %v10107_v43  ;;  %7487 = vmatprep.subr.bf16.mxu1 %v10110_v44  ;;  %v10191_v43 = vld [vmem:[%s15120_s1 + $0x4c4] ss:$16 sps:$4 sm:$0xff]   ;;  %v10194_v44 = vld [vmem:[%s15120_s1 + $0x4cc] ss:$16 sps:$4 sm:$0xff]  }
  0x63   :  { %6640 = vmatpush1.bf16.msra.mxu0 %v10105_v45  ;;  %7488 = vmatpush1.bf16.msra.mxu1 %v10108_v46  ;;  %v10189_v45 = vld [vmem:[%s15120_s1 + $0x4c0] ss:$16 sps:$4 sm:$0xff]   ;;  %v10192_v46 = vld [vmem:[%s15120_s1 + $0x4c8] ss:$16 sps:$4 sm:$0xff]  }
  0x64   :  { %6641 = vmatprep.subr.bf16.mxu0 %v10113_v47  ;;  %7489 = vmatprep.subr.bf16.mxu1 %v10116_v48  ;;  %v10197_v47 = vld [vmem:[%s15120_s1 + $0x4e4] ss:$16 sps:$4 sm:$0xff]   ;;  %v10200_v48 = vld [vmem:[%s15120_s1 + $0x4ec] ss:$16 sps:$4 sm:$0xff]  }
  0x67   :  { %6642 = vmatpush1.bf16.msra.mxu0 %v10111_v49  ;;  %7490 = vmatpush1.bf16.msra.mxu1 %v10114_v50  ;;  %v10195_v49 = vld [vmem:[%s15120_s1 + $0x4e0] ss:$16 sps:$4 sm:$0xff]   ;;  %v10198_v50 = vld [vmem:[%s15120_s1 + $0x4e8] ss:$16 sps:$4 sm:$0xff]  }
  0x68   :  { %6643 = vmatprep.subr.bf16.mxu0 %v10119_v51  ;;  %7491 = vmatprep.subr.bf16.mxu1 %v10122_v52  ;;  %v10203_v51 = vld [vmem:[%s15120_s1 + $0x504] ss:$16 sps:$4 sm:$0xff]   ;;  %v10206_v52 = vld [vmem:[%s15120_s1 + $0x50c] ss:$16 sps:$4 sm:$0xff]  }
  0x6b   :  { %6644 = vmatpush1.bf16.msra.mxu0 %v10117_v53  ;;  %7492 = vmatpush1.bf16.msra.mxu1 %v10120_v54  ;;  %v10201_v53 = vld [vmem:[%s15120_s1 + $0x500] ss:$16 sps:$4 sm:$0xff]   ;;  %v10204_v54 = vld [vmem:[%s15120_s1 + $0x508] ss:$16 sps:$4 sm:$0xff]  }
  0x6c   :  { %6645 = vmatprep.subr.bf16.mxu0 %v10125_v55  ;;  %7493 = vmatprep.subr.bf16.mxu1 %v10128_v56  ;;  %v10209_v55 = vld [vmem:[%s15120_s1 + $0x524] ss:$16 sps:$4 sm:$0xff]   ;;  %v10212_v56 = vld [vmem:[%s15120_s1 + $0x52c] ss:$16 sps:$4 sm:$0xff]  }
  0x6f   :  { %6646 = vmatpush1.bf16.msra.mxu0 %v10123_v57  ;;  %7494 = vmatpush1.bf16.msra.mxu1 %v10126_v58  ;;  %v10207_v57 = vld [vmem:[%s15120_s1 + $0x520] ss:$16 sps:$4 sm:$0xff]   ;;  %v10210_v58 = vld [vmem:[%s15120_s1 + $0x528] ss:$16 sps:$4 sm:$0xff]  }
  0x70   :  { %6647 = vmatprep.subr.bf16.mxu0 %v10131_v59  ;;  %7495 = vmatprep.subr.bf16.mxu1 %v10134_v60  ;;  %v10215_v59 = vld [vmem:[%s15120_s1 + $0x544] ss:$16 sps:$4 sm:$0xff]   ;;  %v10218_v60 = vld [vmem:[%s15120_s1 + $0x54c] ss:$16 sps:$4 sm:$0xff]  }
  0x73   :  { %6648 = vmatpush1.bf16.msra.mxu0 %v10129_v61  ;;  %7496 = vmatpush1.bf16.msra.mxu1 %v10132_v62  ;;  %v10213_v61 = vld [vmem:[%s15120_s1 + $0x540] ss:$16 sps:$4 sm:$0xff]   ;;  %v10216_v62 = vld [vmem:[%s15120_s1 + $0x548] ss:$16 sps:$4 sm:$0xff]  }
  0x74   :  { %6649 = vmatprep.subr.bf16.mxu0 %v10137_v63  ;;  %7497 = vmatprep.subr.bf16.mxu1 %v10140_v0  ;;  %v10221_v63 = vld [vmem:[%s15120_s1 + $0x564] ss:$16 sps:$4 sm:$0xff]   ;;  %v10224_v0 = vld [vmem:[%s15120_s1 + $0x56c] ss:$16 sps:$4 sm:$0xff]  }
  0x77   :  { %6650 = vmatpush1.bf16.msra.mxu0 %v10135_v1  ;;  %7498 = vmatpush1.bf16.msra.mxu1 %v10138_v2  ;;  %v10219_v1 = vld [vmem:[%s15120_s1 + $0x560] ss:$16 sps:$4 sm:$0xff]   ;;  %v10222_v2 = vld [vmem:[%s15120_s1 + $0x568] ss:$16 sps:$4 sm:$0xff]  }
  0x78   :  { %6651 = vmatprep.subr.bf16.mxu0 %v10143_v3  ;;  %7499 = vmatprep.subr.bf16.mxu1 %v10146_v4  ;;  %v10227_v3 = vld [vmem:[%s15120_s1 + $0x584] ss:$16 sps:$4 sm:$0xff]   ;;  %v10230_v4 = vld [vmem:[%s15120_s1 + $0x58c] ss:$16 sps:$4 sm:$0xff]  }
  0x7b   :  { %6652 = vmatpush1.bf16.msra.mxu0 %v10141_v5  ;;  %7500 = vmatpush1.bf16.msra.mxu1 %v10144_v6  ;;  %v10225_v5 = vld [vmem:[%s15120_s1 + $0x580] ss:$16 sps:$4 sm:$0xff]   ;;  %v10228_v6 = vld [vmem:[%s15120_s1 + $0x588] ss:$16 sps:$4 sm:$0xff]  }
  0x7c   :  { %6653 = vmatprep.subr.bf16.mxu0 %v10149_v7  ;;  %7501 = vmatprep.subr.bf16.mxu1 %v10152_v8  ;;  %v10233_v7 = vld [vmem:[%s15120_s1 + $0x5a4] ss:$16 sps:$4 sm:$0xff]   ;;  %v10236_v8 = vld [vmem:[%s15120_s1 + $0x5ac] ss:$16 sps:$4 sm:$0xff]  }
  0x7f   :  { %6654 = vmatpush1.bf16.msra.mxu0 %v10147_v9  ;;  %7502 = vmatpush1.bf16.msra.mxu1 %v10150_v10  ;;  %v10231_v9 = vld [vmem:[%s15120_s1 + $0x5a0] ss:$16 sps:$4 sm:$0xff]   ;;  %v10234_v10 = vld [vmem:[%s15120_s1 + $0x5a8] ss:$16 sps:$4 sm:$0xff]  }
  0x80   :  { %6676 = vmatprep.subr.bf16.mxu0 %v10155_v11  ;;  %7524 = vmatprep.subr.bf16.mxu1 %v10158_v12  ;;  %v10239_v11 = vld [vmem:[%s15120_s1 + $0x5c4] ss:$16 sps:$4 sm:$0xff]   ;;  %v10242_v12 = vld [vmem:[%s15120_s1 + $0x5cc] ss:$16 sps:$4 sm:$0xff]  }
  0x82   :  { %6656 = vmatmul.mubr.bf16.vlgmr.msra.gmra.mrb[0].mxu0 %v8602_v15  ;;  %7504 = vmatmul.mubr.bf16.vlgmr.msra.gmra.mrb[0].mxu1 %v8602_v15  ;;  %v10245_v15 = vld [vmem:[%s15120_s1 + $0x5e4] ss:$16 sps:$4 sm:$0xff]  }
  0x83   :  { %6677 = vmatpush1.bf16.msra.mxu0 %v10153_v13  ;;  %7525 = vmatpush1.bf16.msra.mxu1 %v10156_v14  ;;  %v10237_v13 = vld [vmem:[%s15120_s1 + $0x5c0] ss:$16 sps:$4 sm:$0xff]   ;;  %v10240_v14 = vld [vmem:[%s15120_s1 + $0x5c8] ss:$16 sps:$4 sm:$0xff]  }
  0x84   :  { %6678 = vmatprep.subr.bf16.mxu0 %v10161_v18  ;;  %7526 = vmatprep.subr.bf16.mxu1 %v10164_v19  ;;  %v10246_v18 = vld [vmem:[%s15120_s1 + $0x5e8] ss:$16 sps:$4 sm:$0xff]   ;;  %v10251_v19 = vld [vmem:[%s15120_s1 + $0x604] ss:$16 sps:$4 sm:$0xff]  }
  0x85   :  { %6665 = vmatprep.mubr.bf16.mxu0 %v8635_v20  ;;  %7513 = vmatprep.mubr.bf16.mxu1 %v8635_v20  ;;  %v10254_v20 = vld [vmem:[%s15120_s1 + $0x60c] ss:$16 sps:$4 sm:$0xff]  }
  0x87   :  { %6679 = vmatpush1.bf16.msra.mxu0 %v10159_v21  ;;  %7527 = vmatpush1.bf16.msra.mxu1 %v10162_v22  ;;  %v54_v21 = vld [vmem:[%s15121_s0 + $0x110] sm:$0xff]  ;;  %v8604_v22 = vcombine.low %v11985_v25, %v11990_v27  ;;  %v10260_v27 = vld [vmem:[%s15120_s1 + $0x62c] ss:$16 sps:$4 sm:$0xff]  }
  0x88   :  { %6680 = vmatprep.subr.bf16.mxu0 %v10167_v23  ;;  %7528 = vmatprep.subr.bf16.mxu1 %v10170_v24  ;;  %v70_v23 = vld [vmem:[%s15121_s0 + $0x190] sm:$0xff] }
  0x89   :  { %v10249_v24 = vld [vmem:[%s15120_s1 + $0x600] ss:$16 sps:$4 sm:$0xff]   ;;  %v10257_v25 = vld [vmem:[%s15120_s1 + $0x624] ss:$16 sps:$4 sm:$0xff]  }
  0x8a   :  { %6666 = vmatmul.mubr.bf16.gmra.mrb[4].mxu0 %v8634_v26  ;;  %7514 = vmatmul.mubr.bf16.gmra.mrb[4].mxu1 %v8634_v26  ;;  %v10252_v26 = vld [vmem:[%s15120_s1 + $0x608] ss:$16 sps:$4 sm:$0xff]  }
  0x8b   :  { %6681 = vmatpush1.bf16.msra.mxu0 %v10165_v28  ;;  %7529 = vmatpush1.bf16.msra.mxu1 %v10168_v29  ;;  %v8637_v28 = vcombine.high %v54_v21, %v70_v23  ;;  %v10255_v29 = vld [vmem:[%s15120_s1 + $0x620] ss:$16 sps:$4 sm:$0xff]  }
  0x8c   :  { %6682 = vmatprep.subr.bf16.mxu0 %v10173_v30  ;;  %7530 = vmatprep.subr.bf16.mxu1 %v10176_v31  ;;  %v10258_v30 = vld [vmem:[%s15120_s1 + $0x628] ss:$16 sps:$4 sm:$0xff]   ;;  %v10263_v31 = vld [vmem:[%s15120_s1 + $0x644] ss:$16 sps:$4 sm:$0xff]  }
  0x8d   :  { %6708 = vmatprep.mubr.bf16.mxu0 %v8605_v32  ;;  %7556 = vmatprep.mubr.bf16.mxu1 %v8605_v32  ;;  %v10266_v32 = vld [vmem:[%s15120_s1 + $0x64c] ss:$16 sps:$4 sm:$0xff]  }
  0x8f   :  { %6683 = vmatpush1.bf16.msra.mxu0 %v10171_v33  ;;  %7531 = vmatpush1.bf16.msra.mxu1 %v10174_v34  ;;  %v12197_v33 = vld [vmem:[%s15121_s0 + $0x18] sm:$0xff]  ;;  %v8636_v34 = vcombine.low %v54_v21, %v70_v23  ;;  %v10333_v21 = vld [vmem:[%s15120_s1 + $0x7c0] ss:$16 sps:$4 sm:$0xff]   ;;  %v10341_v23 = vld [vmem:[%s15120_s1 + $0x7e4] ss:$16 sps:$4 sm:$0xff]  }
  0x90   :  { %6684 = vmatprep.subr.bf16.mxu0 %v10179_v35  ;;  %7532 = vmatprep.subr.bf16.mxu1 %v10182_v36  ;;  %v12202_v35 = vld [vmem:[%s15121_s0 + $0x98] sm:$0xff]  ;;  %v10261_v36 = vld [vmem:[%s15120_s1 + $0x640] ss:$16 sps:$4 sm:$0xff]  }
  0x93   :  { %6685 = vmatpush1.bf16.msra.mxu0 %v10177_v37  ;;  %7533 = vmatpush1.bf16.msra.mxu1 %v10180_v38  ;;  %v10264_v37 = vld [vmem:[%s15120_s1 + $0x648] ss:$16 sps:$4 sm:$0xff]   ;;  %v10269_v38 = vld [vmem:[%s15120_s1 + $0x664] ss:$16 sps:$4 sm:$0xff]  }
  0x94   :  { %6686 = vmatprep.subr.bf16.mxu0 %v10185_v39  ;;  %7534 = vmatprep.subr.bf16.mxu1 %v10188_v40  ;;  %v10272_v39 = vld [vmem:[%s15120_s1 + $0x66c] ss:$16 sps:$4 sm:$0xff]   ;;  %v8607_v40 = vcombine.high %v12197_v33, %v12202_v35 }
  0x97   :  { %6687 = vmatpush1.bf16.msra.mxu0 %v10183_v41  ;;  %7535 = vmatpush1.bf16.msra.mxu1 %v10186_v42  ;;  %v10267_v41 = vld [vmem:[%s15120_s1 + $0x660] ss:$16 sps:$4 sm:$0xff]   ;;  %v10270_v42 = vld [vmem:[%s15120_s1 + $0x668] ss:$16 sps:$4 sm:$0xff]  }
  0x98   :  { %6688 = vmatprep.subr.bf16.mxu0 %v10191_v43  ;;  %7536 = vmatprep.subr.bf16.mxu1 %v10194_v44  ;;  %v10275_v43 = vld [vmem:[%s15120_s1 + $0x684] ss:$16 sps:$4 sm:$0xff]   ;;  %v10278_v44 = vld [vmem:[%s15120_s1 + $0x68c] ss:$16 sps:$4 sm:$0xff]  }
  0x9b   :  { %6689 = vmatpush1.bf16.msra.mxu0 %v10189_v45  ;;  %7537 = vmatpush1.bf16.msra.mxu1 %v10192_v46  ;;  %v10273_v45 = vld [vmem:[%s15120_s1 + $0x680] ss:$16 sps:$4 sm:$0xff]   ;;  %v10276_v46 = vld [vmem:[%s15120_s1 + $0x688] ss:$16 sps:$4 sm:$0xff]  }
  0x9c   :  { %6690 = vmatprep.subr.bf16.mxu0 %v10197_v47  ;;  %7538 = vmatprep.subr.bf16.mxu1 %v10200_v48  ;;  %v10281_v47 = vld [vmem:[%s15120_s1 + $0x6a4] ss:$16 sps:$4 sm:$0xff]   ;;  %v10284_v48 = vld [vmem:[%s15120_s1 + $0x6ac] ss:$16 sps:$4 sm:$0xff]  }
  0x9f   :  { %6691 = vmatpush1.bf16.msra.mxu0 %v10195_v49  ;;  %7539 = vmatpush1.bf16.msra.mxu1 %v10198_v50  ;;  %v10279_v49 = vld [vmem:[%s15120_s1 + $0x6a0] ss:$16 sps:$4 sm:$0xff]   ;;  %v10282_v50 = vld [vmem:[%s15120_s1 + $0x6a8] ss:$16 sps:$4 sm:$0xff]  }
  0xa0   :  { %6692 = vmatprep.subr.bf16.mxu0 %v10203_v51  ;;  %7540 = vmatprep.subr.bf16.mxu1 %v10206_v52  ;;  %v10287_v51 = vld [vmem:[%s15120_s1 + $0x6c4] ss:$16 sps:$4 sm:$0xff]   ;;  %v10290_v52 = vld [vmem:[%s15120_s1 + $0x6cc] ss:$16 sps:$4 sm:$0xff]  }
  0xa3   :  { %6693 = vmatpush1.bf16.msra.mxu0 %v10201_v53  ;;  %7541 = vmatpush1.bf16.msra.mxu1 %v10204_v54  ;;  %v10285_v53 = vld [vmem:[%s15120_s1 + $0x6c0] ss:$16 sps:$4 sm:$0xff]   ;;  %v10288_v54 = vld [vmem:[%s15120_s1 + $0x6c8] ss:$16 sps:$4 sm:$0xff]  }
  0xa4   :  { %6694 = vmatprep.subr.bf16.mxu0 %v10209_v55  ;;  %7542 = vmatprep.subr.bf16.mxu1 %v10212_v56  ;;  %v10293_v55 = vld [vmem:[%s15120_s1 + $0x6e4] ss:$16 sps:$4 sm:$0xff]   ;;  %v10296_v56 = vld [vmem:[%s15120_s1 + $0x6ec] ss:$16 sps:$4 sm:$0xff]  }
  0xa7   :  { %6695 = vmatpush1.bf16.msra.mxu0 %v10207_v57  ;;  %7543 = vmatpush1.bf16.msra.mxu1 %v10210_v58  ;;  %v10291_v57 = vld [vmem:[%s15120_s1 + $0x6e0] ss:$16 sps:$4 sm:$0xff]   ;;  %v10294_v58 = vld [vmem:[%s15120_s1 + $0x6e8] ss:$16 sps:$4 sm:$0xff]  }
  0xa8   :  { %6696 = vmatprep.subr.bf16.mxu0 %v10215_v59  ;;  %7544 = vmatprep.subr.bf16.mxu1 %v10218_v60  ;;  %v10299_v59 = vld [vmem:[%s15120_s1 + $0x704] ss:$16 sps:$4 sm:$0xff]   ;;  %v10302_v60 = vld [vmem:[%s15120_s1 + $0x70c] ss:$16 sps:$4 sm:$0xff]  }
  0xab   :  { %6697 = vmatpush1.bf16.msra.mxu0 %v10213_v61  ;;  %7545 = vmatpush1.bf16.msra.mxu1 %v10216_v62  ;;  %v10297_v61 = vld [vmem:[%s15120_s1 + $0x700] ss:$16 sps:$4 sm:$0xff]   ;;  %v10300_v62 = vld [vmem:[%s15120_s1 + $0x708] ss:$16 sps:$4 sm:$0xff]  }
  0xac   :  { %6698 = vmatprep.subr.bf16.mxu0 %v10221_v63  ;;  %7546 = vmatprep.subr.bf16.mxu1 %v10224_v0  ;;  %v10305_v63 = vld [vmem:[%s15120_s1 + $0x724] ss:$16 sps:$4 sm:$0xff]   ;;  %v10308_v0 = vld [vmem:[%s15120_s1 + $0x72c] ss:$16 sps:$4 sm:$0xff]  }
  0xaf   :  { %6699 = vmatpush1.bf16.msra.mxu0 %v10219_v1  ;;  %7547 = vmatpush1.bf16.msra.mxu1 %v10222_v2  ;;  %v10303_v1 = vld [vmem:[%s15120_s1 + $0x720] ss:$16 sps:$4 sm:$0xff]   ;;  %v10306_v2 = vld [vmem:[%s15120_s1 + $0x728] ss:$16 sps:$4 sm:$0xff]  }
  0xb0   :  { %6700 = vmatprep.subr.bf16.mxu0 %v10227_v3  ;;  %7548 = vmatprep.subr.bf16.mxu1 %v10230_v4  ;;  %v10311_v3 = vld [vmem:[%s15120_s1 + $0x744] ss:$16 sps:$4 sm:$0xff]   ;;  %v10314_v4 = vld [vmem:[%s15120_s1 + $0x74c] ss:$16 sps:$4 sm:$0xff]  }
  0xb3   :  { %6701 = vmatpush1.bf16.msra.mxu0 %v10225_v5  ;;  %7549 = vmatpush1.bf16.msra.mxu1 %v10228_v6  ;;  %v10309_v5 = vld [vmem:[%s15120_s1 + $0x740] ss:$16 sps:$4 sm:$0xff]   ;;  %v10312_v6 = vld [vmem:[%s15120_s1 + $0x748] ss:$16 sps:$4 sm:$0xff]  }
  0xb4   :  { %6702 = vmatprep.subr.bf16.mxu0 %v10233_v7  ;;  %7550 = vmatprep.subr.bf16.mxu1 %v10236_v8  ;;  %v10317_v7 = vld [vmem:[%s15120_s1 + $0x764] ss:$16 sps:$4 sm:$0xff]   ;;  %v10320_v8 = vld [vmem:[%s15120_s1 + $0x76c] ss:$16 sps:$4 sm:$0xff]  }
  0xb7   :  { %6703 = vmatpush1.bf16.msra.mxu0 %v10231_v9  ;;  %7551 = vmatpush1.bf16.msra.mxu1 %v10234_v10  ;;  %v10315_v9 = vld [vmem:[%s15120_s1 + $0x760] ss:$16 sps:$4 sm:$0xff]   ;;  %v10318_v10 = vld [vmem:[%s15120_s1 + $0x768] ss:$16 sps:$4 sm:$0xff]  }
  0xb8   :  { %6704 = vmatprep.subr.bf16.mxu0 %v10239_v11  ;;  %7552 = vmatprep.subr.bf16.mxu1 %v10242_v12  ;;  %v10323_v11 = vld [vmem:[%s15120_s1 + $0x784] ss:$16 sps:$4 sm:$0xff]   ;;  %v10326_v12 = vld [vmem:[%s15120_s1 + $0x78c] ss:$16 sps:$4 sm:$0xff]  }
  0xbb   :  { %6705 = vmatpush1.bf16.msra.mxu0 %v10237_v13  ;;  %7553 = vmatpush1.bf16.msra.mxu1 %v10240_v14  ;;  %v10321_v13 = vld [vmem:[%s15120_s1 + $0x780] ss:$16 sps:$4 sm:$0xff]   ;;  %v10324_v14 = vld [vmem:[%s15120_s1 + $0x788] ss:$16 sps:$4 sm:$0xff]  }
  0xbc   :  { %6706 = vmatprep.subr.bf16.mxu0 %v10245_v15  ;;  %7554 = vmatprep.subr.bf16.mxu1 %v10248_v16  ;;  %v10329_v15 = vld [vmem:[%s15120_s1 + $0x7a4] ss:$16 sps:$4 sm:$0xff]   ;;  %v10332_v16 = vld [vmem:[%s15120_s1 + $0x7ac] ss:$16 sps:$4 sm:$0xff]  }
  0xbf   :  { %6707 = vmatpush1.bf16.msra.mxu0 %v10243_v17  ;;  %7555 = vmatpush1.bf16.msra.mxu1 %v10246_v18  ;;  %v10327_v17 = vld [vmem:[%s15120_s1 + $0x7a0] ss:$16 sps:$4 sm:$0xff]   ;;  %v10330_v18 = vld [vmem:[%s15120_s1 + $0x7a8] ss:$16 sps:$4 sm:$0xff]  }
  0xc0   :  { %6729 = vmatprep.subr.bf16.mxu0 %v10251_v19  ;;  %7577 = vmatprep.subr.bf16.mxu1 %v10254_v20  ;;  %v10335_v19 = vld [vmem:[%s15120_s1 + $0x7c4] ss:$16 sps:$4 sm:$0xff]   ;;  %v10338_v20 = vld [vmem:[%s15120_s1 + $0x7cc] ss:$16 sps:$4 sm:$0xff]  }
  0xc2   :  { %6709 = vmatmul.mubr.bf16.vlgmr.msra.gmra.mrb[0].mxu0 %v8604_v22  ;;  %7557 = vmatmul.mubr.bf16.vlgmr.msra.gmra.mrb[0].mxu1 %v8604_v22  ;;  %v10336_v22 = vld [vmem:[%s15120_s1 + $0x7c8] ss:$16 sps:$4 sm:$0xff]  }
  0xc3   :  { %6730 = vmatpush1.bf16.msra.mxu0 %v10249_v24  ;;  %7578 = vmatpush1.bf16.msra.mxu1 %v10252_v26  ;;  %v10344_v24 = vld [vmem:[%s15120_s1 + $0x7ec] ss:$16 sps:$4 sm:$0xff]   ;;  %v10339_v26 = vld [vmem:[%s15120_s1 + $0x7e0] ss:$16 sps:$4 sm:$0xff]  }
  0xc4   :  { %6731 = vmatprep.subr.bf16.mxu0 %v10257_v25  ;;  %7579 = vmatprep.subr.bf16.mxu1 %v10260_v27  ;;  %v10342_v25 = vld [vmem:[%s15120_s1 + $0x7e8] ss:$16 sps:$4 sm:$0xff]   ;;  %v10347_v27 = vld [vmem:[%s15120_s1 + $0x804] ss:$16 sps:$4 sm:$0xff]  }
  0xc5   :  { %6718 = vmatprep.mubr.bf16.mxu0 %v8637_v28  ;;  %7566 = vmatprep.mubr.bf16.mxu1 %v8637_v28  ;;  %v10350_v28 = vld [vmem:[%s15120_s1 + $0x80c] ss:$16 sps:$4 sm:$0xff]  }
  0xc7   :  { %6732 = vmatpush1.bf16.msra.mxu0 %v10255_v29  ;;  %7580 = vmatpush1.bf16.msra.mxu1 %v10258_v30  ;;  %v55_v29 = vld [vmem:[%s15121_s0 + $0x118] sm:$0xff]  ;;  %v8606_v30 = vcombine.low %v12197_v33, %v12202_v35 }
  0xc8   :  { %6733 = vmatprep.subr.bf16.mxu0 %v10263_v31  ;;  %7581 = vmatprep.subr.bf16.mxu1 %v10266_v32  ;;  %v71_v31 = vld [vmem:[%s15121_s0 + $0x198] sm:$0xff]  ;;  %v10345_v32 = vld [vmem:[%s15120_s1 + $0x800] ss:$16 sps:$4 sm:$0xff]  }
  0xc9   :  { %v10356_v33 = vld [vmem:[%s15120_s1 + $0x82c] ss:$16 sps:$4 sm:$0xff]   ;;  %v8639_v35 = vcombine.high %v55_v29, %v71_v31 }
  0xca   :  { %6719 = vmatmul.mubr.bf16.gmra.mrb[4].mxu0 %v8636_v34  ;;  %7567 = vmatmul.mubr.bf16.gmra.mrb[4].mxu1 %v8636_v34  ;;  %v10348_v34 = vld [vmem:[%s15120_s1 + $0x808] ss:$16 sps:$4 sm:$0xff]  }
  0xcb   :  { %6734 = vmatpush1.bf16.msra.mxu0 %v10261_v36  ;;  %7582 = vmatpush1.bf16.msra.mxu1 %v10264_v37  ;;  %v10353_v36 = vld [vmem:[%s15120_s1 + $0x824] ss:$16 sps:$4 sm:$0xff]   ;;  %v10351_v37 = vld [vmem:[%s15120_s1 + $0x820] ss:$16 sps:$4 sm:$0xff]  }
  0xcc   :  { %6735 = vmatprep.subr.bf16.mxu0 %v10269_v38  ;;  %7583 = vmatprep.subr.bf16.mxu1 %v10272_v39  ;;  %v10354_v38 = vld [vmem:[%s15120_s1 + $0x828] ss:$16 sps:$4 sm:$0xff]   ;;  %v10359_v39 = vld [vmem:[%s15120_s1 + $0x844] ss:$16 sps:$4 sm:$0xff]  }
  0xcd   :  { %6761 = vmatprep.mubr.bf16.mxu0 %v8607_v40  ;;  %7609 = vmatprep.mubr.bf16.mxu1 %v8607_v40  ;;  %v10362_v40 = vld [vmem:[%s15120_s1 + $0x84c] ss:$16 sps:$4 sm:$0xff]  }
  0xcf   :  { %6736 = vmatpush1.bf16.msra.mxu0 %v10267_v41  ;;  %7584 = vmatpush1.bf16.msra.mxu1 %v10270_v42  ;;  %v12409_v41 = vld [vmem:[%s15121_s0 + $0x20] sm:$0xff]  ;;  %v8638_v42 = vcombine.low %v55_v29, %v71_v31 }
  0xd0   :  { %6737 = vmatprep.subr.bf16.mxu0 %v10275_v43  ;;  %7585 = vmatprep.subr.bf16.mxu1 %v10278_v44  ;;  %v12414_v43 = vld [vmem:[%s15121_s0 + $0xa0] sm:$0xff] }
  0xd1   :  { %v10357_v44 = vld [vmem:[%s15120_s1 + $0x840] ss:$16 sps:$4 sm:$0xff]   ;;  %v10437_v31 = vld [vmem:[%s15120_s1 + $0x9e4] ss:$16 sps:$4 sm:$0xff]  }
  0xd2   :  { %v10429_v29 = vld [vmem:[%s15120_s1 + $0x9c0] ss:$16 sps:$4 sm:$0xff]  }
  0xd3   :  { %6738 = vmatpush1.bf16.msra.mxu0 %v10273_v45  ;;  %7586 = vmatpush1.bf16.msra.mxu1 %v10276_v46  ;;  %v10360_v45 = vld [vmem:[%s15120_s1 + $0x848] ss:$16 sps:$4 sm:$0xff]   ;;  %v10365_v46 = vld [vmem:[%s15120_s1 + $0x864] ss:$16 sps:$4 sm:$0xff]  }
  0xd4   :  { %6739 = vmatprep.subr.bf16.mxu0 %v10281_v47  ;;  %7587 = vmatprep.subr.bf16.mxu1 %v10284_v48  ;;  %v10368_v47 = vld [vmem:[%s15120_s1 + $0x86c] ss:$16 sps:$4 sm:$0xff]   ;;  %v8609_v48 = vcombine.high %v12409_v41, %v12414_v43 }
  0xd7   :  { %6740 = vmatpush1.bf16.msra.mxu0 %v10279_v49  ;;  %7588 = vmatpush1.bf16.msra.mxu1 %v10282_v50  ;;  %v10363_v49 = vld [vmem:[%s15120_s1 + $0x860] ss:$16 sps:$4 sm:$0xff]   ;;  %v10366_v50 = vld [vmem:[%s15120_s1 + $0x868] ss:$16 sps:$4 sm:$0xff]  }
  0xd8   :  { %6741 = vmatprep.subr.bf16.mxu0 %v10287_v51  ;;  %7589 = vmatprep.subr.bf16.mxu1 %v10290_v52  ;;  %v10371_v51 = vld [vmem:[%s15120_s1 + $0x884] ss:$16 sps:$4 sm:$0xff]   ;;  %v10374_v52 = vld [vmem:[%s15120_s1 + $0x88c] ss:$16 sps:$4 sm:$0xff]  }
  0xdb   :  { %6742 = vmatpush1.bf16.msra.mxu0 %v10285_v53  ;;  %7590 = vmatpush1.bf16.msra.mxu1 %v10288_v54  ;;  %v10369_v53 = vld [vmem:[%s15120_s1 + $0x880] ss:$16 sps:$4 sm:$0xff]   ;;  %v10372_v54 = vld [vmem:[%s15120_s1 + $0x888] ss:$16 sps:$4 sm:$0xff]  }
  0xdc   :  { %6743 = vmatprep.subr.bf16.mxu0 %v10293_v55  ;;  %7591 = vmatprep.subr.bf16.mxu1 %v10296_v56  ;;  %v10377_v55 = vld [vmem:[%s15120_s1 + $0x8a4] ss:$16 sps:$4 sm:$0xff]   ;;  %v10380_v56 = vld [vmem:[%s15120_s1 + $0x8ac] ss:$16 sps:$4 sm:$0xff]  }
  0xdf   :  { %6744 = vmatpush1.bf16.msra.mxu0 %v10291_v57  ;;  %7592 = vmatpush1.bf16.msra.mxu1 %v10294_v58  ;;  %v10375_v57 = vld [vmem:[%s15120_s1 + $0x8a0] ss:$16 sps:$4 sm:$0xff]   ;;  %v10378_v58 = vld [vmem:[%s15120_s1 + $0x8a8] ss:$16 sps:$4 sm:$0xff]  }
  0xe0   :  { %6745 = vmatprep.subr.bf16.mxu0 %v10299_v59  ;;  %7593 = vmatprep.subr.bf16.mxu1 %v10302_v60  ;;  %v10383_v59 = vld [vmem:[%s15120_s1 + $0x8c4] ss:$16 sps:$4 sm:$0xff]   ;;  %v10386_v60 = vld [vmem:[%s15120_s1 + $0x8cc] ss:$16 sps:$4 sm:$0xff]  }
  0xe3   :  { %6746 = vmatpush1.bf16.msra.mxu0 %v10297_v61  ;;  %7594 = vmatpush1.bf16.msra.mxu1 %v10300_v62  ;;  %v10381_v61 = vld [vmem:[%s15120_s1 + $0x8c0] ss:$16 sps:$4 sm:$0xff]   ;;  %v10384_v62 = vld [vmem:[%s15120_s1 + $0x8c8] ss:$16 sps:$4 sm:$0xff]  }
  0xe4   :  { %6747 = vmatprep.subr.bf16.mxu0 %v10305_v63  ;;  %7595 = vmatprep.subr.bf16.mxu1 %v10308_v0  ;;  %v10389_v63 = vld [vmem:[%s15120_s1 + $0x8e4] ss:$16 sps:$4 sm:$0xff]   ;;  %v10392_v0 = vld [vmem:[%s15120_s1 + $0x8ec] ss:$16 sps:$4 sm:$0xff]  }
  0xe7   :  { %6748 = vmatpush1.bf16.msra.mxu0 %v10303_v1  ;;  %7596 = vmatpush1.bf16.msra.mxu1 %v10306_v2  ;;  %v10387_v1 = vld [vmem:[%s15120_s1 + $0x8e0] ss:$16 sps:$4 sm:$0xff]   ;;  %v10390_v2 = vld [vmem:[%s15120_s1 + $0x8e8] ss:$16 sps:$4 sm:$0xff]  }
  0xe8   :  { %6749 = vmatprep.subr.bf16.mxu0 %v10311_v3  ;;  %7597 = vmatprep.subr.bf16.mxu1 %v10314_v4  ;;  %v10395_v3 = vld [vmem:[%s15120_s1 + $0x904] ss:$16 sps:$4 sm:$0xff]   ;;  %v10398_v4 = vld [vmem:[%s15120_s1 + $0x90c] ss:$16 sps:$4 sm:$0xff]  }
  0xeb   :  { %6750 = vmatpush1.bf16.msra.mxu0 %v10309_v5  ;;  %7598 = vmatpush1.bf16.msra.mxu1 %v10312_v6  ;;  %v10393_v5 = vld [vmem:[%s15120_s1 + $0x900] ss:$16 sps:$4 sm:$0xff]   ;;  %v10396_v6 = vld [vmem:[%s15120_s1 + $0x908] ss:$16 sps:$4 sm:$0xff]  }
  0xec   :  { %6751 = vmatprep.subr.bf16.mxu0 %v10317_v7  ;;  %7599 = vmatprep.subr.bf16.mxu1 %v10320_v8  ;;  %v10401_v7 = vld [vmem:[%s15120_s1 + $0x924] ss:$16 sps:$4 sm:$0xff]   ;;  %v10404_v8 = vld [vmem:[%s15120_s1 + $0x92c] ss:$16 sps:$4 sm:$0xff]  }
  0xef   :  { %6752 = vmatpush1.bf16.msra.mxu0 %v10315_v9  ;;  %7600 = vmatpush1.bf16.msra.mxu1 %v10318_v10  ;;  %v10399_v9 = vld [vmem:[%s15120_s1 + $0x920] ss:$16 sps:$4 sm:$0xff]   ;;  %v10402_v10 = vld [vmem:[%s15120_s1 + $0x928] ss:$16 sps:$4 sm:$0xff]  }
  0xf0   :  { %6753 = vmatprep.subr.bf16.mxu0 %v10323_v11  ;;  %7601 = vmatprep.subr.bf16.mxu1 %v10326_v12  ;;  %v10407_v11 = vld [vmem:[%s15120_s1 + $0x944] ss:$16 sps:$4 sm:$0xff]   ;;  %v10410_v12 = vld [vmem:[%s15120_s1 + $0x94c] ss:$16 sps:$4 sm:$0xff]  }
  0xf3   :  { %6754 = vmatpush1.bf16.msra.mxu0 %v10321_v13  ;;  %7602 = vmatpush1.bf16.msra.mxu1 %v10324_v14  ;;  %v10405_v13 = vld [vmem:[%s15120_s1 + $0x940] ss:$16 sps:$4 sm:$0xff]   ;;  %v10408_v14 = vld [vmem:[%s15120_s1 + $0x948] ss:$16 sps:$4 sm:$0xff]  }
  0xf4   :  { %6755 = vmatprep.subr.bf16.mxu0 %v10329_v15  ;;  %7603 = vmatprep.subr.bf16.mxu1 %v10332_v16  ;;  %v10413_v15 = vld [vmem:[%s15120_s1 + $0x964] ss:$16 sps:$4 sm:$0xff]   ;;  %v10416_v16 = vld [vmem:[%s15120_s1 + $0x96c] ss:$16 sps:$4 sm:$0xff]  }
  0xf7   :  { %6756 = vmatpush1.bf16.msra.mxu0 %v10327_v17  ;;  %7604 = vmatpush1.bf16.msra.mxu1 %v10330_v18  ;;  %v10411_v17 = vld [vmem:[%s15120_s1 + $0x960] ss:$16 sps:$4 sm:$0xff]   ;;  %v10414_v18 = vld [vmem:[%s15120_s1 + $0x968] ss:$16 sps:$4 sm:$0xff]  }
  0xf8   :  { %6757 = vmatprep.subr.bf16.mxu0 %v10335_v19  ;;  %7605 = vmatprep.subr.bf16.mxu1 %v10338_v20  ;;  %v10419_v19 = vld [vmem:[%s15120_s1 + $0x984] ss:$16 sps:$4 sm:$0xff]   ;;  %v10422_v20 = vld [vmem:[%s15120_s1 + $0x98c] ss:$16 sps:$4 sm:$0xff]  }
  0xfb   :  { %6758 = vmatpush1.bf16.msra.mxu0 %v10333_v21  ;;  %7606 = vmatpush1.bf16.msra.mxu1 %v10336_v22  ;;  %v10417_v21 = vld [vmem:[%s15120_s1 + $0x980] ss:$16 sps:$4 sm:$0xff]   ;;  %v10420_v22 = vld [vmem:[%s15120_s1 + $0x988] ss:$16 sps:$4 sm:$0xff]  }
  0xfc   :  { %6759 = vmatprep.subr.bf16.mxu0 %v10341_v23  ;;  %7607 = vmatprep.subr.bf16.mxu1 %v10344_v24  ;;  %v10425_v23 = vld [vmem:[%s15120_s1 + $0x9a4] ss:$16 sps:$4 sm:$0xff]   ;;  %v10428_v24 = vld [vmem:[%s15120_s1 + $0x9ac] ss:$16 sps:$4 sm:$0xff]  }
  0xff   :  { %6760 = vmatpush1.bf16.msra.mxu0 %v10339_v26  ;;  %7608 = vmatpush1.bf16.msra.mxu1 %v10342_v25  ;;  %v10423_v26 = vld [vmem:[%s15120_s1 + $0x9a0] ss:$16 sps:$4 sm:$0xff]   ;;  %v10426_v25 = vld [vmem:[%s15120_s1 + $0x9a8] ss:$16 sps:$4 sm:$0xff]  }
 0x100   :  { %6782 = vmatprep.subr.bf16.mxu0 %v10347_v27  ;;  %7630 = vmatprep.subr.bf16.mxu1 %v10350_v28  ;;  %v10431_v27 = vld [vmem:[%s15120_s1 + $0x9c4] ss:$16 sps:$4 sm:$0xff]   ;;  %v10434_v28 = vld [vmem:[%s15120_s1 + $0x9cc] ss:$16 sps:$4 sm:$0xff]  }
 0x102   :  { %6762 = vmatmul.mubr.bf16.vlgmr.msra.gmra.mrb[0].mxu0 %v8606_v30  ;;  %7610 = vmatmul.mubr.bf16.vlgmr.msra.gmra.mrb[0].mxu1 %v8606_v30  ;;  %v10432_v30 = vld [vmem:[%s15120_s1 + $0x9c8] ss:$16 sps:$4 sm:$0xff]  }
 0x103   :  { %6783 = vmatpush1.bf16.msra.mxu0 %v10345_v32  ;;  %7631 = vmatpush1.bf16.msra.mxu1 %v10348_v34  ;;  %v10440_v32 = vld [vmem:[%s15120_s1 + $0x9ec] ss:$16 sps:$4 sm:$0xff]   ;;  %v10435_v34 = vld [vmem:[%s15120_s1 + $0x9e0] ss:$16 sps:$4 sm:$0xff]  }
 0x104   :  { %6784 = vmatprep.subr.bf16.mxu0 %v10353_v36  ;;  %7632 = vmatprep.subr.bf16.mxu1 %v10356_v33  ;;  %v10438_v36 = vld [vmem:[%s15120_s1 + $0x9e8] ss:$16 sps:$4 sm:$0xff]   ;;  %v10443_v33 = vld [vmem:[%s15120_s1 + $0xa04] ss:$16 sps:$4 sm:$0xff]  }
 0x105   :  { %6771 = vmatprep.mubr.bf16.mxu0 %v8639_v35  ;;  %7619 = vmatprep.mubr.bf16.mxu1 %v8639_v35  ;;  %v10446_v35 = vld [vmem:[%s15120_s1 + $0xa0c] ss:$16 sps:$4 sm:$0xff]  }
 0x107   :  { %6785 = vmatpush1.bf16.msra.mxu0 %v10351_v37  ;;  %7633 = vmatpush1.bf16.msra.mxu1 %v10354_v38  ;;  %v56_v37 = vld [vmem:[%s15121_s0 + $0x120] sm:$0xff] }
 0x108   :  { %6786 = vmatprep.subr.bf16.mxu0 %v10359_v39  ;;  %7634 = vmatprep.subr.bf16.mxu1 %v10362_v40  ;;  %v72_v38 = vld [vmem:[%s15121_s0 + $0x1a0] sm:$0xff]  ;;  %v8608_v39 = vcombine.low %v12409_v41, %v12414_v43  ;;  %v10452_v41 = vld [vmem:[%s15120_s1 + $0xa2c] ss:$16 sps:$4 sm:$0xff]  }
 0x109   :  { %v10441_v40 = vld [vmem:[%s15120_s1 + $0xa00] ss:$16 sps:$4 sm:$0xff]  }
 0x10a   :  { %6772 = vmatmul.mubr.bf16.gmra.mrb[4].mxu0 %v8638_v42  ;;  %7620 = vmatmul.mubr.bf16.gmra.mrb[4].mxu1 %v8638_v42  ;;  %v10444_v42 = vld [vmem:[%s15120_s1 + $0xa08] ss:$16 sps:$4 sm:$0xff]   ;;  %v10447_v43 = vld [vmem:[%s15120_s1 + $0xa20] ss:$16 sps:$4 sm:$0xff]  }
 0x10b   :  { %6787 = vmatpush1.bf16.msra.mxu0 %v10357_v44  ;;  %7635 = vmatpush1.bf16.msra.mxu1 %v10360_v45  ;;  %v10449_v44 = vld [vmem:[%s15120_s1 + $0xa24] ss:$16 sps:$4 sm:$0xff]   ;;  %v10450_v45 = vld [vmem:[%s15120_s1 + $0xa28] ss:$16 sps:$4 sm:$0xff]  }
 0x10c   :  { %6788 = vmatprep.subr.bf16.mxu0 %v10365_v46  ;;  %7636 = vmatprep.subr.bf16.mxu1 %v10368_v47  ;;  %v8641_v46 = vcombine.high %v56_v37, %v72_v38  ;;  %v10455_v47 = vld [vmem:[%s15120_s1 + $0xa44] ss:$16 sps:$4 sm:$0xff]  }
 0x10d   :  { %6814 = vmatprep.mubr.bf16.mxu0 %v8609_v48  ;;  %7662 = vmatprep.mubr.bf16.mxu1 %v8609_v48  ;;  %v10458_v48 = vld [vmem:[%s15120_s1 + $0xa4c] ss:$16 sps:$4 sm:$0xff]  }
 0x10f   :  { %6789 = vmatpush1.bf16.msra.mxu0 %v10363_v49  ;;  %7637 = vmatpush1.bf16.msra.mxu1 %v10366_v50  ;;  %v12621_v49 = vld [vmem:[%s15121_s0 + $0x28] sm:$0xff] }
 0x110   :  { %6790 = vmatprep.subr.bf16.mxu0 %v10371_v51  ;;  %7638 = vmatprep.subr.bf16.mxu1 %v10374_v52  ;;  %v12626_v50 = vld [vmem:[%s15121_s0 + $0xa8] sm:$0xff]  ;;  %v8640_v51 = vcombine.low %v56_v37, %v72_v38  ;;  %v10453_v52 = vld [vmem:[%s15120_s1 + $0xa40] ss:$16 sps:$4 sm:$0xff]  }
 0x111   :  { %v10525_v37 = vld [vmem:[%s15120_s1 + $0xbc0] ss:$16 sps:$4 sm:$0xff]   ;;  %v10528_v38 = vld [vmem:[%s15120_s1 + $0xbc8] ss:$16 sps:$4 sm:$0xff]  }
 0x113   :  { %6791 = vmatpush1.bf16.msra.mxu0 %v10369_v53  ;;  %7639 = vmatpush1.bf16.msra.mxu1 %v10372_v54  ;;  %v10456_v53 = vld [vmem:[%s15120_s1 + $0xa48] ss:$16 sps:$4 sm:$0xff]   ;;  %v10461_v54 = vld [vmem:[%s15120_s1 + $0xa64] ss:$16 sps:$4 sm:$0xff]  }
 0x114   :  { %6792 = vmatprep.subr.bf16.mxu0 %v10377_v55  ;;  %7640 = vmatprep.subr.bf16.mxu1 %v10380_v56  ;;  %v10464_v55 = vld [vmem:[%s15120_s1 + $0xa6c] ss:$16 sps:$4 sm:$0xff]   ;;  %v8611_v56 = vcombine.high %v12621_v49, %v12626_v50 }
 0x117   :  { %6793 = vmatpush1.bf16.msra.mxu0 %v10375_v57  ;;  %7641 = vmatpush1.bf16.msra.mxu1 %v10378_v58  ;;  %v10459_v57 = vld [vmem:[%s15120_s1 + $0xa60] ss:$16 sps:$4 sm:$0xff]   ;;  %v10462_v58 = vld [vmem:[%s15120_s1 + $0xa68] ss:$16 sps:$4 sm:$0xff]  }
 0x118   :  { %6794 = vmatprep.subr.bf16.mxu0 %v10383_v59  ;;  %7642 = vmatprep.subr.bf16.mxu1 %v10386_v60  ;;  %v10467_v59 = vld [vmem:[%s15120_s1 + $0xa84] ss:$16 sps:$4 sm:$0xff]   ;;  %v10470_v60 = vld [vmem:[%s15120_s1 + $0xa8c] ss:$16 sps:$4 sm:$0xff]  }
 0x11b   :  { %6795 = vmatpush1.bf16.msra.mxu0 %v10381_v61  ;;  %7643 = vmatpush1.bf16.msra.mxu1 %v10384_v62  ;;  %v10465_v61 = vld [vmem:[%s15120_s1 + $0xa80] ss:$16 sps:$4 sm:$0xff]   ;;  %v10468_v62 = vld [vmem:[%s15120_s1 + $0xa88] ss:$16 sps:$4 sm:$0xff]  }
 0x11c   :  { %6796 = vmatprep.subr.bf16.mxu0 %v10389_v63  ;;  %7644 = vmatprep.subr.bf16.mxu1 %v10392_v0  ;;  %v10473_v63 = vld [vmem:[%s15120_s1 + $0xaa4] ss:$16 sps:$4 sm:$0xff]   ;;  %v10476_v0 = vld [vmem:[%s15120_s1 + $0xaac] ss:$16 sps:$4 sm:$0xff]  }
 0x11f   :  { %6797 = vmatpush1.bf16.msra.mxu0 %v10387_v1  ;;  %7645 = vmatpush1.bf16.msra.mxu1 %v10390_v2  ;;  %v10471_v1 = vld [vmem:[%s15120_s1 + $0xaa0] ss:$16 sps:$4 sm:$0xff]   ;;  %v10474_v2 = vld [vmem:[%s15120_s1 + $0xaa8] ss:$16 sps:$4 sm:$0xff]  }
 0x120   :  { %6798 = vmatprep.subr.bf16.mxu0 %v10395_v3  ;;  %7646 = vmatprep.subr.bf16.mxu1 %v10398_v4  ;;  %v10479_v3 = vld [vmem:[%s15120_s1 + $0xac4] ss:$16 sps:$4 sm:$0xff]   ;;  %v10482_v4 = vld [vmem:[%s15120_s1 + $0xacc] ss:$16 sps:$4 sm:$0xff]  }
 0x123   :  { %6799 = vmatpush1.bf16.msra.mxu0 %v10393_v5  ;;  %7647 = vmatpush1.bf16.msra.mxu1 %v10396_v6  ;;  %v10477_v5 = vld [vmem:[%s15120_s1 + $0xac0] ss:$16 sps:$4 sm:$0xff]   ;;  %v10480_v6 = vld [vmem:[%s15120_s1 + $0xac8] ss:$16 sps:$4 sm:$0xff]  }
 0x124   :  { %6800 = vmatprep.subr.bf16.mxu0 %v10401_v7  ;;  %7648 = vmatprep.subr.bf16.mxu1 %v10404_v8  ;;  %v10485_v7 = vld [vmem:[%s15120_s1 + $0xae4] ss:$16 sps:$4 sm:$0xff]   ;;  %v10488_v8 = vld [vmem:[%s15120_s1 + $0xaec] ss:$16 sps:$4 sm:$0xff]  }
 0x127   :  { %6801 = vmatpush1.bf16.msra.mxu0 %v10399_v9  ;;  %7649 = vmatpush1.bf16.msra.mxu1 %v10402_v10  ;;  %v10483_v9 = vld [vmem:[%s15120_s1 + $0xae0] ss:$16 sps:$4 sm:$0xff]   ;;  %v10486_v10 = vld [vmem:[%s15120_s1 + $0xae8] ss:$16 sps:$4 sm:$0xff]  }
 0x128   :  { %6802 = vmatprep.subr.bf16.mxu0 %v10407_v11  ;;  %7650 = vmatprep.subr.bf16.mxu1 %v10410_v12  ;;  %v10491_v11 = vld [vmem:[%s15120_s1 + $0xb04] ss:$16 sps:$4 sm:$0xff]   ;;  %v10494_v12 = vld [vmem:[%s15120_s1 + $0xb0c] ss:$16 sps:$4 sm:$0xff]  }
 0x12b   :  { %6803 = vmatpush1.bf16.msra.mxu0 %v10405_v13  ;;  %7651 = vmatpush1.bf16.msra.mxu1 %v10408_v14  ;;  %v10489_v13 = vld [vmem:[%s15120_s1 + $0xb00] ss:$16 sps:$4 sm:$0xff]   ;;  %v10492_v14 = vld [vmem:[%s15120_s1 + $0xb08] ss:$16 sps:$4 sm:$0xff]  }
 0x12c   :  { %6804 = vmatprep.subr.bf16.mxu0 %v10413_v15  ;;  %7652 = vmatprep.subr.bf16.mxu1 %v10416_v16  ;;  %v10497_v15 = vld [vmem:[%s15120_s1 + $0xb24] ss:$16 sps:$4 sm:$0xff]   ;;  %v10500_v16 = vld [vmem:[%s15120_s1 + $0xb2c] ss:$16 sps:$4 sm:$0xff]  }
 0x12f   :  { %6805 = vmatpush1.bf16.msra.mxu0 %v10411_v17  ;;  %7653 = vmatpush1.bf16.msra.mxu1 %v10414_v18  ;;  %v10495_v17 = vld [vmem:[%s15120_s1 + $0xb20] ss:$16 sps:$4 sm:$0xff]   ;;  %v10498_v18 = vld [vmem:[%s15120_s1 + $0xb28] ss:$16 sps:$4 sm:$0xff]  }
 0x130   :  { %6806 = vmatprep.subr.bf16.mxu0 %v10419_v19  ;;  %7654 = vmatprep.subr.bf16.mxu1 %v10422_v20  ;;  %v10503_v19 = vld [vmem:[%s15120_s1 + $0xb44] ss:$16 sps:$4 sm:$0xff]   ;;  %v10506_v20 = vld [vmem:[%s15120_s1 + $0xb4c] ss:$16 sps:$4 sm:$0xff]  }
 0x133   :  { %6807 = vmatpush1.bf16.msra.mxu0 %v10417_v21  ;;  %7655 = vmatpush1.bf16.msra.mxu1 %v10420_v22  ;;  %v10501_v21 = vld [vmem:[%s15120_s1 + $0xb40] ss:$16 sps:$4 sm:$0xff]   ;;  %v10504_v22 = vld [vmem:[%s15120_s1 + $0xb48] ss:$16 sps:$4 sm:$0xff]  }
 0x134   :  { %6808 = vmatprep.subr.bf16.mxu0 %v10425_v23  ;;  %7656 = vmatprep.subr.bf16.mxu1 %v10428_v24  ;;  %v10509_v23 = vld [vmem:[%s15120_s1 + $0xb64] ss:$16 sps:$4 sm:$0xff]   ;;  %v10512_v24 = vld [vmem:[%s15120_s1 + $0xb6c] ss:$16 sps:$4 sm:$0xff]  }
 0x137   :  { %6809 = vmatpush1.bf16.msra.mxu0 %v10423_v26  ;;  %7657 = vmatpush1.bf16.msra.mxu1 %v10426_v25  ;;  %v10507_v26 = vld [vmem:[%s15120_s1 + $0xb60] ss:$16 sps:$4 sm:$0xff]   ;;  %v10510_v25 = vld [vmem:[%s15120_s1 + $0xb68] ss:$16 sps:$4 sm:$0xff]  }
 0x138   :  { %6810 = vmatprep.subr.bf16.mxu0 %v10431_v27  ;;  %7658 = vmatprep.subr.bf16.mxu1 %v10434_v28  ;;  %v10515_v27 = vld [vmem:[%s15120_s1 + $0xb84] ss:$16 sps:$4 sm:$0xff]   ;;  %v10518_v28 = vld [vmem:[%s15120_s1 + $0xb8c] ss:$16 sps:$4 sm:$0xff]  }
 0x13b   :  { %6811 = vmatpush1.bf16.msra.mxu0 %v10429_v29  ;;  %7659 = vmatpush1.bf16.msra.mxu1 %v10432_v30  ;;  %v10513_v29 = vld [vmem:[%s15120_s1 + $0xb80] ss:$16 sps:$4 sm:$0xff]   ;;  %v10516_v30 = vld [vmem:[%s15120_s1 + $0xb88] ss:$16 sps:$4 sm:$0xff]  }
 0x13c   :  { %6812 = vmatprep.subr.bf16.mxu0 %v10437_v31  ;;  %7660 = vmatprep.subr.bf16.mxu1 %v10440_v32  ;;  %v10521_v31 = vld [vmem:[%s15120_s1 + $0xba4] ss:$16 sps:$4 sm:$0xff]   ;;  %v10524_v32 = vld [vmem:[%s15120_s1 + $0xbac] ss:$16 sps:$4 sm:$0xff]  }
 0x13f   :  { %6813 = vmatpush1.bf16.msra.mxu0 %v10435_v34  ;;  %7661 = vmatpush1.bf16.msra.mxu1 %v10438_v36  ;;  %v10519_v34 = vld [vmem:[%s15120_s1 + $0xba0] ss:$16 sps:$4 sm:$0xff]   ;;  %v10522_v36 = vld [vmem:[%s15120_s1 + $0xba8] ss:$16 sps:$4 sm:$0xff]  }
 0x140   :  { %6835 = vmatprep.subr.bf16.mxu0 %v10443_v33  ;;  %7683 = vmatprep.subr.bf16.mxu1 %v10446_v35  ;;  %v10527_v33 = vld [vmem:[%s15120_s1 + $0xbc4] ss:$16 sps:$4 sm:$0xff]   ;;  %v10530_v35 = vld [vmem:[%s15120_s1 + $0xbcc] ss:$16 sps:$4 sm:$0xff]  }
 0x142   :  { %6815 = vmatmul.mubr.bf16.vlgmr.msra.gmra.mrb[0].mxu0 %v8608_v39  ;;  %7663 = vmatmul.mubr.bf16.vlgmr.msra.gmra.mrb[0].mxu1 %v8608_v39  ;;  %v10533_v39 = vld [vmem:[%s15120_s1 + $0xbe4] ss:$16 sps:$4 sm:$0xff]  }
 0x143   :  { %6836 = vmatpush1.bf16.msra.mxu0 %v10441_v40  ;;  %7684 = vmatpush1.bf16.msra.mxu1 %v10444_v42  ;;  %v10536_v40 = vld [vmem:[%s15120_s1 + $0xbec] ss:$16 sps:$4 sm:$0xff]   ;;  %v10531_v42 = vld [vmem:[%s15120_s1 + $0xbe0] ss:$16 sps:$4 sm:$0xff]  }
 0x144   :  { %6837 = vmatprep.subr.bf16.mxu0 %v10449_v44  ;;  %7685 = vmatprep.subr.bf16.mxu1 %v10452_v41  ;;  %v10534_v44 = vld [vmem:[%s15120_s1 + $0xbe8] ss:$16 sps:$4 sm:$0xff]   ;;  %v10539_v41 = vld [vmem:[%s15120_s1 + $0xc04] ss:$16 sps:$4 sm:$0xff]  }
 0x145   :  { %6824 = vmatprep.mubr.bf16.mxu0 %v8641_v46  ;;  %7672 = vmatprep.mubr.bf16.mxu1 %v8641_v46  ;;  %v73_v46 = vld [vmem:[%s15121_s0 + $0x1a8] sm:$0xff] }
 0x147   :  { %6838 = vmatpush1.bf16.msra.mxu0 %v10447_v43  ;;  %7686 = vmatpush1.bf16.msra.mxu1 %v10450_v45  ;;  %v10542_v43 = vld [vmem:[%s15120_s1 + $0xc0c] ss:$16 sps:$4 sm:$0xff]  }
 0x148   :  { %6839 = vmatprep.subr.bf16.mxu0 %v10455_v47  ;;  %7687 = vmatprep.subr.bf16.mxu1 %v10458_v48  ;;  %v57_v45 = vld [vmem:[%s15121_s0 + $0x128] sm:$0xff]  ;;  %v8610_v47 = vcombine.low %v12621_v49, %v12626_v50  ;;  %v10537_v48 = vld [vmem:[%s15120_s1 + $0xc00] ss:$16 sps:$4 sm:$0xff]  }
 0x149   :  { %v10548_v49 = vld [vmem:[%s15120_s1 + $0xc2c] ss:$16 sps:$4 sm:$0xff]   ;;  %v10543_v50 = vld [vmem:[%s15120_s1 + $0xc20] ss:$16 sps:$4 sm:$0xff]  }
 0x14a   :  { %6825 = vmatmul.mubr.bf16.gmra.mrb[4].mxu0 %v8640_v51  ;;  %7673 = vmatmul.mubr.bf16.gmra.mrb[4].mxu1 %v8640_v51  ;;  %v10540_v51 = vld [vmem:[%s15120_s1 + $0xc08] ss:$16 sps:$4 sm:$0xff]  }
 0x14b   :  { %6840 = vmatpush1.bf16.msra.mxu0 %v10453_v52  ;;  %7688 = vmatpush1.bf16.msra.mxu1 %v10456_v53  ;;  %v10545_v52 = vld [vmem:[%s15120_s1 + $0xc24] ss:$16 sps:$4 sm:$0xff]   ;;  %v10546_v53 = vld [vmem:[%s15120_s1 + $0xc28] ss:$16 sps:$4 sm:$0xff]  }
 0x14c   :  { %6841 = vmatprep.subr.bf16.mxu0 %v10461_v54  ;;  %7689 = vmatprep.subr.bf16.mxu1 %v10464_v55  ;;  %v8643_v54 = vcombine.high %v57_v45, %v73_v46  ;;  %v10551_v55 = vld [vmem:[%s15120_s1 + $0xc44] ss:$16 sps:$4 sm:$0xff]  }
 0x14d   :  { %6867 = vmatprep.mubr.bf16.mxu0 %v8611_v56  ;;  %7715 = vmatprep.mubr.bf16.mxu1 %v8611_v56  ;;  %v10554_v56 = vld [vmem:[%s15120_s1 + $0xc4c] ss:$16 sps:$4 sm:$0xff]  }
 0x14f   :  { %6842 = vmatpush1.bf16.msra.mxu0 %v10459_v57  ;;  %7690 = vmatpush1.bf16.msra.mxu1 %v10462_v58  ;;  %v12833_v57 = vld [vmem:[%s15121_s0 + $0x30] sm:$0xff] }
 0x150   :  { %6843 = vmatprep.subr.bf16.mxu0 %v10467_v59  ;;  %7691 = vmatprep.subr.bf16.mxu1 %v10470_v60  ;;  %v12838_v58 = vld [vmem:[%s15121_s0 + $0xb0] sm:$0xff]  ;;  %v8642_v59 = vcombine.low %v57_v45, %v73_v46  ;;  %v10624_v46 = vld [vmem:[%s15120_s1 + $0xdc8] ss:$16 sps:$4 sm:$0xff]  }
 0x151   :  { %v10549_v60 = vld [vmem:[%s15120_s1 + $0xc40] ss:$16 sps:$4 sm:$0xff]  }
 0x152   :  { %v10621_v45 = vld [vmem:[%s15120_s1 + $0xdc0] ss:$16 sps:$4 sm:$0xff]  }
 0x153   :  { %6844 = vmatpush1.bf16.msra.mxu0 %v10465_v61  ;;  %7692 = vmatpush1.bf16.msra.mxu1 %v10468_v62  ;;  %v10552_v61 = vld [vmem:[%s15120_s1 + $0xc48] ss:$16 sps:$4 sm:$0xff]   ;;  %v10557_v62 = vld [vmem:[%s15120_s1 + $0xc64] ss:$16 sps:$4 sm:$0xff]  }
 0x154   :  { %6845 = vmatprep.subr.bf16.mxu0 %v10473_v63  ;;  %7693 = vmatprep.subr.bf16.mxu1 %v10476_v0  ;;  %v10560_v63 = vld [vmem:[%s15120_s1 + $0xc6c] ss:$16 sps:$4 sm:$0xff]   ;;  %v8613_v0 = vcombine.high %v12833_v57, %v12838_v58 }
 0x157   :  { %6846 = vmatpush1.bf16.msra.mxu0 %v10471_v1  ;;  %7694 = vmatpush1.bf16.msra.mxu1 %v10474_v2  ;;  %v10555_v1 = vld [vmem:[%s15120_s1 + $0xc60] ss:$16 sps:$4 sm:$0xff]   ;;  %v10558_v2 = vld [vmem:[%s15120_s1 + $0xc68] ss:$16 sps:$4 sm:$0xff]  }
 0x158   :  { %6847 = vmatprep.subr.bf16.mxu0 %v10479_v3  ;;  %7695 = vmatprep.subr.bf16.mxu1 %v10482_v4  ;;  %v10563_v3 = vld [vmem:[%s15120_s1 + $0xc84] ss:$16 sps:$4 sm:$0xff]   ;;  %v10566_v4 = vld [vmem:[%s15120_s1 + $0xc8c] ss:$16 sps:$4 sm:$0xff]  }
 0x15b   :  { %6848 = vmatpush1.bf16.msra.mxu0 %v10477_v5  ;;  %7696 = vmatpush1.bf16.msra.mxu1 %v10480_v6  ;;  %v10561_v5 = vld [vmem:[%s15120_s1 + $0xc80] ss:$16 sps:$4 sm:$0xff]   ;;  %v10564_v6 = vld [vmem:[%s15120_s1 + $0xc88] ss:$16 sps:$4 sm:$0xff]  }
 0x15c   :  { %6849 = vmatprep.subr.bf16.mxu0 %v10485_v7  ;;  %7697 = vmatprep.subr.bf16.mxu1 %v10488_v8  ;;  %v10569_v7 = vld [vmem:[%s15120_s1 + $0xca4] ss:$16 sps:$4 sm:$0xff]   ;;  %v10572_v8 = vld [vmem:[%s15120_s1 + $0xcac] ss:$16 sps:$4 sm:$0xff]  }
 0x15f   :  { %6850 = vmatpush1.bf16.msra.mxu0 %v10483_v9  ;;  %7698 = vmatpush1.bf16.msra.mxu1 %v10486_v10  ;;  %v10567_v9 = vld [vmem:[%s15120_s1 + $0xca0] ss:$16 sps:$4 sm:$0xff]   ;;  %v10570_v10 = vld [vmem:[%s15120_s1 + $0xca8] ss:$16 sps:$4 sm:$0xff]  }
 0x160   :  { %6851 = vmatprep.subr.bf16.mxu0 %v10491_v11  ;;  %7699 = vmatprep.subr.bf16.mxu1 %v10494_v12  ;;  %v10575_v11 = vld [vmem:[%s15120_s1 + $0xcc4] ss:$16 sps:$4 sm:$0xff]   ;;  %v10578_v12 = vld [vmem:[%s15120_s1 + $0xccc] ss:$16 sps:$4 sm:$0xff]  }
 0x163   :  { %6852 = vmatpush1.bf16.msra.mxu0 %v10489_v13  ;;  %7700 = vmatpush1.bf16.msra.mxu1 %v10492_v14  ;;  %v10573_v13 = vld [vmem:[%s15120_s1 + $0xcc0] ss:$16 sps:$4 sm:$0xff]   ;;  %v10576_v14 = vld [vmem:[%s15120_s1 + $0xcc8] ss:$16 sps:$4 sm:$0xff]  }
 0x164   :  { %6853 = vmatprep.subr.bf16.mxu0 %v10497_v15  ;;  %7701 = vmatprep.subr.bf16.mxu1 %v10500_v16  ;;  %v10581_v15 = vld [vmem:[%s15120_s1 + $0xce4] ss:$16 sps:$4 sm:$0xff]   ;;  %v10584_v16 = vld [vmem:[%s15120_s1 + $0xcec] ss:$16 sps:$4 sm:$0xff]  }
 0x167   :  { %6854 = vmatpush1.bf16.msra.mxu0 %v10495_v17  ;;  %7702 = vmatpush1.bf16.msra.mxu1 %v10498_v18  ;;  %v10579_v17 = vld [vmem:[%s15120_s1 + $0xce0] ss:$16 sps:$4 sm:$0xff]   ;;  %v10582_v18 = vld [vmem:[%s15120_s1 + $0xce8] ss:$16 sps:$4 sm:$0xff]  }
 0x168   :  { %6855 = vmatprep.subr.bf16.mxu0 %v10503_v19  ;;  %7703 = vmatprep.subr.bf16.mxu1 %v10506_v20  ;;  %v10587_v19 = vld [vmem:[%s15120_s1 + $0xd04] ss:$16 sps:$4 sm:$0xff]   ;;  %v10590_v20 = vld [vmem:[%s15120_s1 + $0xd0c] ss:$16 sps:$4 sm:$0xff]  }
 0x16b   :  { %6856 = vmatpush1.bf16.msra.mxu0 %v10501_v21  ;;  %7704 = vmatpush1.bf16.msra.mxu1 %v10504_v22  ;;  %v10585_v21 = vld [vmem:[%s15120_s1 + $0xd00] ss:$16 sps:$4 sm:$0xff]   ;;  %v10588_v22 = vld [vmem:[%s15120_s1 + $0xd08] ss:$16 sps:$4 sm:$0xff]  }
 0x16c   :  { %6857 = vmatprep.subr.bf16.mxu0 %v10509_v23  ;;  %7705 = vmatprep.subr.bf16.mxu1 %v10512_v24  ;;  %v10593_v23 = vld [vmem:[%s15120_s1 + $0xd24] ss:$16 sps:$4 sm:$0xff]   ;;  %v10596_v24 = vld [vmem:[%s15120_s1 + $0xd2c] ss:$16 sps:$4 sm:$0xff]  }
 0x16f   :  { %6858 = vmatpush1.bf16.msra.mxu0 %v10507_v26  ;;  %7706 = vmatpush1.bf16.msra.mxu1 %v10510_v25  ;;  %v10591_v26 = vld [vmem:[%s15120_s1 + $0xd20] ss:$16 sps:$4 sm:$0xff]   ;;  %v10594_v25 = vld [vmem:[%s15120_s1 + $0xd28] ss:$16 sps:$4 sm:$0xff]  }
 0x170   :  { %6859 = vmatprep.subr.bf16.mxu0 %v10515_v27  ;;  %7707 = vmatprep.subr.bf16.mxu1 %v10518_v28  ;;  %v10599_v27 = vld [vmem:[%s15120_s1 + $0xd44] ss:$16 sps:$4 sm:$0xff]   ;;  %v10602_v28 = vld [vmem:[%s15120_s1 + $0xd4c] ss:$16 sps:$4 sm:$0xff]  }
 0x173   :  { %6860 = vmatpush1.bf16.msra.mxu0 %v10513_v29  ;;  %7708 = vmatpush1.bf16.msra.mxu1 %v10516_v30  ;;  %v10597_v29 = vld [vmem:[%s15120_s1 + $0xd40] ss:$16 sps:$4 sm:$0xff]   ;;  %v10600_v30 = vld [vmem:[%s15120_s1 + $0xd48] ss:$16 sps:$4 sm:$0xff]  }
 0x174   :  { %6861 = vmatprep.subr.bf16.mxu0 %v10521_v31  ;;  %7709 = vmatprep.subr.bf16.mxu1 %v10524_v32  ;;  %v10605_v31 = vld [vmem:[%s15120_s1 + $0xd64] ss:$16 sps:$4 sm:$0xff]   ;;  %v10608_v32 = vld [vmem:[%s15120_s1 + $0xd6c] ss:$16 sps:$4 sm:$0xff]  }
 0x177   :  { %6862 = vmatpush1.bf16.msra.mxu0 %v10519_v34  ;;  %7710 = vmatpush1.bf16.msra.mxu1 %v10522_v36  ;;  %v10603_v34 = vld [vmem:[%s15120_s1 + $0xd60] ss:$16 sps:$4 sm:$0xff]   ;;  %v10606_v36 = vld [vmem:[%s15120_s1 + $0xd68] ss:$16 sps:$4 sm:$0xff]  }
 0x178   :  { %6863 = vmatprep.subr.bf16.mxu0 %v10527_v33  ;;  %7711 = vmatprep.subr.bf16.mxu1 %v10530_v35  ;;  %v10611_v33 = vld [vmem:[%s15120_s1 + $0xd84] ss:$16 sps:$4 sm:$0xff]   ;;  %v10614_v35 = vld [vmem:[%s15120_s1 + $0xd8c] ss:$16 sps:$4 sm:$0xff]  }
 0x17b   :  { %6864 = vmatpush1.bf16.msra.mxu0 %v10525_v37  ;;  %7712 = vmatpush1.bf16.msra.mxu1 %v10528_v38  ;;  %v10609_v37 = vld [vmem:[%s15120_s1 + $0xd80] ss:$16 sps:$4 sm:$0xff]   ;;  %v10612_v38 = vld [vmem:[%s15120_s1 + $0xd88] ss:$16 sps:$4 sm:$0xff]  }
 0x17c   :  { %6865 = vmatprep.subr.bf16.mxu0 %v10533_v39  ;;  %7713 = vmatprep.subr.bf16.mxu1 %v10536_v40  ;;  %v10617_v39 = vld [vmem:[%s15120_s1 + $0xda4] ss:$16 sps:$4 sm:$0xff]   ;;  %v10620_v40 = vld [vmem:[%s15120_s1 + $0xdac] ss:$16 sps:$4 sm:$0xff]  }
 0x17f   :  { %6866 = vmatpush1.bf16.msra.mxu0 %v10531_v42  ;;  %7714 = vmatpush1.bf16.msra.mxu1 %v10534_v44  ;;  %v10615_v42 = vld [vmem:[%s15120_s1 + $0xda0] ss:$16 sps:$4 sm:$0xff]   ;;  %v10618_v44 = vld [vmem:[%s15120_s1 + $0xda8] ss:$16 sps:$4 sm:$0xff]  }
 0x180   :  { %6888 = vmatprep.subr.bf16.mxu0 %v10539_v41  ;;  %7736 = vmatprep.subr.bf16.mxu1 %v10542_v43  ;;  %v10623_v41 = vld [vmem:[%s15120_s1 + $0xdc4] ss:$16 sps:$4 sm:$0xff]   ;;  %v10626_v43 = vld [vmem:[%s15120_s1 + $0xdcc] ss:$16 sps:$4 sm:$0xff]  }
 0x182   :  { %6868 = vmatmul.mubr.bf16.vlgmr.msra.gmra.mrb[0].mxu0 %v8610_v47  ;;  %7716 = vmatmul.mubr.bf16.vlgmr.msra.gmra.mrb[0].mxu1 %v8610_v47  ;;  %v10629_v47 = vld [vmem:[%s15120_s1 + $0xde4] ss:$16 sps:$4 sm:$0xff]  }
 0x183   :  { %6889 = vmatpush1.bf16.msra.mxu0 %v10537_v48  ;;  %7737 = vmatpush1.bf16.msra.mxu1 %v10540_v51  ;;  %v10632_v48 = vld [vmem:[%s15120_s1 + $0xdec] ss:$16 sps:$4 sm:$0xff]   ;;  %v10627_v51 = vld [vmem:[%s15120_s1 + $0xde0] ss:$16 sps:$4 sm:$0xff]  }
 0x184   :  { %6890 = vmatprep.subr.bf16.mxu0 %v10545_v52  ;;  %7738 = vmatprep.subr.bf16.mxu1 %v10548_v49  ;;  %v10630_v52 = vld [vmem:[%s15120_s1 + $0xde8] ss:$16 sps:$4 sm:$0xff]   ;;  %v10635_v49 = vld [vmem:[%s15120_s1 + $0xe04] ss:$16 sps:$4 sm:$0xff]  }
 0x185   :  { %6877 = vmatprep.mubr.bf16.mxu0 %v8643_v54  ;;  %7725 = vmatprep.mubr.bf16.mxu1 %v8643_v54  ;;  %v74_v54 = vld [vmem:[%s15121_s0 + $0x1b0] sm:$0xff] }
 0x187   :  { %6891 = vmatpush1.bf16.msra.mxu0 %v10543_v50  ;;  %7739 = vmatpush1.bf16.msra.mxu1 %v10546_v53  ;;  %v10638_v50 = vld [vmem:[%s15120_s1 + $0xe0c] ss:$16 sps:$4 sm:$0xff]   ;;  %v58_v53 = vld [vmem:[%s15121_s0 + $0x130] sm:$0xff] }
 0x188   :  { %6892 = vmatprep.subr.bf16.mxu0 %v10551_v55  ;;  %7740 = vmatprep.subr.bf16.mxu1 %v10554_v56  ;;  %v8612_v55 = vcombine.low %v12833_v57, %v12838_v58  ;;  %v10633_v56 = vld [vmem:[%s15120_s1 + $0xe00] ss:$16 sps:$4 sm:$0xff]   ;;  %v10644_v57 = vld [vmem:[%s15120_s1 + $0xe2c] ss:$16 sps:$4 sm:$0xff]  }
 0x189   :  { %v10639_v58 = vld [vmem:[%s15120_s1 + $0xe20] ss:$16 sps:$4 sm:$0xff]  }
 0x18a   :  { %6878 = vmatmul.mubr.bf16.gmra.mrb[4].mxu0 %v8642_v59  ;;  %7726 = vmatmul.mubr.bf16.gmra.mrb[4].mxu1 %v8642_v59  ;;  %v10636_v59 = vld [vmem:[%s15120_s1 + $0xe08] ss:$16 sps:$4 sm:$0xff]  }
 0x18b   :  { %6893 = vmatpush1.bf16.msra.mxu0 %v10549_v60  ;;  %7741 = vmatpush1.bf16.msra.mxu1 %v10552_v61  ;;  %v10641_v60 = vld [vmem:[%s15120_s1 + $0xe24] ss:$16 sps:$4 sm:$0xff]   ;;  %v10642_v61 = vld [vmem:[%s15120_s1 + $0xe28] ss:$16 sps:$4 sm:$0xff]  }
 0x18c   :  { %6894 = vmatprep.subr.bf16.mxu0 %v10557_v62  ;;  %7742 = vmatprep.subr.bf16.mxu1 %v10560_v63  ;;  %v8645_v62 = vcombine.high %v58_v53, %v74_v54  ;;  %v10647_v63 = vld [vmem:[%s15120_s1 + $0xe44] ss:$16 sps:$4 sm:$0xff]  }
 0x18d   :  { %6920 = vmatprep.mubr.bf16.mxu0 %v8613_v0  ;;  %7768 = vmatprep.mubr.bf16.mxu1 %v8613_v0  ;;  %v10650_v0 = vld [vmem:[%s15120_s1 + $0xe4c] ss:$16 sps:$4 sm:$0xff]  }
 0x18f   :  { %6895 = vmatpush1.bf16.msra.mxu0 %v10555_v1  ;;  %7743 = vmatpush1.bf16.msra.mxu1 %v10558_v2  ;;  %v13045_v1 = vld [vmem:[%s15121_s0 + $0x38] sm:$0xff] }
 0x190   :  { %6896 = vmatprep.subr.bf16.mxu0 %v10563_v3  ;;  %7744 = vmatprep.subr.bf16.mxu1 %v10566_v4  ;;  %v13050_v2 = vld [vmem:[%s15121_s0 + $0xb8] sm:$0xff]  ;;  %v8644_v3 = vcombine.low %v58_v53, %v74_v54  ;;  %v10645_v4 = vld [vmem:[%s15120_s1 + $0xe40] ss:$16 sps:$4 sm:$0xff]  }
 0x191   :  { %v10717_v53 = vld [vmem:[%s15120_s1 + $0xfc0] ss:$16 sps:$4 sm:$0xff]   ;;  %v10720_v54 = vld [vmem:[%s15120_s1 + $0xfc8] ss:$16 sps:$4 sm:$0xff]  }
 0x193   :  { %6897 = vmatpush1.bf16.msra.mxu0 %v10561_v5  ;;  %7745 = vmatpush1.bf16.msra.mxu1 %v10564_v6  ;;  %v10648_v5 = vld [vmem:[%s15120_s1 + $0xe48] ss:$16 sps:$4 sm:$0xff]   ;;  %v10653_v6 = vld [vmem:[%s15120_s1 + $0xe64] ss:$16 sps:$4 sm:$0xff]  }
 0x194   :  { %6898 = vmatprep.subr.bf16.mxu0 %v10569_v7  ;;  %7746 = vmatprep.subr.bf16.mxu1 %v10572_v8  ;;  %v10656_v7 = vld [vmem:[%s15120_s1 + $0xe6c] ss:$16 sps:$4 sm:$0xff]   ;;  %v8615_v8 = vcombine.high %v13045_v1, %v13050_v2 }
 0x197   :  { %6899 = vmatpush1.bf16.msra.mxu0 %v10567_v9  ;;  %7747 = vmatpush1.bf16.msra.mxu1 %v10570_v10  ;;  %v10651_v9 = vld [vmem:[%s15120_s1 + $0xe60] ss:$16 sps:$4 sm:$0xff]   ;;  %v10654_v10 = vld [vmem:[%s15120_s1 + $0xe68] ss:$16 sps:$4 sm:$0xff]  }
 0x198   :  { %6900 = vmatprep.subr.bf16.mxu0 %v10575_v11  ;;  %7748 = vmatprep.subr.bf16.mxu1 %v10578_v12  ;;  %v10659_v11 = vld [vmem:[%s15120_s1 + $0xe84] ss:$16 sps:$4 sm:$0xff]   ;;  %v10662_v12 = vld [vmem:[%s15120_s1 + $0xe8c] ss:$16 sps:$4 sm:$0xff]  }
 0x19b   :  { %6901 = vmatpush1.bf16.msra.mxu0 %v10573_v13  ;;  %7749 = vmatpush1.bf16.msra.mxu1 %v10576_v14  ;;  %v10657_v13 = vld [vmem:[%s15120_s1 + $0xe80] ss:$16 sps:$4 sm:$0xff]   ;;  %v10660_v14 = vld [vmem:[%s15120_s1 + $0xe88] ss:$16 sps:$4 sm:$0xff]  }
 0x19c   :  { %6902 = vmatprep.subr.bf16.mxu0 %v10581_v15  ;;  %7750 = vmatprep.subr.bf16.mxu1 %v10584_v16  ;;  %v10665_v15 = vld [vmem:[%s15120_s1 + $0xea4] ss:$16 sps:$4 sm:$0xff]   ;;  %v10668_v16 = vld [vmem:[%s15120_s1 + $0xeac] ss:$16 sps:$4 sm:$0xff]  }
 0x19f   :  { %6903 = vmatpush1.bf16.msra.mxu0 %v10579_v17  ;;  %7751 = vmatpush1.bf16.msra.mxu1 %v10582_v18  ;;  %v10663_v17 = vld [vmem:[%s15120_s1 + $0xea0] ss:$16 sps:$4 sm:$0xff]   ;;  %v10666_v18 = vld [vmem:[%s15120_s1 + $0xea8] ss:$16 sps:$4 sm:$0xff]  }
 0x1a0   :  { %6904 = vmatprep.subr.bf16.mxu0 %v10587_v19  ;;  %7752 = vmatprep.subr.bf16.mxu1 %v10590_v20  ;;  %v10671_v19 = vld [vmem:[%s15120_s1 + $0xec4] ss:$16 sps:$4 sm:$0xff]   ;;  %v10674_v20 = vld [vmem:[%s15120_s1 + $0xecc] ss:$16 sps:$4 sm:$0xff]  }
 0x1a3   :  { %6905 = vmatpush1.bf16.msra.mxu0 %v10585_v21  ;;  %7753 = vmatpush1.bf16.msra.mxu1 %v10588_v22  ;;  %v10669_v21 = vld [vmem:[%s15120_s1 + $0xec0] ss:$16 sps:$4 sm:$0xff]   ;;  %v10672_v22 = vld [vmem:[%s15120_s1 + $0xec8] ss:$16 sps:$4 sm:$0xff]  }
 0x1a4   :  { %6906 = vmatprep.subr.bf16.mxu0 %v10593_v23  ;;  %7754 = vmatprep.subr.bf16.mxu1 %v10596_v24  ;;  %v10677_v23 = vld [vmem:[%s15120_s1 + $0xee4] ss:$16 sps:$4 sm:$0xff]   ;;  %v10680_v24 = vld [vmem:[%s15120_s1 + $0xeec] ss:$16 sps:$4 sm:$0xff]  }
 0x1a7   :  { %6907 = vmatpush1.bf16.msra.mxu0 %v10591_v26  ;;  %7755 = vmatpush1.bf16.msra.mxu1 %v10594_v25  ;;  %v10675_v26 = vld [vmem:[%s15120_s1 + $0xee0] ss:$16 sps:$4 sm:$0xff]   ;;  %v10678_v25 = vld [vmem:[%s15120_s1 + $0xee8] ss:$16 sps:$4 sm:$0xff]  }
 0x1a8   :  { %6908 = vmatprep.subr.bf16.mxu0 %v10599_v27  ;;  %7756 = vmatprep.subr.bf16.mxu1 %v10602_v28  ;;  %v10683_v27 = vld [vmem:[%s15120_s1 + $0xf04] ss:$16 sps:$4 sm:$0xff]   ;;  %v10686_v28 = vld [vmem:[%s15120_s1 + $0xf0c] ss:$16 sps:$4 sm:$0xff]  }
 0x1ab   :  { %6909 = vmatpush1.bf16.msra.mxu0 %v10597_v29  ;;  %7757 = vmatpush1.bf16.msra.mxu1 %v10600_v30  ;;  %v10681_v29 = vld [vmem:[%s15120_s1 + $0xf00] ss:$16 sps:$4 sm:$0xff]   ;;  %v10684_v30 = vld [vmem:[%s15120_s1 + $0xf08] ss:$16 sps:$4 sm:$0xff]  }
 0x1ac   :  { %6910 = vmatprep.subr.bf16.mxu0 %v10605_v31  ;;  %7758 = vmatprep.subr.bf16.mxu1 %v10608_v32  ;;  %v10689_v31 = vld [vmem:[%s15120_s1 + $0xf24] ss:$16 sps:$4 sm:$0xff]   ;;  %v10692_v32 = vld [vmem:[%s15120_s1 + $0xf2c] ss:$16 sps:$4 sm:$0xff]  }
 0x1af   :  { %6911 = vmatpush1.bf16.msra.mxu0 %v10603_v34  ;;  %7759 = vmatpush1.bf16.msra.mxu1 %v10606_v36  ;;  %v10687_v34 = vld [vmem:[%s15120_s1 + $0xf20] ss:$16 sps:$4 sm:$0xff]   ;;  %v10690_v36 = vld [vmem:[%s15120_s1 + $0xf28] ss:$16 sps:$4 sm:$0xff]  }
 0x1b0   :  { %6912 = vmatprep.subr.bf16.mxu0 %v10611_v33  ;;  %7760 = vmatprep.subr.bf16.mxu1 %v10614_v35  ;;  %v10695_v33 = vld [vmem:[%s15120_s1 + $0xf44] ss:$16 sps:$4 sm:$0xff]   ;;  %v10698_v35 = vld [vmem:[%s15120_s1 + $0xf4c] ss:$16 sps:$4 sm:$0xff]  }
 0x1b3   :  { %6913 = vmatpush1.bf16.msra.mxu0 %v10609_v37  ;;  %7761 = vmatpush1.bf16.msra.mxu1 %v10612_v38  ;;  %v10693_v37 = vld [vmem:[%s15120_s1 + $0xf40] ss:$16 sps:$4 sm:$0xff]   ;;  %v10696_v38 = vld [vmem:[%s15120_s1 + $0xf48] ss:$16 sps:$4 sm:$0xff]  }
 0x1b4   :  { %6914 = vmatprep.subr.bf16.mxu0 %v10617_v39  ;;  %7762 = vmatprep.subr.bf16.mxu1 %v10620_v40  ;;  %v10701_v39 = vld [vmem:[%s15120_s1 + $0xf64] ss:$16 sps:$4 sm:$0xff]   ;;  %v10704_v40 = vld [vmem:[%s15120_s1 + $0xf6c] ss:$16 sps:$4 sm:$0xff]  }
 0x1b7   :  { %6915 = vmatpush1.bf16.msra.mxu0 %v10615_v42  ;;  %7763 = vmatpush1.bf16.msra.mxu1 %v10618_v44  ;;  %v10699_v42 = vld [vmem:[%s15120_s1 + $0xf60] ss:$16 sps:$4 sm:$0xff]   ;;  %v10702_v44 = vld [vmem:[%s15120_s1 + $0xf68] ss:$16 sps:$4 sm:$0xff]  }
 0x1b8   :  { %6916 = vmatprep.subr.bf16.mxu0 %v10623_v41  ;;  %7764 = vmatprep.subr.bf16.mxu1 %v10626_v43  ;;  %v10707_v41 = vld [vmem:[%s15120_s1 + $0xf84] ss:$16 sps:$4 sm:$0xff]   ;;  %v10710_v43 = vld [vmem:[%s15120_s1 + $0xf8c] ss:$16 sps:$4 sm:$0xff]  }
 0x1bb   :  { %6917 = vmatpush1.bf16.msra.mxu0 %v10621_v45  ;;  %7765 = vmatpush1.bf16.msra.mxu1 %v10624_v46  ;;  %v10705_v45 = vld [vmem:[%s15120_s1 + $0xf80] ss:$16 sps:$4 sm:$0xff]   ;;  %v10708_v46 = vld [vmem:[%s15120_s1 + $0xf88] ss:$16 sps:$4 sm:$0xff]  }
 0x1bc   :  { %6918 = vmatprep.subr.bf16.mxu0 %v10629_v47  ;;  %7766 = vmatprep.subr.bf16.mxu1 %v10632_v48  ;;  %v10713_v47 = vld [vmem:[%s15120_s1 + $0xfa4] ss:$16 sps:$4 sm:$0xff]   ;;  %v10716_v48 = vld [vmem:[%s15120_s1 + $0xfac] ss:$16 sps:$4 sm:$0xff]  }
 0x1bf   :  { %6919 = vmatpush1.bf16.msra.mxu0 %v10627_v51  ;;  %7767 = vmatpush1.bf16.msra.mxu1 %v10630_v52  ;;  %v10711_v51 = vld [vmem:[%s15120_s1 + $0xfa0] ss:$16 sps:$4 sm:$0xff]   ;;  %v10714_v52 = vld [vmem:[%s15120_s1 + $0xfa8] ss:$16 sps:$4 sm:$0xff]  }
 0x1c0   :  { %6941 = vmatprep.subr.bf16.mxu0 %v10635_v49  ;;  %7789 = vmatprep.subr.bf16.mxu1 %v10638_v50  ;;  %v10719_v49 = vld [vmem:[%s15120_s1 + $0xfc4] ss:$16 sps:$4 sm:$0xff]   ;;  %v10722_v50 = vld [vmem:[%s15120_s1 + $0xfcc] ss:$16 sps:$4 sm:$0xff]  }
 0x1c2   :  { %6921 = vmatmul.mubr.bf16.vlgmr.msra.gmra.mrb[0].mxu0 %v8612_v55  ;;  %7769 = vmatmul.mubr.bf16.vlgmr.msra.gmra.mrb[0].mxu1 %v8612_v55  ;;  %v10725_v55 = vld [vmem:[%s15120_s1 + $0xfe4] ss:$16 sps:$4 sm:$0xff]  }
 0x1c3   :  { %6942 = vmatpush1.bf16.msra.mxu0 %v10633_v56  ;;  %7790 = vmatpush1.bf16.msra.mxu1 %v10636_v59  ;;  %v10728_v56 = vld [vmem:[%s15120_s1 + $0xfec] ss:$16 sps:$4 sm:$0xff]   ;;  %v10723_v59 = vld [vmem:[%s15120_s1 + $0xfe0] ss:$16 sps:$4 sm:$0xff]  }
 0x1c4   :  { %6943 = vmatprep.subr.bf16.mxu0 %v10641_v60  ;;  %7791 = vmatprep.subr.bf16.mxu1 %v10644_v57  ;;  %v10726_v60 = vld [vmem:[%s15120_s1 + $0xfe8] ss:$16 sps:$4 sm:$0xff]   ;;  %v10731_v57 = vld [vmem:[%s15120_s1 + $0x1004] ss:$16 sps:$4 sm:$0xff]  }
 0x1c5   :  { %6930 = vmatprep.mubr.bf16.mxu0 %v8645_v62  ;;  %7778 = vmatprep.mubr.bf16.mxu1 %v8645_v62  ;;  %v75_v62 = vld [vmem:[%s15121_s0 + $0x1b8] sm:$0xff] }
 0x1c7   :  { %6944 = vmatpush1.bf16.msra.mxu0 %v10639_v58  ;;  %7792 = vmatpush1.bf16.msra.mxu1 %v10642_v61  ;;  %v10734_v58 = vld [vmem:[%s15120_s1 + $0x100c] ss:$16 sps:$4 sm:$0xff]  }
 0x1c8   :  { %6945 = vmatprep.subr.bf16.mxu0 %v10647_v63  ;;  %7793 = vmatprep.subr.bf16.mxu1 %v10650_v0  ;;  %v59_v61 = vld [vmem:[%s15121_s0 + $0x138] sm:$0xff]  ;;  %v8614_v63 = vcombine.low %v13045_v1, %v13050_v2  ;;  %v10729_v0 = vld [vmem:[%s15120_s1 + $0x1000] ss:$16 sps:$4 sm:$0xff]  }
 0x1c9   :  { %v10740_v1 = vld [vmem:[%s15120_s1 + $0x102c] ss:$16 sps:$4 sm:$0xff]   ;;  %v10735_v2 = vld [vmem:[%s15120_s1 + $0x1020] ss:$16 sps:$4 sm:$0xff]  }
 0x1ca   :  { %6931 = vmatmul.mubr.bf16.gmra.mrb[4].mxu0 %v8644_v3  ;;  %7779 = vmatmul.mubr.bf16.gmra.mrb[4].mxu1 %v8644_v3  ;;  %v10732_v3 = vld [vmem:[%s15120_s1 + $0x1008] ss:$16 sps:$4 sm:$0xff]  }
 0x1cb   :  { %6946 = vmatpush1.bf16.msra.mxu0 %v10645_v4  ;;  %7794 = vmatpush1.bf16.msra.mxu1 %v10648_v5  ;;  %v10737_v4 = vld [vmem:[%s15120_s1 + $0x1024] ss:$16 sps:$4 sm:$0xff]   ;;  %v10738_v5 = vld [vmem:[%s15120_s1 + $0x1028] ss:$16 sps:$4 sm:$0xff]  }
 0x1cc   :  { %6947 = vmatprep.subr.bf16.mxu0 %v10653_v6  ;;  %7795 = vmatprep.subr.bf16.mxu1 %v10656_v7  ;;  %v8647_v6 = vcombine.high %v59_v61, %v75_v62  ;;  %v10743_v7 = vld [vmem:[%s15120_s1 + $0x1044] ss:$16 sps:$4 sm:$0xff]  }
 0x1cd   :  { %6973 = vmatprep.mubr.bf16.mxu0 %v8615_v8  ;;  %7821 = vmatprep.mubr.bf16.mxu1 %v8615_v8  ;;  %v10746_v8 = vld [vmem:[%s15120_s1 + $0x104c] ss:$16 sps:$4 sm:$0xff]  }
 0x1cf   :  { %6948 = vmatpush1.bf16.msra.mxu0 %v10651_v9  ;;  %7796 = vmatpush1.bf16.msra.mxu1 %v10654_v10  ;;  %v13257_v9 = vld [vmem:[%s15121_s0 + $0x40] sm:$0xff] }
 0x1d0   :  { %6949 = vmatprep.subr.bf16.mxu0 %v10659_v11  ;;  %7797 = vmatprep.subr.bf16.mxu1 %v10662_v12  ;;  %v13262_v10 = vld [vmem:[%s15121_s0 + $0xc0] sm:$0xff]  ;;  %v8646_v11 = vcombine.low %v59_v61, %v75_v62  ;;  %v10816_v62 = vld [vmem:[%s15120_s1 + $0x11c8] ss:$16 sps:$4 sm:$0xff]  }
 0x1d1   :  { %v10741_v12 = vld [vmem:[%s15120_s1 + $0x1040] ss:$16 sps:$4 sm:$0xff]  }
 0x1d2   :  { %v10813_v61 = vld [vmem:[%s15120_s1 + $0x11c0] ss:$16 sps:$4 sm:$0xff]  }
 0x1d3   :  { %6950 = vmatpush1.bf16.msra.mxu0 %v10657_v13  ;;  %7798 = vmatpush1.bf16.msra.mxu1 %v10660_v14  ;;  %v10744_v13 = vld [vmem:[%s15120_s1 + $0x1048] ss:$16 sps:$4 sm:$0xff]   ;;  %v10749_v14 = vld [vmem:[%s15120_s1 + $0x1064] ss:$16 sps:$4 sm:$0xff]  }
 0x1d4   :  { %6951 = vmatprep.subr.bf16.mxu0 %v10665_v15  ;;  %7799 = vmatprep.subr.bf16.mxu1 %v10668_v16  ;;  %v10752_v15 = vld [vmem:[%s15120_s1 + $0x106c] ss:$16 sps:$4 sm:$0xff]   ;;  %v8617_v16 = vcombine.high %v13257_v9, %v13262_v10 }
 0x1d7   :  { %6952 = vmatpush1.bf16.msra.mxu0 %v10663_v17  ;;  %7800 = vmatpush1.bf16.msra.mxu1 %v10666_v18  ;;  %v10747_v17 = vld [vmem:[%s15120_s1 + $0x1060] ss:$16 sps:$4 sm:$0xff]   ;;  %v10750_v18 = vld [vmem:[%s15120_s1 + $0x1068] ss:$16 sps:$4 sm:$0xff]  }
 0x1d8   :  { %6953 = vmatprep.subr.bf16.mxu0 %v10671_v19  ;;  %7801 = vmatprep.subr.bf16.mxu1 %v10674_v20  ;;  %v10755_v19 = vld [vmem:[%s15120_s1 + $0x1084] ss:$16 sps:$4 sm:$0xff]   ;;  %v10758_v20 = vld [vmem:[%s15120_s1 + $0x108c] ss:$16 sps:$4 sm:$0xff]  }
 0x1db   :  { %6954 = vmatpush1.bf16.msra.mxu0 %v10669_v21  ;;  %7802 = vmatpush1.bf16.msra.mxu1 %v10672_v22  ;;  %v10753_v21 = vld [vmem:[%s15120_s1 + $0x1080] ss:$16 sps:$4 sm:$0xff]   ;;  %v10756_v22 = vld [vmem:[%s15120_s1 + $0x1088] ss:$16 sps:$4 sm:$0xff]  }
 0x1dc   :  { %6955 = vmatprep.subr.bf16.mxu0 %v10677_v23  ;;  %7803 = vmatprep.subr.bf16.mxu1 %v10680_v24  ;;  %v10761_v23 = vld [vmem:[%s15120_s1 + $0x10a4] ss:$16 sps:$4 sm:$0xff]   ;;  %v10764_v24 = vld [vmem:[%s15120_s1 + $0x10ac] ss:$16 sps:$4 sm:$0xff]  }
 0x1df   :  { %6956 = vmatpush1.bf16.msra.mxu0 %v10675_v26  ;;  %7804 = vmatpush1.bf16.msra.mxu1 %v10678_v25  ;;  %v10759_v26 = vld [vmem:[%s15120_s1 + $0x10a0] ss:$16 sps:$4 sm:$0xff]   ;;  %v10762_v25 = vld [vmem:[%s15120_s1 + $0x10a8] ss:$16 sps:$4 sm:$0xff]  }
 0x1e0   :  { %6957 = vmatprep.subr.bf16.mxu0 %v10683_v27  ;;  %7805 = vmatprep.subr.bf16.mxu1 %v10686_v28  ;;  %v10767_v27 = vld [vmem:[%s15120_s1 + $0x10c4] ss:$16 sps:$4 sm:$0xff]   ;;  %v10770_v28 = vld [vmem:[%s15120_s1 + $0x10cc] ss:$16 sps:$4 sm:$0xff]  }
 0x1e3   :  { %6958 = vmatpush1.bf16.msra.mxu0 %v10681_v29  ;;  %7806 = vmatpush1.bf16.msra.mxu1 %v10684_v30  ;;  %v10765_v29 = vld [vmem:[%s15120_s1 + $0x10c0] ss:$16 sps:$4 sm:$0xff]   ;;  %v10768_v30 = vld [vmem:[%s15120_s1 + $0x10c8] ss:$16 sps:$4 sm:$0xff]  }
 0x1e4   :  { %6959 = vmatprep.subr.bf16.mxu0 %v10689_v31  ;;  %7807 = vmatprep.subr.bf16.mxu1 %v10692_v32  ;;  %v10773_v31 = vld [vmem:[%s15120_s1 + $0x10e4] ss:$16 sps:$4 sm:$0xff]   ;;  %v10776_v32 = vld [vmem:[%s15120_s1 + $0x10ec] ss:$16 sps:$4 sm:$0xff]  }
 0x1e7   :  { %6960 = vmatpush1.bf16.msra.mxu0 %v10687_v34  ;;  %7808 = vmatpush1.bf16.msra.mxu1 %v10690_v36  ;;  %v10771_v34 = vld [vmem:[%s15120_s1 + $0x10e0] ss:$16 sps:$4 sm:$0xff]   ;;  %v10774_v36 = vld [vmem:[%s15120_s1 + $0x10e8] ss:$16 sps:$4 sm:$0xff]  }
 0x1e8   :  { %6961 = vmatprep.subr.bf16.mxu0 %v10695_v33  ;;  %7809 = vmatprep.subr.bf16.mxu1 %v10698_v35  ;;  %v10779_v33 = vld [vmem:[%s15120_s1 + $0x1104] ss:$16 sps:$4 sm:$0xff]   ;;  %v10782_v35 = vld [vmem:[%s15120_s1 + $0x110c] ss:$16 sps:$4 sm:$0xff]  }
 0x1eb   :  { %6962 = vmatpush1.bf16.msra.mxu0 %v10693_v37  ;;  %7810 = vmatpush1.bf16.msra.mxu1 %v10696_v38  ;;  %v10777_v37 = vld [vmem:[%s15120_s1 + $0x1100] ss:$16 sps:$4 sm:$0xff]   ;;  %v10780_v38 = vld [vmem:[%s15120_s1 + $0x1108] ss:$16 sps:$4 sm:$0xff]  }
 0x1ec   :  { %6963 = vmatprep.subr.bf16.mxu0 %v10701_v39  ;;  %7811 = vmatprep.subr.bf16.mxu1 %v10704_v40  ;;  %v10785_v39 = vld [vmem:[%s15120_s1 + $0x1124] ss:$16 sps:$4 sm:$0xff]   ;;  %v10788_v40 = vld [vmem:[%s15120_s1 + $0x112c] ss:$16 sps:$4 sm:$0xff]  }
 0x1ef   :  { %6964 = vmatpush1.bf16.msra.mxu0 %v10699_v42  ;;  %7812 = vmatpush1.bf16.msra.mxu1 %v10702_v44  ;;  %v10783_v42 = vld [vmem:[%s15120_s1 + $0x1120] ss:$16 sps:$4 sm:$0xff]   ;;  %v10786_v44 = vld [vmem:[%s15120_s1 + $0x1128] ss:$16 sps:$4 sm:$0xff]  }
 0x1f0   :  { %6965 = vmatprep.subr.bf16.mxu0 %v10707_v41  ;;  %7813 = vmatprep.subr.bf16.mxu1 %v10710_v43  ;;  %v10791_v41 = vld [vmem:[%s15120_s1 + $0x1144] ss:$16 sps:$4 sm:$0xff]   ;;  %v10794_v43 = vld [vmem:[%s15120_s1 + $0x114c] ss:$16 sps:$4 sm:$0xff]  }
 0x1f3   :  { %6966 = vmatpush1.bf16.msra.mxu0 %v10705_v45  ;;  %7814 = vmatpush1.bf16.msra.mxu1 %v10708_v46  ;;  %v10789_v45 = vld [vmem:[%s15120_s1 + $0x1140] ss:$16 sps:$4 sm:$0xff]   ;;  %v10792_v46 = vld [vmem:[%s15120_s1 + $0x1148] ss:$16 sps:$4 sm:$0xff]  }
 0x1f4   :  { %6967 = vmatprep.subr.bf16.mxu0 %v10713_v47  ;;  %7815 = vmatprep.subr.bf16.mxu1 %v10716_v48  ;;  %v10797_v47 = vld [vmem:[%s15120_s1 + $0x1164] ss:$16 sps:$4 sm:$0xff]   ;;  %v10800_v48 = vld [vmem:[%s15120_s1 + $0x116c] ss:$16 sps:$4 sm:$0xff]  }
 0x1f7   :  { %6968 = vmatpush1.bf16.msra.mxu0 %v10711_v51  ;;  %7816 = vmatpush1.bf16.msra.mxu1 %v10714_v52  ;;  %v10795_v51 = vld [vmem:[%s15120_s1 + $0x1160] ss:$16 sps:$4 sm:$0xff]   ;;  %v10798_v52 = vld [vmem:[%s15120_s1 + $0x1168] ss:$16 sps:$4 sm:$0xff]  }
 0x1f8   :  { %6969 = vmatprep.subr.bf16.mxu0 %v10719_v49  ;;  %7817 = vmatprep.subr.bf16.mxu1 %v10722_v50  ;;  %v10803_v49 = vld [vmem:[%s15120_s1 + $0x1184] ss:$16 sps:$4 sm:$0xff]   ;;  %v10806_v50 = vld [vmem:[%s15120_s1 + $0x118c] ss:$16 sps:$4 sm:$0xff]  }
 0x1fb   :  { %6970 = vmatpush1.bf16.msra.mxu0 %v10717_v53  ;;  %7818 = vmatpush1.bf16.msra.mxu1 %v10720_v54  ;;  %v10801_v53 = vld [vmem:[%s15120_s1 + $0x1180] ss:$16 sps:$4 sm:$0xff]   ;;  %v10804_v54 = vld [vmem:[%s15120_s1 + $0x1188] ss:$16 sps:$4 sm:$0xff]  }
 0x1fc   :  { %6971 = vmatprep.subr.bf16.mxu0 %v10725_v55  ;;  %7819 = vmatprep.subr.bf16.mxu1 %v10728_v56  ;;  %v10809_v55 = vld [vmem:[%s15120_s1 + $0x11a4] ss:$16 sps:$4 sm:$0xff]   ;;  %v10812_v56 = vld [vmem:[%s15120_s1 + $0x11ac] ss:$16 sps:$4 sm:$0xff]  }
 0x1ff   :  { %6972 = vmatpush1.bf16.msra.mxu0 %v10723_v59  ;;  %7820 = vmatpush1.bf16.msra.mxu1 %v10726_v60  ;;  %v10807_v59 = vld [vmem:[%s15120_s1 + $0x11a0] ss:$16 sps:$4 sm:$0xff]   ;;  %v10810_v60 = vld [vmem:[%s15120_s1 + $0x11a8] ss:$16 sps:$4 sm:$0xff]  }
 0x200   :  { %6994 = vmatprep.subr.bf16.mxu0 %v10731_v57  ;;  %7842 = vmatprep.subr.bf16.mxu1 %v10734_v58  ;;  %v10815_v57 = vld [vmem:[%s15120_s1 + $0x11c4] ss:$16 sps:$4 sm:$0xff]   ;;  %v10818_v58 = vld [vmem:[%s15120_s1 + $0x11cc] ss:$16 sps:$4 sm:$0xff]  }
 0x202   :  { %6974 = vmatmul.mubr.bf16.vlgmr.msra.gmra.mrb[0].mxu0 %v8614_v63  ;;  %7822 = vmatmul.mubr.bf16.vlgmr.msra.gmra.mrb[0].mxu1 %v8614_v63  ;;  %v10821_v63 = vld [vmem:[%s15120_s1 + $0x11e4] ss:$16 sps:$4 sm:$0xff]  }
 0x203   :  { %6995 = vmatpush1.bf16.msra.mxu0 %v10729_v0  ;;  %7843 = vmatpush1.bf16.msra.mxu1 %v10732_v3  ;;  %v10824_v0 = vld [vmem:[%s15120_s1 + $0x11ec] ss:$16 sps:$4 sm:$0xff]   ;;  %v10819_v3 = vld [vmem:[%s15120_s1 + $0x11e0] ss:$16 sps:$4 sm:$0xff]  }
 0x204   :  { %6996 = vmatprep.subr.bf16.mxu0 %v10737_v4  ;;  %7844 = vmatprep.subr.bf16.mxu1 %v10740_v1  ;;  %v10822_v4 = vld [vmem:[%s15120_s1 + $0x11e8] ss:$16 sps:$4 sm:$0xff]   ;;  %v10827_v1 = vld [vmem:[%s15120_s1 + $0x1204] ss:$16 sps:$4 sm:$0xff]  }
 0x205   :  { %6983 = vmatprep.mubr.bf16.mxu0 %v8647_v6  ;;  %7831 = vmatprep.mubr.bf16.mxu1 %v8647_v6  ;;  %v76_v6 = vld [vmem:[%s15121_s0 + $0x1c0] sm:$0xff] }
 0x207   :  { %6997 = vmatpush1.bf16.msra.mxu0 %v10735_v2  ;;  %7845 = vmatpush1.bf16.msra.mxu1 %v10738_v5  ;;  %v10830_v2 = vld [vmem:[%s15120_s1 + $0x120c] ss:$16 sps:$4 sm:$0xff]   ;;  %v60_v5 = vld [vmem:[%s15121_s0 + $0x140] sm:$0xff] }
 0x208   :  { %6998 = vmatprep.subr.bf16.mxu0 %v10743_v7  ;;  %7846 = vmatprep.subr.bf16.mxu1 %v10746_v8  ;;  %v8616_v7 = vcombine.low %v13257_v9, %v13262_v10  ;;  %v10825_v8 = vld [vmem:[%s15120_s1 + $0x1200] ss:$16 sps:$4 sm:$0xff]   ;;  %v10836_v9 = vld [vmem:[%s15120_s1 + $0x122c] ss:$16 sps:$4 sm:$0xff]  }
 0x209   :  { %v10831_v10 = vld [vmem:[%s15120_s1 + $0x1220] ss:$16 sps:$4 sm:$0xff]  }
 0x20a   :  { %6984 = vmatmul.mubr.bf16.gmra.mrb[4].mxu0 %v8646_v11  ;;  %7832 = vmatmul.mubr.bf16.gmra.mrb[4].mxu1 %v8646_v11  ;;  %v10828_v11 = vld [vmem:[%s15120_s1 + $0x1208] ss:$16 sps:$4 sm:$0xff]  }
 0x20b   :  { %6999 = vmatpush1.bf16.msra.mxu0 %v10741_v12  ;;  %7847 = vmatpush1.bf16.msra.mxu1 %v10744_v13  ;;  %v10833_v12 = vld [vmem:[%s15120_s1 + $0x1224] ss:$16 sps:$4 sm:$0xff]   ;;  %v10834_v13 = vld [vmem:[%s15120_s1 + $0x1228] ss:$16 sps:$4 sm:$0xff]  }
 0x20c   :  { %7000 = vmatprep.subr.bf16.mxu0 %v10749_v14  ;;  %7848 = vmatprep.subr.bf16.mxu1 %v10752_v15  ;;  %v8649_v14 = vcombine.high %v60_v5, %v76_v6  ;;  %v10839_v15 = vld [vmem:[%s15120_s1 + $0x1244] ss:$16 sps:$4 sm:$0xff]  }
 0x20d   :  { %7026 = vmatprep.mubr.bf16.mxu0 %v8617_v16  ;;  %7874 = vmatprep.mubr.bf16.mxu1 %v8617_v16  ;;  %v10842_v16 = vld [vmem:[%s15120_s1 + $0x124c] ss:$16 sps:$4 sm:$0xff]  }
 0x20f   :  { %7001 = vmatpush1.bf16.msra.mxu0 %v10747_v17  ;;  %7849 = vmatpush1.bf16.msra.mxu1 %v10750_v18  ;;  %v13469_v17 = vld [vmem:[%s15121_s0 + $0x48] sm:$0xff] }
 0x210   :  { %7002 = vmatprep.subr.bf16.mxu0 %v10755_v19  ;;  %7850 = vmatprep.subr.bf16.mxu1 %v10758_v20  ;;  %v13474_v18 = vld [vmem:[%s15121_s0 + $0xc8] sm:$0xff]  ;;  %v8648_v19 = vcombine.low %v60_v5, %v76_v6  ;;  %v10837_v20 = vld [vmem:[%s15120_s1 + $0x1240] ss:$16 sps:$4 sm:$0xff]  }
 0x211   :  { %v10909_v5 = vld [vmem:[%s15120_s1 + $0x13c0] ss:$16 sps:$4 sm:$0xff]   ;;  %v10912_v6 = vld [vmem:[%s15120_s1 + $0x13c8] ss:$16 sps:$4 sm:$0xff]  }
 0x213   :  { %7003 = vmatpush1.bf16.msra.mxu0 %v10753_v21  ;;  %7851 = vmatpush1.bf16.msra.mxu1 %v10756_v22  ;;  %v10840_v21 = vld [vmem:[%s15120_s1 + $0x1248] ss:$16 sps:$4 sm:$0xff]   ;;  %v10845_v22 = vld [vmem:[%s15120_s1 + $0x1264] ss:$16 sps:$4 sm:$0xff]  }
 0x214   :  { %7004 = vmatprep.subr.bf16.mxu0 %v10761_v23  ;;  %7852 = vmatprep.subr.bf16.mxu1 %v10764_v24  ;;  %v10848_v23 = vld [vmem:[%s15120_s1 + $0x126c] ss:$16 sps:$4 sm:$0xff]   ;;  %v8619_v24 = vcombine.high %v13469_v17, %v13474_v18 }
 0x217   :  { %7005 = vmatpush1.bf16.msra.mxu0 %v10759_v26  ;;  %7853 = vmatpush1.bf16.msra.mxu1 %v10762_v25  ;;  %v10843_v26 = vld [vmem:[%s15120_s1 + $0x1260] ss:$16 sps:$4 sm:$0xff]   ;;  %v10846_v25 = vld [vmem:[%s15120_s1 + $0x1268] ss:$16 sps:$4 sm:$0xff]  }
 0x218   :  { %7006 = vmatprep.subr.bf16.mxu0 %v10767_v27  ;;  %7854 = vmatprep.subr.bf16.mxu1 %v10770_v28  ;;  %v10851_v27 = vld [vmem:[%s15120_s1 + $0x1284] ss:$16 sps:$4 sm:$0xff]   ;;  %v10854_v28 = vld [vmem:[%s15120_s1 + $0x128c] ss:$16 sps:$4 sm:$0xff]  }
 0x21b   :  { %7007 = vmatpush1.bf16.msra.mxu0 %v10765_v29  ;;  %7855 = vmatpush1.bf16.msra.mxu1 %v10768_v30  ;;  %v10849_v29 = vld [vmem:[%s15120_s1 + $0x1280] ss:$16 sps:$4 sm:$0xff]   ;;  %v10852_v30 = vld [vmem:[%s15120_s1 + $0x1288] ss:$16 sps:$4 sm:$0xff]  }
 0x21c   :  { %7008 = vmatprep.subr.bf16.mxu0 %v10773_v31  ;;  %7856 = vmatprep.subr.bf16.mxu1 %v10776_v32  ;;  %v10857_v31 = vld [vmem:[%s15120_s1 + $0x12a4] ss:$16 sps:$4 sm:$0xff]   ;;  %v10860_v32 = vld [vmem:[%s15120_s1 + $0x12ac] ss:$16 sps:$4 sm:$0xff]  }
 0x21f   :  { %7009 = vmatpush1.bf16.msra.mxu0 %v10771_v34  ;;  %7857 = vmatpush1.bf16.msra.mxu1 %v10774_v36  ;;  %v10855_v34 = vld [vmem:[%s15120_s1 + $0x12a0] ss:$16 sps:$4 sm:$0xff]   ;;  %v10858_v36 = vld [vmem:[%s15120_s1 + $0x12a8] ss:$16 sps:$4 sm:$0xff]  }
 0x220   :  { %7010 = vmatprep.subr.bf16.mxu0 %v10779_v33  ;;  %7858 = vmatprep.subr.bf16.mxu1 %v10782_v35  ;;  %v10863_v33 = vld [vmem:[%s15120_s1 + $0x12c4] ss:$16 sps:$4 sm:$0xff]   ;;  %v10866_v35 = vld [vmem:[%s15120_s1 + $0x12cc] ss:$16 sps:$4 sm:$0xff]  }
 0x223   :  { %7011 = vmatpush1.bf16.msra.mxu0 %v10777_v37  ;;  %7859 = vmatpush1.bf16.msra.mxu1 %v10780_v38  ;;  %v10861_v37 = vld [vmem:[%s15120_s1 + $0x12c0] ss:$16 sps:$4 sm:$0xff]   ;;  %v10864_v38 = vld [vmem:[%s15120_s1 + $0x12c8] ss:$16 sps:$4 sm:$0xff]  }
 0x224   :  { %7012 = vmatprep.subr.bf16.mxu0 %v10785_v39  ;;  %7860 = vmatprep.subr.bf16.mxu1 %v10788_v40  ;;  %v10869_v39 = vld [vmem:[%s15120_s1 + $0x12e4] ss:$16 sps:$4 sm:$0xff]   ;;  %v10872_v40 = vld [vmem:[%s15120_s1 + $0x12ec] ss:$16 sps:$4 sm:$0xff]  }
 0x227   :  { %7013 = vmatpush1.bf16.msra.mxu0 %v10783_v42  ;;  %7861 = vmatpush1.bf16.msra.mxu1 %v10786_v44  ;;  %v10867_v42 = vld [vmem:[%s15120_s1 + $0x12e0] ss:$16 sps:$4 sm:$0xff]   ;;  %v10870_v44 = vld [vmem:[%s15120_s1 + $0x12e8] ss:$16 sps:$4 sm:$0xff]  }
 0x228   :  { %7014 = vmatprep.subr.bf16.mxu0 %v10791_v41  ;;  %7862 = vmatprep.subr.bf16.mxu1 %v10794_v43  ;;  %v10875_v41 = vld [vmem:[%s15120_s1 + $0x1304] ss:$16 sps:$4 sm:$0xff]   ;;  %v10878_v43 = vld [vmem:[%s15120_s1 + $0x130c] ss:$16 sps:$4 sm:$0xff]  }
 0x22b   :  { %7015 = vmatpush1.bf16.msra.mxu0 %v10789_v45  ;;  %7863 = vmatpush1.bf16.msra.mxu1 %v10792_v46  ;;  %v10873_v45 = vld [vmem:[%s15120_s1 + $0x1300] ss:$16 sps:$4 sm:$0xff]   ;;  %v10876_v46 = vld [vmem:[%s15120_s1 + $0x1308] ss:$16 sps:$4 sm:$0xff]  }
 0x22c   :  { %7016 = vmatprep.subr.bf16.mxu0 %v10797_v47  ;;  %7864 = vmatprep.subr.bf16.mxu1 %v10800_v48  ;;  %v10881_v47 = vld [vmem:[%s15120_s1 + $0x1324] ss:$16 sps:$4 sm:$0xff]   ;;  %v10884_v48 = vld [vmem:[%s15120_s1 + $0x132c] ss:$16 sps:$4 sm:$0xff]  }
 0x22f   :  { %7017 = vmatpush1.bf16.msra.mxu0 %v10795_v51  ;;  %7865 = vmatpush1.bf16.msra.mxu1 %v10798_v52  ;;  %v10879_v51 = vld [vmem:[%s15120_s1 + $0x1320] ss:$16 sps:$4 sm:$0xff]   ;;  %v10882_v52 = vld [vmem:[%s15120_s1 + $0x1328] ss:$16 sps:$4 sm:$0xff]  }
 0x230   :  { %7018 = vmatprep.subr.bf16.mxu0 %v10803_v49  ;;  %7866 = vmatprep.subr.bf16.mxu1 %v10806_v50  ;;  %v10887_v49 = vld [vmem:[%s15120_s1 + $0x1344] ss:$16 sps:$4 sm:$0xff]   ;;  %v10890_v50 = vld [vmem:[%s15120_s1 + $0x134c] ss:$16 sps:$4 sm:$0xff]  }
 0x233   :  { %7019 = vmatpush1.bf16.msra.mxu0 %v10801_v53  ;;  %7867 = vmatpush1.bf16.msra.mxu1 %v10804_v54  ;;  %v10885_v53 = vld [vmem:[%s15120_s1 + $0x1340] ss:$16 sps:$4 sm:$0xff]   ;;  %v10888_v54 = vld [vmem:[%s15120_s1 + $0x1348] ss:$16 sps:$4 sm:$0xff]  }
 0x234   :  { %7020 = vmatprep.subr.bf16.mxu0 %v10809_v55  ;;  %7868 = vmatprep.subr.bf16.mxu1 %v10812_v56  ;;  %v10893_v55 = vld [vmem:[%s15120_s1 + $0x1364] ss:$16 sps:$4 sm:$0xff]   ;;  %v10896_v56 = vld [vmem:[%s15120_s1 + $0x136c] ss:$16 sps:$4 sm:$0xff]  }
 0x237   :  { %7021 = vmatpush1.bf16.msra.mxu0 %v10807_v59  ;;  %7869 = vmatpush1.bf16.msra.mxu1 %v10810_v60  ;;  %v10891_v59 = vld [vmem:[%s15120_s1 + $0x1360] ss:$16 sps:$4 sm:$0xff]   ;;  %v10894_v60 = vld [vmem:[%s15120_s1 + $0x1368] ss:$16 sps:$4 sm:$0xff]  }
 0x238   :  { %7022 = vmatprep.subr.bf16.mxu0 %v10815_v57  ;;  %7870 = vmatprep.subr.bf16.mxu1 %v10818_v58  ;;  %v10899_v57 = vld [vmem:[%s15120_s1 + $0x1384] ss:$16 sps:$4 sm:$0xff]   ;;  %v10902_v58 = vld [vmem:[%s15120_s1 + $0x138c] ss:$16 sps:$4 sm:$0xff]  }
 0x23b   :  { %7023 = vmatpush1.bf16.msra.mxu0 %v10813_v61  ;;  %7871 = vmatpush1.bf16.msra.mxu1 %v10816_v62  ;;  %v10897_v61 = vld [vmem:[%s15120_s1 + $0x1380] ss:$16 sps:$4 sm:$0xff]   ;;  %v10900_v62 = vld [vmem:[%s15120_s1 + $0x1388] ss:$16 sps:$4 sm:$0xff]  }
 0x23c   :  { %7024 = vmatprep.subr.bf16.mxu0 %v10821_v63  ;;  %7872 = vmatprep.subr.bf16.mxu1 %v10824_v0  ;;  %v10905_v63 = vld [vmem:[%s15120_s1 + $0x13a4] ss:$16 sps:$4 sm:$0xff]   ;;  %v10908_v0 = vld [vmem:[%s15120_s1 + $0x13ac] ss:$16 sps:$4 sm:$0xff]  }
 0x23f   :  { %7025 = vmatpush1.bf16.msra.mxu0 %v10819_v3  ;;  %7873 = vmatpush1.bf16.msra.mxu1 %v10822_v4  ;;  %v10903_v3 = vld [vmem:[%s15120_s1 + $0x13a0] ss:$16 sps:$4 sm:$0xff]   ;;  %v10906_v4 = vld [vmem:[%s15120_s1 + $0x13a8] ss:$16 sps:$4 sm:$0xff]  }
 0x240   :  { %7047 = vmatprep.subr.bf16.mxu0 %v10827_v1  ;;  %7895 = vmatprep.subr.bf16.mxu1 %v10830_v2  ;;  %v10911_v1 = vld [vmem:[%s15120_s1 + $0x13c4] ss:$16 sps:$4 sm:$0xff]   ;;  %v10914_v2 = vld [vmem:[%s15120_s1 + $0x13cc] ss:$16 sps:$4 sm:$0xff]  }
 0x242   :  { %7027 = vmatmul.mubr.bf16.vlgmr.msra.gmra.mrb[0].mxu0 %v8616_v7  ;;  %7875 = vmatmul.mubr.bf16.vlgmr.msra.gmra.mrb[0].mxu1 %v8616_v7  ;;  %v10917_v7 = vld [vmem:[%s15120_s1 + $0x13e4] ss:$16 sps:$4 sm:$0xff]  }
 0x243   :  { %7048 = vmatpush1.bf16.msra.mxu0 %v10825_v8  ;;  %7896 = vmatpush1.bf16.msra.mxu1 %v10828_v11  ;;  %v10920_v8 = vld [vmem:[%s15120_s1 + $0x13ec] ss:$16 sps:$4 sm:$0xff]   ;;  %v10915_v11 = vld [vmem:[%s15120_s1 + $0x13e0] ss:$16 sps:$4 sm:$0xff]  }
 0x244   :  { %7049 = vmatprep.subr.bf16.mxu0 %v10833_v12  ;;  %7897 = vmatprep.subr.bf16.mxu1 %v10836_v9  ;;  %v10918_v12 = vld [vmem:[%s15120_s1 + $0x13e8] ss:$16 sps:$4 sm:$0xff]   ;;  %v10923_v9 = vld [vmem:[%s15120_s1 + $0x1404] ss:$16 sps:$4 sm:$0xff]  }
 0x245   :  { %7036 = vmatprep.mubr.bf16.mxu0 %v8649_v14  ;;  %7884 = vmatprep.mubr.bf16.mxu1 %v8649_v14  ;;  %v61_v14 = vld [vmem:[%s15121_s0 + $0x148] sm:$0xff] }
 0x247   :  { %7050 = vmatpush1.bf16.msra.mxu0 %v10831_v10  ;;  %7898 = vmatpush1.bf16.msra.mxu1 %v10834_v13  ;;  %v10926_v10 = vld [vmem:[%s15120_s1 + $0x140c] ss:$16 sps:$4 sm:$0xff]   ;;  %v8618_v13 = vcombine.low %v13469_v17, %v13474_v18  ;;  %v10929_v17 = vld [vmem:[%s15120_s1 + $0x1424] ss:$16 sps:$4 sm:$0xff]  }
 0x248   :  { %7051 = vmatprep.subr.bf16.mxu0 %v10839_v15  ;;  %7899 = vmatprep.subr.bf16.mxu1 %v10842_v16  ;;  %v77_v15 = vld [vmem:[%s15121_s0 + $0x1c8] sm:$0xff]  ;;  %v10921_v16 = vld [vmem:[%s15120_s1 + $0x1400] ss:$16 sps:$4 sm:$0xff]  }
 0x249   :  { %v10932_v18 = vld [vmem:[%s15120_s1 + $0x142c] ss:$16 sps:$4 sm:$0xff]  }
 0x24a   :  { %7037 = vmatmul.mubr.bf16.gmra.mrb[4].mxu0 %v8648_v19  ;;  %7885 = vmatmul.mubr.bf16.gmra.mrb[4].mxu1 %v8648_v19  ;;  %v10924_v19 = vld [vmem:[%s15120_s1 + $0x1408] ss:$16 sps:$4 sm:$0xff]  }
 0x24b   :  { %7052 = vmatpush1.bf16.msra.mxu0 %v10837_v20  ;;  %7900 = vmatpush1.bf16.msra.mxu1 %v10840_v21  ;;  %v8651_v20 = vcombine.high %v61_v14, %v77_v15  ;;  %v10927_v21 = vld [vmem:[%s15120_s1 + $0x1420] ss:$16 sps:$4 sm:$0xff]  }
 0x24c   :  { %7053 = vmatprep.subr.bf16.mxu0 %v10845_v22  ;;  %7901 = vmatprep.subr.bf16.mxu1 %v10848_v23  ;;  %v10930_v22 = vld [vmem:[%s15120_s1 + $0x1428] ss:$16 sps:$4 sm:$0xff]   ;;  %v10935_v23 = vld [vmem:[%s15120_s1 + $0x1444] ss:$16 sps:$4 sm:$0xff]  }
 0x24d   :  { %7079 = vmatprep.mubr.bf16.mxu0 %v8619_v24  ;;  %7927 = vmatprep.mubr.bf16.mxu1 %v8619_v24  ;;  %v10938_v24 = vld [vmem:[%s15120_s1 + $0x144c] ss:$16 sps:$4 sm:$0xff]  }
 0x24f   :  { %7054 = vmatpush1.bf16.msra.mxu0 %v10843_v26  ;;  %7902 = vmatpush1.bf16.msra.mxu1 %v10846_v25  ;;  %v8650_v26 = vcombine.low %v61_v14, %v77_v15  ;;  %v13681_v25 = vld [vmem:[%s15121_s0 + $0x50] sm:$0xff]  ;;  %v11008_v14 = vld [vmem:[%s15120_s1 + $0x15c8] ss:$16 sps:$4 sm:$0xff]  }
 0x250   :  { %7055 = vmatprep.subr.bf16.mxu0 %v10851_v27  ;;  %7903 = vmatprep.subr.bf16.mxu1 %v10854_v28  ;;  %v13686_v27 = vld [vmem:[%s15121_s0 + $0xd0] sm:$0xff] }
 0x251   :  { %v10933_v28 = vld [vmem:[%s15120_s1 + $0x1440] ss:$16 sps:$4 sm:$0xff]   ;;  %v11013_v15 = vld [vmem:[%s15120_s1 + $0x15e4] ss:$16 sps:$4 sm:$0xff]  }
 0x253   :  { %7056 = vmatpush1.bf16.msra.mxu0 %v10849_v29  ;;  %7904 = vmatpush1.bf16.msra.mxu1 %v10852_v30  ;;  %v10936_v29 = vld [vmem:[%s15120_s1 + $0x1448] ss:$16 sps:$4 sm:$0xff]   ;;  %v10941_v30 = vld [vmem:[%s15120_s1 + $0x1464] ss:$16 sps:$4 sm:$0xff]  }
 0x254   :  { %7057 = vmatprep.subr.bf16.mxu0 %v10857_v31  ;;  %7905 = vmatprep.subr.bf16.mxu1 %v10860_v32  ;;  %v10944_v31 = vld [vmem:[%s15120_s1 + $0x146c] ss:$16 sps:$4 sm:$0xff]   ;;  %v8621_v32 = vcombine.high %v13681_v25, %v13686_v27 }
 0x257   :  { %7058 = vmatpush1.bf16.msra.mxu0 %v10855_v34  ;;  %7906 = vmatpush1.bf16.msra.mxu1 %v10858_v36  ;;  %v10939_v34 = vld [vmem:[%s15120_s1 + $0x1460] ss:$16 sps:$4 sm:$0xff]   ;;  %v10942_v36 = vld [vmem:[%s15120_s1 + $0x1468] ss:$16 sps:$4 sm:$0xff]  }
 0x258   :  { %7059 = vmatprep.subr.bf16.mxu0 %v10863_v33  ;;  %7907 = vmatprep.subr.bf16.mxu1 %v10866_v35  ;;  %v10947_v33 = vld [vmem:[%s15120_s1 + $0x1484] ss:$16 sps:$4 sm:$0xff]   ;;  %v10950_v35 = vld [vmem:[%s15120_s1 + $0x148c] ss:$16 sps:$4 sm:$0xff]  }
 0x25b   :  { %7060 = vmatpush1.bf16.msra.mxu0 %v10861_v37  ;;  %7908 = vmatpush1.bf16.msra.mxu1 %v10864_v38  ;;  %v10945_v37 = vld [vmem:[%s15120_s1 + $0x1480] ss:$16 sps:$4 sm:$0xff]   ;;  %v10948_v38 = vld [vmem:[%s15120_s1 + $0x1488] ss:$16 sps:$4 sm:$0xff]  }
 0x25c   :  { %7061 = vmatprep.subr.bf16.mxu0 %v10869_v39  ;;  %7909 = vmatprep.subr.bf16.mxu1 %v10872_v40  ;;  %v10953_v39 = vld [vmem:[%s15120_s1 + $0x14a4] ss:$16 sps:$4 sm:$0xff]   ;;  %v10956_v40 = vld [vmem:[%s15120_s1 + $0x14ac] ss:$16 sps:$4 sm:$0xff]  }
 0x25f   :  { %7062 = vmatpush1.bf16.msra.mxu0 %v10867_v42  ;;  %7910 = vmatpush1.bf16.msra.mxu1 %v10870_v44  ;;  %v10951_v42 = vld [vmem:[%s15120_s1 + $0x14a0] ss:$16 sps:$4 sm:$0xff]   ;;  %v10954_v44 = vld [vmem:[%s15120_s1 + $0x14a8] ss:$16 sps:$4 sm:$0xff]  }
 0x260   :  { %7063 = vmatprep.subr.bf16.mxu0 %v10875_v41  ;;  %7911 = vmatprep.subr.bf16.mxu1 %v10878_v43  ;;  %v10959_v41 = vld [vmem:[%s15120_s1 + $0x14c4] ss:$16 sps:$4 sm:$0xff]   ;;  %v10962_v43 = vld [vmem:[%s15120_s1 + $0x14cc] ss:$16 sps:$4 sm:$0xff]  }
 0x263   :  { %7064 = vmatpush1.bf16.msra.mxu0 %v10873_v45  ;;  %7912 = vmatpush1.bf16.msra.mxu1 %v10876_v46  ;;  %v10957_v45 = vld [vmem:[%s15120_s1 + $0x14c0] ss:$16 sps:$4 sm:$0xff]   ;;  %v10960_v46 = vld [vmem:[%s15120_s1 + $0x14c8] ss:$16 sps:$4 sm:$0xff]  }
 0x264   :  { %7065 = vmatprep.subr.bf16.mxu0 %v10881_v47  ;;  %7913 = vmatprep.subr.bf16.mxu1 %v10884_v48  ;;  %v10965_v47 = vld [vmem:[%s15120_s1 + $0x14e4] ss:$16 sps:$4 sm:$0xff]   ;;  %v10968_v48 = vld [vmem:[%s15120_s1 + $0x14ec] ss:$16 sps:$4 sm:$0xff]  }
 0x267   :  { %7066 = vmatpush1.bf16.msra.mxu0 %v10879_v51  ;;  %7914 = vmatpush1.bf16.msra.mxu1 %v10882_v52  ;;  %v10963_v51 = vld [vmem:[%s15120_s1 + $0x14e0] ss:$16 sps:$4 sm:$0xff]   ;;  %v10966_v52 = vld [vmem:[%s15120_s1 + $0x14e8] ss:$16 sps:$4 sm:$0xff]  }
 0x268   :  { %7067 = vmatprep.subr.bf16.mxu0 %v10887_v49  ;;  %7915 = vmatprep.subr.bf16.mxu1 %v10890_v50  ;;  %v10971_v49 = vld [vmem:[%s15120_s1 + $0x1504] ss:$16 sps:$4 sm:$0xff]   ;;  %v10974_v50 = vld [vmem:[%s15120_s1 + $0x150c] ss:$16 sps:$4 sm:$0xff]  }
 0x26b   :  { %7068 = vmatpush1.bf16.msra.mxu0 %v10885_v53  ;;  %7916 = vmatpush1.bf16.msra.mxu1 %v10888_v54  ;;  %v10969_v53 = vld [vmem:[%s15120_s1 + $0x1500] ss:$16 sps:$4 sm:$0xff]   ;;  %v10972_v54 = vld [vmem:[%s15120_s1 + $0x1508] ss:$16 sps:$4 sm:$0xff]  }
 0x26c   :  { %7069 = vmatprep.subr.bf16.mxu0 %v10893_v55  ;;  %7917 = vmatprep.subr.bf16.mxu1 %v10896_v56  ;;  %v10977_v55 = vld [vmem:[%s15120_s1 + $0x1524] ss:$16 sps:$4 sm:$0xff]   ;;  %v10980_v56 = vld [vmem:[%s15120_s1 + $0x152c] ss:$16 sps:$4 sm:$0xff]  }
 0x26f   :  { %7070 = vmatpush1.bf16.msra.mxu0 %v10891_v59  ;;  %7918 = vmatpush1.bf16.msra.mxu1 %v10894_v60  ;;  %v10975_v59 = vld [vmem:[%s15120_s1 + $0x1520] ss:$16 sps:$4 sm:$0xff]   ;;  %v10978_v60 = vld [vmem:[%s15120_s1 + $0x1528] ss:$16 sps:$4 sm:$0xff]  }
 0x270   :  { %7071 = vmatprep.subr.bf16.mxu0 %v10899_v57  ;;  %7919 = vmatprep.subr.bf16.mxu1 %v10902_v58  ;;  %v10983_v57 = vld [vmem:[%s15120_s1 + $0x1544] ss:$16 sps:$4 sm:$0xff]   ;;  %v10986_v58 = vld [vmem:[%s15120_s1 + $0x154c] ss:$16 sps:$4 sm:$0xff]  }
 0x273   :  { %7072 = vmatpush1.bf16.msra.mxu0 %v10897_v61  ;;  %7920 = vmatpush1.bf16.msra.mxu1 %v10900_v62  ;;  %v10981_v61 = vld [vmem:[%s15120_s1 + $0x1540] ss:$16 sps:$4 sm:$0xff]   ;;  %v10984_v62 = vld [vmem:[%s15120_s1 + $0x1548] ss:$16 sps:$4 sm:$0xff]  }
 0x274   :  { %7073 = vmatprep.subr.bf16.mxu0 %v10905_v63  ;;  %7921 = vmatprep.subr.bf16.mxu1 %v10908_v0  ;;  %v10989_v63 = vld [vmem:[%s15120_s1 + $0x1564] ss:$16 sps:$4 sm:$0xff]   ;;  %v10992_v0 = vld [vmem:[%s15120_s1 + $0x156c] ss:$16 sps:$4 sm:$0xff]  }
 0x277   :  { %7074 = vmatpush1.bf16.msra.mxu0 %v10903_v3  ;;  %7922 = vmatpush1.bf16.msra.mxu1 %v10906_v4  ;;  %v10987_v3 = vld [vmem:[%s15120_s1 + $0x1560] ss:$16 sps:$4 sm:$0xff]   ;;  %v10990_v4 = vld [vmem:[%s15120_s1 + $0x1568] ss:$16 sps:$4 sm:$0xff]  }
 0x278   :  { %7075 = vmatprep.subr.bf16.mxu0 %v10911_v1  ;;  %7923 = vmatprep.subr.bf16.mxu1 %v10914_v2  ;;  %v10995_v1 = vld [vmem:[%s15120_s1 + $0x1584] ss:$16 sps:$4 sm:$0xff]   ;;  %v10998_v2 = vld [vmem:[%s15120_s1 + $0x158c] ss:$16 sps:$4 sm:$0xff]  }
 0x27b   :  { %7076 = vmatpush1.bf16.msra.mxu0 %v10909_v5  ;;  %7924 = vmatpush1.bf16.msra.mxu1 %v10912_v6  ;;  %v10993_v5 = vld [vmem:[%s15120_s1 + $0x1580] ss:$16 sps:$4 sm:$0xff]   ;;  %v10996_v6 = vld [vmem:[%s15120_s1 + $0x1588] ss:$16 sps:$4 sm:$0xff]  }
 0x27c   :  { %7077 = vmatprep.subr.bf16.mxu0 %v10917_v7  ;;  %7925 = vmatprep.subr.bf16.mxu1 %v10920_v8  ;;  %v11001_v7 = vld [vmem:[%s15120_s1 + $0x15a4] ss:$16 sps:$4 sm:$0xff]   ;;  %v11004_v8 = vld [vmem:[%s15120_s1 + $0x15ac] ss:$16 sps:$4 sm:$0xff]  }
 0x27f   :  { %7078 = vmatpush1.bf16.msra.mxu0 %v10915_v11  ;;  %7926 = vmatpush1.bf16.msra.mxu1 %v10918_v12  ;;  %v10999_v11 = vld [vmem:[%s15120_s1 + $0x15a0] ss:$16 sps:$4 sm:$0xff]   ;;  %v11002_v12 = vld [vmem:[%s15120_s1 + $0x15a8] ss:$16 sps:$4 sm:$0xff]  }
 0x280   :  { %7100 = vmatprep.subr.bf16.mxu0 %v10923_v9  ;;  %7948 = vmatprep.subr.bf16.mxu1 %v10926_v10  ;;  %v11007_v9 = vld [vmem:[%s15120_s1 + $0x15c4] ss:$16 sps:$4 sm:$0xff]   ;;  %v11010_v10 = vld [vmem:[%s15120_s1 + $0x15cc] ss:$16 sps:$4 sm:$0xff]  }
 0x282   :  { %7080 = vmatmul.mubr.bf16.vlgmr.msra.gmra.mrb[0].mxu0 %v8618_v13  ;;  %7928 = vmatmul.mubr.bf16.vlgmr.msra.gmra.mrb[0].mxu1 %v8618_v13  ;;  %v11005_v13 = vld [vmem:[%s15120_s1 + $0x15c0] ss:$16 sps:$4 sm:$0xff]  }
 0x283   :  { %7101 = vmatpush1.bf16.msra.mxu0 %v10921_v16  ;;  %7949 = vmatpush1.bf16.msra.mxu1 %v10924_v19  ;;  %v11016_v16 = vld [vmem:[%s15120_s1 + $0x15ec] ss:$16 sps:$4 sm:$0xff]   ;;  %v11011_v19 = vld [vmem:[%s15120_s1 + $0x15e0] ss:$16 sps:$4 sm:$0xff]  }
 0x284   :  { %7102 = vmatprep.subr.bf16.mxu0 %v10929_v17  ;;  %7950 = vmatprep.subr.bf16.mxu1 %v10932_v18  ;;  %v11014_v17 = vld [vmem:[%s15120_s1 + $0x15e8] ss:$16 sps:$4 sm:$0xff]   ;;  %v11019_v18 = vld [vmem:[%s15120_s1 + $0x1604] ss:$16 sps:$4 sm:$0xff]  }
 0x285   :  { %7089 = vmatprep.mubr.bf16.mxu0 %v8651_v20  ;;  %7937 = vmatprep.mubr.bf16.mxu1 %v8651_v20  ;;  %v11022_v20 = vld [vmem:[%s15120_s1 + $0x160c] ss:$16 sps:$4 sm:$0xff]  }
 0x287   :  { %7103 = vmatpush1.bf16.msra.mxu0 %v10927_v21  ;;  %7951 = vmatpush1.bf16.msra.mxu1 %v10930_v22  ;;  %v8620_v21 = vcombine.low %v13681_v25, %v13686_v27  ;;  %v62_v22 = vld [vmem:[%s15121_s0 + $0x150] sm:$0xff]  ;;  %v11028_v27 = vld [vmem:[%s15120_s1 + $0x162c] ss:$16 sps:$4 sm:$0xff]  }
 0x288   :  { %7104 = vmatprep.subr.bf16.mxu0 %v10935_v23  ;;  %7952 = vmatprep.subr.bf16.mxu1 %v10938_v24  ;;  %v78_v23 = vld [vmem:[%s15121_s0 + $0x1d0] sm:$0xff] }
 0x289   :  { %v11017_v24 = vld [vmem:[%s15120_s1 + $0x1600] ss:$16 sps:$4 sm:$0xff]   ;;  %v11025_v25 = vld [vmem:[%s15120_s1 + $0x1624] ss:$16 sps:$4 sm:$0xff]  }
 0x28a   :  { %7090 = vmatmul.mubr.bf16.gmra.mrb[4].mxu0 %v8650_v26  ;;  %7938 = vmatmul.mubr.bf16.gmra.mrb[4].mxu1 %v8650_v26  ;;  %v11020_v26 = vld [vmem:[%s15120_s1 + $0x1608] ss:$16 sps:$4 sm:$0xff]  }
 0x28b   :  { %7105 = vmatpush1.bf16.msra.mxu0 %v10933_v28  ;;  %7953 = vmatpush1.bf16.msra.mxu1 %v10936_v29  ;;  %v8653_v28 = vcombine.high %v62_v22, %v78_v23  ;;  %v11023_v29 = vld [vmem:[%s15120_s1 + $0x1620] ss:$16 sps:$4 sm:$0xff]  }
 0x28c   :  { %7106 = vmatprep.subr.bf16.mxu0 %v10941_v30  ;;  %7954 = vmatprep.subr.bf16.mxu1 %v10944_v31  ;;  %v11026_v30 = vld [vmem:[%s15120_s1 + $0x1628] ss:$16 sps:$4 sm:$0xff]   ;;  %v11031_v31 = vld [vmem:[%s15120_s1 + $0x1644] ss:$16 sps:$4 sm:$0xff]  }
 0x28d   :  { %7132 = vmatprep.mubr.bf16.mxu0 %v8621_v32  ;;  %7980 = vmatprep.mubr.bf16.mxu1 %v8621_v32  ;;  %v11034_v32 = vld [vmem:[%s15120_s1 + $0x164c] ss:$16 sps:$4 sm:$0xff]  }
 0x28f   :  { %7107 = vmatpush1.bf16.msra.mxu0 %v10939_v34  ;;  %7955 = vmatpush1.bf16.msra.mxu1 %v10942_v36  ;;  %v8652_v34 = vcombine.low %v62_v22, %v78_v23  ;;  %v13893_v36 = vld [vmem:[%s15121_s0 + $0x58] sm:$0xff]  ;;  %v11109_v23 = vld [vmem:[%s15120_s1 + $0x17e4] ss:$16 sps:$4 sm:$0xff]  }
 0x290   :  { %7108 = vmatprep.subr.bf16.mxu0 %v10947_v33  ;;  %7956 = vmatprep.subr.bf16.mxu1 %v10950_v35  ;;  %v13898_v33 = vld [vmem:[%s15121_s0 + $0xd8] sm:$0xff]  ;;  %v11029_v35 = vld [vmem:[%s15120_s1 + $0x1640] ss:$16 sps:$4 sm:$0xff]  }
 0x291   :  { %v11104_v22 = vld [vmem:[%s15120_s1 + $0x17c8] ss:$16 sps:$4 sm:$0xff]  }
 0x293   :  { %7109 = vmatpush1.bf16.msra.mxu0 %v10945_v37  ;;  %7957 = vmatpush1.bf16.msra.mxu1 %v10948_v38  ;;  %v11032_v37 = vld [vmem:[%s15120_s1 + $0x1648] ss:$16 sps:$4 sm:$0xff]   ;;  %v11037_v38 = vld [vmem:[%s15120_s1 + $0x1664] ss:$16 sps:$4 sm:$0xff]  }
 0x294   :  { %7110 = vmatprep.subr.bf16.mxu0 %v10953_v39  ;;  %7958 = vmatprep.subr.bf16.mxu1 %v10956_v40  ;;  %v11040_v39 = vld [vmem:[%s15120_s1 + $0x166c] ss:$16 sps:$4 sm:$0xff]   ;;  %v8623_v40 = vcombine.high %v13893_v36, %v13898_v33 }
 0x297   :  { %7111 = vmatpush1.bf16.msra.mxu0 %v10951_v42  ;;  %7959 = vmatpush1.bf16.msra.mxu1 %v10954_v44  ;;  %v11035_v42 = vld [vmem:[%s15120_s1 + $0x1660] ss:$16 sps:$4 sm:$0xff]   ;;  %v11038_v44 = vld [vmem:[%s15120_s1 + $0x1668] ss:$16 sps:$4 sm:$0xff]  }
 0x298   :  { %7112 = vmatprep.subr.bf16.mxu0 %v10959_v41  ;;  %7960 = vmatprep.subr.bf16.mxu1 %v10962_v43  ;;  %v11043_v41 = vld [vmem:[%s15120_s1 + $0x1684] ss:$16 sps:$4 sm:$0xff]   ;;  %v11046_v43 = vld [vmem:[%s15120_s1 + $0x168c] ss:$16 sps:$4 sm:$0xff]  }
 0x29b   :  { %7113 = vmatpush1.bf16.msra.mxu0 %v10957_v45  ;;  %7961 = vmatpush1.bf16.msra.mxu1 %v10960_v46  ;;  %v11041_v45 = vld [vmem:[%s15120_s1 + $0x1680] ss:$16 sps:$4 sm:$0xff]   ;;  %v11044_v46 = vld [vmem:[%s15120_s1 + $0x1688] ss:$16 sps:$4 sm:$0xff]  }
 0x29c   :  { %7114 = vmatprep.subr.bf16.mxu0 %v10965_v47  ;;  %7962 = vmatprep.subr.bf16.mxu1 %v10968_v48  ;;  %v11049_v47 = vld [vmem:[%s15120_s1 + $0x16a4] ss:$16 sps:$4 sm:$0xff]   ;;  %v11052_v48 = vld [vmem:[%s15120_s1 + $0x16ac] ss:$16 sps:$4 sm:$0xff]  }
 0x29f   :  { %7115 = vmatpush1.bf16.msra.mxu0 %v10963_v51  ;;  %7963 = vmatpush1.bf16.msra.mxu1 %v10966_v52  ;;  %v11047_v51 = vld [vmem:[%s15120_s1 + $0x16a0] ss:$16 sps:$4 sm:$0xff]   ;;  %v11050_v52 = vld [vmem:[%s15120_s1 + $0x16a8] ss:$16 sps:$4 sm:$0xff]  }
 0x2a0   :  { %7116 = vmatprep.subr.bf16.mxu0 %v10971_v49  ;;  %7964 = vmatprep.subr.bf16.mxu1 %v10974_v50  ;;  %v11055_v49 = vld [vmem:[%s15120_s1 + $0x16c4] ss:$16 sps:$4 sm:$0xff]   ;;  %v11058_v50 = vld [vmem:[%s15120_s1 + $0x16cc] ss:$16 sps:$4 sm:$0xff]  }
 0x2a3   :  { %7117 = vmatpush1.bf16.msra.mxu0 %v10969_v53  ;;  %7965 = vmatpush1.bf16.msra.mxu1 %v10972_v54  ;;  %v11053_v53 = vld [vmem:[%s15120_s1 + $0x16c0] ss:$16 sps:$4 sm:$0xff]   ;;  %v11056_v54 = vld [vmem:[%s15120_s1 + $0x16c8] ss:$16 sps:$4 sm:$0xff]  }
 0x2a4   :  { %7118 = vmatprep.subr.bf16.mxu0 %v10977_v55  ;;  %7966 = vmatprep.subr.bf16.mxu1 %v10980_v56  ;;  %v11061_v55 = vld [vmem:[%s15120_s1 + $0x16e4] ss:$16 sps:$4 sm:$0xff]   ;;  %v11064_v56 = vld [vmem:[%s15120_s1 + $0x16ec] ss:$16 sps:$4 sm:$0xff]  }
 0x2a7   :  { %7119 = vmatpush1.bf16.msra.mxu0 %v10975_v59  ;;  %7967 = vmatpush1.bf16.msra.mxu1 %v10978_v60  ;;  %v11059_v59 = vld [vmem:[%s15120_s1 + $0x16e0] ss:$16 sps:$4 sm:$0xff]   ;;  %v11062_v60 = vld [vmem:[%s15120_s1 + $0x16e8] ss:$16 sps:$4 sm:$0xff]  }
 0x2a8   :  { %7120 = vmatprep.subr.bf16.mxu0 %v10983_v57  ;;  %7968 = vmatprep.subr.bf16.mxu1 %v10986_v58  ;;  %v11067_v57 = vld [vmem:[%s15120_s1 + $0x1704] ss:$16 sps:$4 sm:$0xff]   ;;  %v11070_v58 = vld [vmem:[%s15120_s1 + $0x170c] ss:$16 sps:$4 sm:$0xff]  }
 0x2ab   :  { %7121 = vmatpush1.bf16.msra.mxu0 %v10981_v61  ;;  %7969 = vmatpush1.bf16.msra.mxu1 %v10984_v62  ;;  %v11065_v61 = vld [vmem:[%s15120_s1 + $0x1700] ss:$16 sps:$4 sm:$0xff]   ;;  %v11068_v62 = vld [vmem:[%s15120_s1 + $0x1708] ss:$16 sps:$4 sm:$0xff]  }
 0x2ac   :  { %7122 = vmatprep.subr.bf16.mxu0 %v10989_v63  ;;  %7970 = vmatprep.subr.bf16.mxu1 %v10992_v0  ;;  %v11073_v63 = vld [vmem:[%s15120_s1 + $0x1724] ss:$16 sps:$4 sm:$0xff]   ;;  %v11076_v0 = vld [vmem:[%s15120_s1 + $0x172c] ss:$16 sps:$4 sm:$0xff]  }
 0x2af   :  { %7123 = vmatpush1.bf16.msra.mxu0 %v10987_v3  ;;  %7971 = vmatpush1.bf16.msra.mxu1 %v10990_v4  ;;  %v11071_v3 = vld [vmem:[%s15120_s1 + $0x1720] ss:$16 sps:$4 sm:$0xff]   ;;  %v11074_v4 = vld [vmem:[%s15120_s1 + $0x1728] ss:$16 sps:$4 sm:$0xff]  }
 0x2b0   :  { %7124 = vmatprep.subr.bf16.mxu0 %v10995_v1  ;;  %7972 = vmatprep.subr.bf16.mxu1 %v10998_v2  ;;  %v11079_v1 = vld [vmem:[%s15120_s1 + $0x1744] ss:$16 sps:$4 sm:$0xff]   ;;  %v11082_v2 = vld [vmem:[%s15120_s1 + $0x174c] ss:$16 sps:$4 sm:$0xff]  }
 0x2b3   :  { %7125 = vmatpush1.bf16.msra.mxu0 %v10993_v5  ;;  %7973 = vmatpush1.bf16.msra.mxu1 %v10996_v6  ;;  %v11077_v5 = vld [vmem:[%s15120_s1 + $0x1740] ss:$16 sps:$4 sm:$0xff]   ;;  %v11080_v6 = vld [vmem:[%s15120_s1 + $0x1748] ss:$16 sps:$4 sm:$0xff]  }
 0x2b4   :  { %7126 = vmatprep.subr.bf16.mxu0 %v11001_v7  ;;  %7974 = vmatprep.subr.bf16.mxu1 %v11004_v8  ;;  %v11085_v7 = vld [vmem:[%s15120_s1 + $0x1764] ss:$16 sps:$4 sm:$0xff]   ;;  %v11088_v8 = vld [vmem:[%s15120_s1 + $0x176c] ss:$16 sps:$4 sm:$0xff]  }
 0x2b7   :  { %7127 = vmatpush1.bf16.msra.mxu0 %v10999_v11  ;;  %7975 = vmatpush1.bf16.msra.mxu1 %v11002_v12  ;;  %v11083_v11 = vld [vmem:[%s15120_s1 + $0x1760] ss:$16 sps:$4 sm:$0xff]   ;;  %v11086_v12 = vld [vmem:[%s15120_s1 + $0x1768] ss:$16 sps:$4 sm:$0xff]  }
 0x2b8   :  { %7128 = vmatprep.subr.bf16.mxu0 %v11007_v9  ;;  %7976 = vmatprep.subr.bf16.mxu1 %v11010_v10  ;;  %v11091_v9 = vld [vmem:[%s15120_s1 + $0x1784] ss:$16 sps:$4 sm:$0xff]   ;;  %v11094_v10 = vld [vmem:[%s15120_s1 + $0x178c] ss:$16 sps:$4 sm:$0xff]  }
 0x2bb   :  { %7129 = vmatpush1.bf16.msra.mxu0 %v11005_v13  ;;  %7977 = vmatpush1.bf16.msra.mxu1 %v11008_v14  ;;  %v11089_v13 = vld [vmem:[%s15120_s1 + $0x1780] ss:$16 sps:$4 sm:$0xff]   ;;  %v11092_v14 = vld [vmem:[%s15120_s1 + $0x1788] ss:$16 sps:$4 sm:$0xff]  }
 0x2bc   :  { %7130 = vmatprep.subr.bf16.mxu0 %v11013_v15  ;;  %7978 = vmatprep.subr.bf16.mxu1 %v11016_v16  ;;  %v11097_v15 = vld [vmem:[%s15120_s1 + $0x17a4] ss:$16 sps:$4 sm:$0xff]   ;;  %v11100_v16 = vld [vmem:[%s15120_s1 + $0x17ac] ss:$16 sps:$4 sm:$0xff]  }
 0x2bf   :  { %7131 = vmatpush1.bf16.msra.mxu0 %v11011_v19  ;;  %7979 = vmatpush1.bf16.msra.mxu1 %v11014_v17  ;;  %v11095_v19 = vld [vmem:[%s15120_s1 + $0x17a0] ss:$16 sps:$4 sm:$0xff]   ;;  %v11098_v17 = vld [vmem:[%s15120_s1 + $0x17a8] ss:$16 sps:$4 sm:$0xff]  }
 0x2c0   :  { %7153 = vmatprep.subr.bf16.mxu0 %v11019_v18  ;;  %8001 = vmatprep.subr.bf16.mxu1 %v11022_v20  ;;  %v11103_v18 = vld [vmem:[%s15120_s1 + $0x17c4] ss:$16 sps:$4 sm:$0xff]   ;;  %v11106_v20 = vld [vmem:[%s15120_s1 + $0x17cc] ss:$16 sps:$4 sm:$0xff]  }
 0x2c2   :  { %7133 = vmatmul.mubr.bf16.vlgmr.msra.gmra.mrb[0].mxu0 %v8620_v21  ;;  %7981 = vmatmul.mubr.bf16.vlgmr.msra.gmra.mrb[0].mxu1 %v8620_v21  ;;  %v11101_v21 = vld [vmem:[%s15120_s1 + $0x17c0] ss:$16 sps:$4 sm:$0xff]  }
 0x2c3   :  { %7154 = vmatpush1.bf16.msra.mxu0 %v11017_v24  ;;  %8002 = vmatpush1.bf16.msra.mxu1 %v11020_v26  ;;  %v11112_v24 = vld [vmem:[%s15120_s1 + $0x17ec] ss:$16 sps:$4 sm:$0xff]   ;;  %v11107_v26 = vld [vmem:[%s15120_s1 + $0x17e0] ss:$16 sps:$4 sm:$0xff]  }
 0x2c4   :  { %7155 = vmatprep.subr.bf16.mxu0 %v11025_v25  ;;  %8003 = vmatprep.subr.bf16.mxu1 %v11028_v27  ;;  %v11110_v25 = vld [vmem:[%s15120_s1 + $0x17e8] ss:$16 sps:$4 sm:$0xff]   ;;  %v11115_v27 = vld [vmem:[%s15120_s1 + $0x1804] ss:$16 sps:$4 sm:$0xff]  }
 0x2c5   :  { %7142 = vmatprep.mubr.bf16.mxu0 %v8653_v28  ;;  %7990 = vmatprep.mubr.bf16.mxu1 %v8653_v28  ;;  %v11118_v28 = vld [vmem:[%s15120_s1 + $0x180c] ss:$16 sps:$4 sm:$0xff]  }
 0x2c7   :  { %7156 = vmatpush1.bf16.msra.mxu0 %v11023_v29  ;;  %8004 = vmatpush1.bf16.msra.mxu1 %v11026_v30  ;;  %v8622_v29 = vcombine.low %v13893_v36, %v13898_v33  ;;  %v63_v30 = vld [vmem:[%s15121_s0 + $0x158] sm:$0xff]  ;;  %v11121_v36 = vld [vmem:[%s15120_s1 + $0x1824] ss:$16 sps:$4 sm:$0xff]  }
 0x2c8   :  { %7157 = vmatprep.subr.bf16.mxu0 %v11031_v31  ;;  %8005 = vmatprep.subr.bf16.mxu1 %v11034_v32  ;;  %v79_v31 = vld [vmem:[%s15121_s0 + $0x1d8] sm:$0xff]  ;;  %v11113_v32 = vld [vmem:[%s15120_s1 + $0x1800] ss:$16 sps:$4 sm:$0xff]  }
 0x2c9   :  { %v11124_v33 = vld [vmem:[%s15120_s1 + $0x182c] ss:$16 sps:$4 sm:$0xff]  }
 0x2ca   :  { %7143 = vmatmul.mubr.bf16.gmra.mrb[4].mxu0 %v8652_v34  ;;  %7991 = vmatmul.mubr.bf16.gmra.mrb[4].mxu1 %v8652_v34  ;;  %v11116_v34 = vld [vmem:[%s15120_s1 + $0x1808] ss:$16 sps:$4 sm:$0xff]  }
 0x2cb   :  { %7158 = vmatpush1.bf16.msra.mxu0 %v11029_v35  ;;  %8006 = vmatpush1.bf16.msra.mxu1 %v11032_v37  ;;  %v8655_v35 = vcombine.high %v63_v30, %v79_v31  ;;  %v11119_v37 = vld [vmem:[%s15120_s1 + $0x1820] ss:$16 sps:$4 sm:$0xff]  }
 0x2cc   :  { %7159 = vmatprep.subr.bf16.mxu0 %v11037_v38  ;;  %8007 = vmatprep.subr.bf16.mxu1 %v11040_v39  ;;  %v11122_v38 = vld [vmem:[%s15120_s1 + $0x1828] ss:$16 sps:$4 sm:$0xff]   ;;  %v11127_v39 = vld [vmem:[%s15120_s1 + $0x1844] ss:$16 sps:$4 sm:$0xff]  }
 0x2cd   :  { %7185 = vmatprep.mubr.bf16.mxu0 %v8623_v40  ;;  %8033 = vmatprep.mubr.bf16.mxu1 %v8623_v40  ;;  %v11130_v40 = vld [vmem:[%s15120_s1 + $0x184c] ss:$16 sps:$4 sm:$0xff]  }
 0x2cf   :  { %7160 = vmatpush1.bf16.msra.mxu0 %v11035_v42  ;;  %8008 = vmatpush1.bf16.msra.mxu1 %v11038_v44  ;;  %v8654_v42 = vcombine.low %v63_v30, %v79_v31  ;;  %v14105_v44 = vld [vmem:[%s15121_s0 + $0x60] sm:$0xff]  ;;  %v11200_v30 = vld [vmem:[%s15120_s1 + $0x19c8] ss:$16 sps:$4 sm:$0xff]  }
 0x2d0   :  { %7161 = vmatprep.subr.bf16.mxu0 %v11043_v41  ;;  %8009 = vmatprep.subr.bf16.mxu1 %v11046_v43  ;;  %v14110_v41 = vld [vmem:[%s15121_s0 + $0xe0] sm:$0xff] }
 0x2d1   :  { %v11125_v43 = vld [vmem:[%s15120_s1 + $0x1840] ss:$16 sps:$4 sm:$0xff]   ;;  %v11205_v31 = vld [vmem:[%s15120_s1 + $0x19e4] ss:$16 sps:$4 sm:$0xff]  }
 0x2d3   :  { %7162 = vmatpush1.bf16.msra.mxu0 %v11041_v45  ;;  %8010 = vmatpush1.bf16.msra.mxu1 %v11044_v46  ;;  %v11128_v45 = vld [vmem:[%s15120_s1 + $0x1848] ss:$16 sps:$4 sm:$0xff]   ;;  %v11133_v46 = vld [vmem:[%s15120_s1 + $0x1864] ss:$16 sps:$4 sm:$0xff]  }
 0x2d4   :  { %7163 = vmatprep.subr.bf16.mxu0 %v11049_v47  ;;  %8011 = vmatprep.subr.bf16.mxu1 %v11052_v48  ;;  %v11136_v47 = vld [vmem:[%s15120_s1 + $0x186c] ss:$16 sps:$4 sm:$0xff]   ;;  %v8625_v48 = vcombine.high %v14105_v44, %v14110_v41 }
 0x2d7   :  { %7164 = vmatpush1.bf16.msra.mxu0 %v11047_v51  ;;  %8012 = vmatpush1.bf16.msra.mxu1 %v11050_v52  ;;  %v11131_v51 = vld [vmem:[%s15120_s1 + $0x1860] ss:$16 sps:$4 sm:$0xff]   ;;  %v11134_v52 = vld [vmem:[%s15120_s1 + $0x1868] ss:$16 sps:$4 sm:$0xff]  }
 0x2d8   :  { %7165 = vmatprep.subr.bf16.mxu0 %v11055_v49  ;;  %8013 = vmatprep.subr.bf16.mxu1 %v11058_v50  ;;  %v11139_v49 = vld [vmem:[%s15120_s1 + $0x1884] ss:$16 sps:$4 sm:$0xff]   ;;  %v11142_v50 = vld [vmem:[%s15120_s1 + $0x188c] ss:$16 sps:$4 sm:$0xff]  }
 0x2db   :  { %7166 = vmatpush1.bf16.msra.mxu0 %v11053_v53  ;;  %8014 = vmatpush1.bf16.msra.mxu1 %v11056_v54  ;;  %v11137_v53 = vld [vmem:[%s15120_s1 + $0x1880] ss:$16 sps:$4 sm:$0xff]   ;;  %v11140_v54 = vld [vmem:[%s15120_s1 + $0x1888] ss:$16 sps:$4 sm:$0xff]  }
 0x2dc   :  { %7167 = vmatprep.subr.bf16.mxu0 %v11061_v55  ;;  %8015 = vmatprep.subr.bf16.mxu1 %v11064_v56  ;;  %v11145_v55 = vld [vmem:[%s15120_s1 + $0x18a4] ss:$16 sps:$4 sm:$0xff]   ;;  %v11148_v56 = vld [vmem:[%s15120_s1 + $0x18ac] ss:$16 sps:$4 sm:$0xff]  }
 0x2df   :  { %7168 = vmatpush1.bf16.msra.mxu0 %v11059_v59  ;;  %8016 = vmatpush1.bf16.msra.mxu1 %v11062_v60  ;;  %v11143_v59 = vld [vmem:[%s15120_s1 + $0x18a0] ss:$16 sps:$4 sm:$0xff]   ;;  %v11146_v60 = vld [vmem:[%s15120_s1 + $0x18a8] ss:$16 sps:$4 sm:$0xff]  }
 0x2e0   :  { %7169 = vmatprep.subr.bf16.mxu0 %v11067_v57  ;;  %8017 = vmatprep.subr.bf16.mxu1 %v11070_v58  ;;  %v11151_v57 = vld [vmem:[%s15120_s1 + $0x18c4] ss:$16 sps:$4 sm:$0xff]   ;;  %v11154_v58 = vld [vmem:[%s15120_s1 + $0x18cc] ss:$16 sps:$4 sm:$0xff]  }
 0x2e3   :  { %7170 = vmatpush1.bf16.msra.mxu0 %v11065_v61  ;;  %8018 = vmatpush1.bf16.msra.mxu1 %v11068_v62  ;;  %v11149_v61 = vld [vmem:[%s15120_s1 + $0x18c0] ss:$16 sps:$4 sm:$0xff]   ;;  %v11152_v62 = vld [vmem:[%s15120_s1 + $0x18c8] ss:$16 sps:$4 sm:$0xff]  }
 0x2e4   :  { %7171 = vmatprep.subr.bf16.mxu0 %v11073_v63  ;;  %8019 = vmatprep.subr.bf16.mxu1 %v11076_v0  ;;  %v11157_v63 = vld [vmem:[%s15120_s1 + $0x18e4] ss:$16 sps:$4 sm:$0xff]   ;;  %v11160_v0 = vld [vmem:[%s15120_s1 + $0x18ec] ss:$16 sps:$4 sm:$0xff]  }
 0x2e7   :  { %7172 = vmatpush1.bf16.msra.mxu0 %v11071_v3  ;;  %8020 = vmatpush1.bf16.msra.mxu1 %v11074_v4  ;;  %v11155_v3 = vld [vmem:[%s15120_s1 + $0x18e0] ss:$16 sps:$4 sm:$0xff]   ;;  %v11158_v4 = vld [vmem:[%s15120_s1 + $0x18e8] ss:$16 sps:$4 sm:$0xff]  }
 0x2e8   :  { %7173 = vmatprep.subr.bf16.mxu0 %v11079_v1  ;;  %8021 = vmatprep.subr.bf16.mxu1 %v11082_v2  ;;  %v11163_v1 = vld [vmem:[%s15120_s1 + $0x1904] ss:$16 sps:$4 sm:$0xff]   ;;  %v11166_v2 = vld [vmem:[%s15120_s1 + $0x190c] ss:$16 sps:$4 sm:$0xff]  }
 0x2eb   :  { %7174 = vmatpush1.bf16.msra.mxu0 %v11077_v5  ;;  %8022 = vmatpush1.bf16.msra.mxu1 %v11080_v6  ;;  %v11161_v5 = vld [vmem:[%s15120_s1 + $0x1900] ss:$16 sps:$4 sm:$0xff]   ;;  %v11164_v6 = vld [vmem:[%s15120_s1 + $0x1908] ss:$16 sps:$4 sm:$0xff]  }
 0x2ec   :  { %7175 = vmatprep.subr.bf16.mxu0 %v11085_v7  ;;  %8023 = vmatprep.subr.bf16.mxu1 %v11088_v8  ;;  %v11169_v7 = vld [vmem:[%s15120_s1 + $0x1924] ss:$16 sps:$4 sm:$0xff]   ;;  %v11172_v8 = vld [vmem:[%s15120_s1 + $0x192c] ss:$16 sps:$4 sm:$0xff]  }
 0x2ef   :  { %7176 = vmatpush1.bf16.msra.mxu0 %v11083_v11  ;;  %8024 = vmatpush1.bf16.msra.mxu1 %v11086_v12  ;;  %v11167_v11 = vld [vmem:[%s15120_s1 + $0x1920] ss:$16 sps:$4 sm:$0xff]   ;;  %v11170_v12 = vld [vmem:[%s15120_s1 + $0x1928] ss:$16 sps:$4 sm:$0xff]  }
 0x2f0   :  { %7177 = vmatprep.subr.bf16.mxu0 %v11091_v9  ;;  %8025 = vmatprep.subr.bf16.mxu1 %v11094_v10  ;;  %v11175_v9 = vld [vmem:[%s15120_s1 + $0x1944] ss:$16 sps:$4 sm:$0xff]   ;;  %v11178_v10 = vld [vmem:[%s15120_s1 + $0x194c] ss:$16 sps:$4 sm:$0xff]  }
 0x2f3   :  { %7178 = vmatpush1.bf16.msra.mxu0 %v11089_v13  ;;  %8026 = vmatpush1.bf16.msra.mxu1 %v11092_v14  ;;  %v11173_v13 = vld [vmem:[%s15120_s1 + $0x1940] ss:$16 sps:$4 sm:$0xff]   ;;  %v11176_v14 = vld [vmem:[%s15120_s1 + $0x1948] ss:$16 sps:$4 sm:$0xff]  }
 0x2f4   :  { %7179 = vmatprep.subr.bf16.mxu0 %v11097_v15  ;;  %8027 = vmatprep.subr.bf16.mxu1 %v11100_v16  ;;  %v11181_v15 = vld [vmem:[%s15120_s1 + $0x1964] ss:$16 sps:$4 sm:$0xff]   ;;  %v11184_v16 = vld [vmem:[%s15120_s1 + $0x196c] ss:$16 sps:$4 sm:$0xff]  }
 0x2f7   :  { %7180 = vmatpush1.bf16.msra.mxu0 %v11095_v19  ;;  %8028 = vmatpush1.bf16.msra.mxu1 %v11098_v17  ;;  %v11179_v19 = vld [vmem:[%s15120_s1 + $0x1960] ss:$16 sps:$4 sm:$0xff]   ;;  %v11182_v17 = vld [vmem:[%s15120_s1 + $0x1968] ss:$16 sps:$4 sm:$0xff]  }
 0x2f8   :  { %7181 = vmatprep.subr.bf16.mxu0 %v11103_v18  ;;  %8029 = vmatprep.subr.bf16.mxu1 %v11106_v20  ;;  %v11187_v18 = vld [vmem:[%s15120_s1 + $0x1984] ss:$16 sps:$4 sm:$0xff]   ;;  %v11190_v20 = vld [vmem:[%s15120_s1 + $0x198c] ss:$16 sps:$4 sm:$0xff]  }
 0x2fb   :  { %7182 = vmatpush1.bf16.msra.mxu0 %v11101_v21  ;;  %8030 = vmatpush1.bf16.msra.mxu1 %v11104_v22  ;;  %v11185_v21 = vld [vmem:[%s15120_s1 + $0x1980] ss:$16 sps:$4 sm:$0xff]   ;;  %v11188_v22 = vld [vmem:[%s15120_s1 + $0x1988] ss:$16 sps:$4 sm:$0xff]  }
 0x2fc   :  { %7183 = vmatprep.subr.bf16.mxu0 %v11109_v23  ;;  %8031 = vmatprep.subr.bf16.mxu1 %v11112_v24  ;;  %v11193_v23 = vld [vmem:[%s15120_s1 + $0x19a4] ss:$16 sps:$4 sm:$0xff]   ;;  %v11196_v24 = vld [vmem:[%s15120_s1 + $0x19ac] ss:$16 sps:$4 sm:$0xff]  }
 0x2ff   :  { %7184 = vmatpush1.bf16.msra.mxu0 %v11107_v26  ;;  %8032 = vmatpush1.bf16.msra.mxu1 %v11110_v25  ;;  %v11191_v26 = vld [vmem:[%s15120_s1 + $0x19a0] ss:$16 sps:$4 sm:$0xff]   ;;  %v11194_v25 = vld [vmem:[%s15120_s1 + $0x19a8] ss:$16 sps:$4 sm:$0xff]  }
 0x300   :  { %7206 = vmatprep.subr.bf16.mxu0 %v11115_v27  ;;  %8054 = vmatprep.subr.bf16.mxu1 %v11118_v28  ;;  %v11199_v27 = vld [vmem:[%s15120_s1 + $0x19c4] ss:$16 sps:$4 sm:$0xff]   ;;  %v11202_v28 = vld [vmem:[%s15120_s1 + $0x19cc] ss:$16 sps:$4 sm:$0xff]  }
 0x302   :  { %7186 = vmatmul.mubr.bf16.vlgmr.msra.gmra.mrb[0].mxu0 %v8622_v29  ;;  %8034 = vmatmul.mubr.bf16.vlgmr.msra.gmra.mrb[0].mxu1 %v8622_v29  ;;  %v11197_v29 = vld [vmem:[%s15120_s1 + $0x19c0] ss:$16 sps:$4 sm:$0xff]  }
 0x303   :  { %7207 = vmatpush1.bf16.msra.mxu0 %v11113_v32  ;;  %8055 = vmatpush1.bf16.msra.mxu1 %v11116_v34  ;;  %v11208_v32 = vld [vmem:[%s15120_s1 + $0x19ec] ss:$16 sps:$4 sm:$0xff]   ;;  %v11203_v34 = vld [vmem:[%s15120_s1 + $0x19e0] ss:$16 sps:$4 sm:$0xff]  }
 0x304   :  { %7208 = vmatprep.subr.bf16.mxu0 %v11121_v36  ;;  %8056 = vmatprep.subr.bf16.mxu1 %v11124_v33  ;;  %v11206_v36 = vld [vmem:[%s15120_s1 + $0x19e8] ss:$16 sps:$4 sm:$0xff]   ;;  %v11211_v33 = vld [vmem:[%s15120_s1 + $0x1a04] ss:$16 sps:$4 sm:$0xff]  }
 0x305   :  { %7195 = vmatprep.mubr.bf16.mxu0 %v8655_v35  ;;  %8043 = vmatprep.mubr.bf16.mxu1 %v8655_v35  ;;  %v11214_v35 = vld [vmem:[%s15120_s1 + $0x1a0c] ss:$16 sps:$4 sm:$0xff]  }
 0x307   :  { %7209 = vmatpush1.bf16.msra.mxu0 %v11119_v37  ;;  %8057 = vmatpush1.bf16.msra.mxu1 %v11122_v38  ;;  %v8624_v37 = vcombine.low %v14105_v44, %v14110_v41  ;;  %v64_v38 = vld [vmem:[%s15121_s0 + $0x160] sm:$0xff]  ;;  %v11220_v41 = vld [vmem:[%s15120_s1 + $0x1a2c] ss:$16 sps:$4 sm:$0xff]  }
 0x308   :  { %7210 = vmatprep.subr.bf16.mxu0 %v11127_v39  ;;  %8058 = vmatprep.subr.bf16.mxu1 %v11130_v40  ;;  %v80_v39 = vld [vmem:[%s15121_s0 + $0x1e0] sm:$0xff] }
 0x309   :  { %v11209_v40 = vld [vmem:[%s15120_s1 + $0x1a00] ss:$16 sps:$4 sm:$0xff]   ;;  %v11217_v44 = vld [vmem:[%s15120_s1 + $0x1a24] ss:$16 sps:$4 sm:$0xff]  }
 0x30a   :  { %7196 = vmatmul.mubr.bf16.gmra.mrb[4].mxu0 %v8654_v42  ;;  %8044 = vmatmul.mubr.bf16.gmra.mrb[4].mxu1 %v8654_v42  ;;  %v11212_v42 = vld [vmem:[%s15120_s1 + $0x1a08] ss:$16 sps:$4 sm:$0xff]  }
 0x30b   :  { %7211 = vmatpush1.bf16.msra.mxu0 %v11125_v43  ;;  %8059 = vmatpush1.bf16.msra.mxu1 %v11128_v45  ;;  %v8657_v43 = vcombine.high %v64_v38, %v80_v39  ;;  %v11215_v45 = vld [vmem:[%s15120_s1 + $0x1a20] ss:$16 sps:$4 sm:$0xff]  }
 0x30c   :  { %7212 = vmatprep.subr.bf16.mxu0 %v11133_v46  ;;  %8060 = vmatprep.subr.bf16.mxu1 %v11136_v47  ;;  %v11218_v46 = vld [vmem:[%s15120_s1 + $0x1a28] ss:$16 sps:$4 sm:$0xff]   ;;  %v11223_v47 = vld [vmem:[%s15120_s1 + $0x1a44] ss:$16 sps:$4 sm:$0xff]  }
 0x30d   :  { %7238 = vmatprep.mubr.bf16.mxu0 %v8625_v48  ;;  %8086 = vmatprep.mubr.bf16.mxu1 %v8625_v48  ;;  %v11226_v48 = vld [vmem:[%s15120_s1 + $0x1a4c] ss:$16 sps:$4 sm:$0xff]  }
 0x30f   :  { %7213 = vmatpush1.bf16.msra.mxu0 %v11131_v51  ;;  %8061 = vmatpush1.bf16.msra.mxu1 %v11134_v52  ;;  %v8656_v51 = vcombine.low %v64_v38, %v80_v39  ;;  %v14317_v52 = vld [vmem:[%s15121_s0 + $0x68] sm:$0xff]  ;;  %v11301_v39 = vld [vmem:[%s15120_s1 + $0x1be4] ss:$16 sps:$4 sm:$0xff]  }
 0x310   :  { %7214 = vmatprep.subr.bf16.mxu0 %v11139_v49  ;;  %8062 = vmatprep.subr.bf16.mxu1 %v11142_v50  ;;  %v14322_v49 = vld [vmem:[%s15121_s0 + $0xe8] sm:$0xff]  ;;  %v11221_v50 = vld [vmem:[%s15120_s1 + $0x1a40] ss:$16 sps:$4 sm:$0xff]  }
 0x311   :  { %v11296_v38 = vld [vmem:[%s15120_s1 + $0x1bc8] ss:$16 sps:$4 sm:$0xff]  }
 0x313   :  { %7215 = vmatpush1.bf16.msra.mxu0 %v11137_v53  ;;  %8063 = vmatpush1.bf16.msra.mxu1 %v11140_v54  ;;  %v11224_v53 = vld [vmem:[%s15120_s1 + $0x1a48] ss:$16 sps:$4 sm:$0xff]   ;;  %v11229_v54 = vld [vmem:[%s15120_s1 + $0x1a64] ss:$16 sps:$4 sm:$0xff]  }
 0x314   :  { %7216 = vmatprep.subr.bf16.mxu0 %v11145_v55  ;;  %8064 = vmatprep.subr.bf16.mxu1 %v11148_v56  ;;  %v11232_v55 = vld [vmem:[%s15120_s1 + $0x1a6c] ss:$16 sps:$4 sm:$0xff]   ;;  %v8627_v56 = vcombine.high %v14317_v52, %v14322_v49 }
 0x317   :  { %7217 = vmatpush1.bf16.msra.mxu0 %v11143_v59  ;;  %8065 = vmatpush1.bf16.msra.mxu1 %v11146_v60  ;;  %v11227_v59 = vld [vmem:[%s15120_s1 + $0x1a60] ss:$16 sps:$4 sm:$0xff]   ;;  %v11230_v60 = vld [vmem:[%s15120_s1 + $0x1a68] ss:$16 sps:$4 sm:$0xff]  }
 0x318   :  { %7218 = vmatprep.subr.bf16.mxu0 %v11151_v57  ;;  %8066 = vmatprep.subr.bf16.mxu1 %v11154_v58  ;;  %v11235_v57 = vld [vmem:[%s15120_s1 + $0x1a84] ss:$16 sps:$4 sm:$0xff]   ;;  %v11238_v58 = vld [vmem:[%s15120_s1 + $0x1a8c] ss:$16 sps:$4 sm:$0xff]  }
 0x31b   :  { %7219 = vmatpush1.bf16.msra.mxu0 %v11149_v61  ;;  %8067 = vmatpush1.bf16.msra.mxu1 %v11152_v62  ;;  %v11233_v61 = vld [vmem:[%s15120_s1 + $0x1a80] ss:$16 sps:$4 sm:$0xff]   ;;  %v11236_v62 = vld [vmem:[%s15120_s1 + $0x1a88] ss:$16 sps:$4 sm:$0xff]  }
 0x31c   :  { %7220 = vmatprep.subr.bf16.mxu0 %v11157_v63  ;;  %8068 = vmatprep.subr.bf16.mxu1 %v11160_v0  ;;  %v11241_v63 = vld [vmem:[%s15120_s1 + $0x1aa4] ss:$16 sps:$4 sm:$0xff]   ;;  %v11244_v0 = vld [vmem:[%s15120_s1 + $0x1aac] ss:$16 sps:$4 sm:$0xff]  }
 0x31f   :  { %7221 = vmatpush1.bf16.msra.mxu0 %v11155_v3  ;;  %8069 = vmatpush1.bf16.msra.mxu1 %v11158_v4  ;;  %v11239_v3 = vld [vmem:[%s15120_s1 + $0x1aa0] ss:$16 sps:$4 sm:$0xff]   ;;  %v11242_v4 = vld [vmem:[%s15120_s1 + $0x1aa8] ss:$16 sps:$4 sm:$0xff]  }
 0x320   :  { %7222 = vmatprep.subr.bf16.mxu0 %v11163_v1  ;;  %8070 = vmatprep.subr.bf16.mxu1 %v11166_v2  ;;  %v11247_v1 = vld [vmem:[%s15120_s1 + $0x1ac4] ss:$16 sps:$4 sm:$0xff]   ;;  %v11250_v2 = vld [vmem:[%s15120_s1 + $0x1acc] ss:$16 sps:$4 sm:$0xff]  }
 0x323   :  { %7223 = vmatpush1.bf16.msra.mxu0 %v11161_v5  ;;  %8071 = vmatpush1.bf16.msra.mxu1 %v11164_v6  ;;  %v11245_v5 = vld [vmem:[%s15120_s1 + $0x1ac0] ss:$16 sps:$4 sm:$0xff]   ;;  %v11248_v6 = vld [vmem:[%s15120_s1 + $0x1ac8] ss:$16 sps:$4 sm:$0xff]  }
 0x324   :  { %7224 = vmatprep.subr.bf16.mxu0 %v11169_v7  ;;  %8072 = vmatprep.subr.bf16.mxu1 %v11172_v8  ;;  %v11253_v7 = vld [vmem:[%s15120_s1 + $0x1ae4] ss:$16 sps:$4 sm:$0xff]   ;;  %v11256_v8 = vld [vmem:[%s15120_s1 + $0x1aec] ss:$16 sps:$4 sm:$0xff]  }
 0x327   :  { %7225 = vmatpush1.bf16.msra.mxu0 %v11167_v11  ;;  %8073 = vmatpush1.bf16.msra.mxu1 %v11170_v12  ;;  %v11251_v11 = vld [vmem:[%s15120_s1 + $0x1ae0] ss:$16 sps:$4 sm:$0xff]   ;;  %v11254_v12 = vld [vmem:[%s15120_s1 + $0x1ae8] ss:$16 sps:$4 sm:$0xff]  }
 0x328   :  { %7226 = vmatprep.subr.bf16.mxu0 %v11175_v9  ;;  %8074 = vmatprep.subr.bf16.mxu1 %v11178_v10  ;;  %v11259_v9 = vld [vmem:[%s15120_s1 + $0x1b04] ss:$16 sps:$4 sm:$0xff]   ;;  %v11262_v10 = vld [vmem:[%s15120_s1 + $0x1b0c] ss:$16 sps:$4 sm:$0xff]  }
 0x32b   :  { %7227 = vmatpush1.bf16.msra.mxu0 %v11173_v13  ;;  %8075 = vmatpush1.bf16.msra.mxu1 %v11176_v14  ;;  %v11257_v13 = vld [vmem:[%s15120_s1 + $0x1b00] ss:$16 sps:$4 sm:$0xff]   ;;  %v11260_v14 = vld [vmem:[%s15120_s1 + $0x1b08] ss:$16 sps:$4 sm:$0xff]  }
 0x32c   :  { %7228 = vmatprep.subr.bf16.mxu0 %v11181_v15  ;;  %8076 = vmatprep.subr.bf16.mxu1 %v11184_v16  ;;  %v11265_v15 = vld [vmem:[%s15120_s1 + $0x1b24] ss:$16 sps:$4 sm:$0xff]   ;;  %v11268_v16 = vld [vmem:[%s15120_s1 + $0x1b2c] ss:$16 sps:$4 sm:$0xff]  }
 0x32f   :  { %7229 = vmatpush1.bf16.msra.mxu0 %v11179_v19  ;;  %8077 = vmatpush1.bf16.msra.mxu1 %v11182_v17  ;;  %v11263_v19 = vld [vmem:[%s15120_s1 + $0x1b20] ss:$16 sps:$4 sm:$0xff]   ;;  %v11266_v17 = vld [vmem:[%s15120_s1 + $0x1b28] ss:$16 sps:$4 sm:$0xff]  }
 0x330   :  { %7230 = vmatprep.subr.bf16.mxu0 %v11187_v18  ;;  %8078 = vmatprep.subr.bf16.mxu1 %v11190_v20  ;;  %v11271_v18 = vld [vmem:[%s15120_s1 + $0x1b44] ss:$16 sps:$4 sm:$0xff]   ;;  %v11274_v20 = vld [vmem:[%s15120_s1 + $0x1b4c] ss:$16 sps:$4 sm:$0xff]  }
 0x333   :  { %7231 = vmatpush1.bf16.msra.mxu0 %v11185_v21  ;;  %8079 = vmatpush1.bf16.msra.mxu1 %v11188_v22  ;;  %v11269_v21 = vld [vmem:[%s15120_s1 + $0x1b40] ss:$16 sps:$4 sm:$0xff]   ;;  %v11272_v22 = vld [vmem:[%s15120_s1 + $0x1b48] ss:$16 sps:$4 sm:$0xff]  }
 0x334   :  { %7232 = vmatprep.subr.bf16.mxu0 %v11193_v23  ;;  %8080 = vmatprep.subr.bf16.mxu1 %v11196_v24  ;;  %v11277_v23 = vld [vmem:[%s15120_s1 + $0x1b64] ss:$16 sps:$4 sm:$0xff]   ;;  %v11280_v24 = vld [vmem:[%s15120_s1 + $0x1b6c] ss:$16 sps:$4 sm:$0xff]  }
 0x337   :  { %7233 = vmatpush1.bf16.msra.mxu0 %v11191_v26  ;;  %8081 = vmatpush1.bf16.msra.mxu1 %v11194_v25  ;;  %v11275_v26 = vld [vmem:[%s15120_s1 + $0x1b60] ss:$16 sps:$4 sm:$0xff]   ;;  %v11278_v25 = vld [vmem:[%s15120_s1 + $0x1b68] ss:$16 sps:$4 sm:$0xff]  }
 0x338   :  { %7234 = vmatprep.subr.bf16.mxu0 %v11199_v27  ;;  %8082 = vmatprep.subr.bf16.mxu1 %v11202_v28  ;;  %v11283_v27 = vld [vmem:[%s15120_s1 + $0x1b84] ss:$16 sps:$4 sm:$0xff]   ;;  %v11286_v28 = vld [vmem:[%s15120_s1 + $0x1b8c] ss:$16 sps:$4 sm:$0xff]  }
 0x33b   :  { %7235 = vmatpush1.bf16.msra.mxu0 %v11197_v29  ;;  %8083 = vmatpush1.bf16.msra.mxu1 %v11200_v30  ;;  %v11281_v29 = vld [vmem:[%s15120_s1 + $0x1b80] ss:$16 sps:$4 sm:$0xff]   ;;  %v11284_v30 = vld [vmem:[%s15120_s1 + $0x1b88] ss:$16 sps:$4 sm:$0xff]  }
 0x33c   :  { %7236 = vmatprep.subr.bf16.mxu0 %v11205_v31  ;;  %8084 = vmatprep.subr.bf16.mxu1 %v11208_v32  ;;  %v11289_v31 = vld [vmem:[%s15120_s1 + $0x1ba4] ss:$16 sps:$4 sm:$0xff]   ;;  %v11292_v32 = vld [vmem:[%s15120_s1 + $0x1bac] ss:$16 sps:$4 sm:$0xff]  }
 0x33f   :  { %7237 = vmatpush1.bf16.msra.mxu0 %v11203_v34  ;;  %8085 = vmatpush1.bf16.msra.mxu1 %v11206_v36  ;;  %v11287_v34 = vld [vmem:[%s15120_s1 + $0x1ba0] ss:$16 sps:$4 sm:$0xff]   ;;  %v11290_v36 = vld [vmem:[%s15120_s1 + $0x1ba8] ss:$16 sps:$4 sm:$0xff]  }
 0x340   :  { %7259 = vmatprep.subr.bf16.mxu0 %v11211_v33  ;;  %8107 = vmatprep.subr.bf16.mxu1 %v11214_v35  ;;  %v11295_v33 = vld [vmem:[%s15120_s1 + $0x1bc4] ss:$16 sps:$4 sm:$0xff]   ;;  %v11298_v35 = vld [vmem:[%s15120_s1 + $0x1bcc] ss:$16 sps:$4 sm:$0xff]  }
 0x342   :  { %7239 = vmatmul.mubr.bf16.vlgmr.msra.gmra.mrb[0].mxu0 %v8624_v37  ;;  %8087 = vmatmul.mubr.bf16.vlgmr.msra.gmra.mrb[0].mxu1 %v8624_v37  ;;  %v11293_v37 = vld [vmem:[%s15120_s1 + $0x1bc0] ss:$16 sps:$4 sm:$0xff]  }
 0x343   :  { %7260 = vmatpush1.bf16.msra.mxu0 %v11209_v40  ;;  %8108 = vmatpush1.bf16.msra.mxu1 %v11212_v42  ;;  %v11304_v40 = vld [vmem:[%s15120_s1 + $0x1bec] ss:$16 sps:$4 sm:$0xff]   ;;  %v11299_v42 = vld [vmem:[%s15120_s1 + $0x1be0] ss:$16 sps:$4 sm:$0xff]  }
 0x344   :  { %7261 = vmatprep.subr.bf16.mxu0 %v11217_v44  ;;  %8109 = vmatprep.subr.bf16.mxu1 %v11220_v41  ;;  %v11302_v44 = vld [vmem:[%s15120_s1 + $0x1be8] ss:$16 sps:$4 sm:$0xff]   ;;  %v11307_v41 = vld [vmem:[%s15120_s1 + $0x1c04] ss:$16 sps:$4 sm:$0xff]  }
 0x345   :  { %7248 = vmatprep.mubr.bf16.mxu0 %v8657_v43  ;;  %8096 = vmatprep.mubr.bf16.mxu1 %v8657_v43  ;;  %v11310_v43 = vld [vmem:[%s15120_s1 + $0x1c0c] ss:$16 sps:$4 sm:$0xff]  }
 0x347   :  { %7262 = vmatpush1.bf16.msra.mxu0 %v11215_v45  ;;  %8110 = vmatpush1.bf16.msra.mxu1 %v11218_v46  ;;  %v8626_v45 = vcombine.low %v14317_v52, %v14322_v49  ;;  %v65_v46 = vld [vmem:[%s15121_s0 + $0x168] sm:$0xff]  ;;  %v11313_v52 = vld [vmem:[%s15120_s1 + $0x1c24] ss:$16 sps:$4 sm:$0xff]  }
 0x348   :  { %7263 = vmatprep.subr.bf16.mxu0 %v11223_v47  ;;  %8111 = vmatprep.subr.bf16.mxu1 %v11226_v48  ;;  %v81_v47 = vld [vmem:[%s15121_s0 + $0x1e8] sm:$0xff]  ;;  %v11305_v48 = vld [vmem:[%s15120_s1 + $0x1c00] ss:$16 sps:$4 sm:$0xff]  }
 0x349   :  { %v11316_v49 = vld [vmem:[%s15120_s1 + $0x1c2c] ss:$16 sps:$4 sm:$0xff]  }
 0x34a   :  { %7249 = vmatmul.mubr.bf16.gmra.mrb[4].mxu0 %v8656_v51  ;;  %8097 = vmatmul.mubr.bf16.gmra.mrb[4].mxu1 %v8656_v51  ;;  %v11308_v51 = vld [vmem:[%s15120_s1 + $0x1c08] ss:$16 sps:$4 sm:$0xff]  }
 0x34b   :  { %7264 = vmatpush1.bf16.msra.mxu0 %v11221_v50  ;;  %8112 = vmatpush1.bf16.msra.mxu1 %v11224_v53  ;;  %v8659_v50 = vcombine.high %v65_v46, %v81_v47  ;;  %v11311_v53 = vld [vmem:[%s15120_s1 + $0x1c20] ss:$16 sps:$4 sm:$0xff]  }
 0x34c   :  { %7265 = vmatprep.subr.bf16.mxu0 %v11229_v54  ;;  %8113 = vmatprep.subr.bf16.mxu1 %v11232_v55  ;;  %v11314_v54 = vld [vmem:[%s15120_s1 + $0x1c28] ss:$16 sps:$4 sm:$0xff]   ;;  %v11319_v55 = vld [vmem:[%s15120_s1 + $0x1c44] ss:$16 sps:$4 sm:$0xff]  }
 0x34d   :  { %7291 = vmatprep.mubr.bf16.mxu0 %v8627_v56  ;;  %8139 = vmatprep.mubr.bf16.mxu1 %v8627_v56  ;;  %v11322_v56 = vld [vmem:[%s15120_s1 + $0x1c4c] ss:$16 sps:$4 sm:$0xff]  }
 0x34f   :  { %7266 = vmatpush1.bf16.msra.mxu0 %v11227_v59  ;;  %8114 = vmatpush1.bf16.msra.mxu1 %v11230_v60  ;;  %v8658_v59 = vcombine.low %v65_v46, %v81_v47  ;;  %v14529_v60 = vld [vmem:[%s15121_s0 + $0x70] sm:$0xff]  ;;  %v11392_v46 = vld [vmem:[%s15120_s1 + $0x1dc8] ss:$16 sps:$4 sm:$0xff]  }
 0x350   :  { %7267 = vmatprep.subr.bf16.mxu0 %v11235_v57  ;;  %8115 = vmatprep.subr.bf16.mxu1 %v11238_v58  ;;  %v14534_v57 = vld [vmem:[%s15121_s0 + $0xf0] sm:$0xff] }
 0x351   :  { %v11317_v58 = vld [vmem:[%s15120_s1 + $0x1c40] ss:$16 sps:$4 sm:$0xff]   ;;  %v11397_v47 = vld [vmem:[%s15120_s1 + $0x1de4] ss:$16 sps:$4 sm:$0xff]  }
 0x353   :  { %7268 = vmatpush1.bf16.msra.mxu0 %v11233_v61  ;;  %8116 = vmatpush1.bf16.msra.mxu1 %v11236_v62  ;;  %v11320_v61 = vld [vmem:[%s15120_s1 + $0x1c48] ss:$16 sps:$4 sm:$0xff]   ;;  %v11325_v62 = vld [vmem:[%s15120_s1 + $0x1c64] ss:$16 sps:$4 sm:$0xff]  }
 0x354   :  { %7269 = vmatprep.subr.bf16.mxu0 %v11241_v63  ;;  %8117 = vmatprep.subr.bf16.mxu1 %v11244_v0  ;;  %v11328_v63 = vld [vmem:[%s15120_s1 + $0x1c6c] ss:$16 sps:$4 sm:$0xff]   ;;  %v8629_v0 = vcombine.high %v14529_v60, %v14534_v57 }
 0x357   :  { %7270 = vmatpush1.bf16.msra.mxu0 %v11239_v3  ;;  %8118 = vmatpush1.bf16.msra.mxu1 %v11242_v4  ;;  %v11323_v3 = vld [vmem:[%s15120_s1 + $0x1c60] ss:$16 sps:$4 sm:$0xff]   ;;  %v11326_v4 = vld [vmem:[%s15120_s1 + $0x1c68] ss:$16 sps:$4 sm:$0xff]  }
 0x358   :  { %7271 = vmatprep.subr.bf16.mxu0 %v11247_v1  ;;  %8119 = vmatprep.subr.bf16.mxu1 %v11250_v2  ;;  %v11331_v1 = vld [vmem:[%s15120_s1 + $0x1c84] ss:$16 sps:$4 sm:$0xff]   ;;  %v11334_v2 = vld [vmem:[%s15120_s1 + $0x1c8c] ss:$16 sps:$4 sm:$0xff]  }
 0x35b   :  { %7272 = vmatpush1.bf16.msra.mxu0 %v11245_v5  ;;  %8120 = vmatpush1.bf16.msra.mxu1 %v11248_v6  ;;  %v11329_v5 = vld [vmem:[%s15120_s1 + $0x1c80] ss:$16 sps:$4 sm:$0xff]   ;;  %v11332_v6 = vld [vmem:[%s15120_s1 + $0x1c88] ss:$16 sps:$4 sm:$0xff]  }
 0x35c   :  { %7273 = vmatprep.subr.bf16.mxu0 %v11253_v7  ;;  %8121 = vmatprep.subr.bf16.mxu1 %v11256_v8  ;;  %v11337_v7 = vld [vmem:[%s15120_s1 + $0x1ca4] ss:$16 sps:$4 sm:$0xff]   ;;  %v11340_v8 = vld [vmem:[%s15120_s1 + $0x1cac] ss:$16 sps:$4 sm:$0xff]  }
 0x35f   :  { %7274 = vmatpush1.bf16.msra.mxu0 %v11251_v11  ;;  %8122 = vmatpush1.bf16.msra.mxu1 %v11254_v12  ;;  %v11335_v11 = vld [vmem:[%s15120_s1 + $0x1ca0] ss:$16 sps:$4 sm:$0xff]   ;;  %v11338_v12 = vld [vmem:[%s15120_s1 + $0x1ca8] ss:$16 sps:$4 sm:$0xff]  }
 0x360   :  { %7275 = vmatprep.subr.bf16.mxu0 %v11259_v9  ;;  %8123 = vmatprep.subr.bf16.mxu1 %v11262_v10  ;;  %v11343_v9 = vld [vmem:[%s15120_s1 + $0x1cc4] ss:$16 sps:$4 sm:$0xff]   ;;  %v11346_v10 = vld [vmem:[%s15120_s1 + $0x1ccc] ss:$16 sps:$4 sm:$0xff]  }
 0x363   :  { %7276 = vmatpush1.bf16.msra.mxu0 %v11257_v13  ;;  %8124 = vmatpush1.bf16.msra.mxu1 %v11260_v14  ;;  %v11341_v13 = vld [vmem:[%s15120_s1 + $0x1cc0] ss:$16 sps:$4 sm:$0xff]   ;;  %v11344_v14 = vld [vmem:[%s15120_s1 + $0x1cc8] ss:$16 sps:$4 sm:$0xff]  }
 0x364   :  { %7277 = vmatprep.subr.bf16.mxu0 %v11265_v15  ;;  %8125 = vmatprep.subr.bf16.mxu1 %v11268_v16  ;;  %v11349_v15 = vld [vmem:[%s15120_s1 + $0x1ce4] ss:$16 sps:$4 sm:$0xff]   ;;  %v11352_v16 = vld [vmem:[%s15120_s1 + $0x1cec] ss:$16 sps:$4 sm:$0xff]  }
 0x367   :  { %7278 = vmatpush1.bf16.msra.mxu0 %v11263_v19  ;;  %8126 = vmatpush1.bf16.msra.mxu1 %v11266_v17  ;;  %v11347_v19 = vld [vmem:[%s15120_s1 + $0x1ce0] ss:$16 sps:$4 sm:$0xff]   ;;  %v11350_v17 = vld [vmem:[%s15120_s1 + $0x1ce8] ss:$16 sps:$4 sm:$0xff]  }
 0x368   :  { %7279 = vmatprep.subr.bf16.mxu0 %v11271_v18  ;;  %8127 = vmatprep.subr.bf16.mxu1 %v11274_v20  ;;  %v11355_v18 = vld [vmem:[%s15120_s1 + $0x1d04] ss:$16 sps:$4 sm:$0xff]   ;;  %v11358_v20 = vld [vmem:[%s15120_s1 + $0x1d0c] ss:$16 sps:$4 sm:$0xff]  }
 0x36b   :  { %7280 = vmatpush1.bf16.msra.mxu0 %v11269_v21  ;;  %8128 = vmatpush1.bf16.msra.mxu1 %v11272_v22  ;;  %v11353_v21 = vld [vmem:[%s15120_s1 + $0x1d00] ss:$16 sps:$4 sm:$0xff]   ;;  %v11356_v22 = vld [vmem:[%s15120_s1 + $0x1d08] ss:$16 sps:$4 sm:$0xff]  }
 0x36c   :  { %7281 = vmatprep.subr.bf16.mxu0 %v11277_v23  ;;  %8129 = vmatprep.subr.bf16.mxu1 %v11280_v24  ;;  %v11361_v23 = vld [vmem:[%s15120_s1 + $0x1d24] ss:$16 sps:$4 sm:$0xff]   ;;  %v11364_v24 = vld [vmem:[%s15120_s1 + $0x1d2c] ss:$16 sps:$4 sm:$0xff]  }
 0x36f   :  { %7282 = vmatpush1.bf16.msra.mxu0 %v11275_v26  ;;  %8130 = vmatpush1.bf16.msra.mxu1 %v11278_v25  ;;  %v11359_v26 = vld [vmem:[%s15120_s1 + $0x1d20] ss:$16 sps:$4 sm:$0xff]   ;;  %v11362_v25 = vld [vmem:[%s15120_s1 + $0x1d28] ss:$16 sps:$4 sm:$0xff]  }
 0x370   :  { %7283 = vmatprep.subr.bf16.mxu0 %v11283_v27  ;;  %8131 = vmatprep.subr.bf16.mxu1 %v11286_v28  ;;  %v11367_v27 = vld [vmem:[%s15120_s1 + $0x1d44] ss:$16 sps:$4 sm:$0xff]   ;;  %v11370_v28 = vld [vmem:[%s15120_s1 + $0x1d4c] ss:$16 sps:$4 sm:$0xff]  }
 0x373   :  { %7284 = vmatpush1.bf16.msra.mxu0 %v11281_v29  ;;  %8132 = vmatpush1.bf16.msra.mxu1 %v11284_v30  ;;  %v11365_v29 = vld [vmem:[%s15120_s1 + $0x1d40] ss:$16 sps:$4 sm:$0xff]   ;;  %v11368_v30 = vld [vmem:[%s15120_s1 + $0x1d48] ss:$16 sps:$4 sm:$0xff]  }
 0x374   :  { %7285 = vmatprep.subr.bf16.mxu0 %v11289_v31  ;;  %8133 = vmatprep.subr.bf16.mxu1 %v11292_v32  ;;  %v11373_v31 = vld [vmem:[%s15120_s1 + $0x1d64] ss:$16 sps:$4 sm:$0xff]   ;;  %v11376_v32 = vld [vmem:[%s15120_s1 + $0x1d6c] ss:$16 sps:$4 sm:$0xff]  }
 0x377   :  { %7286 = vmatpush1.bf16.msra.mxu0 %v11287_v34  ;;  %8134 = vmatpush1.bf16.msra.mxu1 %v11290_v36  ;;  %v11371_v34 = vld [vmem:[%s15120_s1 + $0x1d60] ss:$16 sps:$4 sm:$0xff]   ;;  %v11374_v36 = vld [vmem:[%s15120_s1 + $0x1d68] ss:$16 sps:$4 sm:$0xff]  }
 0x378   :  { %7287 = vmatprep.subr.bf16.mxu0 %v11295_v33  ;;  %8135 = vmatprep.subr.bf16.mxu1 %v11298_v35  ;;  %v11379_v33 = vld [vmem:[%s15120_s1 + $0x1d84] ss:$16 sps:$4 sm:$0xff]   ;;  %v11382_v35 = vld [vmem:[%s15120_s1 + $0x1d8c] ss:$16 sps:$4 sm:$0xff]  }
 0x37b   :  { %7288 = vmatpush1.bf16.msra.mxu0 %v11293_v37  ;;  %8136 = vmatpush1.bf16.msra.mxu1 %v11296_v38  ;;  %v11377_v37 = vld [vmem:[%s15120_s1 + $0x1d80] ss:$16 sps:$4 sm:$0xff]   ;;  %v11380_v38 = vld [vmem:[%s15120_s1 + $0x1d88] ss:$16 sps:$4 sm:$0xff]  }
 0x37c   :  { %7289 = vmatprep.subr.bf16.mxu0 %v11301_v39  ;;  %8137 = vmatprep.subr.bf16.mxu1 %v11304_v40  ;;  %v11385_v39 = vld [vmem:[%s15120_s1 + $0x1da4] ss:$16 sps:$4 sm:$0xff]   ;;  %v11388_v40 = vld [vmem:[%s15120_s1 + $0x1dac] ss:$16 sps:$4 sm:$0xff]  }
 0x37f   :  { %7290 = vmatpush1.bf16.msra.mxu0 %v11299_v42  ;;  %8138 = vmatpush1.bf16.msra.mxu1 %v11302_v44  ;;  %v11383_v42 = vld [vmem:[%s15120_s1 + $0x1da0] ss:$16 sps:$4 sm:$0xff]   ;;  %v11386_v44 = vld [vmem:[%s15120_s1 + $0x1da8] ss:$16 sps:$4 sm:$0xff]  }
 0x380   :  { %7312 = vmatprep.subr.bf16.mxu0 %v11307_v41  ;;  %8160 = vmatprep.subr.bf16.mxu1 %v11310_v43  ;;  %v11391_v41 = vld [vmem:[%s15120_s1 + $0x1dc4] ss:$16 sps:$4 sm:$0xff]   ;;  %v11394_v43 = vld [vmem:[%s15120_s1 + $0x1dcc] ss:$16 sps:$4 sm:$0xff]  }
 0x382   :  { %7292 = vmatmul.mubr.bf16.vlgmr.msra.gmra.mrb[0].mxu0 %v8626_v45  ;;  %8140 = vmatmul.mubr.bf16.vlgmr.msra.gmra.mrb[0].mxu1 %v8626_v45  ;;  %v11389_v45 = vld [vmem:[%s15120_s1 + $0x1dc0] ss:$16 sps:$4 sm:$0xff]  }
 0x383   :  { %7313 = vmatpush1.bf16.msra.mxu0 %v11305_v48  ;;  %8161 = vmatpush1.bf16.msra.mxu1 %v11308_v51  ;;  %v11400_v48 = vld [vmem:[%s15120_s1 + $0x1dec] ss:$16 sps:$4 sm:$0xff]   ;;  %v11395_v51 = vld [vmem:[%s15120_s1 + $0x1de0] ss:$16 sps:$4 sm:$0xff]  }
 0x384   :  { %7314 = vmatprep.subr.bf16.mxu0 %v11313_v52  ;;  %8162 = vmatprep.subr.bf16.mxu1 %v11316_v49  ;;  %v11398_v52 = vld [vmem:[%s15120_s1 + $0x1de8] ss:$16 sps:$4 sm:$0xff]   ;;  %v11403_v49 = vld [vmem:[%s15120_s1 + $0x1e04] ss:$16 sps:$4 sm:$0xff]  }
 0x385   :  { %7301 = vmatprep.mubr.bf16.mxu0 %v8659_v50  ;;  %8149 = vmatprep.mubr.bf16.mxu1 %v8659_v50  ;;  %v11406_v50 = vld [vmem:[%s15120_s1 + $0x1e0c] ss:$16 sps:$4 sm:$0xff]  }
 0x387   :  { %7315 = vmatpush1.bf16.msra.mxu0 %v11311_v53  ;;  %8163 = vmatpush1.bf16.msra.mxu1 %v11314_v54  ;;  %v8628_v53 = vcombine.low %v14529_v60, %v14534_v57  ;;  %v66_v54 = vld [vmem:[%s15121_s0 + $0x170] sm:$0xff]  ;;  %v11412_v57 = vld [vmem:[%s15120_s1 + $0x1e2c] ss:$16 sps:$4 sm:$0xff]  }
 0x388   :  { %7316 = vmatprep.subr.bf16.mxu0 %v11319_v55  ;;  %8164 = vmatprep.subr.bf16.mxu1 %v11322_v56  ;;  %v82_v55 = vld [vmem:[%s15121_s0 + $0x1f0] sm:$0xff] }
 0x389   :  { %v11401_v56 = vld [vmem:[%s15120_s1 + $0x1e00] ss:$16 sps:$4 sm:$0xff]   ;;  %v11409_v60 = vld [vmem:[%s15120_s1 + $0x1e24] ss:$16 sps:$4 sm:$0xff]  }
 0x38a   :  { %7302 = vmatmul.mubr.bf16.gmra.mrb[4].mxu0 %v8658_v59  ;;  %8150 = vmatmul.mubr.bf16.gmra.mrb[4].mxu1 %v8658_v59  ;;  %v11404_v59 = vld [vmem:[%s15120_s1 + $0x1e08] ss:$16 sps:$4 sm:$0xff]  }
 0x38b   :  { %7317 = vmatpush1.bf16.msra.mxu0 %v11317_v58  ;;  %8165 = vmatpush1.bf16.msra.mxu1 %v11320_v61  ;;  %v8661_v58 = vcombine.high %v66_v54, %v82_v55  ;;  %v11407_v61 = vld [vmem:[%s15120_s1 + $0x1e20] ss:$16 sps:$4 sm:$0xff]  }
 0x38c   :  { %7318 = vmatprep.subr.bf16.mxu0 %v11325_v62  ;;  %8166 = vmatprep.subr.bf16.mxu1 %v11328_v63  ;;  %v11410_v62 = vld [vmem:[%s15120_s1 + $0x1e28] ss:$16 sps:$4 sm:$0xff]   ;;  %v11415_v63 = vld [vmem:[%s15120_s1 + $0x1e44] ss:$16 sps:$4 sm:$0xff]  }
 0x38d   :  { %7344 = vmatprep.mubr.bf16.mxu0 %v8629_v0  ;;  %8192 = vmatprep.mubr.bf16.mxu1 %v8629_v0  ;;  %v11418_v0 = vld [vmem:[%s15120_s1 + $0x1e4c] ss:$16 sps:$4 sm:$0xff]  }
 0x38f   :  { %7319 = vmatpush1.bf16.msra.mxu0 %v11323_v3  ;;  %8167 = vmatpush1.bf16.msra.mxu1 %v11326_v4  ;;  %v8660_v3 = vcombine.low %v66_v54, %v82_v55  ;;  %v14741_v4 = vld [vmem:[%s15121_s0 + $0x78] sm:$0xff]  ;;  %v11493_v55 = vld [vmem:[%s15120_s1 + $0x1fe4] ss:$16 sps:$4 sm:$0xff]  }
 0x390   :  { %7320 = vmatprep.subr.bf16.mxu0 %v11331_v1  ;;  %8168 = vmatprep.subr.bf16.mxu1 %v11334_v2  ;;  %v14746_v1 = vld [vmem:[%s15121_s0 + $0xf8] sm:$0xff]  ;;  %v11413_v2 = vld [vmem:[%s15120_s1 + $0x1e40] ss:$16 sps:$4 sm:$0xff]  }
 0x391   :  { %v11488_v54 = vld [vmem:[%s15120_s1 + $0x1fc8] ss:$16 sps:$4 sm:$0xff]  }
 0x393   :  { %7321 = vmatpush1.bf16.msra.mxu0 %v11329_v5  ;;  %8169 = vmatpush1.bf16.msra.mxu1 %v11332_v6  ;;  %v11416_v5 = vld [vmem:[%s15120_s1 + $0x1e48] ss:$16 sps:$4 sm:$0xff]   ;;  %v11421_v6 = vld [vmem:[%s15120_s1 + $0x1e64] ss:$16 sps:$4 sm:$0xff]  }
 0x394   :  { %7322 = vmatprep.subr.bf16.mxu0 %v11337_v7  ;;  %8170 = vmatprep.subr.bf16.mxu1 %v11340_v8  ;;  %v11424_v7 = vld [vmem:[%s15120_s1 + $0x1e6c] ss:$16 sps:$4 sm:$0xff]   ;;  %v8631_v8 = vcombine.high %v14741_v4, %v14746_v1 }
 0x397   :  { %7323 = vmatpush1.bf16.msra.mxu0 %v11335_v11  ;;  %8171 = vmatpush1.bf16.msra.mxu1 %v11338_v12  ;;  %v11419_v11 = vld [vmem:[%s15120_s1 + $0x1e60] ss:$16 sps:$4 sm:$0xff]   ;;  %v11422_v12 = vld [vmem:[%s15120_s1 + $0x1e68] ss:$16 sps:$4 sm:$0xff]  }
 0x398   :  { %7324 = vmatprep.subr.bf16.mxu0 %v11343_v9  ;;  %8172 = vmatprep.subr.bf16.mxu1 %v11346_v10  ;;  %v11427_v9 = vld [vmem:[%s15120_s1 + $0x1e84] ss:$16 sps:$4 sm:$0xff]   ;;  %v11430_v10 = vld [vmem:[%s15120_s1 + $0x1e8c] ss:$16 sps:$4 sm:$0xff]  }
 0x39b   :  { %7325 = vmatpush1.bf16.msra.mxu0 %v11341_v13  ;;  %8173 = vmatpush1.bf16.msra.mxu1 %v11344_v14  ;;  %v11425_v13 = vld [vmem:[%s15120_s1 + $0x1e80] ss:$16 sps:$4 sm:$0xff]   ;;  %v11428_v14 = vld [vmem:[%s15120_s1 + $0x1e88] ss:$16 sps:$4 sm:$0xff]  }
 0x39c   :  { %7326 = vmatprep.subr.bf16.mxu0 %v11349_v15  ;;  %8174 = vmatprep.subr.bf16.mxu1 %v11352_v16  ;;  %v11433_v15 = vld [vmem:[%s15120_s1 + $0x1ea4] ss:$16 sps:$4 sm:$0xff]   ;;  %v11436_v16 = vld [vmem:[%s15120_s1 + $0x1eac] ss:$16 sps:$4 sm:$0xff]  }
 0x39f   :  { %7327 = vmatpush1.bf16.msra.mxu0 %v11347_v19  ;;  %8175 = vmatpush1.bf16.msra.mxu1 %v11350_v17  ;;  %v11431_v19 = vld [vmem:[%s15120_s1 + $0x1ea0] ss:$16 sps:$4 sm:$0xff]   ;;  %v11434_v17 = vld [vmem:[%s15120_s1 + $0x1ea8] ss:$16 sps:$4 sm:$0xff]  }
 0x3a0   :  { %7328 = vmatprep.subr.bf16.mxu0 %v11355_v18  ;;  %8176 = vmatprep.subr.bf16.mxu1 %v11358_v20  ;;  %v11439_v18 = vld [vmem:[%s15120_s1 + $0x1ec4] ss:$16 sps:$4 sm:$0xff]   ;;  %v11442_v20 = vld [vmem:[%s15120_s1 + $0x1ecc] ss:$16 sps:$4 sm:$0xff]  }
 0x3a3   :  { %7329 = vmatpush1.bf16.msra.mxu0 %v11353_v21  ;;  %8177 = vmatpush1.bf16.msra.mxu1 %v11356_v22  ;;  %v11437_v21 = vld [vmem:[%s15120_s1 + $0x1ec0] ss:$16 sps:$4 sm:$0xff]   ;;  %v11440_v22 = vld [vmem:[%s15120_s1 + $0x1ec8] ss:$16 sps:$4 sm:$0xff]  }
 0x3a4   :  { %7330 = vmatprep.subr.bf16.mxu0 %v11361_v23  ;;  %8178 = vmatprep.subr.bf16.mxu1 %v11364_v24  ;;  %v11445_v23 = vld [vmem:[%s15120_s1 + $0x1ee4] ss:$16 sps:$4 sm:$0xff]   ;;  %v11448_v24 = vld [vmem:[%s15120_s1 + $0x1eec] ss:$16 sps:$4 sm:$0xff]  }
 0x3a7   :  { %7331 = vmatpush1.bf16.msra.mxu0 %v11359_v26  ;;  %8179 = vmatpush1.bf16.msra.mxu1 %v11362_v25  ;;  %v11443_v26 = vld [vmem:[%s15120_s1 + $0x1ee0] ss:$16 sps:$4 sm:$0xff]   ;;  %v11446_v25 = vld [vmem:[%s15120_s1 + $0x1ee8] ss:$16 sps:$4 sm:$0xff]  }
 0x3a8   :  { %7332 = vmatprep.subr.bf16.mxu0 %v11367_v27  ;;  %8180 = vmatprep.subr.bf16.mxu1 %v11370_v28  ;;  %v11451_v27 = vld [vmem:[%s15120_s1 + $0x1f04] ss:$16 sps:$4 sm:$0xff]   ;;  %v11454_v28 = vld [vmem:[%s15120_s1 + $0x1f0c] ss:$16 sps:$4 sm:$0xff]  }
 0x3ab   :  { %7333 = vmatpush1.bf16.msra.mxu0 %v11365_v29  ;;  %8181 = vmatpush1.bf16.msra.mxu1 %v11368_v30  ;;  %v11449_v29 = vld [vmem:[%s15120_s1 + $0x1f00] ss:$16 sps:$4 sm:$0xff]   ;;  %v11452_v30 = vld [vmem:[%s15120_s1 + $0x1f08] ss:$16 sps:$4 sm:$0xff]  }
 0x3ac   :  { %7334 = vmatprep.subr.bf16.mxu0 %v11373_v31  ;;  %8182 = vmatprep.subr.bf16.mxu1 %v11376_v32  ;;  %v11457_v31 = vld [vmem:[%s15120_s1 + $0x1f24] ss:$16 sps:$4 sm:$0xff]   ;;  %v11460_v32 = vld [vmem:[%s15120_s1 + $0x1f2c] ss:$16 sps:$4 sm:$0xff]  }
 0x3af   :  { %7335 = vmatpush1.bf16.msra.mxu0 %v11371_v34  ;;  %8183 = vmatpush1.bf16.msra.mxu1 %v11374_v36  ;;  %v11455_v34 = vld [vmem:[%s15120_s1 + $0x1f20] ss:$16 sps:$4 sm:$0xff]   ;;  %v11458_v36 = vld [vmem:[%s15120_s1 + $0x1f28] ss:$16 sps:$4 sm:$0xff]  }
 0x3b0   :  { %7336 = vmatprep.subr.bf16.mxu0 %v11379_v33  ;;  %8184 = vmatprep.subr.bf16.mxu1 %v11382_v35  ;;  %v11463_v33 = vld [vmem:[%s15120_s1 + $0x1f44] ss:$16 sps:$4 sm:$0xff]   ;;  %v11466_v35 = vld [vmem:[%s15120_s1 + $0x1f4c] ss:$16 sps:$4 sm:$0xff]  }
 0x3b3   :  { %7337 = vmatpush1.bf16.msra.mxu0 %v11377_v37  ;;  %8185 = vmatpush1.bf16.msra.mxu1 %v11380_v38  ;;  %v11461_v37 = vld [vmem:[%s15120_s1 + $0x1f40] ss:$16 sps:$4 sm:$0xff]   ;;  %v11464_v38 = vld [vmem:[%s15120_s1 + $0x1f48] ss:$16 sps:$4 sm:$0xff]  }
 0x3b4   :  { %7338 = vmatprep.subr.bf16.mxu0 %v11385_v39  ;;  %8186 = vmatprep.subr.bf16.mxu1 %v11388_v40  ;;  %v11469_v39 = vld [vmem:[%s15120_s1 + $0x1f64] ss:$16 sps:$4 sm:$0xff]   ;;  %v11472_v40 = vld [vmem:[%s15120_s1 + $0x1f6c] ss:$16 sps:$4 sm:$0xff]  }
 0x3b7   :  { %7339 = vmatpush1.bf16.msra.mxu0 %v11383_v42  ;;  %8187 = vmatpush1.bf16.msra.mxu1 %v11386_v44  ;;  %v11467_v42 = vld [vmem:[%s15120_s1 + $0x1f60] ss:$16 sps:$4 sm:$0xff]   ;;  %v11470_v44 = vld [vmem:[%s15120_s1 + $0x1f68] ss:$16 sps:$4 sm:$0xff]  }
 0x3b8   :  { %7340 = vmatprep.subr.bf16.mxu0 %v11391_v41  ;;  %8188 = vmatprep.subr.bf16.mxu1 %v11394_v43  ;;  %v11475_v41 = vld [vmem:[%s15120_s1 + $0x1f84] ss:$16 sps:$4 sm:$0xff]   ;;  %v11478_v43 = vld [vmem:[%s15120_s1 + $0x1f8c] ss:$16 sps:$4 sm:$0xff]  }
 0x3bb   :  { %7341 = vmatpush1.bf16.msra.mxu0 %v11389_v45  ;;  %8189 = vmatpush1.bf16.msra.mxu1 %v11392_v46  ;;  %v11473_v45 = vld [vmem:[%s15120_s1 + $0x1f80] ss:$16 sps:$4 sm:$0xff]   ;;  %v11476_v46 = vld [vmem:[%s15120_s1 + $0x1f88] ss:$16 sps:$4 sm:$0xff]  }
 0x3bc   :  { %7342 = vmatprep.subr.bf16.mxu0 %v11397_v47  ;;  %8190 = vmatprep.subr.bf16.mxu1 %v11400_v48  ;;  %v11481_v47 = vld [vmem:[%s15120_s1 + $0x1fa4] ss:$16 sps:$4 sm:$0xff]   ;;  %v11484_v48 = vld [vmem:[%s15120_s1 + $0x1fac] ss:$16 sps:$4 sm:$0xff]  }
 0x3bf   :  { %7343 = vmatpush1.bf16.msra.mxu0 %v11395_v51  ;;  %8191 = vmatpush1.bf16.msra.mxu1 %v11398_v52  ;;  %v11479_v51 = vld [vmem:[%s15120_s1 + $0x1fa0] ss:$16 sps:$4 sm:$0xff]   ;;  %v11482_v52 = vld [vmem:[%s15120_s1 + $0x1fa8] ss:$16 sps:$4 sm:$0xff]  }
 0x3c0   :  { %7365 = vmatprep.subr.bf16.mxu0 %v11403_v49  ;;  %8213 = vmatprep.subr.bf16.mxu1 %v11406_v50  ;;  %v11487_v49 = vld [vmem:[%s15120_s1 + $0x1fc4] ss:$16 sps:$4 sm:$0xff]   ;;  %v11490_v50 = vld [vmem:[%s15120_s1 + $0x1fcc] ss:$16 sps:$4 sm:$0xff]  }
 0x3c2   :  { %7345 = vmatmul.mubr.bf16.vlgmr.msra.gmra.mrb[0].mxu0 %v8628_v53  ;;  %8193 = vmatmul.mubr.bf16.vlgmr.msra.gmra.mrb[0].mxu1 %v8628_v53  ;;  %v11485_v53 = vld [vmem:[%s15120_s1 + $0x1fc0] ss:$16 sps:$4 sm:$0xff]  }
 0x3c3   :  { %7366 = vmatpush1.bf16.msra.mxu0 %v11401_v56  ;;  %8214 = vmatpush1.bf16.msra.mxu1 %v11404_v59  ;;  %v11496_v56 = vld [vmem:[%s15120_s1 + $0x1fec] ss:$16 sps:$4 sm:$0xff]   ;;  %v11491_v59 = vld [vmem:[%s15120_s1 + $0x1fe0] ss:$16 sps:$4 sm:$0xff]  }
 0x3c4   :  { %7367 = vmatprep.subr.bf16.mxu0 %v11409_v60  ;;  %8215 = vmatprep.subr.bf16.mxu1 %v11412_v57  ;;  %v11494_v60 = vld [vmem:[%s15120_s1 + $0x1fe8] ss:$16 sps:$4 sm:$0xff]  }
 0x3c5   :  { %7354 = vmatprep.mubr.bf16.mxu0 %v8661_v58  ;;  %8202 = vmatprep.mubr.bf16.mxu1 %v8661_v58  ;;  %v67_v57 = vld [vmem:[%s15121_s0 + $0x178] sm:$0xff] }
 0x3c6   :  { %v83_v58 = vld [vmem:[%s15121_s0 + $0x1f8] sm:$0xff] }
 0x3c7   :  { %7368 = vmatpush1.bf16.msra.mxu0 %v11407_v61  ;;  %8216 = vmatpush1.bf16.msra.mxu1 %v11410_v62  ;;  %v8630_v61 = vcombine.low %v14741_v4, %v14746_v1  ;;  %v8663_v62 = vcombine.high %v67_v57, %v83_v58  ;;  %v1108_v4 = vld [vmem:[%s15122_s2] sm:$0xf] }
 0x3c8   :  { %7369 = vmatprep.subr.bf16.mxu0 %v11415_v63  ;;  %8217 = vmatprep.subr.bf16.mxu1 %v11418_v0  ;;  %v8662_v63 = vcombine.low %v67_v57, %v83_v58  ;;  %v1110_v0 = vlaneseq }
 0x3ca   :  { %7355 = vmatmul.mubr.bf16.gmra.mrb[4].mxu0 %v8660_v3  ;;  %8203 = vmatmul.mubr.bf16.gmra.mrb[4].mxu1 %v8660_v3  ;;  %v14920_v3 = vshrl.u32 %v1110_v0, 7 }
 0x3cb   :  { %7370 = vmatpush1.bf16.msra.mxu0 %v11413_v2  ;;  %8218 = vmatpush1.bf16.msra.mxu1 %v11416_v5 }
 0x3cc   :  { %7371 = vmatprep.subr.bf16.mxu0 %v11421_v6  ;;  %8219 = vmatprep.subr.bf16.mxu1 %v11424_v7  ;;  %v14923_v2 = vsub.s32 0, %v14920_v3  ;;  %v14926_v5 = vsub.s32 2, %v14920_v3  ;;  %v14932_v1 = vsub.s32 1, %v14920_v3  ;;  %v14935_v6 = vsub.s32 3, %v14920_v3 }
 0x3cd   :  { %7397 = vmatprep.mubr.bf16.mxu0 %v8631_v8  ;;  %8245 = vmatprep.mubr.bf16.mxu1 %v8631_v8 }
 0x3ce   :  { %v1113_v7 = vrot.slane %v1108_v4, %v14923_v2  ;;  %v1121_v8 = vrot.slane %v1108_v4, %v14926_v5 }
 0x3cf   :  { %7372 = vmatpush1.bf16.msra.mxu0 %v11419_v11  ;;  %8220 = vmatpush1.bf16.msra.mxu1 %v11422_v12 }
 0x3d0   :  { %7373 = vmatprep.subr.bf16.mxu0 %v11427_v9  ;;  %8221 = vmatprep.subr.bf16.mxu1 %v11430_v10  ;;  %v1117_v9 = vrot.slane %v1108_v4, %v14932_v1  ;;  %v1125_v10 = vrot.slane %v1108_v4, %v14935_v6 }
 0x3d3   :  { %7374 = vmatpush1.bf16.msra.mxu0 %v11425_v13  ;;  %8222 = vmatpush1.bf16.msra.mxu1 %v11428_v14 }
 0x3d4   :  { %7375 = vmatprep.subr.bf16.mxu0 %v11433_v15  ;;  %8223 = vmatprep.subr.bf16.mxu1 %v11436_v16 }
 0x3d7   :  { %7376 = vmatpush1.bf16.msra.mxu0 %v11431_v19  ;;  %8224 = vmatpush1.bf16.msra.mxu1 %v11434_v17 }
 0x3d8   :  { %7377 = vmatprep.subr.bf16.mxu0 %v11439_v18  ;;  %8225 = vmatprep.subr.bf16.mxu1 %v11442_v20 }
 0x3db   :  { %7378 = vmatpush1.bf16.msra.mxu0 %v11437_v21  ;;  %8226 = vmatpush1.bf16.msra.mxu1 %v11440_v22 }
 0x3dc   :  { %7379 = vmatprep.subr.bf16.mxu0 %v11445_v23  ;;  %8227 = vmatprep.subr.bf16.mxu1 %v11448_v24 }
 0x3df   :  { %7380 = vmatpush1.bf16.msra.mxu0 %v11443_v26  ;;  %8228 = vmatpush1.bf16.msra.mxu1 %v11446_v25 }
 0x3e0   :  { %7381 = vmatprep.subr.bf16.mxu0 %v11451_v27  ;;  %8229 = vmatprep.subr.bf16.mxu1 %v11454_v28 }
 0x3e3   :  { %7382 = vmatpush1.bf16.msra.mxu0 %v11449_v29  ;;  %8230 = vmatpush1.bf16.msra.mxu1 %v11452_v30 }
 0x3e4   :  { %7383 = vmatprep.subr.bf16.mxu0 %v11457_v31  ;;  %8231 = vmatprep.subr.bf16.mxu1 %v11460_v32 }
 0x3e7   :  { %7384 = vmatpush1.bf16.msra.mxu0 %v11455_v34  ;;  %8232 = vmatpush1.bf16.msra.mxu1 %v11458_v36 }
 0x3e8   :  { %7385 = vmatprep.subr.bf16.mxu0 %v11463_v33  ;;  %8233 = vmatprep.subr.bf16.mxu1 %v11466_v35 }
 0x3eb   :  { %7386 = vmatpush1.bf16.msra.mxu0 %v11461_v37  ;;  %8234 = vmatpush1.bf16.msra.mxu1 %v11464_v38 }
 0x3ec   :  { %7387 = vmatprep.subr.bf16.mxu0 %v11469_v39  ;;  %8235 = vmatprep.subr.bf16.mxu1 %v11472_v40 }
 0x3ef   :  { %7388 = vmatpush1.bf16.msra.mxu0 %v11467_v42  ;;  %8236 = vmatpush1.bf16.msra.mxu1 %v11470_v44 }
 0x3f0   :  { %7389 = vmatprep.subr.bf16.mxu0 %v11475_v41  ;;  %8237 = vmatprep.subr.bf16.mxu1 %v11478_v43 }
 0x3f3   :  { %7390 = vmatpush1.bf16.msra.mxu0 %v11473_v45  ;;  %8238 = vmatpush1.bf16.msra.mxu1 %v11476_v46 }
 0x3f4   :  { %7391 = vmatprep.subr.bf16.mxu0 %v11481_v47  ;;  %8239 = vmatprep.subr.bf16.mxu1 %v11484_v48 }
 0x3f7   :  { %7392 = vmatpush1.bf16.msra.mxu0 %v11479_v51  ;;  %8240 = vmatpush1.bf16.msra.mxu1 %v11482_v52 }
 0x3f8   :  { %7393 = vmatprep.subr.bf16.mxu0 %v11487_v49  ;;  %8241 = vmatprep.subr.bf16.mxu1 %v11490_v50 }
 0x3fb   :  { %7394 = vmatpush1.bf16.msra.mxu0 %v11485_v53  ;;  %8242 = vmatpush1.bf16.msra.mxu1 %v11488_v54 }
 0x3fc   :  { %7395 = vmatprep.subr.bf16.mxu0 %v11493_v55  ;;  %8243 = vmatprep.subr.bf16.mxu1 %v11496_v56 }
 0x3ff   :  { %7396 = vmatpush1.bf16.msra.mxu0 %v11491_v59  ;;  %8244 = vmatpush1.bf16.msra.mxu1 %v11494_v60 }
 0x402   :  { %7398 = vmatmul.mubr.bf16.vlgmr.msra.gmra.mrb[0].mxu0 %v8630_v61  ;;  %8246 = vmatmul.mubr.bf16.vlgmr.msra.gmra.mrb[0].mxu1 %v8630_v61 }
 0x403   :  { %7407 = vmatprep.mubr.bf16.mxu0 %v8663_v62  ;;  %8255 = vmatprep.mubr.bf16.mxu1 %v8663_v62 }
 0x40a   :  { %7408 = vmatmul.mubr.bf16.gmra.mrb[4].mxu0 %v8662_v63  ;;  %8256 = vmatmul.mubr.bf16.gmra.mrb[4].mxu1 %v8662_v63 }
 0x4d5   :  { %v7399_v11 = vpop.f32.mrb[0].mxu0  ;;  %v8247_v12 = vpop.f32.mrb[0].mxu1 }
 0x4d6   :  { %v7401_v13 = vpop.f32.mrb[1].mxu0  ;;  %v8249_v14 = vpop.f32.mrb[1].mxu1  ;;  %v14941_v19 = vadd.f32 %v7399_v11, %v1113_v7  ;;  %v14943_v17 = vadd.f32 %v8247_v12, %v1121_v8 }
 0x4d7   :  { %v7403_v15 = vpop.f32.mrb[2].mxu0  ;;  %v8251_v16 = vpop.f32.mrb[2].mxu1  ;;  %v14949_v23 = vadd.f32 %v7401_v13, %v1117_v9  ;;  %v14951_v24 = vadd.f32 %v8249_v14, %v1125_v10 }
 0x4d8   :  { %v14945_v18 = vadd.f32 %v7403_v15, %v1113_v7  ;;  %v14947_v20 = vadd.f32 %v8251_v16, %v1121_v8  ;;  %v7405_v21 = vpop.f32.mrb[3].mxu0  ;;  %v8253_v22 = vpop.f32.mrb[3].mxu1 }
 0x4d9   :  { %v14953_v26 = vadd.f32 %v7405_v21, %v1117_v9  ;;  %v14955_v25 = vadd.f32 %v8253_v22, %v1125_v10 }
 0x4da   :  { %v8266_v27 = vadd.f32 %v14945_v18, %v14941_v19  ;;  %v8284_v28 = vadd.f32 %v14947_v20, %v14943_v17 }
 0x4db   :  { %v8275_v29 = vadd.f32 %v14953_v26, %v14949_v23  ;;  %v8293_v30 = vadd.f32 %v14955_v25, %v14951_v24 }
 0x4dd   :  { %v7409_v31 = vpop.f32.mrb[4].mxu0  ;;  %v8257_v32 = vpop.f32.mrb[4].mxu1 }
 0x4de   :  { %v9708_v34 = vadd.f32 %v7409_v31, %v1113_v7  ;;  %v9716_v36 = vadd.f32 %v8257_v32, %v1121_v8  ;;  %v7411_v33 = vpop.f32.mrb[5].mxu0  ;;  %v8259_v35 = vpop.f32.mrb[5].mxu1 }
 0x4df   :  { %v14965_v37 = vadd.f32 %v7411_v33, %v1117_v9  ;;  %v14967_v38 = vadd.f32 %v8259_v35, %v1125_v10  ;;  %v7413_v39 = vpop.f32.mrb[6].mxu0  ;;  %v8261_v40 = vpop.f32.mrb[6].mxu1 }
 0x4e0   :  { %v8267_v42 = vadd.f32 %v9708_v34, %v8266_v27  ;;  %v8285_v44 = vadd.f32 %v9716_v36, %v8284_v28  ;;  %v9710_v41 = vadd.f32 %v7413_v39, %v1113_v7  ;;  %v9718_v43 = vadd.f32 %v8261_v40, %v1121_v8  ;;  %v7415_v45 = vpop.f32.mrb[7].mxu0  ;;  %v8263_v46 = vpop.f32.mrb[7].mxu1 }
 0x4e1   :  { %v8276_v47 = vadd.f32 %v14965_v37, %v8275_v29  ;;  %v8294_v48 = vadd.f32 %v14967_v38, %v8293_v30  ;;  %v9711_v51 = vadd.f32 %v7415_v45, %v1117_v9  ;;  %v14971_v52 = vadd.f32 %v8263_v46, %v1125_v10 }
 0x4e2   :  { %v8268_v49 = vadd.f32 %v9710_v41, %v8267_v42  ;;  %v8286_v50 = vadd.f32 %v9718_v43, %v8285_v44 }
 0x4e3   :  { %v8277_v53 = vadd.f32 %v9711_v51, %v8276_v47  ;;  %v8295_v54 = vadd.f32 %v14971_v52, %v8294_v48 }
 0x4e4   :  { %v8269_v55 = vrot.slane %v8268_v49, 4  ;;  %v8287_v56 = vrot.slane %v8286_v50, 4 }
 0x4e5   :  { %v8278_v59 = vrot.slane %v8277_v53, 4  ;;  %v8296_v60 = vrot.slane %v8295_v54, 4 }
 0x4e6   :  { %v8270_v57 = vadd.f32 %v8269_v55, %v8268_v49  ;;  %v8288_v58 = vadd.f32 %v8287_v56, %v8286_v50 }
 0x4e7   :  { %v8279_v61 = vadd.f32 %v8278_v59, %v8277_v53  ;;  %v8297_v62 = vadd.f32 %v8296_v60, %v8295_v54 }
 0x4e8   :  { %v8271_v63 = vrot.slane %v8270_v57, 2  ;;  %v8289_v0 = vrot.slane %v8288_v58, 2 }
 0x4e9   :  { %v8280_v4 = vrot.slane %v8279_v61, 2  ;;  %v8298_v7 = vrot.slane %v8297_v62, 2 }
 0x4ea   :  { %v8272_v8 = vadd.f32 %v8271_v63, %v8270_v57  ;;  %v8290_v11 = vadd.f32 %v8289_v0, %v8288_v58 }
 0x4eb   :  { %v8281_v12 = vadd.f32 %v8280_v4, %v8279_v61  ;;  %v8299_v9 = vadd.f32 %v8298_v7, %v8297_v62 }
 0x4ec   :  { %v8273_v10 = vrot.slane %v8272_v8, 1  ;;  %v8291_v13 = vrot.slane %v8290_v11, 1 }
 0x4ed   :  { %v8282_v14 = vrot.slane %v8281_v12, 1  ;;  %v8300_v15 = vrot.slane %v8299_v9, 1 }
 0x4ee   :  { %v8274_v16 = vadd.f32 %v8273_v10, %v8272_v8  ;;  %v8292_v21 = vadd.f32 %v8291_v13, %v8290_v11 }
 0x4ef   :  { %v8283_v22 = vadd.f32 %v8282_v14, %v8281_v12  ;;  %v8301_v27 = vadd.f32 %v8300_v15, %v8299_v9 }
 0x4f0   :  { %v8302_v28 = vmul.f32 0.03125, %v8274_v16  ;;  %v8304_v29 = vmul.f32 0.03125, %v8292_v21 }
 0x4f1   :  { %v8303_v30 = vmul.f32 0.03125, %v8283_v22  ;;  %v8305_v31 = vmul.f32 0.03125, %v8301_v27 }
 0x4f2   :  { %v14975_v32 = vsub.f32 %v14941_v19, %v8302_v28  ;;  %v14978_v33 = vsub.f32 %v14945_v18, %v8302_v28  ;;  %v14980_v35 = vsub.f32 %v9708_v34, %v8302_v28  ;;  %v14982_v39 = vsub.f32 %v9710_v41, %v8302_v28 }
 0x4f3   :  { %v14985_v40 = vsub.f32 %v14943_v17, %v8304_v29  ;;  %v14988_v42 = vsub.f32 %v14947_v20, %v8304_v29  ;;  %v14990_v44 = vsub.f32 %v9716_v36, %v8304_v29  ;;  %v14992_v45 = vsub.f32 %v9718_v43, %v8304_v29 }
 0x4f4   :  { %v8322_v19 = vmul.f32 %v14975_v32, %v14975_v32  ;;  %v8326_v18 = vmul.f32 %v14978_v33, %v14978_v33  ;;  %v8330_v34 = vmul.f32 %v14980_v35, %v14980_v35  ;;  %v8334_v17 = vmul.f32 %v14982_v39, %v14982_v39 }
 0x4f5   :  { %v8324_v20 = vmul.f32 %v14985_v40, %v14985_v40  ;;  %v8328_v36 = vmul.f32 %v14988_v42, %v14988_v42  ;;  %v8332_v41 = vmul.f32 %v14990_v44, %v14990_v44  ;;  %v15009_v46 = vsub.f32 %v14949_v23, %v8303_v30 }
 0x4f6   :  { %v8338_v43 = vadd.f32 %v8326_v18, %v8322_v19  ;;  %v15012_v47 = vsub.f32 %v14953_v26, %v8303_v30  ;;  %v15015_v48 = vsub.f32 %v14965_v37, %v8303_v30  ;;  %v15017_v50 = vsub.f32 %v9711_v51, %v8303_v30 }
 0x4f7   :  { %v8356_v49 = vadd.f32 %v8328_v36, %v8324_v20  ;;  %v15020_v53 = vsub.f32 %v14951_v24, %v8305_v31  ;;  %v15023_v54 = vsub.f32 %v14955_v25, %v8305_v31  ;;  %v8336_v23 = vmul.f32 %v14992_v45, %v14992_v45 }
 0x4f8   :  { %v8339_v55 = vadd.f32 %v8338_v43, %v8330_v34  ;;  %v8323_v26 = vmul.f32 %v15009_v46, %v15009_v46  ;;  %v8327_v37 = vmul.f32 %v15012_v47, %v15012_v47  ;;  %v8331_v51 = vmul.f32 %v15015_v48, %v15015_v48 }
 0x4f9   :  { %v8357_v56 = vadd.f32 %v8356_v49, %v8332_v41  ;;  %v15034_v24 = vsub.f32 %v14967_v38, %v8305_v31  ;;  %v15037_v25 = vsub.f32 %v14971_v52, %v8305_v31  ;;  %v8325_v57 = vmul.f32 %v15020_v53, %v15020_v53 }
 0x4fa   :  { %v8340_v59 = vadd.f32 %v8339_v55, %v8334_v17  ;;  %v8347_v60 = vadd.f32 %v8327_v37, %v8323_v26  ;;  %v8329_v58 = vmul.f32 %v15023_v54, %v15023_v54  ;;  %v8335_v62 = vmul.f32 %v15017_v50, %v15017_v50 }
 0x4fb   :  { %v8358_v61 = vadd.f32 %v8357_v56, %v8336_v23  ;;  %v8333_v38 = vmul.f32 %v15034_v24, %v15034_v24  ;;  %v8337_v11 = vmul.f32 %v15037_v25, %v15037_v25 }
 0x4fc   :  { %v8341_v63 = vrot.slane %v8340_v59, 4  ;;  %v8348_v0 = vadd.f32 %v8347_v60, %v8331_v51  ;;  %v8365_v4 = vadd.f32 %v8329_v58, %v8325_v57  ;;  %v11505_v57 = vmov 1966171168  }
 0x4fd   :  { %v8359_v52 = vrot.slane %v8358_v61, 4  ;;  %v8394_v58 = vunpack.c.l.s4 %v11505_v57 }
 0x4fe   :  { %v8342_v7 = vadd.f32 %v8341_v63, %v8340_v59  ;;  %v8349_v8 = vadd.f32 %v8348_v0, %v8335_v62  ;;  %v8366_v12 = vadd.f32 %v8365_v4, %v8333_v38 }
 0x4ff   :  { %v8360_v9 = vadd.f32 %v8359_v52, %v8358_v61  ;;  %v8395_v61 = vunpack.c.0.s8 %v8394_v58 }
 0x500   :  { %v8343_v10 = vrot.slane %v8342_v7, 2  ;;  %v8350_v13 = vrot.slane %v8349_v8, 4  ;;  %v8367_v14 = vadd.f32 %v8366_v12, %v8337_v11 }
 0x501   :  { %v8361_v15 = vrot.slane %v8360_v9, 2  ;;  %v8398_v0 = vsub.s32 %v8395_v61, %v14920_v3 }
 0x502   :  { %v8344_v16 = vadd.f32 %v8343_v10, %v8342_v7  ;;  %v8351_v21 = vadd.f32 %v8350_v13, %v8349_v8  ;;  %v8368_v22 = vrot.slane %v8367_v14, 4  ;;  %v8454_v13 = vld [vmem:[%s15124_s4] sm:$0xf] }
 0x503   :  { %v8362_v27 = vadd.f32 %v8361_v15, %v8360_v9  ;;  %v8386_v9 = vld [vmem:[%s15123_s3] sm:$0xf] }
 0x504   :  { %v8345_v28 = vrot.slane %v8344_v16, 1  ;;  %v8352_v29 = vrot.slane %v8351_v21, 2  ;;  %v8369_v30 = vadd.f32 %v8368_v22, %v8367_v14  ;;  %v8459_v22 = vrot.slane %v8454_v13, %v14923_v2 }
 0x505   :  { %v8363_v31 = vrot.slane %v8362_v27, 1 }
 0x506   :  { %v8346_v19 = vadd.f32 %v8345_v28, %v8344_v16  ;;  %v8353_v18 = vadd.f32 %v8352_v29, %v8351_v21  ;;  %v8370_v34 = vrot.slane %v8369_v30, 2  ;;  %v8463_v28 = vrot.slane %v8454_v13, %v14932_v1 }
 0x507   :  { %v8364_v17 = vadd.f32 %v8363_v31, %v8362_v27  ;;  %v8467_v27 = vrot.slane %v8454_v13, %v14926_v5  ;;  %v8471_v29 = vrot.slane %v8454_v13, %v14935_v6 }
 0x508   :  { %v8374_v20 = vmul.f32 0.03125, %v8346_v19  ;;  %v8354_v36 = vrot.slane %v8353_v18, 1  ;;  %v8371_v41 = vadd.f32 %v8370_v34, %v8369_v30 }
 0x509   :  { %v8376_v43 = vmul.f32 0.03125, %v8364_v17 }
 0x50a   :  { %v8378_v49 = vadd.f32 1e-05, %v8374_v20  ;;  %v8355_v55 = vadd.f32 %v8354_v36, %v8353_v18  ;;  %v8372_v23 = vrot.slane %v8371_v41, 1 }
 0x50b   :  { %v8380_v26 = vadd.f32 1e-05, %v8376_v43 }
 0x50c   :  { %v8375_v37 = vmul.f32 0.03125, %v8355_v55  ;;  %v8373_v56 = vadd.f32 %v8372_v23, %v8371_v41  ;;  %11497 = vrsqrt.f32 %v8378_v49 }
 0x50d   :  { %11499 = vrsqrt.f32 %v8380_v26 }
 0x50e   :  { %v8379_v51 = vadd.f32 1e-05, %v8375_v37  ;;  %v8377_v59 = vmul.f32 0.03125, %v8373_v56 }
 0x510   :  { %11501 = vrsqrt.f32 %v8379_v51  ;;  %v8381_v60 = vadd.f32 1e-05, %v8377_v59 }
 0x512   :  { %11503 = vrsqrt.f32 %v8381_v60 }
 0x516   :  { %v11498_v62 = vpop.eup %11497 }
 0x517   :  { %v11500_v63 = vpop.eup %11499 }
 0x51a   :  { %v11502_v38 = vpop.eup %11501 }
 0x51b   :  { %v8391_v4 = vcombine.low %v11498_v62, %v11502_v38 }
 0x51c   :  { %v11504_v52 = vpop.eup %11503 }
 0x51d   :  { %v8392_v7 = vcombine.low %v11500_v63, %v11504_v52  ;;  %v8399_v8 = vrot.slane %v8391_v4, %v8398_v0 }
 0x51f   :  { %v8406_v11 = vrot.slane %v8392_v7, %v8398_v0 }
 0x521   :  { %v8407_v12 = vcombine.low %v8399_v8, %v8406_v11 }
 0x523   :  { %v8414_v10 = vrot.slane %v8407_v12, %v8398_v0 }
 0x525   :  { %v8416_v14 = vmul.f32 %v8414_v10, %v8386_v9 }
 0x527   :  { %v8421_v15 = vrot.slane %v8416_v14, %v14923_v2  ;;  %v8425_v3 = vrot.slane %v8416_v14, %v14932_v1  ;;  %v8429_v16 = vrot.slane %v8416_v14, %v14926_v5  ;;  %v8433_v21 = vrot.slane %v8416_v14, %v14935_v6 }
 0x529   :  { %v8438_v30 = vmul.f32 %v8421_v15, %v14975_v32  ;;  %v8439_v31 = vmul.f32 %v8425_v3, %v15009_v46  ;;  %v8440_v19 = vmul.f32 %v8429_v16, %v14985_v40  ;;  %v8441_v18 = vmul.f32 %v8433_v21, %v15020_v53 }
 0x52a   :  { %v8442_v34 = vmul.f32 %v8421_v15, %v14978_v33  ;;  %v8443_v17 = vmul.f32 %v8425_v3, %v15012_v47  ;;  %v8444_v2 = vmul.f32 %v8429_v16, %v14988_v42  ;;  %v8445_v5 = vmul.f32 %v8433_v21, %v15023_v54 }
 0x52b   :  { %v8446_v1 = vmul.f32 %v8421_v15, %v14980_v35  ;;  %v8447_v6 = vmul.f32 %v8425_v3, %v15015_v48  ;;  %v8448_v32 = vmul.f32 %v8429_v16, %v14990_v44  ;;  %v8449_v46 = vmul.f32 %v8433_v21, %v15034_v24 }
 0x52c   :  { %v8450_v40 = vmul.f32 %v8421_v15, %v14982_v39  ;;  %v8451_v53 = vmul.f32 %v8425_v3, %v15017_v50  ;;  %v8452_v33 = vmul.f32 %v8429_v16, %v14992_v45  ;;  %v8453_v47 = vmul.f32 %v8433_v21, %v15037_v25 }
 0x52d   :  { %v8476_v20 = vadd.f32 %v8459_v22, %v8438_v30  ;;  %v8477_v42 = vadd.f32 %v8463_v28, %v8439_v31  ;;  %v8478_v36 = vadd.f32 %v8467_v27, %v8440_v19  ;;  %v8479_v54 = vadd.f32 %v8471_v29, %v8441_v18 }
 0x52e   :  { %v8480_v41 = vadd.f32 %v8459_v22, %v8442_v34  ;;  %v8481_v35 = vadd.f32 %v8463_v28, %v8443_v17  ;;  %v8482_v43 = vadd.f32 %v8467_v27, %v8444_v2  ;;  %v8483_v48 = vadd.f32 %v8471_v29, %v8445_v5 }
 0x52f   :  { %v8484_v49 = vadd.f32 %v8459_v22, %v8446_v1  ;;  %v8485_v44 = vadd.f32 %v8463_v28, %v8447_v6  ;;  %v8486_v55 = vadd.f32 %v8467_v27, %v8448_v32  ;;  %v8487_v24 = vadd.f32 %v8471_v29, %v8449_v46 }
 0x530   :  { %v8488_v23 = vadd.f32 %v8459_v22, %v8450_v40  ;;  %v8489_v39 = vadd.f32 %v8463_v28, %v8451_v53  ;;  %v8490_v26 = vadd.f32 %v8467_v27, %v8452_v33  ;;  %v8491_v50 = vadd.f32 %v8471_v29, %v8453_v47 }
 0x531   :  { %vm8492_vm0 = vcmp.gt.f32.partialorder %v8476_v20, 0.0  ;;  %vm8493_vm1 = vcmp.gt.f32.partialorder %v8477_v42, 0.0  ;;  %vm8494_vm2 = vcmp.gt.f32.partialorder %v8478_v36, 0.0  ;;  %vm8495_vm3 = vcmp.gt.f32.partialorder %v8479_v54, 0.0 }
 0x532   :  { %vm8496_vm4 = vcmp.gt.f32.partialorder %v8480_v41, 0.0  ;;  %vm8497_vm5 = vcmp.gt.f32.partialorder %v8481_v35, 0.0  ;;  %vm8498_vm6 = vcmp.gt.f32.partialorder %v8482_v43, 0.0  ;;  %vm8499_vm7 = vcmp.gt.f32.partialorder %v8483_v48, 0.0 }
 0x533   :  { %vm8500_vm8 = vcmp.gt.f32.partialorder %v8484_v49, 0.0  ;;  %vm8501_vm9 = vcmp.gt.f32.partialorder %v8485_v44, 0.0  ;;  %vm8502_vm10 = vcmp.gt.f32.partialorder %v8486_v55, 0.0  ;;  %vm8503_vm11 = vcmp.gt.f32.partialorder %v8487_v24, 0.0 }
 0x534   :  { %vm8504_vm12 = vcmp.gt.f32.partialorder %v8488_v23, 0.0  ;;  %vm8505_vm13 = vcmp.gt.f32.partialorder %v8489_v39, 0.0  ;;  %vm8506_vm14 = vcmp.gt.f32.partialorder %v8490_v26, 0.0  ;;  %vm8507_vm15 = vcmp.gt.f32.partialorder %v8491_v50, 0.0 }
 0x535   :  { %v8508_v45 = vmul.f32 0.2, %v8476_v20  ;;  %v8509_v25 = vmul.f32 0.2, %v8477_v42  ;;  %v8510_v37 = vmul.f32 0.2, %v8478_v36 }
 0x536   :  { %v8511_v56 = vmul.f32 0.2, %v8479_v54  ;;  %v8512_v51 = vmul.f32 0.2, %v8480_v41  ;;  %v8513_v59 = vmul.f32 0.2, %v8481_v35 }
 0x537   :  { %v8514_v60 = vmul.f32 0.2, %v8482_v43  ;;  %v8515_v57 = vmul.f32 0.2, %v8483_v48  ;;  %v8516_v58 = vmul.f32 0.2, %v8484_v49  ;;  %v8524_v61 = vsel %vm8492_vm0, %v8476_v20, %v8508_v45 }
 0x538   :  { %v8517_v62 = vmul.f32 0.2, %v8485_v44  ;;  %v8518_v63 = vmul.f32 0.2, %v8486_v55  ;;  %v8519_v0 = vmul.f32 0.2, %v8487_v24  ;;  %v8525_v38 = vsel %vm8493_vm1, %v8477_v42, %v8509_v25 }
 0x539   :  { %v8520_v4 = vmul.f32 0.2, %v8488_v23  ;;  %v8521_v52 = vmul.f32 0.2, %v8489_v39  ;;  %v8522_v7 = vmul.f32 0.2, %v8490_v26  ;;  %v8526_v8 = vsel %vm8494_vm2, %v8478_v36, %v8510_v37 }
 0x53a   :  { %v8523_v11 = vmul.f32 0.2, %v8491_v50  ;;  %v8527_v12 = vsel %vm8495_vm3, %v8479_v54, %v8511_v56  ;;  %v8528_v9 = vsel %vm8496_vm4, %v8480_v41, %v8512_v51  ;;  %v8529_v10 = vsel %vm8497_vm5, %v8481_v35, %v8513_v59 }
 0x53b   :  { %v8530_v13 = vsel %vm8498_vm6, %v8482_v43, %v8514_v60  ;;  %v8531_v14 = vsel %vm8499_vm7, %v8483_v48, %v8515_v57  ;;  %v8532_v15 = vsel %vm8500_vm8, %v8484_v49, %v8516_v58  ;;  %v8533_v3 = vsel %vm8501_vm9, %v8485_v44, %v8517_v62 }
 0x53c   :  { %v8534_v16 = vsel %vm8502_vm10, %v8486_v55, %v8518_v63  ;;  %v8535_v21 = vsel %vm8503_vm11, %v8487_v24, %v8519_v0  ;;  %v8536_v22 = vsel %vm8504_vm12, %v8488_v23, %v8520_v4  ;;  %v8537_v27 = vsel %vm8505_vm13, %v8489_v39, %v8521_v52 }
 0x53d   :  { %v8538_v28 = vsel %vm8506_vm14, %v8490_v26, %v8522_v7  ;;  %v8539_v29 = vsel %vm8507_vm15, %v8491_v50, %v8523_v11  ;;  %v9696_v30 = vpack.c.bf16 %v8525_v38, %v8524_v61  ;;  %v9697_v31 = vpack.c.bf16 %v8527_v12, %v8526_v8 }
 0x53e   :  { %v9698_v19 = vpack.c.bf16 %v8529_v10, %v8528_v9  ;;  %v9699_v18 = vpack.c.bf16 %v8531_v14, %v8530_v13  ;;  %v9700_v34 = vpack.c.bf16 %v8533_v3, %v8532_v15  ;;  %v9701_v17 = vpack.c.bf16 %v8535_v21, %v8534_v16 }
 0x53f   :  { %v9702_v2 = vpack.c.bf16 %v8537_v27, %v8536_v22  ;;  %v9703_v5 = vpack.c.bf16 %v8539_v29, %v8538_v28  ;;  %8588 = vst [vmem:[%s15125_s5] sm:$0xff] %v9696_v30  ;;  %8589 = vst [vmem:[%s15125_s5 + $0x8] sm:$0xff] %v9697_v31 }
 0x540   :  { %8590 = vst [vmem:[%s15125_s5 + $0x10] sm:$0xff] %v9698_v19  ;;  %8591 = vst [vmem:[%s15125_s5 + $0x18] sm:$0xff] %v9699_v18 }
 0x541   :  { %8592 = vst [vmem:[%s15125_s5 + $0x20] sm:$0xff] %v9700_v34  ;;  %8593 = vst [vmem:[%s15125_s5 + $0x28] sm:$0xff] %v9701_v17 }
 0x542   :  { %8594 = vst [vmem:[%s15125_s5 + $0x30] sm:$0xff] %v9702_v2  ;;  %8595 = vst [vmem:[%s15125_s5 + $0x38] sm:$0xff] %v9703_v5 }

</bundles_post_ra>
